<compile_context>
chip_gen: v5e
topology: v5e:2x2
jax: 0.10.0
libtpu: 0.0.40
codegen_flags: <defaults>
</compile_context>

<pallas_src>
import jax
import jax.numpy as jnp
from jax import lax
from jax.experimental import pallas as pl
from jax.experimental.pallas import tpu as pltpu


def _round_up(x, m):
    return ((x + m - 1) // m) * m


def _build_block_kernel(x_ref, s1_ref, b1_ref, s2_ref, b2_ref, w1_ref, w2_ref,
                        out_ref, pad_ref):
    """Fused bn1->relu->conv3x3->bn2->relu->conv3x3 + identity residual.

    x_ref:    (N, H, W, C)     VMEM
    s*/b*:    (1, C)           VMEM  (folded eval-mode BN scale / bias)
    w*_ref:   (9*C, C)         VMEM  (im2col-flattened HWIO weights)
    out_ref:  (N, H, W*C)      VMEM  (lane-dense output slab, W*C % 128 == 0)
    pad_ref:  (N, H+2, Wp, C)  VMEM scratch, Wp = round_up(W+2, 8)
    """
    N, H, W, C = x_ref.shape
    Cout = w1_ref.shape[1]
    M = N * H * W

    x = x_ref[...]                                            # (N, H, W, C)

    # ---- bn1 (eval-mode affine) + relu -------------------------------------
    a1 = jnp.maximum(x * s1_ref[...] + b1_ref[...], 0.0)

    # ---- zero the padded scratch once; the halo is never written afterwards -
    pad_ref[...] = jnp.zeros_like(pad_ref)

    def conv3x3(act, w_flat, cin):
        # Write activation into the interior of the zero-padded scratch, gather
        # the 9 taps as one im2col matrix and run a single MXU matmul (K=9*cin).
        pad_ref[:, 1:H + 1, 1:W + 1, :] = act
        patches = jnp.concatenate(
            [pad_ref[:, dy:dy + H, dx:dx + W, :]
             for dy in range(3) for dx in range(3)],
            axis=-1)                                          # (N, H, W, 9*cin)
        patches = patches.reshape(M, 9 * cin)
        out = jnp.dot(patches, w_flat,
                      preferred_element_type=jnp.float32)     # (M, Cout)
        return out.reshape(N, H, W, Cout)

    # ---- conv1 (3x3, stride 1, pad 1, no bias) ------------------------------
    out1 = conv3x3(a1, w1_ref[...], C)

    # ---- bn2 + relu ----------------------------------------------------------
    a2 = jnp.maximum(out1 * s2_ref[...] + b2_ref[...], 0.0)

    # ---- conv2 (reuses the same padded scratch; halo is still zero) ----------
    out2 = conv3x3(a2, w2_ref[...], Cout)

    # ---- identity residual + lane-dense store --------------------------------
    out_ref[...] = (out2 + x).reshape(N, H, W * Cout).astype(out_ref.dtype)


def build_block_forward(x_nchw, params, *, eps=1e-5):
    """Wrapper: NCHW in / NCHW out, like the PyTorch module."""
    (g1, be1, m1, v1, g2, be2, m2, v2, w1_oihw, w2_oihw) = params
    N, Cin, H, W = x_nchw.shape
    Cout = w1_oihw.shape[0]
    assert Cin == Cout, "stride=1 identity-residual configuration requires Cin == Cout"
    assert (W * Cout) % 128 == 0, "lane-dense output layout requires W*C % 128 == 0"

    # NCHW -> NHWC activations; OIHW -> HWIO -> (9*Cin, Cout) im2col weights.
    # im2col contraction index: k = (dy*3 + dx)*Cin + ci  (matches the kernel's concat order)
    x = jnp.transpose(x_nchw, (0, 2, 3, 1)).astype(jnp.float32)
    w1 = jnp.transpose(w1_oihw, (2, 3, 1, 0)).reshape(9 * Cin, Cout).astype(jnp.float32)
    w2 = jnp.transpose(w2_oihw, (2, 3, 1, 0)).reshape(9 * Cout, Cout).astype(jnp.float32)

    # Fold eval-mode BatchNorm into per-channel scale/bias.
    inv1 = g1 / jnp.sqrt(v1 + eps)
    inv2 = g2 / jnp.sqrt(v2 + eps)
    s1 = inv1.reshape(1, Cin).astype(jnp.float32)
    b1 = (be1 - m1 * inv1).reshape(1, Cin).astype(jnp.float32)
    s2 = inv2.reshape(1, Cout).astype(jnp.float32)
    b2 = (be2 - m2 * inv2).reshape(1, Cout).astype(jnp.float32)

    Wp = _round_up(W + 2, 8)  # sublane-aligned padded width

    out_flat = pl.pallas_call(
        _build_block_kernel,
        out_shape=jax.ShapeDtypeStruct((N, H, W * Cout), jnp.float32),
        grid_spec=pltpu.PrefetchScalarGridSpec(
            num_scalar_prefetch=0,
            grid=(1,),   # whole (tiny) problem in one step: per-step overhead amortized
            in_specs=[
                pl.BlockSpec((N, H, W, Cin), lambda i: (0, 0, 0, 0)),
                pl.BlockSpec((1, Cin), lambda i: (0, 0)),
                pl.BlockSpec((1, Cin), lambda i: (0, 0)),
                pl.BlockSpec((1, Cout), lambda i: (0, 0)),
                pl.BlockSpec((1, Cout), lambda i: (0, 0)),
                pl.BlockSpec((9 * Cin, Cout), lambda i: (0, 0)),
                pl.BlockSpec((9 * Cout, Cout), lambda i: (0, 0)),
            ],
            out_specs=pl.BlockSpec((N, H, W * Cout), lambda i: (0, 0, 0)),
            scratch_shapes=[
                pltpu.VMEM((N, H + 2, Wp, Cin), jnp.float32),  # shared padded buffer
            ],
        ),
        compiler_params=pltpu.CompilerParams(
            dimension_semantics=("arbitrary",)),
    )(x, s1, b1, s2, b2, w1, w2)

    out_nhwc = out_flat.reshape(N, H, W, Cout)
    return jnp.transpose(out_nhwc, (0, 3, 1, 2))  # back to NCHW


def ref_forward(x_nchw, params, eps=1e-5):
    """Pure-JAX reference (NCHW, same semantics as the PyTorch module in eval mode)."""
    g1, be1, m1, v1, g2, be2, m2, v2, w1, w2 = params

    def bn(x, g, b, m, v):
        inv = (g / jnp.sqrt(v + eps))[None, :, None, None]
        return (x - m[None, :, None, None]) * inv + b[None, :, None, None]

    out = jax.nn.relu(bn(x_nchw, g1, be1, m1, v1))
    out = lax.conv_general_dilated(out, w1, (1, 1), [(1, 1), (1, 1)],
                                   dimension_numbers=('NCHW', 'OIHW', 'NCHW'))
    out = jax.nn.relu(bn(out, g2, be2, m2, v2))
    out = lax.conv_general_dilated(out, w2, (1, 1), [(1, 1), (1, 1)],
                                   dimension_numbers=('NCHW', 'OIHW', 'NCHW'))
    return out + x_nchw


if __name__ == "__main__":
    N, C, H, W = 2, 32, 16, 16   # input_size = output_size = 32, stride = 1

    key = jax.random.PRNGKey(0)
    ks = jax.random.split(key, 11)

    x_nchw = jax.random.normal(ks[0], (N, C, H, W), jnp.float32)

    # Conv weights, PyTorch OIHW layout, no bias.
    w1 = jax.random.normal(ks[1], (C, C, 3, 3), jnp.float32) * 0.1
    w2 = jax.random.normal(ks[2], (C, C, 3, 3), jnp.float32) * 0.1

    # BatchNorm parameters + running stats (deterministic, nontrivial).
    g1 = jax.random.uniform(ks[3], (C,), jnp.float32, 0.5, 1.5)
    be1 = jax.random.normal(ks[4], (C,), jnp.float32) * 0.1
    m1 = jax.random.normal(ks[5], (C,), jnp.float32) * 0.1
    v1 = jax.random.uniform(ks[6], (C,), jnp.float32, 0.5, 1.5)
    g2 = jax.random.uniform(ks[7], (C,), jnp.float32, 0.5, 1.5)
    be2 = jax.random.normal(ks[8], (C,), jnp.float32) * 0.1
    m2 = jax.random.normal(ks[9], (C,), jnp.float32) * 0.1
    v2 = jax.random.uniform(ks[10], (C,), jnp.float32, 0.5, 1.5)

    params = (g1, be1, m1, v1, g2, be2, m2, v2, w1, w2)

    out = build_block_forward(x_nchw, params)
    out = jax.block_until_ready(out)

    ref = ref_forward(x_nchw, params)
    assert out.shape == ref.shape == (N, C, H, W)
    if not jnp.allclose(out, ref, atol=1e-3, rtol=1e-3):
        max_err = float(jnp.max(jnp.abs(out - ref)))
        raise AssertionError(f"Pallas kernel mismatch vs reference, max abs err = {max_err}")

    print("KERNEL_OK")
</pallas_src>

<mosaic_0001>
module attributes {stable_mosaic.version = 11 : i64} {
  func.func @_build_block_kernel(%arg0: i32, %arg1: memref<2x16x16x32xf32, #tpu.memory_space<vmem>>, %arg2: memref<1x32xf32, #tpu.memory_space<vmem>>, %arg3: memref<1x32xf32, #tpu.memory_space<vmem>>, %arg4: memref<1x32xf32, #tpu.memory_space<vmem>>, %arg5: memref<1x32xf32, #tpu.memory_space<vmem>>, %arg6: memref<288x32xf32, #tpu.memory_space<vmem>>, %arg7: memref<288x32xf32, #tpu.memory_space<vmem>>, %arg8: memref<2x16x512xf32, #tpu.memory_space<vmem>>, %arg9: memref<2x18x24x32xf32, #tpu.memory_space<vmem>>) attributes {dimension_semantics = [#tpu.dimension_semantics<arbitrary>], iteration_bounds = array<i64: 1>, scalar_prefetch = 0 : i64, scratch_operands = 1 : i64, tpu.core_type = #tpu.core_type<tc>, window_params = [{pipeline_mode = #tpu.pipeline_mode<synchronous>, transform_indices = @transform_0, window_bounds = array<i64: 2, 16, 16, 32>}, {pipeline_mode = #tpu.pipeline_mode<synchronous>, transform_indices = @transform_1, window_bounds = array<i64: 1, 32>}, {pipeline_mode = #tpu.pipeline_mode<synchronous>, transform_indices = @transform_2, window_bounds = array<i64: 1, 32>}, {pipeline_mode = #tpu.pipeline_mode<synchronous>, transform_indices = @transform_3, window_bounds = array<i64: 1, 32>}, {pipeline_mode = #tpu.pipeline_mode<synchronous>, transform_indices = @transform_4, window_bounds = array<i64: 1, 32>}, {pipeline_mode = #tpu.pipeline_mode<synchronous>, transform_indices = @transform_5, window_bounds = array<i64: 288, 32>}, {pipeline_mode = #tpu.pipeline_mode<synchronous>, transform_indices = @transform_6, window_bounds = array<i64: 288, 32>}, {pipeline_mode = #tpu.pipeline_mode<synchronous>, transform_indices = @transform_7, window_bounds = array<i64: 2, 16, 512>}]} {
    %c0 = arith.constant 0 : index
    %c0_0 = arith.constant 0 : index
    %c0_1 = arith.constant 0 : index
    %c0_2 = arith.constant 0 : index
    %0 = vector.load %arg1[%c0, %c0_0, %c0_1, %c0_2] : memref<2x16x16x32xf32, #tpu.memory_space<vmem>>, vector<2x16x16x32xf32>
    %c0_3 = arith.constant 0 : index
    %c0_4 = arith.constant 0 : index
    %1 = vector.load %arg2[%c0_3, %c0_4] : memref<1x32xf32, #tpu.memory_space<vmem>>, vector<1x32xf32>
    %2 = vector.shape_cast %1 : vector<1x32xf32> to vector<1x1x1x32xf32>
    %3 = vector.broadcast %2 : vector<1x1x1x32xf32> to vector<2x16x16x32xf32>
    %4 = arith.mulf %0, %3 : vector<2x16x16x32xf32>
    %c0_5 = arith.constant 0 : index
    %c0_6 = arith.constant 0 : index
    %5 = vector.load %arg3[%c0_5, %c0_6] : memref<1x32xf32, #tpu.memory_space<vmem>>, vector<1x32xf32>
    %6 = vector.shape_cast %5 : vector<1x32xf32> to vector<1x1x1x32xf32>
    %7 = vector.broadcast %6 : vector<1x1x1x32xf32> to vector<2x16x16x32xf32>
    %8 = arith.addf %4, %7 : vector<2x16x16x32xf32>
    %cst = arith.constant 0.000000e+00 : f32
    %9 = vector.broadcast %cst : f32 to vector<2x16x16x32xf32>
    %10 = arith.maximumf %8, %9 : vector<2x16x16x32xf32>
    %cst_7 = arith.constant 0.000000e+00 : f32
    %11 = vector.broadcast %cst_7 : f32 to vector<2x18x24x32xf32>
    %c0_8 = arith.constant 0 : index
    %c0_9 = arith.constant 0 : index
    %c0_10 = arith.constant 0 : index
    %c0_11 = arith.constant 0 : index
    %12 = vector.load %arg9[%c0_8, %c0_9, %c0_10, %c0_11] : memref<2x18x24x32xf32, #tpu.memory_space<vmem>>, vector<2x18x24x32xf32>
    tpu.vector_store %arg9[%c0_8, %c0_9, %c0_10, %c0_11], %11 {strides = array<i32>} : memref<2x18x24x32xf32, #tpu.memory_space<vmem>>, vector<2x18x24x32xf32>,
    %c0_12 = arith.constant 0 : index
    %c0_13 = arith.constant 0 : index
    %13 = vector.load %arg6[%c0_12, %c0_13] : memref<288x32xf32, #tpu.memory_space<vmem>>, vector<288x32xf32>
    %c0_14 = arith.constant 0 : index
    %c1 = arith.constant 1 : index
    %c1_15 = arith.constant 1 : index
    %c0_16 = arith.constant 0 : index
    %14 = vector.load %arg9[%c0_14, %c1, %c1_15, %c0_16] : memref<2x18x24x32xf32, #tpu.memory_space<vmem>>, vector<2x16x16x32xf32>
    tpu.vector_store %arg9[%c0_14, %c1, %c1_15, %c0_16], %10 {strides = array<i32>} : memref<2x18x24x32xf32, #tpu.memory_space<vmem>>, vector<2x16x16x32xf32>,
    %c0_17 = arith.constant 0 : index
    %c0_18 = arith.constant 0 : index
    %c0_19 = arith.constant 0 : index
    %c0_20 = arith.constant 0 : index
    %15 = vector.load %arg9[%c0_17, %c0_18, %c0_19, %c0_20] : memref<2x18x24x32xf32, #tpu.memory_space<vmem>>, vector<2x16x16x32xf32>
    %c0_21 = arith.constant 0 : index
    %c0_22 = arith.constant 0 : index
    %c1_23 = arith.constant 1 : index
    %c0_24 = arith.constant 0 : index
    %16 = vector.load %arg9[%c0_21, %c0_22, %c1_23, %c0_24] : memref<2x18x24x32xf32, #tpu.memory_space<vmem>>, vector<2x16x16x32xf32>
    %c0_25 = arith.constant 0 : index
    %c0_26 = arith.constant 0 : index
    %c2 = arith.constant 2 : index
    %c0_27 = arith.constant 0 : index
    %17 = vector.load %arg9[%c0_25, %c0_26, %c2, %c0_27] : memref<2x18x24x32xf32, #tpu.memory_space<vmem>>, vector<2x16x16x32xf32>
    %c0_28 = arith.constant 0 : index
    %c1_29 = arith.constant 1 : index
    %c0_30 = arith.constant 0 : index
    %c0_31 = arith.constant 0 : index
    %18 = vector.load %arg9[%c0_28, %c1_29, %c0_30, %c0_31] : memref<2x18x24x32xf32, #tpu.memory_space<vmem>>, vector<2x16x16x32xf32>
    %c0_32 = arith.constant 0 : index
    %c1_33 = arith.constant 1 : index
    %c1_34 = arith.constant 1 : index
    %c0_35 = arith.constant 0 : index
    %19 = vector.load %arg9[%c0_32, %c1_33, %c1_34, %c0_35] : memref<2x18x24x32xf32, #tpu.memory_space<vmem>>, vector<2x16x16x32xf32>
    %c0_36 = arith.constant 0 : index
    %c1_37 = arith.constant 1 : index
    %c2_38 = arith.constant 2 : index
    %c0_39 = arith.constant 0 : index
    %20 = vector.load %arg9[%c0_36, %c1_37, %c2_38, %c0_39] : memref<2x18x24x32xf32, #tpu.memory_space<vmem>>, vector<2x16x16x32xf32>
    %c0_40 = arith.constant 0 : index
    %c2_41 = arith.constant 2 : index
    %c0_42 = arith.constant 0 : index
    %c0_43 = arith.constant 0 : index
    %21 = vector.load %arg9[%c0_40, %c2_41, %c0_42, %c0_43] : memref<2x18x24x32xf32, #tpu.memory_space<vmem>>, vector<2x16x16x32xf32>
    %c0_44 = arith.constant 0 : index
    %c2_45 = arith.constant 2 : index
    %c1_46 = arith.constant 1 : index
    %c0_47 = arith.constant 0 : index
    %22 = vector.load %arg9[%c0_44, %c2_45, %c1_46, %c0_47] : memref<2x18x24x32xf32, #tpu.memory_space<vmem>>, vector<2x16x16x32xf32>
    %c0_48 = arith.constant 0 : index
    %c2_49 = arith.constant 2 : index
    %c2_50 = arith.constant 2 : index
    %c0_51 = arith.constant 0 : index
    %23 = vector.load %arg9[%c0_48, %c2_49, %c2_50, %c0_51] : memref<2x18x24x32xf32, #tpu.memory_space<vmem>>, vector<2x16x16x32xf32>
    %24 = tpu.concatenate %15, %16, %17, %18, %19, %20, %21, %22, %23 in 3 : vector<2x16x16x32xf32>, vector<2x16x16x32xf32>, vector<2x16x16x32xf32>, vector<2x16x16x32xf32>, vector<2x16x16x32xf32>, vector<2x16x16x32xf32>, vector<2x16x16x32xf32>, vector<2x16x16x32xf32>, vector<2x16x16x32xf32> -> vector<2x16x16x288xf32>
    %25 = vector.shape_cast %24 : vector<2x16x16x288xf32> to vector<512x288xf32>
    %cst_52 = arith.constant dense<0.000000e+00> : vector<512x32xf32>
    %26 = tpu.matmul %25, %13, %cst_52 {dimension_numbers = #tpu.dot_dimension_numbers<[1], [0], [0], [1], [0, 0, 1, 1], [], []>} : vector<512x288xf32>, vector<288x32xf32>, vector<512x32xf32> -> vector<512x32xf32>
    %27 = vector.shape_cast %26 : vector<512x32xf32> to vector<2x16x16x32xf32>
    %c0_53 = arith.constant 0 : index
    %c0_54 = arith.constant 0 : index
    %28 = vector.load %arg4[%c0_53, %c0_54] : memref<1x32xf32, #tpu.memory_space<vmem>>, vector<1x32xf32>
    %29 = vector.shape_cast %28 : vector<1x32xf32> to vector<1x1x1x32xf32>
    %30 = vector.broadcast %29 : vector<1x1x1x32xf32> to vector<2x16x16x32xf32>
    %31 = arith.mulf %27, %30 : vector<2x16x16x32xf32>
    %c0_55 = arith.constant 0 : index
    %c0_56 = arith.constant 0 : index
    %32 = vector.load %arg5[%c0_55, %c0_56] : memref<1x32xf32, #tpu.memory_space<vmem>>, vector<1x32xf32>
    %33 = vector.shape_cast %32 : vector<1x32xf32> to vector<1x1x1x32xf32>
    %34 = vector.broadcast %33 : vector<1x1x1x32xf32> to vector<2x16x16x32xf32>
    %35 = arith.addf %31, %34 : vector<2x16x16x32xf32>
    %cst_57 = arith.constant 0.000000e+00 : f32
    %36 = vector.broadcast %cst_57 : f32 to vector<2x16x16x32xf32>
    %37 = arith.maximumf %35, %36 : vector<2x16x16x32xf32>
    %c0_58 = arith.constant 0 : index
    %c0_59 = arith.constant 0 : index
    %38 = vector.load %arg7[%c0_58, %c0_59] : memref<288x32xf32, #tpu.memory_space<vmem>>, vector<288x32xf32>
    %c0_60 = arith.constant 0 : index
    %c1_61 = arith.constant 1 : index
    %c1_62 = arith.constant 1 : index
    %c0_63 = arith.constant 0 : index
    %39 = vector.load %arg9[%c0_60, %c1_61, %c1_62, %c0_63] : memref<2x18x24x32xf32, #tpu.memory_space<vmem>>, vector<2x16x16x32xf32>
    tpu.vector_store %arg9[%c0_60, %c1_61, %c1_62, %c0_63], %37 {strides = array<i32>} : memref<2x18x24x32xf32, #tpu.memory_space<vmem>>, vector<2x16x16x32xf32>,
    %c0_64 = arith.constant 0 : index
    %c0_65 = arith.constant 0 : index
    %c0_66 = arith.constant 0 : index
    %c0_67 = arith.constant 0 : index
    %40 = vector.load %arg9[%c0_64, %c0_65, %c0_66, %c0_67] : memref<2x18x24x32xf32, #tpu.memory_space<vmem>>, vector<2x16x16x32xf32>
    %c0_68 = arith.constant 0 : index
    %c0_69 = arith.constant 0 : index
    %c1_70 = arith.constant 1 : index
    %c0_71 = arith.constant 0 : index
    %41 = vector.load %arg9[%c0_68, %c0_69, %c1_70, %c0_71] : memref<2x18x24x32xf32, #tpu.memory_space<vmem>>, vector<2x16x16x32xf32>
    %c0_72 = arith.constant 0 : index
    %c0_73 = arith.constant 0 : index
    %c2_74 = arith.constant 2 : index
    %c0_75 = arith.constant 0 : index
    %42 = vector.load %arg9[%c0_72, %c0_73, %c2_74, %c0_75] : memref<2x18x24x32xf32, #tpu.memory_space<vmem>>, vector<2x16x16x32xf32>
    %c0_76 = arith.constant 0 : index
    %c1_77 = arith.constant 1 : index
    %c0_78 = arith.constant 0 : index
    %c0_79 = arith.constant 0 : index
    %43 = vector.load %arg9[%c0_76, %c1_77, %c0_78, %c0_79] : memref<2x18x24x32xf32, #tpu.memory_space<vmem>>, vector<2x16x16x32xf32>
    %c0_80 = arith.constant 0 : index
    %c1_81 = arith.constant 1 : index
    %c1_82 = arith.constant 1 : index
    %c0_83 = arith.constant 0 : index
    %44 = vector.load %arg9[%c0_80, %c1_81, %c1_82, %c0_83] : memref<2x18x24x32xf32, #tpu.memory_space<vmem>>, vector<2x16x16x32xf32>
    %c0_84 = arith.constant 0 : index
    %c1_85 = arith.constant 1 : index
    %c2_86 = arith.constant 2 : index
    %c0_87 = arith.constant 0 : index
    %45 = vector.load %arg9[%c0_84, %c1_85, %c2_86, %c0_87] : memref<2x18x24x32xf32, #tpu.memory_space<vmem>>, vector<2x16x16x32xf32>
    %c0_88 = arith.constant 0 : index
    %c2_89 = arith.constant 2 : index
    %c0_90 = arith.constant 0 : index
    %c0_91 = arith.constant 0 : index
    %46 = vector.load %arg9[%c0_88, %c2_89, %c0_90, %c0_91] : memref<2x18x24x32xf32, #tpu.memory_space<vmem>>, vector<2x16x16x32xf32>
    %c0_92 = arith.constant 0 : index
    %c2_93 = arith.constant 2 : index
    %c1_94 = arith.constant 1 : index
    %c0_95 = arith.constant 0 : index
    %47 = vector.load %arg9[%c0_92, %c2_93, %c1_94, %c0_95] : memref<2x18x24x32xf32, #tpu.memory_space<vmem>>, vector<2x16x16x32xf32>
    %c0_96 = arith.constant 0 : index
    %c2_97 = arith.constant 2 : index
    %c2_98 = arith.constant 2 : index
    %c0_99 = arith.constant 0 : index
    %48 = vector.load %arg9[%c0_96, %c2_97, %c2_98, %c0_99] : memref<2x18x24x32xf32, #tpu.memory_space<vmem>>, vector<2x16x16x32xf32>
    %49 = tpu.concatenate %40, %41, %42, %43, %44, %45, %46, %47, %48 in 3 : vector<2x16x16x32xf32>, vector<2x16x16x32xf32>, vector<2x16x16x32xf32>, vector<2x16x16x32xf32>, vector<2x16x16x32xf32>, vector<2x16x16x32xf32>, vector<2x16x16x32xf32>, vector<2x16x16x32xf32>, vector<2x16x16x32xf32> -> vector<2x16x16x288xf32>
    %50 = vector.shape_cast %49 : vector<2x16x16x288xf32> to vector<512x288xf32>
    %cst_100 = arith.constant dense<0.000000e+00> : vector<512x32xf32>
    %51 = tpu.matmul %50, %38, %cst_100 {dimension_numbers = #tpu.dot_dimension_numbers<[1], [0], [0], [1], [0, 0, 1, 1], [], []>} : vector<512x288xf32>, vector<288x32xf32>, vector<512x32xf32> -> vector<512x32xf32>
    %52 = vector.shape_cast %51 : vector<512x32xf32> to vector<2x16x16x32xf32>
    %53 = arith.addf %52, %0 : vector<2x16x16x32xf32>
    %54 = vector.shape_cast %53 : vector<2x16x16x32xf32> to vector<2x16x512xf32>
    %c0_101 = arith.constant 0 : index
    %c0_102 = arith.constant 0 : index
    %c0_103 = arith.constant 0 : index
    %55 = vector.load %arg8[%c0_101, %c0_102, %c0_103] : memref<2x16x512xf32, #tpu.memory_space<vmem>>, vector<2x16x512xf32>
    tpu.vector_store %arg8[%c0_101, %c0_102, %c0_103], %54 {strides = array<i32>} : memref<2x16x512xf32, #tpu.memory_space<vmem>>, vector<2x16x512xf32>,
    return
  }
  func.func @transform_0(%arg0: i32) -> (i32, i32, i32, i32) {
    %c0_i32 = arith.constant 0 : i32
    %c0_i32_0 = arith.constant 0 : i32
    %c0_i32_1 = arith.constant 0 : i32
    %c0_i32_2 = arith.constant 0 : i32
    %c0_i32_3 = arith.constant 0 : i32
    return %c0_i32, %c0_i32_0, %c0_i32_1, %c0_i32_2 : i32, i32, i32, i32
  }
  func.func @transform_1(%arg0: i32) -> (i32, i32) {
    %c0_i32 = arith.constant 0 : i32
    %c0_i32_0 = arith.constant 0 : i32
    %c0_i32_1 = arith.constant 0 : i32
    return %c0_i32, %c0_i32_0 : i32, i32
  }
  func.func @transform_2(%arg0: i32) -> (i32, i32) {
    %c0_i32 = arith.constant 0 : i32
    %c0_i32_0 = arith.constant 0 : i32
    %c0_i32_1 = arith.constant 0 : i32
    return %c0_i32, %c0_i32_0 : i32, i32
  }
  func.func @transform_3(%arg0: i32) -> (i32, i32) {
    %c0_i32 = arith.constant 0 : i32
    %c0_i32_0 = arith.constant 0 : i32
    %c0_i32_1 = arith.constant 0 : i32
    return %c0_i32, %c0_i32_0 : i32, i32
  }
  func.func @transform_4(%arg0: i32) -> (i32, i32) {
    %c0_i32 = arith.constant 0 : i32
    %c0_i32_0 = arith.constant 0 : i32
    %c0_i32_1 = arith.constant 0 : i32
    return %c0_i32, %c0_i32_0 : i32, i32
  }
  func.func @transform_5(%arg0: i32) -> (i32, i32) {
    %c0_i32 = arith.constant 0 : i32
    %c0_i32_0 = arith.constant 0 : i32
    %c0_i32_1 = arith.constant 0 : i32
    return %c0_i32, %c0_i32_0 : i32, i32
  }
  func.func @transform_6(%arg0: i32) -> (i32, i32) {
    %c0_i32 = arith.constant 0 : i32
    %c0_i32_0 = arith.constant 0 : i32
    %c0_i32_1 = arith.constant 0 : i32
    return %c0_i32, %c0_i32_0 : i32, i32
  }
  func.func @transform_7(%arg0: i32) -> (i32, i32, i32) {
    %c0_i32 = arith.constant 0 : i32
    %c0_i32_0 = arith.constant 0 : i32
    %c0_i32_1 = arith.constant 0 : i32
    %c0_i32_2 = arith.constant 0 : i32
    return %c0_i32, %c0_i32_0, %c0_i32_1 : i32, i32, i32
  }
}

</mosaic_0001>

<bundles_post_ra>
// kernel: tpu_custom_call.1
= control target key start
LH: loop header
LB: loop body
LE: loop exit
PB: predicated region body
PF: predicated region fallthrough
CT: control target
= control target key end

     0   :  { %vm291_vm0 = vcmask 261120   ;;  %v10842_v0 = vmov 0.0   ;;  %s16996_s0 = inlined_call_operand.vmem [shape: f32[2,16,16,32], index: 0, kind: input, shape index: {}]   ;;  %s16997_s1 = inlined_call_operand.vmem [shape: f32[1,32], index: 1, kind: input, shape index: {}]   ;;  %s16998_s2 = inlined_call_operand.vmem [shape: f32[1,32], index: 2, kind: input, shape index: {}]   ;;  %s16999_s3 = inlined_call_operand.vmem [shape: f32[1,32], index: 3, kind: input, shape index: {}]   ;;  %s17000_s4 = inlined_call_operand.vmem [shape: f32[1,32], index: 4, kind: input, shape index: {}]   ;;  %s17001_s5 = inlined_call_operand.vmem [shape: f32[288,32], index: 5, kind: input, shape index: {}]   ;;  %s17002_s6 = inlined_call_operand.vmem [shape: f32[288,32], index: 6, kind: input, shape index: {}]   ;;  %s17003_s7 = inlined_call_operand.hbm [shape: f32[2,16,512], index: 7, kind: output, shape index: {}]  }
   0x1   :  { %292 = vst.msk [vmem:[#allocation2] sm:$0xff] %vm291_vm0, %v10842_v0 }
   0x2   :  { %293 = vst.msk [vmem:[#allocation2 + $0x8] sm:$0xff] %vm291_vm0, %v10842_v0 }
   0x3   :  { %294 = vst.msk [vmem:[#allocation2 + $0x10] sm:$0xff] %vm291_vm0, %v10842_v0 }
   0x4   :  { %295 = vst.msk [vmem:[#allocation2 + $0x18] sm:$0xff] %vm291_vm0, %v10842_v0 }
   0x5   :  { %12 = vsyncpa [#allocation4], 0  ;;  %296 = vst.msk [vmem:[#allocation2 + $0x20] sm:$0xff] %vm291_vm0, %v10842_v0  ;;  %s10843_s24 = smov 32   ;;  %v11080_v4 = vld [vmem:[%s16997_s1] ss:$0 sm:$0xff] }
   0x6   :  { %297 = vst.msk [vmem:[#allocation2 + $0x28] sm:$0xff] %vm291_vm0, %v10842_v0  ;;  %v33_v5 = vld [vmem:[%s16996_s0 + $0x30] sm:$0xff]  ;;  %v34_v6 = vld [vmem:[%s16996_s0 + $0x38] sm:$0xff]  ;;  %v11103_v9 = vld [vmem:[%s16998_s2] ss:$0 sm:$0xff]  ;;  %s10844_s16 = smov 64  }
   0x7   :  { %298 = vst.msk [vmem:[#allocation2 + $0x30] sm:$0xff] %vm291_vm0, %v10842_v0  ;;  %v29_v7 = vld [vmem:[%s16996_s0 + $0x10] sm:$0xff]  ;;  %v101_v8 = vmul.f32 %v11080_v4, %v33_v5  ;;  %v30_v10 = vld [vmem:[%s16996_s0 + $0x18] sm:$0xff]  ;;  %v102_v11 = vmul.f32 %v11080_v4, %v34_v6  ;;  %v27_v12 = vld [vmem:[%s16996_s0] sm:$0xff]  ;;  %vm2678_vm1 = vcmask 523264   ;;  %vm2743_vm2 = vcmask 785408  }
   0x8   :  { %299 = vst.msk [vmem:[#allocation2 + $0x38] sm:$0xff] %vm291_vm0, %v10842_v0  ;;  %v97_v13 = vmul.f32 %v11080_v4, %v29_v7  ;;  %v28_v14 = vld [vmem:[%s16996_s0 + $0x8] sm:$0xff]  ;;  %v98_v15 = vmul.f32 %v11080_v4, %v30_v10  ;;  %v35_v16 = vld [vmem:[%s16996_s0 + $0x40] sm:$0xff]  ;;  %v95_v18 = vmul.f32 %v11080_v4, %v27_v12  ;;  %v37_v28 = vld [vmem:[%s16996_s0 + $0x50] sm:$0xff]  ;;  %vm7499_vm3 = vcmask 1047556   ;;  %s10848_s19 = smov [#allocation3]  }
   0x9   :  { %v565_v1 = vld [vmem:[#allocation2 + $0x1] sm:$0xff]  ;;  %300 = vst.msk [vmem:[#allocation2 + $0x40] sm:$0xff] %vm291_vm0, %v10842_v0  ;;  %v169_v17 = vadd.f32 %v11103_v9, %v101_v8  ;;  %v170_v20 = vadd.f32 %v11103_v9, %v102_v11  ;;  %v96_v21 = vmul.f32 %v11080_v4, %v28_v14  ;;  %v103_v24 = vmul.f32 %v11080_v4, %v35_v16  ;;  %v38_v32 = vld [vmem:[%s16996_s0 + $0x58] sm:$0xff]  ;;  %v41_v36 = vld [vmem:[%s16996_s0 + $0x70] sm:$0xff]  ;;  %s8655_s20 = sshll.u32 %s10848_s19, 4  ;;  %s10849_s21 = smov 512   ;;  %s8656_s20 = int_to_ptr.vmem [resolvable:$true] %s8655_s20 }
   0xa   :  { %v566_v2 = vld [vmem:[#allocation2 + $0x9] sm:$0xff]  ;;  %301 = vst.msk [vmem:[#allocation2 + $0x48] sm:$0xff] %vm291_vm0, %v10842_v0  ;;  %v31_v22 = vld [vmem:[%s16996_s0 + $0x20] sm:$0xff]  ;;  %v165_v23 = vadd.f32 %v11103_v9, %v97_v13  ;;  %v166_v26 = vadd.f32 %v11103_v9, %v98_v15  ;;  %v163_v30 = vadd.f32 %v11103_v9, %v95_v18  ;;  %v105_v39 = vmul.f32 %v11080_v4, %v37_v28  ;;  %v42_v40 = vld [vmem:[%s16996_s0 + $0x78] sm:$0xff] }
   0xb   :  { %v8829_v3 = vpack.i.bf16 %v566_v2, %v565_v1  ;;  %302 = vst.msk [vmem:[#allocation2 + $0x50] sm:$0xff] %vm291_vm0, %v10842_v0  ;;  %v36_v19 = vld [vmem:[%s16996_s0 + $0x48] sm:$0xff]  ;;  %v233_v29 = vmax.f32 %v169_v17, 0.0  ;;  %v99_v31 = vmul.f32 %v11080_v4, %v31_v22  ;;  %v234_v33 = vmax.f32 %v170_v20, 0.0  ;;  %v39_v44 = vld [vmem:[%s16996_s0 + $0x60] sm:$0xff]  ;;  %v45_v5 = vld [vmem:[%s16996_s0 + $0x90] sm:$0xff] }
   0xc   :  { %303 = vst.msk [vmem:[#allocation2 + $0x58] sm:$0xff] %vm291_vm0, %v10842_v0  ;;  %v32_v25 = vld [vmem:[%s16996_s0 + $0x28] sm:$0xff]  ;;  %v104_v27 = vmul.f32 %v11080_v4, %v36_v19  ;;  %v164_v34 = vadd.f32 %v11103_v9, %v96_v21  ;;  %v229_v37 = vmax.f32 %v165_v23, 0.0  ;;  %v171_v38 = vadd.f32 %v11103_v9, %v103_v24  ;;  %v43_v52 = vld [vmem:[%s16996_s0 + $0x80] sm:$0xff]  ;;  %v46_v10 = vld [vmem:[%s16996_s0 + $0x98] sm:$0xff] }
   0xd   :  { %8830 = vrot.lane.b32.xlu0 %v8829_v3, %s10843_s24  ;;  %304 = vst.msk [vmem:[#allocation2 + $0x60] sm:$0xff] %vm291_vm0, %v10842_v0  ;;  %v100_v35 = vmul.f32 %v11080_v4, %v32_v25  ;;  %v230_v41 = vmax.f32 %v166_v26, 0.0  ;;  %v106_v43 = vmul.f32 %v11080_v4, %v38_v32  ;;  %v227_v45 = vmax.f32 %v163_v30, 0.0  ;;  %v40_v48 = vld [vmem:[%s16996_s0 + $0x68] sm:$0xff]  ;;  %v47_v60 = vld [vmem:[%s16996_s0 + $0xa0] sm:$0xff]  ;;  %v49_v15 = vld [vmem:[%s16996_s0 + $0xb0] sm:$0xff] }
   0xe   :  { %305 = vst.msk [vmem:[#allocation2 + $0x68] sm:$0xff] %vm291_vm0, %v10842_v0  ;;  %v172_v42 = vadd.f32 %v11103_v9, %v104_v27  ;;  %v167_v46 = vadd.f32 %v11103_v9, %v99_v31  ;;  %v109_v47 = vmul.f32 %v11080_v4, %v41_v36  ;;  %v228_v49 = vmax.f32 %v164_v34, 0.0  ;;  %v44_v56 = vld [vmem:[%s16996_s0 + $0x88] sm:$0xff]  ;;  %v50_v20 = vld [vmem:[%s16996_s0 + $0xb8] sm:$0xff]  ;;  %v53_v26 = vld [vmem:[%s16996_s0 + $0xd0] sm:$0xff] }
   0xf   :  { %306 = vst.msk [vmem:[#allocation2 + $0x70] sm:$0xff] %vm291_vm0, %v10842_v0  ;;  %v168_v50 = vadd.f32 %v11103_v9, %v100_v35  ;;  %v110_v51 = vmul.f32 %v11080_v4, %v42_v40  ;;  %v235_v53 = vmax.f32 %v171_v38, 0.0  ;;  %v173_v54 = vadd.f32 %v11103_v9, %v105_v39  ;;  %v54_v31 = vld [vmem:[%s16996_s0 + $0xd8] sm:$0xff] }
  0x10   :  { %307 = vst.msk [vmem:[#allocation2 + $0x78] sm:$0xff] %vm291_vm0, %v10842_v0  ;;  %v107_v55 = vmul.f32 %v11080_v4, %v39_v44  ;;  %v236_v57 = vmax.f32 %v172_v42, 0.0  ;;  %v174_v58 = vadd.f32 %v11103_v9, %v106_v43  ;;  %v108_v59 = vmul.f32 %v11080_v4, %v40_v48  ;;  %v52_v42 = vld [vmem:[%s16996_s0 + $0xc8] sm:$0xff]  ;;  %v55_v48 = vld [vmem:[%s16996_s0 + $0xe0] sm:$0xff] }
  0x11   :  { %308 = vst.msk [vmem:[#allocation2 + $0x80] sm:$0xff] %vm291_vm0, %v10842_v0  ;;  %v231_v61 = vmax.f32 %v167_v46, 0.0  ;;  %v177_v62 = vadd.f32 %v11103_v9, %v109_v47  ;;  %v111_v63 = vmul.f32 %v11080_v4, %v43_v52  ;;  %v232_v1 = vmax.f32 %v168_v50, 0.0 }
  0x12   :  { %309 = vst.msk [vmem:[#allocation2 + $0x88] sm:$0xff] %vm291_vm0, %v10842_v0  ;;  %v178_v2 = vadd.f32 %v11103_v9, %v110_v51  ;;  %v112_v3 = vmul.f32 %v11080_v4, %v44_v56  ;;  %v237_v6 = vmax.f32 %v173_v54, 0.0  ;;  %v175_v7 = vadd.f32 %v11103_v9, %v107_v55 }
  0x13   :  { %310 = vst.msk [vmem:[#allocation2 + $0x90] sm:$0xff] %vm291_vm0, %v10842_v0  ;;  %v115_v8 = vmul.f32 %v11080_v4, %v47_v60  ;;  %v238_v12 = vmax.f32 %v174_v58, 0.0  ;;  %v176_v13 = vadd.f32 %v11103_v9, %v108_v59  ;;  %v241_v17 = vmax.f32 %v177_v62, 0.0  ;;  %v59_v59 = vld [vmem:[%s16996_s0 + $0x100] sm:$0xff] }
  0x14   :  { %311 = vst.msk [vmem:[#allocation2 + $0x98] sm:$0xff] %vm291_vm0, %v10842_v0  ;;  %v179_v18 = vadd.f32 %v11103_v9, %v111_v63  ;;  %v113_v19 = vmul.f32 %v11080_v4, %v45_v5  ;;  %v242_v23 = vmax.f32 %v178_v2, 0.0  ;;  %v180_v24 = vadd.f32 %v11103_v9, %v112_v3 }
  0x15   :  { %312 = vst.msk [vmem:[#allocation2 + $0xa0] sm:$0xff] %vm291_vm0, %v10842_v0  ;;  %v114_v25 = vmul.f32 %v11080_v4, %v46_v10  ;;  %v239_v28 = vmax.f32 %v175_v7, 0.0  ;;  %v117_v30 = vmul.f32 %v11080_v4, %v49_v15  ;;  %v240_v34 = vmax.f32 %v176_v13, 0.0  ;;  %v61_v7 = vld [vmem:[%s16996_s0 + $0x110] sm:$0xff]  ;;  %v62_v13 = vld [vmem:[%s16996_s0 + $0x118] sm:$0xff] }
  0x16   :  { %313 = vst.msk [vmem:[#allocation2 + $0xa8] sm:$0xff] %vm291_vm0, %v10842_v0  ;;  %v118_v36 = vmul.f32 %v11080_v4, %v50_v20  ;;  %v243_v39 = vmax.f32 %v179_v18, 0.0  ;;  %v181_v40 = vadd.f32 %v11103_v9, %v113_v19  ;;  %v122_v47 = vmul.f32 %v11080_v4, %v54_v31  ;;  %v65_v18 = vld [vmem:[%s16996_s0 + $0x130] sm:$0xff] }
  0x17   :  { %314 = vst.msk [vmem:[#allocation2 + $0xb0] sm:$0xff] %vm291_vm0, %v10842_v0  ;;  %v182_v46 = vadd.f32 %v11103_v9, %v114_v25  ;;  %v185_v51 = vadd.f32 %v11103_v9, %v117_v30  ;;  %v120_v58 = vmul.f32 %v11080_v4, %v52_v42  ;;  %v123_v63 = vmul.f32 %v11080_v4, %v55_v48 }
  0x18   :  { %315 = vst.msk [vmem:[#allocation2 + $0xb8] sm:$0xff] %vm291_vm0, %v10842_v0  ;;  %v190_v5 = vadd.f32 %v11103_v9, %v122_v47 }
  0x19   :  { %316 = vst.msk [vmem:[#allocation2 + $0xc0] sm:$0xff] %vm291_vm0, %v10842_v0  ;;  %v246_v3 = vmax.f32 %v182_v46, 0.0  ;;  %v249_v10 = vmax.f32 %v185_v51, 0.0 }
  0x1a   :  { %317 = vst.msk [vmem:[#allocation2 + $0xc8] sm:$0xff] %vm291_vm0, %v10842_v0  ;;  %v254_v25 = vmax.f32 %v190_v5, 0.0 }
  0x1b   :  { %318 = vst.msk [vmem:[#allocation2 + $0xd0] sm:$0xff] %vm291_vm0, %v10842_v0 }
  0x1c   :  { %319 = vst.msk [vmem:[#allocation2 + $0xd8] sm:$0xff] %vm291_vm0, %v10842_v0 }
  0x1d   :  { %320 = vst.msk [vmem:[#allocation2 + $0xe0] sm:$0xff] %vm291_vm0, %v10842_v0 }
  0x1e   :  { %321 = vst.msk [vmem:[#allocation2 + $0xe8] sm:$0xff] %vm291_vm0, %v10842_v0 }
  0x1f   :  { %322 = vst.msk [vmem:[#allocation2 + $0xf0] sm:$0xff] %vm291_vm0, %v10842_v0 }
  0x20   :  { %323 = vst.msk [vmem:[#allocation2 + $0xf8] sm:$0xff] %vm291_vm0, %v10842_v0 }
  0x21   :  { %324 = vst.msk [vmem:[#allocation2 + $0x100] sm:$0xff] %vm291_vm0, %v10842_v0 }
  0x22   :  { %325 = vst.msk [vmem:[#allocation2 + $0x108] sm:$0xff] %vm291_vm0, %v10842_v0 }
  0x23   :  { %326 = vst.msk [vmem:[#allocation2 + $0x110] sm:$0xff] %vm291_vm0, %v10842_v0 }
  0x24   :  { %327 = vst.msk [vmem:[#allocation2 + $0x118] sm:$0xff] %vm291_vm0, %v10842_v0 }
  0x25   :  { %328 = vst.msk [vmem:[#allocation2 + $0x120] sm:$0xff] %vm291_vm0, %v10842_v0 }
  0x26   :  { %329 = vst.msk [vmem:[#allocation2 + $0x128] sm:$0xff] %vm291_vm0, %v10842_v0 }
  0x27   :  { %330 = vst.msk [vmem:[#allocation2 + $0x130] sm:$0xff] %vm291_vm0, %v10842_v0 }
  0x28   :  { %331 = vst.msk [vmem:[#allocation2 + $0x138] sm:$0xff] %vm291_vm0, %v10842_v0 }
  0x29   :  { %332 = vst.msk [vmem:[#allocation2 + $0x140] sm:$0xff] %vm291_vm0, %v10842_v0 }
  0x2a   :  { %333 = vst.msk [vmem:[#allocation2 + $0x148] sm:$0xff] %vm291_vm0, %v10842_v0 }
  0x2b   :  { %334 = vst.msk [vmem:[#allocation2 + $0x150] sm:$0xff] %vm291_vm0, %v10842_v0 }
  0x2c   :  { %335 = vst.msk [vmem:[#allocation2 + $0x158] sm:$0xff] %vm291_vm0, %v10842_v0 }
  0x2d   :  { %336 = vst.msk [vmem:[#allocation2 + $0x160] sm:$0xff] %vm291_vm0, %v10842_v0 }
  0x2e   :  { %337 = vst.msk [vmem:[#allocation2 + $0x168] sm:$0xff] %vm291_vm0, %v10842_v0 }
  0x2f   :  { %338 = vst.msk [vmem:[#allocation2 + $0x170] sm:$0xff] %vm291_vm0, %v10842_v0 }
  0x30   :  { %339 = vst.msk [vmem:[#allocation2 + $0x178] sm:$0xff] %vm291_vm0, %v10842_v0 }
  0x31   :  { %340 = vst.msk [vmem:[#allocation2 + $0x180] sm:$0xff] %vm291_vm0, %v10842_v0 }
  0x32   :  { %341 = vst.msk [vmem:[#allocation2 + $0x188] sm:$0xff] %vm291_vm0, %v10842_v0 }
  0x33   :  { %342 = vst.msk [vmem:[#allocation2 + $0x190] sm:$0xff] %vm291_vm0, %v10842_v0 }
  0x34   :  { %343 = vst.msk [vmem:[#allocation2 + $0x198] sm:$0xff] %vm291_vm0, %v10842_v0 }
  0x35   :  { %344 = vst.msk [vmem:[#allocation2 + $0x1a0] sm:$0xff] %vm291_vm0, %v10842_v0 }
  0x36   :  { %345 = vst.msk [vmem:[#allocation2 + $0x1a8] sm:$0xff] %vm291_vm0, %v10842_v0 }
  0x37   :  { %346 = vst.msk [vmem:[#allocation2 + $0x1b0] sm:$0xff] %vm291_vm0, %v10842_v0 }
  0x38   :  { %347 = vst.msk [vmem:[#allocation2 + $0x1b8] sm:$0xff] %vm291_vm0, %v10842_v0 }
  0x39   :  { %348 = vst.msk [vmem:[#allocation2 + $0x1c0] sm:$0xff] %vm291_vm0, %v10842_v0 }
  0x3a   :  { %349 = vst.msk [vmem:[#allocation2 + $0x1c8] sm:$0xff] %vm291_vm0, %v10842_v0 }
  0x3b   :  { %350 = vst.msk [vmem:[#allocation2 + $0x1d0] sm:$0xff] %vm291_vm0, %v10842_v0 }
  0x3c   :  { %351 = vst.msk [vmem:[#allocation2 + $0x1d8] sm:$0xff] %vm291_vm0, %v10842_v0 }
  0x3d   :  { %352 = vst.msk [vmem:[#allocation2 + $0x1e0] sm:$0xff] %vm291_vm0, %v10842_v0 }
  0x3e   :  { %353 = vst.msk [vmem:[#allocation2 + $0x1e8] sm:$0xff] %vm291_vm0, %v10842_v0 }
  0x3f   :  { %354 = vst.msk [vmem:[#allocation2 + $0x1f0] sm:$0xff] %vm291_vm0, %v10842_v0 }
  0x40   :  { %355 = vst.msk [vmem:[#allocation2 + $0x1f8] sm:$0xff] %vm291_vm0, %v10842_v0 }
  0x41   :  { %356 = vst.msk [vmem:[#allocation2 + $0x200] sm:$0xff] %vm291_vm0, %v10842_v0 }
  0x42   :  { %357 = vst.msk [vmem:[#allocation2 + $0x208] sm:$0xff] %vm291_vm0, %v10842_v0 }
  0x43   :  { %358 = vst.msk [vmem:[#allocation2 + $0x210] sm:$0xff] %vm291_vm0, %v10842_v0 }
  0x44   :  { %359 = vst.msk [vmem:[#allocation2 + $0x218] sm:$0xff] %vm291_vm0, %v10842_v0 }
  0x45   :  { %360 = vst.msk [vmem:[#allocation2 + $0x220] sm:$0xff] %vm291_vm0, %v10842_v0 }
  0x46   :  { %361 = vst.msk [vmem:[#allocation2 + $0x228] sm:$0xff] %vm291_vm0, %v10842_v0 }
  0x47   :  { %362 = vst.msk [vmem:[#allocation2 + $0x230] sm:$0xff] %vm291_vm0, %v10842_v0 }
  0x48   :  { %363 = vst.msk [vmem:[#allocation2 + $0x238] sm:$0xff] %vm291_vm0, %v10842_v0 }
  0x49   :  { %364 = vst.msk [vmem:[#allocation2 + $0x240] sm:$0xff] %vm291_vm0, %v10842_v0 }
  0x4a   :  { %365 = vst.msk [vmem:[#allocation2 + $0x248] sm:$0xff] %vm291_vm0, %v10842_v0 }
  0x4b   :  { %366 = vst.msk [vmem:[#allocation2 + $0x250] sm:$0xff] %vm291_vm0, %v10842_v0 }
  0x4c   :  { %367 = vst.msk [vmem:[#allocation2 + $0x258] sm:$0xff] %vm291_vm0, %v10842_v0 }
  0x4d   :  { %368 = vst.msk [vmem:[#allocation2 + $0x260] sm:$0xff] %vm291_vm0, %v10842_v0 }
  0x4e   :  { %369 = vst.msk [vmem:[#allocation2 + $0x268] sm:$0xff] %vm291_vm0, %v10842_v0 }
  0x4f   :  { %370 = vst.msk [vmem:[#allocation2 + $0x270] sm:$0xff] %vm291_vm0, %v10842_v0 }
  0x50   :  { %371 = vst.msk [vmem:[#allocation2 + $0x278] sm:$0xff] %vm291_vm0, %v10842_v0 }
  0x51   :  { %372 = vst.msk [vmem:[#allocation2 + $0x280] sm:$0xff] %vm291_vm0, %v10842_v0 }
  0x52   :  { %373 = vst.msk [vmem:[#allocation2 + $0x288] sm:$0xff] %vm291_vm0, %v10842_v0 }
  0x53   :  { %374 = vst.msk [vmem:[#allocation2 + $0x290] sm:$0xff] %vm291_vm0, %v10842_v0 }
  0x54   :  { %375 = vst.msk [vmem:[#allocation2 + $0x298] sm:$0xff] %vm291_vm0, %v10842_v0 }
  0x55   :  { %376 = vst.msk [vmem:[#allocation2 + $0x2a0] sm:$0xff] %vm291_vm0, %v10842_v0 }
  0x56   :  { %377 = vst.msk [vmem:[#allocation2 + $0x2a8] sm:$0xff] %vm291_vm0, %v10842_v0 }
  0x57   :  { %378 = vst.msk [vmem:[#allocation2 + $0x2b0] sm:$0xff] %vm291_vm0, %v10842_v0 }
  0x58   :  { %379 = vst.msk [vmem:[#allocation2 + $0x2b8] sm:$0xff] %vm291_vm0, %v10842_v0 }
  0x59   :  { %380 = vst.msk [vmem:[#allocation2 + $0x2c0] sm:$0xff] %vm291_vm0, %v10842_v0 }
  0x5a   :  { %381 = vst.msk [vmem:[#allocation2 + $0x2c8] sm:$0xff] %vm291_vm0, %v10842_v0 }
  0x5b   :  { %382 = vst.msk [vmem:[#allocation2 + $0x2d0] sm:$0xff] %vm291_vm0, %v10842_v0 }
  0x5c   :  { %383 = vst.msk [vmem:[#allocation2 + $0x2d8] sm:$0xff] %vm291_vm0, %v10842_v0 }
  0x5d   :  { %384 = vst.msk [vmem:[#allocation2 + $0x2e0] sm:$0xff] %vm291_vm0, %v10842_v0 }
  0x5e   :  { %385 = vst.msk [vmem:[#allocation2 + $0x2e8] sm:$0xff] %vm291_vm0, %v10842_v0 }
  0x5f   :  { %386 = vst.msk [vmem:[#allocation2 + $0x2f0] sm:$0xff] %vm291_vm0, %v10842_v0 }
  0x60   :  { %387 = vst.msk [vmem:[#allocation2 + $0x2f8] sm:$0xff] %vm291_vm0, %v10842_v0 }
  0x61   :  { %388 = vst.msk [vmem:[#allocation2 + $0x300] sm:$0xff] %vm291_vm0, %v10842_v0 }
  0x62   :  { %389 = vst.msk [vmem:[#allocation2 + $0x308] sm:$0xff] %vm291_vm0, %v10842_v0 }
  0x63   :  { %390 = vst.msk [vmem:[#allocation2 + $0x310] sm:$0xff] %vm291_vm0, %v10842_v0 }
  0x64   :  { %391 = vst.msk [vmem:[#allocation2 + $0x318] sm:$0xff] %vm291_vm0, %v10842_v0 }
  0x65   :  { %392 = vst.msk [vmem:[#allocation2 + $0x320] sm:$0xff] %vm291_vm0, %v10842_v0 }
  0x66   :  { %393 = vst.msk [vmem:[#allocation2 + $0x328] sm:$0xff] %vm291_vm0, %v10842_v0 }
  0x67   :  { %394 = vst.msk [vmem:[#allocation2 + $0x330] sm:$0xff] %vm291_vm0, %v10842_v0 }
  0x68   :  { %395 = vst.msk [vmem:[#allocation2 + $0x338] sm:$0xff] %vm291_vm0, %v10842_v0 }
  0x69   :  { %396 = vst.msk [vmem:[#allocation2 + $0x340] sm:$0xff] %vm291_vm0, %v10842_v0 }
  0x6a   :  { %397 = vst.msk [vmem:[#allocation2 + $0x348] sm:$0xff] %vm291_vm0, %v10842_v0 }
  0x6b   :  { %398 = vst.msk [vmem:[#allocation2 + $0x350] sm:$0xff] %vm291_vm0, %v10842_v0 }
  0x6c   :  { %399 = vst.msk [vmem:[#allocation2 + $0x358] sm:$0xff] %vm291_vm0, %v10842_v0  ;;  %v48_v0 = vld [vmem:[%s16996_s0 + $0xa8] sm:$0xff] }
  0x6d   :  { %443 = vst.msk [vmem:[#allocation2 + $0x61] sm:$0xff] %vm291_vm0, %v233_v29  ;;  %v116_v14 = vmul.f32 %v11080_v4, %v48_v0  ;;  %v183_v29 = vadd.f32 %v11103_v9, %v115_v8  ;;  %v60_v0 = vld [vmem:[%s16996_s0 + $0x108] sm:$0xff] }
  0x6e   :  { %444 = vst.msk [vmem:[#allocation2 + $0x69] sm:$0xff] %vm291_vm0, %v234_v33 }
  0x6f   :  { %439 = vst.msk [vmem:[#allocation2 + $0x31] sm:$0xff] %vm291_vm0, %v229_v37  ;;  %v184_v35 = vadd.f32 %v11103_v9, %v116_v14  ;;  %v51_v37 = vld [vmem:[%s16996_s0 + $0xc0] sm:$0xff]  ;;  %v247_v50 = vmax.f32 %v183_v29, 0.0 }
  0x70   :  { %440 = vst.msk [vmem:[#allocation2 + $0x39] sm:$0xff] %vm291_vm0, %v230_v41  ;;  %v121_v41 = vmul.f32 %v11080_v4, %v53_v26  ;;  %v119_v52 = vmul.f32 %v11080_v4, %v51_v37 }
  0x71   :  { %437 = vst.msk [vmem:[#allocation2 + $0x19] sm:$0xff] %vm291_vm0, %v227_v45  ;;  %v244_v45 = vmax.f32 %v180_v24, 0.0  ;;  %v248_v56 = vmax.f32 %v184_v35, 0.0  ;;  %v66_v24 = vld [vmem:[%s16996_s0 + $0x138] sm:$0xff] }
  0x72   :  { %438 = vst.msk [vmem:[#allocation2 + $0x21] sm:$0xff] %vm291_vm0, %v228_v49  ;;  %v189_v62 = vadd.f32 %v11103_v9, %v121_v41 }
  0x73   :  { %445 = vst.msk [vmem:[#allocation2 + $0x79] sm:$0xff] %vm291_vm0, %v235_v53  ;;  %v56_v53 = vld [vmem:[%s16996_s0 + $0xe8] sm:$0xff] }
  0x74   :  { %v573_v11 = vld [vmem:[#allocation2 + $0x61] sm:$0xff]  ;;  %446 = vst.msk [vmem:[#allocation2 + $0x81] sm:$0xff] %vm291_vm0, %v236_v57  ;;  %v186_v57 = vadd.f32 %v11103_v9, %v118_v36 }
  0x75   :  { %v574_v16 = vld [vmem:[#allocation2 + $0x69] sm:$0xff]  ;;  %441 = vst.msk [vmem:[#allocation2 + $0x49] sm:$0xff] %vm291_vm0, %v231_v61  ;;  %v245_v61 = vmax.f32 %v181_v40, 0.0 }
  0x76   :  { %v8849_v21 = vpack.i.bf16 %v574_v16, %v573_v11  ;;  %v569_v22 = vld [vmem:[#allocation2 + $0x31] sm:$0xff]  ;;  %442 = vst.msk [vmem:[#allocation2 + $0x51] sm:$0xff] %vm291_vm0, %v232_v1  ;;  %v187_v11 = vadd.f32 %v11103_v9, %v119_v52  ;;  %v250_v15 = vmax.f32 %v186_v57, 0.0  ;;  %v188_v16 = vadd.f32 %v11103_v9, %v120_v58 }
  0x77   :  { %v570_v27 = vld [vmem:[#allocation2 + $0x39] sm:$0xff]  ;;  %447 = vst.msk [vmem:[#allocation2 + $0x91] sm:$0xff] %vm291_vm0, %v237_v6  ;;  %v124_v6 = vmul.f32 %v11080_v4, %v56_v53 }
  0x78   :  { %8850 = vrot.lane.b32.xlu2 %v8849_v21, %s10843_s24  ;;  %v8839_v32 = vpack.i.bf16 %v570_v27, %v569_v22  ;;  %v567_v33 = vld [vmem:[#allocation2 + $0x19] sm:$0xff]  ;;  %448 = vst.msk [vmem:[#allocation2 + $0x99] sm:$0xff] %vm291_vm0, %v238_v12  ;;  %v127_v12 = vmul.f32 %v11080_v4, %v59_v59  ;;  %v253_v21 = vmax.f32 %v189_v62, 0.0  ;;  %v191_v22 = vadd.f32 %v11103_v9, %v123_v63  ;;  %v69_v59 = vld [vmem:[%s16996_s0 + $0x150] sm:$0xff] }
  0x79   :  { %v568_v38 = vld [vmem:[#allocation2 + $0x21] sm:$0xff]  ;;  %451 = vst.msk [vmem:[#allocation2 + $0xc1] sm:$0xff] %vm291_vm0, %v241_v17  ;;  %v128_v17 = vmul.f32 %v11080_v4, %v60_v0  ;;  %v192_v26 = vadd.f32 %v11103_v9, %v124_v6  ;;  %v130_v27 = vmul.f32 %v11080_v4, %v62_v13  ;;  %v251_v31 = vmax.f32 %v187_v11, 0.0  ;;  %v73_v6 = vld [vmem:[%s16996_s0 + $0x170] sm:$0xff]  ;;  %v74_v13 = vld [vmem:[%s16996_s0 + $0x178] sm:$0xff] }
  0x7a   :  { %8840 = vrot.lane.b32.xlu1 %v8839_v32, %s10843_s24  ;;  %v8834_v43 = vpack.i.bf16 %v568_v38, %v567_v33  ;;  %v575_v44 = vld [vmem:[#allocation2 + $0x79] sm:$0xff]  ;;  %452 = vst.msk [vmem:[#allocation2 + $0xc9] sm:$0xff] %vm291_vm0, %v242_v23  ;;  %v129_v23 = vmul.f32 %v11080_v4, %v61_v7  ;;  %v195_v32 = vadd.f32 %v11103_v9, %v127_v12  ;;  %v252_v36 = vmax.f32 %v188_v16, 0.0 }
  0x7b   :  { %v576_v49 = vld [vmem:[#allocation2 + $0x81] sm:$0xff]  ;;  %449 = vst.msk [vmem:[#allocation2 + $0xa9] sm:$0xff] %vm291_vm0, %v239_v28  ;;  %v133_v33 = vmul.f32 %v11080_v4, %v65_v18  ;;  %v196_v37 = vadd.f32 %v11103_v9, %v128_v17  ;;  %v134_v38 = vmul.f32 %v11080_v4, %v66_v24  ;;  %v255_v42 = vmax.f32 %v191_v22, 0.0  ;;  %v77_v18 = vld [vmem:[%s16996_s0 + $0x190] sm:$0xff]  ;;  %v78_v24 = vld [vmem:[%s16996_s0 + $0x198] sm:$0xff] }
  0x7c   :  { %8835 = vrot.lane.b32.xlu0 %v8834_v43, %s10843_s24  ;;  %v8854_v54 = vpack.i.bf16 %v576_v49, %v575_v44  ;;  %v571_v55 = vld [vmem:[#allocation2 + $0x49] sm:$0xff]  ;;  %450 = vst.msk [vmem:[#allocation2 + $0xb1] sm:$0xff] %vm291_vm0, %v240_v34  ;;  %v63_v28 = vld [vmem:[%s16996_s0 + $0x120] sm:$0xff]  ;;  %v197_v43 = vadd.f32 %v11103_v9, %v129_v23  ;;  %v256_v47 = vmax.f32 %v192_v26, 0.0  ;;  %v198_v48 = vadd.f32 %v11103_v9, %v130_v27 }
  0x7d   :  { %v572_v60 = vld [vmem:[#allocation2 + $0x51] sm:$0xff]  ;;  %453 = vst.msk [vmem:[#allocation2 + $0xd9] sm:$0xff] %vm291_vm0, %v243_v39  ;;  %v64_v34 = vld [vmem:[%s16996_s0 + $0x128] sm:$0xff]  ;;  %v67_v39 = vld [vmem:[%s16996_s0 + $0x140] sm:$0xff]  ;;  %v131_v44 = vmul.f32 %v11080_v4, %v63_v28  ;;  %v259_v51 = vmax.f32 %v195_v32, 0.0  ;;  %v201_v52 = vadd.f32 %v11103_v9, %v133_v33  ;;  %v202_v57 = vadd.f32 %v11103_v9, %v134_v38 }
  0x7e   :  { %v8844_v1 = vpack.i.bf16 %v572_v60, %v571_v55  ;;  %v577_v2 = vld [vmem:[#allocation2 + $0x91] sm:$0xff]  ;;  %454 = vst.msk [vmem:[#allocation2 + $0xe1] sm:$0xff] %vm291_vm0, %v244_v45  ;;  %v68_v45 = vld [vmem:[%s16996_s0 + $0x148] sm:$0xff]  ;;  %v132_v49 = vmul.f32 %v11080_v4, %v64_v34  ;;  %v135_v53 = vmul.f32 %v11080_v4, %v67_v39  ;;  %v261_v62 = vmax.f32 %v197_v43, 0.0  ;;  %v79_v38 = vld [vmem:[%s16996_s0 + $0x1a0] sm:$0xff] }
  0x7f   :  { %v578_v8 = vld [vmem:[#allocation2 + $0x99] sm:$0xff]  ;;  %457 = vst.msk [vmem:[#allocation2 + $0x109] sm:$0xff] %vm291_vm0, %v247_v50  ;;  %v136_v58 = vmul.f32 %v11080_v4, %v68_v45  ;;  %v199_v63 = vadd.f32 %v11103_v9, %v131_v44  ;;  %v137_v12 = vmul.f32 %v11080_v4, %v69_v59  ;;  %v141_v23 = vmul.f32 %v11080_v4, %v73_v6  ;;  %v76_v33 = vld [vmem:[%s16996_s0 + $0x188] sm:$0xff]  ;;  %v81_v59 = vld [vmem:[%s16996_s0 + $0x1b0] sm:$0xff] }
  0x80   :  { %8855 = vrot.lane.b32.xlu2 %v8854_v54, %s10843_s24  ;;  %v8859_v14 = vpack.i.bf16 %v578_v8, %v577_v2  ;;  %458 = vst.msk [vmem:[#allocation2 + $0x111] sm:$0xff] %vm291_vm0, %v248_v56  ;;  %v581_v19 = vld [vmem:[#allocation2 + $0xc1] sm:$0xff]  ;;  %v260_v56 = vmax.f32 %v196_v37, 0.0  ;;  %v262_v2 = vmax.f32 %v198_v48, 0.0  ;;  %v203_v11 = vadd.f32 %v11103_v9, %v135_v53 }
  0x81   :  { %v582_v20 = vld [vmem:[#allocation2 + $0xc9] sm:$0xff]  ;;  %455 = vst.msk [vmem:[#allocation2 + $0xf1] sm:$0xff] %vm291_vm0, %v245_v61  ;;  %v71_v50 = vld [vmem:[%s16996_s0 + $0x160] sm:$0xff]  ;;  %v204_v16 = vadd.f32 %v11103_v9, %v136_v58  ;;  %v142_v28 = vmul.f32 %v11080_v4, %v74_v13  ;;  %v145_v32 = vmul.f32 %v11080_v4, %v77_v18  ;;  %v146_v37 = vmul.f32 %v11080_v4, %v78_v24 }
  0x82   :  { %8845 = vrot.lane.b32.xlu1 %v8844_v1, %s10843_s24  ;;  %456 = vst.msk [vmem:[#allocation2 + $0xf9] sm:$0xff] %vm291_vm0, %v246_v3  ;;  %v579_v29 = vld [vmem:[#allocation2 + $0xa9] sm:$0xff]  ;;  %v8869_v35 = vpack.i.bf16 %v582_v20, %v581_v19  ;;  %v139_v0 = vmul.f32 %v11080_v4, %v71_v50  ;;  %v70_v1 = vld [vmem:[%s16996_s0 + $0x158] sm:$0xff]  ;;  %v200_v3 = vadd.f32 %v11103_v9, %v132_v49  ;;  %v83_v48 = vld [vmem:[%s16996_s0 + $0x1c0] sm:$0xff] }
  0x83   :  { %v580_v30 = vld [vmem:[#allocation2 + $0xb1] sm:$0xff]  ;;  %459 = vst.msk [vmem:[#allocation2 + $0x121] sm:$0xff] %vm291_vm0, %v249_v10  ;;  %v72_v54 = vld [vmem:[%s16996_s0 + $0x168] sm:$0xff]  ;;  %v265_v10 = vmax.f32 %v201_v52, 0.0  ;;  %v138_v17 = vmul.f32 %v11080_v4, %v70_v1  ;;  %v213_v52 = vadd.f32 %v11103_v9, %v145_v32  ;;  %v147_v53 = vmul.f32 %v11080_v4, %v79_v38 }
  0x84   :  { %8860 = vrot.lane.b32.xlu0 %v8859_v14, %s10843_s24  ;;  %460 = vst.msk [vmem:[#allocation2 + $0x129] sm:$0xff] %vm291_vm0, %v250_v15  ;;  %v583_v40 = vld [vmem:[#allocation2 + $0xd9] sm:$0xff]  ;;  %v8864_v46 = vpack.i.bf16 %v580_v30, %v579_v29  ;;  %v140_v5 = vmul.f32 %v11080_v4, %v72_v54  ;;  %v266_v15 = vmax.f32 %v202_v57, 0.0  ;;  %v207_v22 = vadd.f32 %v11103_v9, %v139_v0  ;;  %v80_v44 = vld [vmem:[%s16996_s0 + $0x1a8] sm:$0xff] }
  0x85   :  { %v584_v41 = vld [vmem:[#allocation2 + $0xe1] sm:$0xff]  ;;  %463 = vst.msk [vmem:[#allocation2 + $0x151] sm:$0xff] %vm291_vm0, %v253_v21  ;;  %v263_v21 = vmax.f32 %v199_v63, 0.0  ;;  %v264_v26 = vmax.f32 %v200_v3, 0.0  ;;  %v267_v30 = vmax.f32 %v203_v11, 0.0  ;;  %v214_v57 = vadd.f32 %v11103_v9, %v146_v37  ;;  %v82_v1 = vld [vmem:[%s16996_s0 + $0x1b8] sm:$0xff] }
  0x86   :  { %464 = vst.msk [vmem:[#allocation2 + $0x159] sm:$0xff] %vm291_vm0, %v254_v25  ;;  %v8874_v55 = vpack.i.bf16 %v584_v41, %v583_v40  ;;  %v587_v60 = vld [vmem:[#allocation2 + $0x109] sm:$0xff]  ;;  %v208_v27 = vadd.f32 %v11103_v9, %v140_v5  ;;  %v75_v29 = vld [vmem:[%s16996_s0 + $0x180] sm:$0xff]  ;;  %v271_v41 = vmax.f32 %v207_v22, 0.0  ;;  %v148_v58 = vmul.f32 %v11080_v4, %v80_v44 }
  0x87   :  { %461 = vst.msk [vmem:[#allocation2 + $0x139] sm:$0xff] %vm291_vm0, %v251_v31  ;;  %v588_v61 = vld [vmem:[#allocation2 + $0x111] sm:$0xff]  ;;  %v205_v31 = vadd.f32 %v11103_v9, %v137_v12  ;;  %v143_v43 = vmul.f32 %v11080_v4, %v75_v29  ;;  %v84_v54 = vld [vmem:[%s16996_s0 + $0x1c8] sm:$0xff]  ;;  %v151_v0 = vmul.f32 %v11080_v4, %v83_v48  ;;  %v149_v11 = vmul.f32 %v11080_v4, %v81_v59 }
  0x88   :  { %8870 = vrot.lane.b32.xlu2 %v8869_v35, %s10843_s24  ;;  %462 = vst.msk [vmem:[#allocation2 + $0x141] sm:$0xff] %vm291_vm0, %v252_v36  ;;  %v585_v7 = vld [vmem:[#allocation2 + $0xf1] sm:$0xff]  ;;  %v8884_v14 = vpack.i.bf16 %v588_v61, %v587_v60  ;;  %v268_v35 = vmax.f32 %v204_v16, 0.0  ;;  %v206_v36 = vadd.f32 %v11103_v9, %v138_v17  ;;  %v272_v45 = vmax.f32 %v208_v27, 0.0 }
  0x89   :  { %465 = vst.msk [vmem:[#allocation2 + $0x169] sm:$0xff] %vm291_vm0, %v255_v42  ;;  %v586_v8 = vld [vmem:[#allocation2 + $0xf9] sm:$0xff]  ;;  %v209_v42 = vadd.f32 %v11103_v9, %v141_v23  ;;  %v211_v63 = vadd.f32 %v11103_v9, %v143_v43  ;;  %v152_v6 = vmul.f32 %v11080_v4, %v84_v54  ;;  %v150_v16 = vmul.f32 %v11080_v4, %v82_v1  ;;  %v597_v27 = vld [vmem:[#allocation2 + $0x1b1] sm:$0xff] }
  0x8a   :  { %8865 = vrot.lane.b32.xlu1 %v8864_v46, %s10843_s24  ;;  %466 = vst.msk [vmem:[#allocation2 + $0x171] sm:$0xff] %vm291_vm0, %v256_v47  ;;  %v589_v19 = vld [vmem:[#allocation2 + $0x121] sm:$0xff]  ;;  %v8879_v25 = vpack.i.bf16 %v586_v8, %v585_v7  ;;  %v210_v46 = vadd.f32 %v11103_v9, %v142_v28  ;;  %v144_v47 = vmul.f32 %v11080_v4, %v76_v33  ;;  %v85_v7 = vld [vmem:[%s16996_s0 + $0x1d0] sm:$0xff]  ;;  %v277_v8 = vmax.f32 %v213_v52, 0.0  ;;  %v86_v12 = vld [vmem:[%s16996_s0 + $0x1d8] sm:$0xff] }
  0x8b   :  { %469 = vst.msk [vmem:[#allocation2 + $0x1c9] sm:$0xff] %vm291_vm0, %v259_v51  ;;  %v590_v20 = vld [vmem:[#allocation2 + $0x129] sm:$0xff]  ;;  %v269_v51 = vmax.f32 %v205_v31, 0.0  ;;  %v220_v23 = vadd.f32 %v11103_v9, %v152_v6  ;;  %v154_v24 = vmul.f32 %v11080_v4, %v86_v12  ;;  %v598_v28 = vld [vmem:[#allocation2 + $0x1b9] sm:$0xff] }
  0x8c   :  { %8875 = vrot.lane.b32.xlu0 %v8874_v55, %s10843_s24  ;;  %470 = vst.msk [vmem:[#allocation2 + $0x1d1] sm:$0xff] %vm291_vm0, %v260_v56  ;;  %v8889_v34 = vpack.i.bf16 %v590_v20, %v589_v19  ;;  %v593_v39 = vld [vmem:[#allocation2 + $0x151] sm:$0xff]  ;;  %v270_v56 = vmax.f32 %v206_v36, 0.0  ;;  %v274_v3 = vmax.f32 %v210_v46, 0.0  ;;  %v212_v5 = vadd.f32 %v11103_v9, %v144_v47 }
  0x8d   :  { %471 = vst.msk [vmem:[#allocation2 + $0x1e1] sm:$0xff] %vm291_vm0, %v261_v62  ;;  %v594_v40 = vld [vmem:[#allocation2 + $0x159] sm:$0xff]  ;;  %v273_v62 = vmax.f32 %v209_v42, 0.0  ;;  %v275_v19 = vmax.f32 %v211_v63, 0.0  ;;  %v219_v20 = vadd.f32 %v11103_v9, %v151_v0  ;;  %v222_v42 = vadd.f32 %v11103_v9, %v154_v24  ;;  %v629_v24 = vld [vmem:[#allocation2 + $0x2] sm:$0xff] }
  0x8e   :  { %472 = vst.msk [vmem:[#allocation2 + $0x1e9] sm:$0xff] %vm291_vm0, %v262_v2  ;;  %v591_v49 = vld [vmem:[#allocation2 + $0x139] sm:$0xff]  ;;  %v8899_v55 = vpack.i.bf16 %v594_v40, %v593_v39  ;;  %v276_v22 = vmax.f32 %v212_v5, 0.0  ;;  %v8909_v40 = vpack.i.bf16 %v598_v28, %v597_v27 }
  0x8f   :  { %475 = vst.msk [vmem:[#allocation2 + $0x211] sm:$0xff] %vm291_vm0, %v265_v10  ;;  %v592_v50 = vld [vmem:[#allocation2 + $0x141] sm:$0xff]  ;;  %v215_v10 = vadd.f32 %v11103_v9, %v147_v53  ;;  %v283_v38 = vmax.f32 %v219_v20, 0.0 }
  0x90   :  { %8885 = vrot.lane.b32.xlu2 %v8884_v14, %s10843_s24  ;;  %476 = vst.msk [vmem:[#allocation2 + $0x219] sm:$0xff] %vm291_vm0, %v266_v15  ;;  %v595_v60 = vld [vmem:[#allocation2 + $0x169] sm:$0xff]  ;;  %v8894_v2 = vpack.i.bf16 %v592_v50, %v591_v49  ;;  %v278_v14 = vmax.f32 %v214_v57, 0.0  ;;  %v216_v15 = vadd.f32 %v11103_v9, %v148_v58  ;;  %v286_v50 = vmax.f32 %v222_v42, 0.0  ;;  %v641_v42 = vld [vmem:[#allocation2 + $0x92] sm:$0xff] }
  0x91   :  { %473 = vst.msk [vmem:[#allocation2 + $0x1f9] sm:$0xff] %vm291_vm0, %v263_v21  ;;  %v596_v61 = vld [vmem:[#allocation2 + $0x171] sm:$0xff]  ;;  %v153_v21 = vmul.f32 %v11080_v4, %v85_v7  ;;  %v279_v29 = vmax.f32 %v215_v10, 0.0 }
  0x92   :  { %8880 = vrot.lane.b32.xlu1 %v8879_v25, %s10843_s24  ;;  %474 = vst.msk [vmem:[#allocation2 + $0x201] sm:$0xff] %vm291_vm0, %v264_v26  ;;  %v8904_v13 = vpack.i.bf16 %v596_v61, %v595_v60  ;;  %v599_v17 = vld [vmem:[#allocation2 + $0x1c9] sm:$0xff]  ;;  %v87_v25 = vld [vmem:[%s16996_s0 + $0x1e0] sm:$0xff]  ;;  %v280_v33 = vmax.f32 %v216_v15, 0.0 }
  0x93   :  { %477 = vst.msk [vmem:[#allocation2 + $0x229] sm:$0xff] %vm291_vm0, %v267_v30  ;;  %v600_v18 = vld [vmem:[#allocation2 + $0x1d1] sm:$0xff]  ;;  %v88_v26 = vld [vmem:[%s16996_s0 + $0x1e8] sm:$0xff]  ;;  %v217_v30 = vadd.f32 %v11103_v9, %v149_v11  ;;  %v155_v31 = vmul.f32 %v11080_v4, %v87_v25  ;;  %v221_v39 = vadd.f32 %v11103_v9, %v153_v21 }
  0x94   :  { %8890 = vrot.lane.b32.xlu0 %v8889_v34, %s10843_s24  ;;  %478 = vst.msk [vmem:[#allocation2 + $0x231] sm:$0xff] %vm291_vm0, %v268_v35  ;;  %v8914_v32 = vpack.i.bf16 %v600_v18, %v599_v17  ;;  %v218_v34 = vadd.f32 %v11103_v9, %v150_v16  ;;  %v156_v35 = vmul.f32 %v11080_v4, %v88_v26  ;;  %v601_v36 = vld [vmem:[#allocation2 + $0x1e1] sm:$0xff]  ;;  %v630_v25 = vld [vmem:[#allocation2 + $0xa] sm:$0xff] }
  0x95   :  { %481 = vst.msk [vmem:[#allocation2 + $0x259] sm:$0xff] %vm291_vm0, %v271_v41  ;;  %v602_v37 = vld [vmem:[#allocation2 + $0x1e9] sm:$0xff]  ;;  %v284_v41 = vmax.f32 %v220_v23, 0.0  ;;  %v281_v43 = vmax.f32 %v217_v30, 0.0  ;;  %v223_v44 = vadd.f32 %v11103_v9, %v155_v31  ;;  %v285_v49 = vmax.f32 %v221_v39, 0.0 }
  0x96   :  { %482 = vst.msk [vmem:[#allocation2 + $0x261] sm:$0xff] %vm291_vm0, %v272_v45  ;;  %v8919_v4 = vpack.i.bf16 %v602_v37, %v601_v36  ;;  %v282_v45 = vmax.f32 %v218_v34, 0.0  ;;  %v224_v46 = vadd.f32 %v11103_v9, %v156_v35  ;;  %v605_v47 = vld [vmem:[#allocation2 + $0x211] sm:$0xff]  ;;  %v8989_v28 = vpack.i.bf16 %v630_v25, %v629_v24  ;;  %v632_v30 = vld [vmem:[#allocation2 + $0x22] sm:$0xff]  ;;  %v634_v36 = vld [vmem:[#allocation2 + $0x3a] sm:$0xff] }
  0x97   :  { %479 = vst.msk [vmem:[#allocation2 + $0x241] sm:$0xff] %vm291_vm0, %v269_v51  ;;  %v606_v48 = vld [vmem:[#allocation2 + $0x219] sm:$0xff]  ;;  %v287_v53 = vmax.f32 %v223_v44, 0.0  ;;  %v638_v39 = vld [vmem:[#allocation2 + $0x6a] sm:$0xff] }
  0x98   :  { %8900 = vrot.lane.b32.xlu2 %v8899_v55, %s10843_s24  ;;  %480 = vst.msk [vmem:[#allocation2 + $0x249] sm:$0xff] %vm291_vm0, %v270_v56  ;;  %v603_v51 = vld [vmem:[#allocation2 + $0x1f9] sm:$0xff]  ;;  %v8929_v54 = vpack.i.bf16 %v606_v48, %v605_v47  ;;  %v288_v9 = vmax.f32 %v224_v46, 0.0  ;;  %v643_v47 = vld [vmem:[#allocation2 + $0xaa] sm:$0xff] }
  0x99   :  { %483 = vst.msk [vmem:[#allocation2 + $0x271] sm:$0xff] %vm291_vm0, %v273_v62  ;;  %v604_v52 = vld [vmem:[#allocation2 + $0x201] sm:$0xff]  ;;  %v636_v34 = vld [vmem:[#allocation2 + $0x52] sm:$0xff]  ;;  %v663_v24 = vld [vmem:[#allocation2 + $0x1ca] sm:$0xff] }
  0x9a   :  { %8895 = vrot.lane.b32.xlu1 %v8894_v2, %s10843_s24  ;;  %484 = vst.msk [vmem:[#allocation2 + $0x279] sm:$0xff] %vm291_vm0, %v274_v3  ;;  %v607_v55 = vld [vmem:[#allocation2 + $0x229] sm:$0xff]  ;;  %v8924_v57 = vpack.i.bf16 %v604_v52, %v603_v51  ;;  %v633_v35 = vld [vmem:[#allocation2 + $0x32] sm:$0xff]  ;;  %v647_v51 = vld [vmem:[#allocation2 + $0xda] sm:$0xff] }
  0x9b   :  { %487 = vst.msk [vmem:[#allocation2 + $0x2a1] sm:$0xff] %vm291_vm0, %v277_v8  ;;  %v608_v56 = vld [vmem:[#allocation2 + $0x231] sm:$0xff]  ;;  %v648_v52 = vld [vmem:[#allocation2 + $0xe2] sm:$0xff] }
  0x9c   :  { %8905 = vrot.lane.b32.xlu0 %v8904_v13, %s10843_s24  ;;  %488 = vst.msk [vmem:[#allocation2 + $0x2a9] sm:$0xff] %vm291_vm0, %v278_v14  ;;  %v8934_v58 = vpack.i.bf16 %v608_v56, %v607_v55  ;;  %v611_v59 = vld [vmem:[#allocation2 + $0x259] sm:$0xff]  ;;  %v11541_v55 = vpack.i.bf16 %v648_v52, %v647_v51 }
  0x9d   :  { %485 = vst.msk [vmem:[#allocation2 + $0x289] sm:$0xff] %vm291_vm0, %v275_v19  ;;  %v612_v60 = vld [vmem:[#allocation2 + $0x261] sm:$0xff]  ;;  %v644_v48 = vld [vmem:[#allocation2 + $0xb2] sm:$0xff] }
  0x9e   :  { %486 = vst.msk [vmem:[#allocation2 + $0x291] sm:$0xff] %vm291_vm0, %v276_v22  ;;  %v609_v61 = vld [vmem:[#allocation2 + $0x241] sm:$0xff]  ;;  %v8944_v63 = vpack.i.bf16 %v612_v60, %v611_v59  ;;  %v649_v56 = vld [vmem:[#allocation2 + $0xf2] sm:$0xff] }
  0x9f   :  { %489 = vst.msk [vmem:[#allocation2 + $0x2b9] sm:$0xff] %vm291_vm0, %v279_v29  ;;  %v610_v62 = vld [vmem:[#allocation2 + $0x249] sm:$0xff]  ;;  %v631_v29 = vld [vmem:[#allocation2 + $0x1a] sm:$0xff]  ;;  %v664_v25 = vld [vmem:[#allocation2 + $0x1d2] sm:$0xff] }
  0xa0   :  { %8915 = vrot.lane.b32.xlu2 %v8914_v32, %s10843_s24  ;;  %490 = vst.msk [vmem:[#allocation2 + $0x2c1] sm:$0xff] %vm291_vm0, %v280_v33  ;;  %v613_v0 = vld [vmem:[#allocation2 + $0x271] sm:$0xff]  ;;  %v8939_v2 = vpack.i.bf16 %v610_v62, %v609_v61  ;;  %v11508_v32 = vpack.i.bf16 %v632_v30, %v631_v29  ;;  %v653_v60 = vld [vmem:[#allocation2 + $0x122] sm:$0xff] }
  0xa1   :  { %493 = vst.msk [vmem:[#allocation2 + $0x2e9] sm:$0xff] %vm291_vm0, %v283_v38  ;;  %v614_v1 = vld [vmem:[#allocation2 + $0x279] sm:$0xff]  ;;  %v635_v33 = vld [vmem:[#allocation2 + $0x4a] sm:$0xff]  ;;  %v637_v38 = vld [vmem:[#allocation2 + $0x62] sm:$0xff] }
  0xa2   :  { %8910 = vrot.lane.b32.xlu1 %v8909_v40, %s10843_s24  ;;  %494 = vst.msk [vmem:[#allocation2 + $0x2f1] sm:$0xff] %vm291_vm0, %v284_v41  ;;  %v8949_v3 = vpack.i.bf16 %v614_v1, %v613_v0  ;;  %v617_v5 = vld [vmem:[#allocation2 + $0x2a1] sm:$0xff]  ;;  %v11513_v37 = vpack.i.bf16 %v636_v34, %v635_v33  ;;  %v11515_v40 = vpack.i.bf16 %v634_v36, %v633_v35  ;;  %v654_v61 = vld [vmem:[#allocation2 + $0x12a] sm:$0xff]  ;;  %v652_v0 = vld [vmem:[#allocation2 + $0x112] sm:$0xff]  ;;  %v11555_v1 = vpop.permute.xlu0 %8830 }
  0xa3   :  { %491 = vst.msk [vmem:[#allocation2 + $0x2d1] sm:$0xff] %vm291_vm0, %v281_v43  ;;  %v618_v6 = vld [vmem:[#allocation2 + $0x2a9] sm:$0xff]  ;;  %v11519_v41 = vpack.i.bf16 %v638_v39, %v637_v38  ;;  %v642_v43 = vld [vmem:[#allocation2 + $0x9a] sm:$0xff]  ;;  %v672_v35 = vld [vmem:[#allocation2 + $0x232] sm:$0xff] }
  0xa4   :  { %8920 = vrot.lane.b32.xlu0 %v8919_v4, %s10843_s24  ;;  %492 = vst.msk [vmem:[#allocation2 + $0x2d9] sm:$0xff] %vm291_vm0, %v282_v45  ;;  %v615_v7 = vld [vmem:[#allocation2 + $0x289] sm:$0xff]  ;;  %v8959_v10 = vpack.i.bf16 %v618_v6, %v617_v5  ;;  %v639_v4 = vld [vmem:[#allocation2 + $0x7a] sm:$0xff]  ;;  %v11527_v46 = vpack.i.bf16 %v642_v43, %v641_v42  ;;  %v669_v38 = vld [vmem:[#allocation2 + $0x212] sm:$0xff] }
  0xa5   :  { %495 = vst.msk [vmem:[#allocation2 + $0x301] sm:$0xff] %vm291_vm0, %v285_v49  ;;  %v616_v8 = vld [vmem:[#allocation2 + $0x291] sm:$0xff]  ;;  %v640_v45 = vld [vmem:[#allocation2 + $0x82] sm:$0xff]  ;;  %v670_v39 = vld [vmem:[#allocation2 + $0x21a] sm:$0xff] }
  0xa6   :  { %496 = vst.msk [vmem:[#allocation2 + $0x309] sm:$0xff] %vm291_vm0, %v286_v50  ;;  %v619_v11 = vld [vmem:[#allocation2 + $0x2b9] sm:$0xff]  ;;  %v8954_v13 = vpack.i.bf16 %v616_v8, %v615_v7  ;;  %v11529_v49 = vpack.i.bf16 %v640_v45, %v639_v4  ;;  %v11533_v50 = vpack.i.bf16 %v644_v48, %v643_v47  ;;  %v656_v5 = vld [vmem:[#allocation2 + $0x142] sm:$0xff]  ;;  %v659_v8 = vld [vmem:[#allocation2 + $0x16a] sm:$0xff]  ;;  %v9089_v48 = vpack.i.bf16 %v670_v39, %v669_v38 }
  0xa7   :  { %497 = vst.msk [vmem:[#allocation2 + $0x319] sm:$0xff] %vm291_vm0, %v287_v53  ;;  %v620_v12 = vld [vmem:[#allocation2 + $0x2c1] sm:$0xff]  ;;  %v671_v34 = vld [vmem:[#allocation2 + $0x22a] sm:$0xff]  ;;  %v677_v52 = vld [vmem:[#allocation2 + $0x272] sm:$0xff] }
  0xa8   :  { %8930 = vrot.lane.b32.xlu2 %v8929_v54, %s10843_s24  ;;  %498 = vst.msk [vmem:[#allocation2 + $0x321] sm:$0xff] %vm291_vm0, %v288_v9  ;;  %v8964_v14 = vpack.i.bf16 %v620_v12, %v619_v11  ;;  %v623_v15 = vld [vmem:[#allocation2 + $0x2e9] sm:$0xff]  ;;  %v657_v12 = vld [vmem:[#allocation2 + $0x152] sm:$0xff]  ;;  %v9094_v43 = vpack.i.bf16 %v672_v35, %v671_v34 }
  0xa9   :  { %v624_v16 = vld [vmem:[#allocation2 + $0x2f1] sm:$0xff]  ;;  %v645_v54 = vld [vmem:[#allocation2 + $0xc2] sm:$0xff] }
  0xaa   :  { %8925 = vrot.lane.b32.xlu1 %v8924_v57, %s10843_s24  ;;  %v621_v17 = vld [vmem:[#allocation2 + $0x2d1] sm:$0xff]  ;;  %v8974_v19 = vpack.i.bf16 %v624_v16, %v623_v15  ;;  %v650_v57 = vld [vmem:[#allocation2 + $0xfa] sm:$0xff]  ;;  %v668_v29 = vld [vmem:[#allocation2 + $0x202] sm:$0xff] }
  0xab   :  { %v622_v18 = vld [vmem:[#allocation2 + $0x2d9] sm:$0xff]  ;;  %v646_v9 = vld [vmem:[#allocation2 + $0xca] sm:$0xff]  ;;  %v11547_v59 = vpack.i.bf16 %v650_v57, %v649_v56  ;;  %v673_v4 = vld [vmem:[#allocation2 + $0x242] sm:$0xff] }
  0xac   :  { %8935 = vrot.lane.b32.xlu0 %v8934_v58, %s10843_s24  ;;  %v625_v20 = vld [vmem:[#allocation2 + $0x301] sm:$0xff]  ;;  %v8969_v22 = vpack.i.bf16 %v622_v18, %v621_v17  ;;  %v11543_v58 = vpack.i.bf16 %v646_v9, %v645_v54  ;;  %v661_v16 = vld [vmem:[#allocation2 + $0x1b2] sm:$0xff]  ;;  %v674_v45 = vld [vmem:[#allocation2 + $0x24a] sm:$0xff] }
  0xad   :  { %v626_v21 = vld [vmem:[#allocation2 + $0x309] sm:$0xff]  ;;  %v662_v17 = vld [vmem:[#allocation2 + $0x1ba] sm:$0xff]  ;;  %v9099_v51 = vpack.i.bf16 %v674_v45, %v673_v4  ;;  %v688_v35 = vld [vmem:[#allocation2 + $0x2f2] sm:$0xff] }
  0xae   :  { %v8979_v23 = vpack.i.bf16 %v626_v21, %v625_v20  ;;  %v627_v26 = vld [vmem:[#allocation2 + $0x319] sm:$0xff]  ;;  %v9069_v20 = vpack.i.bf16 %v662_v17, %v661_v16  ;;  %v665_v21 = vld [vmem:[#allocation2 + $0x1e2] sm:$0xff]  ;;  %v682_v17 = vld [vmem:[#allocation2 + $0x2aa] sm:$0xff] }
  0xaf   :  { %v628_v27 = vld [vmem:[#allocation2 + $0x321] sm:$0xff]  ;;  %v687_v34 = vld [vmem:[#allocation2 + $0x2ea] sm:$0xff] }
  0xb0   :  { %8945 = vrot.lane.b32.xlu2 %v8944_v63, %s10843_s24  ;;  %v8984_v31 = vpack.i.bf16 %v628_v27, %v627_v26  ;;  %v651_v63 = vld [vmem:[#allocation2 + $0x10a] sm:$0xff]  ;;  %v678_v54 = vld [vmem:[#allocation2 + $0x27a] sm:$0xff]  ;;  %v676_v57 = vld [vmem:[#allocation2 + $0x262] sm:$0xff] }
  0xb1   :  { %v11559_v6 = vpack.i.bf16 %v652_v0, %v651_v63  ;;  %v675_v56 = vld [vmem:[#allocation2 + $0x25a] sm:$0xff]  ;;  %v679_v63 = vld [vmem:[#allocation2 + $0x28a] sm:$0xff]  ;;  %v680_v0 = vld [vmem:[#allocation2 + $0x292] sm:$0xff] }
  0xb2   :  { %8940 = vrot.lane.b32.xlu1 %v8939_v2, %s10843_s24  ;;  %v11557_v2 = vpack.i.bf16 %v654_v61, %v653_v60  ;;  %v9109_v61 = vpack.i.bf16 %v678_v54, %v677_v52  ;;  %v681_v16 = vld [vmem:[#allocation2 + $0x2a2] sm:$0xff]  ;;  %v696_v52 = vld [vmem:[#allocation2 + $0x38] sm:$0xff] }
  0xb3   :  { %v692_v4 = vld [vmem:[#allocation2 + $0x322] sm:$0xff] }
  0xb4   :  { %8950 = vrot.lane.b32.xlu0 %v8949_v3, %s10843_s24  ;;  %v655_v3 = vld [vmem:[#allocation2 + $0x13a] sm:$0xff] }
  0xb5   :  { %v11563_v7 = vpack.i.bf16 %v656_v5, %v655_v3  ;;  %v9104_v5 = vpack.i.bf16 %v676_v57, %v675_v56  ;;  %v57_v56 = vld [vmem:[%s16996_s0 + $0xf0] sm:$0xff]  ;;  %v58_v57 = vld [vmem:[%s16996_s0 + $0xf8] sm:$0xff] }
  0xb8   :  { %8960 = vrot.lane.b32.xlu2 %v8959_v10, %s10843_s24  ;;  %v660_v10 = vld [vmem:[#allocation2 + $0x172] sm:$0xff] }
  0xb9   :  { %v11573_v15 = vpack.i.bf16 %v660_v10, %v659_v8  ;;  %v9114_v8 = vpack.i.bf16 %v680_v0, %v679_v63  ;;  %v683_v10 = vld [vmem:[#allocation2 + $0x2ba] sm:$0xff] }
  0xba   :  { %8955 = vrot.lane.b32.xlu1 %v8954_v13, %s10843_s24  ;;  %v658_v13 = vld [vmem:[#allocation2 + $0x15a] sm:$0xff] }
  0xbb   :  { %v11641_v63 = vld [vmem:[%s16997_s1] ss:$0 sm:$0xff]  ;;  %s10845_s1 = smov 96  }
  0xbc   :  { %8965 = vrot.lane.b32.xlu0 %v8964_v14, %s10843_s24  ;;  %v125_v0 = vmul.f32 %v11641_v63, %v57_v56 }
  0xc0   :  { %8975 = vrot.lane.b32.xlu2 %v8974_v19, %s10843_s24  ;;  %v11577_v19 = vpack.i.bf16 %v658_v13, %v657_v12  ;;  %v684_v12 = vld [vmem:[#allocation2 + $0x2c2] sm:$0xff] }
  0xc2   :  { %8970 = vrot.lane.b32.xlu1 %v8969_v22, %s10843_s24  ;;  %v666_v22 = vld [vmem:[#allocation2 + $0x1ea] sm:$0xff] }
  0xc3   :  { %v9079_v27 = vpack.i.bf16 %v666_v22, %v665_v21  ;;  %v9124_v21 = vpack.i.bf16 %v684_v12, %v683_v10  ;;  %v685_v22 = vld [vmem:[#allocation2 + $0x2d2] sm:$0xff] }
  0xc4   :  { %8980 = vrot.lane.b32.xlu0 %v8979_v23, %s10843_s24  ;;  %v11649_v12 = vld [vmem:[#allocation2 + $0x18] sm:$0xff] }
  0xc8   :  { %8990 = vrot.lane.b32.xlu2 %v8989_v28, %s10844_s16  ;;  %v667_v28 = vld [vmem:[#allocation2 + $0x1fa] sm:$0xff] }
  0xc9   :  { %v9084_v33 = vpack.i.bf16 %v668_v29, %v667_v28  ;;  %v689_v29 = vld [vmem:[#allocation2 + $0x302] sm:$0xff] }
  0xca   :  { %8985 = vrot.lane.b32.xlu1 %v8984_v31, %s10843_s24  ;;  %v9074_v31 = vpack.i.bf16 %v664_v25, %v663_v24  ;;  %v686_v24 = vld [vmem:[#allocation2 + $0x2da] sm:$0xff] }
  0xcb   :  { %v9129_v28 = vpack.i.bf16 %v686_v24, %v685_v22  ;;  %v11656_v22 = vld [vmem:[%s16998_s2] ss:$0 sm:$0xff] }
  0xcc   :  { %8995 = vrot.lane.b32.xlu0 %v11508_v32, %s10844_s16  ;;  %v193_v24 = vadd.f32 %v11656_v22, %v125_v0  ;;  %v704_v0 = vld [vmem:[#allocation2 + $0x98] sm:$0xff] }
  0xd0   :  { %9005 = vrot.lane.b32.xlu2 %v11513_v37, %s10844_s16 }
  0xd2   :  { %9000 = vrot.lane.b32.xlu1 %v11515_v40, %s10844_s16  ;;  %v11523_v44 = vpop.permute.xlu2 %8850 }
  0xd4   :  { %9010 = vrot.lane.b32.xlu0 %v11519_v41, %s10844_s16 }
  0xd8   :  { %9020 = vrot.lane.b32.xlu2 %v11527_v46, %s10844_s16 }
  0xda   :  { %9015 = vrot.lane.b32.xlu1 %v11529_v49, %s10844_s16  ;;  %v11537_v53 = vpop.permute.xlu2 %8855 }
  0xdc   :  { %9025 = vrot.lane.b32.xlu0 %v11533_v50, %s10844_s16 }
  0xe0   :  { %9035 = vrot.lane.b32.xlu2 %v11541_v55, %s10844_s16 }
  0xe2   :  { %9030 = vrot.lane.b32.xlu1 %v11543_v58, %s10844_s16  ;;  %v11551_v62 = vpop.permute.xlu2 %8870 }
  0xe3   :  { %17090 = vst [vmem:[#allocation6_spill] sm:$0xff] %v11551_v62 }
  0xe4   :  { %9040 = vrot.lane.b32.xlu0 %v11547_v59, %s10844_s16 }
  0xe8   :  { %9050 = vrot.lane.b32.xlu2 %v11557_v2, %s10844_s16 }
  0xea   :  { %9045 = vrot.lane.b32.xlu1 %v11559_v6, %s10844_s16  ;;  %v11567_v11 = vpop.permute.xlu2 %8885 }
  0xeb   :  { %17091 = vst [vmem:[#allocation7_spill] sm:$0xff] %v11567_v11  ;;  %v732_v11 = vld [vmem:[#allocation2 + $0x218] sm:$0xff] }
  0xec   :  { %9055 = vrot.lane.b32.xlu0 %v11563_v7, %s10844_s16  ;;  %v11571_v14 = vpop.permute.xlu1 %8840 }
  0xee   :  { %v11575_v18 = vpop.permute.xlu0 %8835 }
  0xf0   :  { %9065 = vrot.lane.b32.xlu2 %v11573_v15, %s10844_s16 }
  0xf2   :  { %9060 = vrot.lane.b32.xlu1 %v11577_v19, %s10844_s16  ;;  %v11583_v23 = vpop.permute.xlu2 %8900 }
  0xf3   :  { %17092 = vst [vmem:[#allocation8_spill] sm:$0xff] %v11583_v23  ;;  %v716_v23 = vld [vmem:[#allocation2 + $0x128] sm:$0xff] }
  0xf4   :  { %9070 = vrot.lane.b32.xlu0 %v9069_v20, %s10844_s16  ;;  %v11586_v26 = vpop.permute.xlu1 %8845 }
  0xf6   :  { %v11588_v30 = vpop.permute.xlu0 %8860 }
  0xf8   :  { %9080 = vrot.lane.b32.xlu2 %v9079_v27, %s10844_s16  ;;  %v9119_v27 = vpack.i.bf16 %v682_v17, %v681_v16  ;;  %v11651_v16 = vld [vmem:[#allocation2 + $0x20] sm:$0xff]  ;;  %v697_v17 = vld [vmem:[#allocation2 + $0x48] sm:$0xff] }
  0xfa   :  { %9075 = vrot.lane.b32.xlu1 %v9074_v31, %s10844_s16  ;;  %v11592_v36 = vpop.permute.xlu2 %8915  ;;  %v690_v31 = vld [vmem:[#allocation2 + $0x30a] sm:$0xff] }
  0xfb   :  { %v9139_v39 = vpack.i.bf16 %v690_v31, %v689_v29  ;;  %v9149_v29 = vpack.i.bf16 %v11651_v16, %v11649_v12  ;;  %v257_v31 = vmax.f32 %v193_v24, 0.0  ;;  %v708_v24 = vld [vmem:[#allocation2 + $0xc8] sm:$0xff] }
  0xfc   :  { %9085 = vrot.lane.b32.xlu0 %v9084_v33, %s10844_s16  ;;  %v11595_v42 = vpop.permute.xlu1 %8865 }
  0xfd   :  { %467 = vst.msk [vmem:[#allocation2 + $0x181] sm:$0xff] %vm291_vm0, %v257_v31  ;;  %v706_v31 = vld [vmem:[#allocation2 + $0xb0] sm:$0xff] }
  0xfe   :  { %v11597_v47 = vpop.permute.xlu0 %8875 }
  0xff   :  { %17093 = vst [vmem:[#allocation9_spill] sm:$0xff] %v11597_v47 }
 0x100   :  { %9095 = vrot.lane.b32.xlu2 %v9094_v43, %s10844_s16  ;;  %v691_v43 = vld [vmem:[#allocation2 + $0x31a] sm:$0xff] }
 0x102   :  { %9090 = vrot.lane.b32.xlu1 %v9089_v48, %s10844_s16  ;;  %v11601_v9 = vpop.permute.xlu2 %8930  ;;  %v9134_v48 = vpack.i.bf16 %v688_v35, %v687_v34 }
 0x104   :  { %9100 = vrot.lane.b32.xlu0 %v9099_v51, %s10844_s16  ;;  %v11604_v60 = vpop.permute.xlu1 %8880  ;;  %v9144_v51 = vpack.i.bf16 %v692_v4, %v691_v43  ;;  %v702_v43 = vld [vmem:[#allocation2 + $0x80] sm:$0xff] }
 0x105   :  { %17094 = vst [vmem:[#allocation10_spill] sm:$0xff] %v11604_v60  ;;  %v738_v60 = vld [vmem:[#allocation2 + $0x260] sm:$0xff] }
 0x106   :  { %v11606_v3 = vpop.permute.xlu0 %8890 }
 0x107   :  { %17095 = vst [vmem:[#allocation11_spill] sm:$0xff] %v11606_v3  ;;  %v11727_v3 = vld [vmem:[#allocation2 + $0x1e0] sm:$0xff] }
 0x108   :  { %9110 = vrot.lane.b32.xlu2 %v9109_v61, %s10844_s16  ;;  %v11636_v61 = vld [vmem:[#allocation2 + $0x30] sm:$0xff] }
 0x109   :  { %v9154_v10 = vpack.i.bf16 %v696_v52, %v11636_v61 }
 0x10a   :  { %9105 = vrot.lane.b32.xlu1 %v9104_v5, %s10844_s16  ;;  %v11610_v13 = vpop.permute.xlu2 %8945  ;;  %v126_v5 = vmul.f32 %v11641_v63, %v58_v57  ;;  %v703_v57 = vld [vmem:[#allocation2 + $0x90] sm:$0xff] }
 0x10b   :  { %17096 = vst [vmem:[#allocation12_spill] sm:$0xff] %v11610_v13  ;;  %v406_v13 = vld [vmem:[%s17001_s5 + $0x30] sm:$0xff] }
 0x10c   :  { %9115 = vrot.lane.b32.xlu0 %v9114_v8, %s10844_s16  ;;  %v11613_v20 = vpop.permute.xlu1 %8895 }
 0x10d   :  { %17097 = vst [vmem:[#allocation13_spill] sm:$0xff] %v11613_v20 }
 0x10e   :  { %v11615_v25 = vpop.permute.xlu0 %8905 }
 0x10f   :  { %17098 = vst [vmem:[#allocation14_spill] sm:$0xff] %v11615_v25 }
 0x110   :  { %9125 = vrot.lane.b32.xlu2 %v9124_v21, %s10844_s16  ;;  %v698_v21 = vld [vmem:[#allocation2 + $0x50] sm:$0xff] }
 0x111   :  { %v9159_v35 = vpack.i.bf16 %v698_v21, %v697_v17  ;;  %v9174_v17 = vpack.i.bf16 %v704_v0, %v703_v57  ;;  %v707_v21 = vld [vmem:[#allocation2 + $0xc0] sm:$0xff]  ;;  %v714_v57 = vld [vmem:[#allocation2 + $0x110] sm:$0xff] }
 0x112   :  { %9120 = vrot.lane.b32.xlu1 %v9119_v27, %s10844_s16  ;;  %v11619_v33 = vpop.permute.xlu2 %8960  ;;  %v194_v27 = vadd.f32 %v11656_v22, %v126_v5 }
 0x113   :  { %17099 = vst [vmem:[#allocation15_spill] sm:$0xff] %v11619_v33  ;;  %v11729_v33 = vld [vmem:[#allocation2 + $0x1e8] sm:$0xff] }
 0x114   :  { %9130 = vrot.lane.b32.xlu0 %v9129_v28, %s10844_s16  ;;  %v11622_v38 = vpop.permute.xlu1 %8910  ;;  %v258_v34 = vmax.f32 %v194_v27, 0.0 }
 0x116   :  { %v11624_v45 = vpop.permute.xlu0 %8920  ;;  %468 = vst.msk [vmem:[#allocation2 + $0x189] sm:$0xff] %vm291_vm0, %v258_v34 }
 0x118   :  { %9140 = vrot.lane.b32.xlu2 %v9139_v39, %s10844_s16  ;;  %v701_v39 = vld [vmem:[#allocation2 + $0x78] sm:$0xff] }
 0x119   :  { %v9169_v56 = vpack.i.bf16 %v702_v43, %v701_v39  ;;  %v709_v39 = vld [vmem:[#allocation2 + $0xd8] sm:$0xff]  ;;  %v710_v43 = vld [vmem:[#allocation2 + $0xe0] sm:$0xff] }
 0x11a   :  { %9135 = vrot.lane.b32.xlu1 %v9134_v48, %s10844_s16  ;;  %v11628_v54 = vpop.permute.xlu2 %8975  ;;  %v699_v48 = vld [vmem:[#allocation2 + $0x60] sm:$0xff] }
 0x11b   :  { %17100 = vst [vmem:[#allocation16_spill] sm:$0xff] %v11628_v54  ;;  %v712_v54 = vld [vmem:[#allocation2 + $0xf8] sm:$0xff] }
 0x11c   :  { %9145 = vrot.lane.b32.xlu0 %v9144_v51, %s10844_s16  ;;  %v11646_v8 = vpop.permute.xlu1 %8925  ;;  %v700_v51 = vld [vmem:[#allocation2 + $0x68] sm:$0xff] }
 0x11e   :  { %v11660_v28 = vpop.permute.xlu0 %8935 }
 0x120   :  { %9155 = vrot.lane.b32.xlu2 %v9154_v10, %s10845_s1  ;;  %v9164_v10 = vpack.i.bf16 %v700_v51, %v699_v48  ;;  %v9189_v51 = vpack.i.bf16 %v710_v43, %v709_v39  ;;  %v720_v39 = vld [vmem:[#allocation2 + $0x158] sm:$0xff] }
 0x122   :  { %9150 = vrot.lane.b32.xlu1 %v9149_v29, %s10845_s1  ;;  %v11667_v4 = vpop.permute.xlu2 %8990  ;;  %v705_v29 = vld [vmem:[#allocation2 + $0xa8] sm:$0xff] }
 0x123   :  { %v9179_v48 = vpack.i.bf16 %v706_v31, %v705_v29 }
 0x124   :  { %9160 = vrot.lane.b32.xlu0 %v9159_v35, %s10845_s1  ;;  %v11671_v52 = vpop.permute.xlu1 %8940  ;;  %v9184_v35 = vpack.i.bf16 %v708_v24, %v707_v21  ;;  %v715_v24 = vld [vmem:[#allocation2 + $0x120] sm:$0xff] }
 0x125   :  { %v9204_v31 = vpack.i.bf16 %v716_v23, %v715_v24  ;;  %v89_v24 = vld [vmem:[%s16996_s0 + $0x1f0] sm:$0xff] }
 0x126   :  { %v11673_v5 = vpop.permute.xlu0 %8950 }
 0x127   :  { %17101 = vst [vmem:[#allocation17_spill] sm:$0xff] %v11673_v5  ;;  %v736_v5 = vld [vmem:[#allocation2 + $0x248] sm:$0xff] }
 0x128   :  { %9170 = vrot.lane.b32.xlu2 %v9169_v56, %s10845_s1  ;;  %v713_v56 = vld [vmem:[#allocation2 + $0x108] sm:$0xff] }
 0x129   :  { %v9199_v21 = vpack.i.bf16 %v714_v57, %v713_v56  ;;  %v721_v57 = vld [vmem:[#allocation2 + $0x168] sm:$0xff] }
 0x12a   :  { %9165 = vrot.lane.b32.xlu1 %v9164_v10, %s10845_s1  ;;  %v11677_v27 = vpop.permute.xlu2 %9005  ;;  %v711_v10 = vld [vmem:[#allocation2 + $0xf0] sm:$0xff] }
 0x12b   :  { %v9194_v29 = vpack.i.bf16 %v712_v54, %v711_v10 }
 0x12c   :  { %9175 = vrot.lane.b32.xlu0 %v9174_v17, %s10845_s1  ;;  %v11680_v34 = vpop.permute.xlu1 %8955 }
 0x12d   :  { %17102 = vst [vmem:[#allocation18_spill] sm:$0xff] %v11680_v34 }
 0x12e   :  { %v11682_v25 = vpop.permute.xlu0 %8965 }
 0x12f   :  { %17103 = vst [vmem:[#allocation19_spill] sm:$0xff] %v11682_v25  ;;  %v718_v25 = vld [vmem:[#allocation2 + $0x140] sm:$0xff] }
 0x130   :  { %9185 = vrot.lane.b32.xlu2 %v9184_v35, %s10845_s1  ;;  %v719_v35 = vld [vmem:[#allocation2 + $0x150] sm:$0xff] }
 0x131   :  { %v9214_v56 = vpack.i.bf16 %v720_v39, %v719_v35  ;;  %v724_v35 = vld [vmem:[#allocation2 + $0x188] sm:$0xff] }
 0x132   :  { %9180 = vrot.lane.b32.xlu1 %v9179_v48, %s10845_s1  ;;  %v11686_v0 = vpop.permute.xlu2 %9020  ;;  %v717_v48 = vld [vmem:[#allocation2 + $0x138] sm:$0xff] }
 0x133   :  { %v9209_v54 = vpack.i.bf16 %v718_v25, %v717_v48  ;;  %v723_v25 = vld [vmem:[#allocation2 + $0x180] sm:$0xff] }
 0x134   :  { %9190 = vrot.lane.b32.xlu0 %v9189_v51, %s10845_s1  ;;  %v11689_v17 = vpop.permute.xlu1 %8970 }
 0x135   :  { %17104 = vst [vmem:[#allocation20_spill] sm:$0xff] %v11689_v17  ;;  %v722_v17 = vld [vmem:[#allocation2 + $0x170] sm:$0xff] }
 0x136   :  { %v11691_v20 = vpop.permute.xlu0 %8980  ;;  %v9219_v23 = vpack.i.bf16 %v722_v17, %v721_v57  ;;  %v157_v17 = vmul.f32 %v11641_v63, %v89_v24 }
 0x137   :  { %17105 = vst [vmem:[#allocation21_spill] sm:$0xff] %v11691_v20 }
 0x138   :  { %9200 = vrot.lane.b32.xlu2 %v9199_v21, %s10845_s1  ;;  %v11706_v21 = vld [vmem:[#allocation2 + $0x1c8] sm:$0xff]  ;;  %v225_v57 = vadd.f32 %v11656_v22, %v157_v17 }
 0x13a   :  { %9195 = vrot.lane.b32.xlu1 %v9194_v29, %s10845_s1  ;;  %v11695_v43 = vpop.permute.xlu2 %9035  ;;  %v90_v29 = vld [vmem:[%s16996_s0 + $0x1f8] sm:$0xff]  ;;  %v289_v24 = vmax.f32 %v225_v57, 0.0  ;;  %v734_v57 = vld [vmem:[#allocation2 + $0x230] sm:$0xff] }
 0x13b   :  { %17106 = vst [vmem:[#allocation22_spill] sm:$0xff] %v11695_v43  ;;  %v158_v39 = vmul.f32 %v11641_v63, %v90_v29  ;;  %v731_v29 = vld [vmem:[#allocation2 + $0x210] sm:$0xff]  ;;  %v740_v43 = vld [vmem:[#allocation2 + $0x278] sm:$0xff] }
 0x13c   :  { %9205 = vrot.lane.b32.xlu0 %v9204_v31, %s10845_s1  ;;  %v11698_v51 = vpop.permute.xlu1 %8985  ;;  %v11714_v31 = vld [vmem:[#allocation2 + $0x1d0] sm:$0xff]  ;;  %499 = vst.msk [vmem:[#allocation2 + $0x331] sm:$0xff] %vm291_vm0, %v289_v24 }
 0x13d   :  { %17107 = vst [vmem:[#allocation23_spill] sm:$0xff] %v11698_v51 }
 0x13e   :  { %v11700_v20 = vpop.permute.xlu0 %8995 }
 0x140   :  { %9215 = vrot.lane.b32.xlu2 %v9214_v56, %s10845_s1  ;;  %v9229_v56 = vpack.i.bf16 %v11714_v31, %v11706_v21 }
 0x142   :  { %9210 = vrot.lane.b32.xlu1 %v9209_v54, %s10845_s1  ;;  %v11704_v10 = vpop.permute.xlu2 %9050  ;;  %v226_v54 = vadd.f32 %v11656_v22, %v158_v39  ;;  %v9244_v39 = vpack.i.bf16 %v732_v11, %v731_v29  ;;  %v739_v29 = vld [vmem:[#allocation2 + $0x270] sm:$0xff] }
 0x143   :  { %17108 = vst [vmem:[#allocation24_spill] sm:$0xff] %v11704_v10  ;;  %v9224_v10 = vpack.i.bf16 %v724_v35, %v723_v25  ;;  %v729_v25 = vld [vmem:[#allocation2 + $0x1f8] sm:$0xff]  ;;  %v730_v35 = vld [vmem:[#allocation2 + $0x200] sm:$0xff] }
 0x144   :  { %9220 = vrot.lane.b32.xlu0 %v9219_v23, %s10845_s1  ;;  %v11719_v48 = vpop.permute.xlu1 %9000  ;;  %v290_v63 = vmax.f32 %v226_v54, 0.0  ;;  %v9234_v23 = vpack.i.bf16 %v11729_v33, %v11727_v3  ;;  %v9239_v34 = vpack.i.bf16 %v730_v35, %v729_v25  ;;  %v415_v35 = vld [vmem:[%s17001_s5 + $0x78] sm:$0xff] }
 0x145   :  { %3192 = vmatpush.msra.mxu0 %v415_v35  ;;  %8797 = vmatpush.msra.mxu1 %v415_v35 }
 0x146   :  { %v11725_v51 = vpop.permute.xlu0 %9010  ;;  %500 = vst.msk [vmem:[#allocation2 + $0x339] sm:$0xff] %vm291_vm0, %v290_v63 }
 0x148   :  { %9230 = vrot.lane.b32.xlu2 %v9229_v56, %s10845_s1  ;;  %v733_v56 = vld [vmem:[#allocation2 + $0x228] sm:$0xff] }
 0x149   :  { %v9249_v24 = vpack.i.bf16 %v734_v57, %v733_v56  ;;  %v744_v56 = vld [vmem:[#allocation2 + $0x2a8] sm:$0xff] }
 0x14a   :  { %9225 = vrot.lane.b32.xlu1 %v9224_v10, %s10845_s1  ;;  %v11736_v22 = vpop.permute.xlu2 %9065  ;;  %v737_v10 = vld [vmem:[#allocation2 + $0x258] sm:$0xff] }
 0x14b   :  { %17109 = vst [vmem:[#allocation25_spill] sm:$0xff] %v11736_v22  ;;  %v735_v22 = vld [vmem:[#allocation2 + $0x240] sm:$0xff]  ;;  %v9259_v11 = vpack.i.bf16 %v738_v60, %v737_v10  ;;  %v741_v60 = vld [vmem:[#allocation2 + $0x288] sm:$0xff] }
 0x14c   :  { %9235 = vrot.lane.b32.xlu0 %v9234_v23, %s10845_s1  ;;  %v11740_v17 = vpop.permute.xlu1 %9015  ;;  %v9254_v25 = vpack.i.bf16 %v736_v5, %v735_v22  ;;  %v414_v5 = vld [vmem:[%s17001_s5 + $0x70] sm:$0xff] }
 0x14d   :  { %3193 = vmatpush.msra.mxu0 %v414_v5  ;;  %8798 = vmatpush.msra.mxu1 %v414_v5  ;;  %v748_v5 = vld [vmem:[#allocation2 + $0x2d8] sm:$0xff] }
 0x14e   :  { %v11742_v54 = vpop.permute.xlu0 %9025 }
 0x150   :  { %9245 = vrot.lane.b32.xlu2 %v9244_v39, %s10845_s1  ;;  %v743_v39 = vld [vmem:[#allocation2 + $0x2a0] sm:$0xff] }
 0x151   :  { %v9274_v10 = vpack.i.bf16 %v744_v56, %v743_v39  ;;  %v749_v56 = vld [vmem:[#allocation2 + $0x2e8] sm:$0xff] }
 0x152   :  { %9240 = vrot.lane.b32.xlu1 %v9239_v34, %s10845_s1  ;;  %v11746_v63 = vpop.permute.xlu2 %9080  ;;  %v9264_v34 = vpack.i.bf16 %v740_v43, %v739_v29  ;;  %v745_v43 = vld [vmem:[#allocation2 + $0x2b8] sm:$0xff]  ;;  %v413_v29 = vld [vmem:[%s17001_s5 + $0x68] sm:$0xff] }
 0x153   :  { %3194 = vmatpush.msra.mxu0 %v413_v29  ;;  %8799 = vmatpush.msra.mxu1 %v413_v29  ;;  %v409_v29 = vld [vmem:[%s17001_s5 + $0x48] sm:$0xff] }
 0x154   :  { %9250 = vrot.lane.b32.xlu0 %v9249_v24, %s10845_s1  ;;  %v11749_v23 = vpop.permute.xlu1 %9030  ;;  %v742_v24 = vld [vmem:[#allocation2 + $0x290] sm:$0xff] }
 0x155   :  { %17110 = vst [vmem:[#allocation26_spill] sm:$0xff] %v11749_v23  ;;  %v9269_v35 = vpack.i.bf16 %v742_v24, %v741_v60  ;;  %v747_v24 = vld [vmem:[#allocation2 + $0x2d0] sm:$0xff] }
 0x156   :  { %v11751_v47 = vpop.permute.xlu0 %9040  ;;  %v864_v23 = vld [vmem:[#allocation2 + $0x24a] sm:$0xff] }
 0x157   :  { %17111 = vst [vmem:[#allocation27_spill] sm:$0xff] %v11751_v47  ;;  %v412_v47 = vld [vmem:[%s17001_s5 + $0x60] sm:$0xff] }
 0x158   :  { %9260 = vrot.lane.b32.xlu2 %v9259_v11, %s10845_s1  ;;  %v746_v11 = vld [vmem:[#allocation2 + $0x2c0] sm:$0xff]  ;;  %3195 = vmatpush.msra.mxu0 %v412_v47 }
 0x159   :  { %v9279_v39 = vpack.i.bf16 %v746_v11, %v745_v43  ;;  %8800 = vmatpush.msra.mxu1 %v412_v47  ;;  %v751_v11 = vld [vmem:[#allocation2 + $0x300] sm:$0xff]  ;;  %v752_v47 = vld [vmem:[#allocation2 + $0x308] sm:$0xff] }
 0x15a   :  { %9255 = vrot.lane.b32.xlu1 %v9254_v25, %s10845_s1  ;;  %v11758_v57 = vpop.permute.xlu2 %9095 }
 0x15c   :  { %9265 = vrot.lane.b32.xlu0 %v9264_v34, %s10845_s1  ;;  %v11764_v22 = vpop.permute.xlu1 %9045  ;;  %v411_v34 = vld [vmem:[%s17001_s5 + $0x58] sm:$0xff] }
 0x15d   :  { %17112 = vst [vmem:[#allocation28_spill] sm:$0xff] %v11764_v22  ;;  %v750_v22 = vld [vmem:[#allocation2 + $0x2f0] sm:$0xff]  ;;  %3196 = vmatpush.msra.mxu0 %v411_v34  ;;  %8801 = vmatpush.msra.mxu1 %v411_v34  ;;  %v408_v34 = vld [vmem:[%s17001_s5 + $0x40] sm:$0xff] }
 0x15e   :  { %v11769_v25 = vpop.permute.xlu0 %9055  ;;  %v9289_v43 = vpack.i.bf16 %v750_v22, %v749_v56  ;;  %v407_v22 = vld [vmem:[%s17001_s5 + $0x38] sm:$0xff]  ;;  %v755_v56 = vld [vmem:[#allocation2 + $0x330] sm:$0xff] }
 0x15f   :  { %17113 = vst [vmem:[#allocation29_spill] sm:$0xff] %v11769_v25  ;;  %v410_v25 = vld [vmem:[%s17001_s5 + $0x50] sm:$0xff] }
 0x160   :  { %9275 = vrot.lane.b32.xlu2 %v9274_v10, %s10845_s1  ;;  %3197 = vmatpush.msra.mxu0 %v410_v25 }
 0x161   :  { %8802 = vmatpush.msra.mxu1 %v410_v25 }
 0x162   :  { %9270 = vrot.lane.b32.xlu1 %v9269_v35, %s10845_s1  ;;  %v11779_v60 = vpop.permute.xlu2 %9110  ;;  %3198 = vmatpush.msra.mxu0 %v409_v29 }
 0x163   :  { %17114 = vst [vmem:[#allocation30_spill] sm:$0xff] %v11779_v60  ;;  %v9284_v60 = vpack.i.bf16 %v748_v5, %v747_v24  ;;  %8803 = vmatpush.msra.mxu1 %v409_v29  ;;  %v753_v24 = vld [vmem:[#allocation2 + $0x318] sm:$0xff]  ;;  %v754_v5 = vld [vmem:[#allocation2 + $0x320] sm:$0xff] }
 0x164   :  { %9280 = vrot.lane.b32.xlu0 %v9279_v39, %s10845_s1  ;;  %v11785_v10 = vpop.permute.xlu1 %9060  ;;  %v9294_v39 = vpack.i.bf16 %v752_v47, %v751_v11  ;;  %3199 = vmatpush.msra.mxu0 %v408_v34  ;;  %v9299_v29 = vpack.i.bf16 %v754_v5, %v753_v24  ;;  %v400_v5 = vld [vmem:[%s17001_s5] sm:$0xff] }
 0x165   :  { %17115 = vst [vmem:[#allocation31_spill] sm:$0xff] %v11785_v10  ;;  %v756_v10 = vld [vmem:[#allocation2 + $0x338] sm:$0xff]  ;;  %8804 = vmatpush.msra.mxu1 %v408_v34  ;;  %v404_v34 = vld [vmem:[%s17001_s5 + $0x20] sm:$0xff] }
 0x166   :  { %v11790_v35 = vpop.permute.xlu0 %9070  ;;  %3200 = vmatpush.msra.mxu0 %v407_v22  ;;  %v9304_v11 = vpack.i.bf16 %v756_v10, %v755_v56  ;;  %v402_v10 = vld [vmem:[%s17001_s5 + $0x10] sm:$0xff]  ;;  %v401_v56 = vld [vmem:[%s17001_s5 + $0x8] sm:$0xff] }
 0x167   :  { %8805 = vmatpush.msra.mxu1 %v407_v22  ;;  %v403_v22 = vld [vmem:[%s17001_s5 + $0x18] sm:$0xff] }
 0x168   :  { %9290 = vrot.lane.b32.xlu2 %v9289_v43, %s10845_s1  ;;  %3201 = vmatpush.msra.mxu0 %v406_v13 }
 0x169   :  { %8806 = vmatpush.msra.mxu1 %v406_v13 }
 0x16a   :  { %9285 = vrot.lane.b32.xlu1 %v9284_v60, %s10845_s1  ;;  %v11800_v25 = vpop.permute.xlu2 %9125  ;;  %v405_v60 = vld [vmem:[%s17001_s5 + $0x28] sm:$0xff] }
 0x16b   :  { %17116 = vst [vmem:[#allocation32_spill] sm:$0xff] %v11800_v25  ;;  %3202 = vmatpush.msra.mxu0 %v405_v60  ;;  %8807 = vmatpush.msra.mxu1 %v405_v60  ;;  %v853_v25 = vld [vmem:[#allocation2 + $0x1ca] sm:$0xff] }
 0x16c   :  { %9295 = vrot.lane.b32.xlu0 %v9294_v39, %s10845_s1  ;;  %v11806_v43 = vpop.permute.xlu1 %9075 }
 0x16d   :  { %3203 = vmatpush.msra.mxu0 %v404_v34  ;;  %8808 = vmatpush.msra.mxu1 %v404_v34  ;;  %v501_v34 = vld [vmem:[#allocation2] sm:$0xff] }
 0x16e   :  { %v11811_v47 = vpop.permute.xlu0 %9085 }
 0x16f   :  { %3204 = vmatpush.msra.mxu0 %v403_v22  ;;  %8809 = vmatpush.msra.mxu1 %v403_v22 }
 0x170   :  { %9305 = vrot.lane.b32.xlu2 %v9304_v11, %s10845_s1 }
 0x171   :  { %3205 = vmatpush.msra.mxu0 %v402_v10  ;;  %8810 = vmatpush.msra.mxu1 %v402_v10 }
 0x172   :  { %9300 = vrot.lane.b32.xlu1 %v9299_v29, %s10845_s1  ;;  %v11821_v13 = vpop.permute.xlu2 %9140 }
 0x173   :  { %17117 = vst [vmem:[#allocation33_spill] sm:$0xff] %v11821_v13  ;;  %3206 = vmatpush.msra.mxu0 %v401_v56  ;;  %8811 = vmatpush.msra.mxu1 %v401_v56  ;;  %v851_v56 = vld [vmem:[#allocation2 + $0x182] sm:$0xff] }
 0x174   :  { %9310 = vrot.lane.b32.xlu0 %v11508_v32, %s10843_s24  ;;  %v11828_v39 = vpop.permute.xlu1 %9090 }
 0x175   :  { %3207 = vmatpush.msra.mxu0 %v400_v5  ;;  %8812 = vmatpush.msra.mxu1 %v400_v5  ;;  %v852_v5 = vld [vmem:[#allocation2 + $0x18a] sm:$0xff] }
 0x176   :  { %v11833_v24 = vpop.permute.xlu0 %9100  ;;  %v9384_v13 = vpack.i.bf16 %v852_v5, %v851_v56  ;;  %v857_v56 = vld [vmem:[#allocation2 + $0x1fa] sm:$0xff]  ;;  %v858_v5 = vld [vmem:[#allocation2 + $0x202] sm:$0xff] }
 0x178   :  { %9320 = vrot.lane.b32.xlu2 %v11513_v37, %s10843_s24 }
 0x17a   :  { %9315 = vrot.lane.b32.xlu1 %v11515_v40, %s10843_s24  ;;  %v11842_v32 = vpop.permute.xlu2 %9155 }
 0x17c   :  { %9325 = vrot.lane.b32.xlu0 %v11519_v41, %s10843_s24  ;;  %v11846_v11 = vpop.permute.xlu1 %9105 }
 0x17d   :  { %17118 = vst [vmem:[#allocation34_spill] sm:$0xff] %v11846_v11  ;;  %v863_v11 = vld [vmem:[#allocation2 + $0x242] sm:$0xff] }
 0x17e   :  { %v11848_v60 = vpop.permute.xlu0 %9115 }
 0x17f   :  { %17119 = vst [vmem:[#allocation35_spill] sm:$0xff] %v11848_v60  ;;  %v8997_v60 = vunpack.i.l.bf16 %v11700_v20 }
 0x180   :  { %9335 = vrot.lane.b32.xlu2 %v11527_v46, %s10843_s24 }
 0x182   :  { %9330 = vrot.lane.b32.xlu1 %v11529_v49, %s10843_s24  ;;  %v11854_v37 = vpop.permute.xlu2 %9170 }
 0x184   :  { %9340 = vrot.lane.b32.xlu0 %v11533_v50, %s10843_s24  ;;  %v11858_v40 = vpop.permute.xlu1 %9120  ;;  %v431_v50 = vld [vmem:[%s17001_s5 + $0xf8] sm:$0xff] }
 0x185   :  { %17120 = vst [vmem:[#allocation36_spill] sm:$0xff] %v11858_v40  ;;  %3401 = vmatpush.msrb.mxu1 %v431_v50  ;;  %v9072_v40 = vunpack.i.l.bf16 %v11790_v35 }
 0x186   :  { %v11860_v29 = vpop.permute.xlu0 %9130 }
 0x187   :  { %17121 = vst [vmem:[#allocation37_spill] sm:$0xff] %v11860_v29  ;;  %v856_v29 = vld [vmem:[#allocation2 + $0x1ea] sm:$0xff] }
 0x188   :  { %9350 = vrot.lane.b32.xlu2 %v11541_v55, %s10843_s24  ;;  %v8832_v55 = vunpack.i.l.bf16 %v11555_v1 }
 0x18a   :  { %9345 = vrot.lane.b32.xlu1 %v11543_v58, %s10843_s24  ;;  %v11866_v41 = vpop.permute.xlu2 %9185  ;;  %v8992_v58 = vunpack.i.l.bf16 %v11667_v4  ;;  %v2614_v10 = vsel %vm291_vm0, %v501_v34, %v8832_v55  ;;  %v8993_v55 = vunpack.i.h.bf16 %v11667_v4 }
 0x18c   :  { %9355 = vrot.lane.b32.xlu0 %v11547_v59, %s10843_s24  ;;  %v11870_v46 = vpop.permute.xlu1 %9135  ;;  %v2679_v50 = vsel %vm2678_vm1, %v2614_v10, %v8992_v58  ;;  %v502_v58 = vld [vmem:[#allocation2 + $0x8] sm:$0xff] }
 0x18d   :  { %17122 = vst [vmem:[#allocation38_spill] sm:$0xff] %v11870_v46  ;;  %v855_v46 = vld [vmem:[#allocation2 + $0x1e2] sm:$0xff] }
 0x18e   :  { %v11872_v49 = vpop.permute.xlu0 %9145 }
 0x18f   :  { %17123 = vst [vmem:[#allocation39_spill] sm:$0xff] %v11872_v49 }
 0x190   :  { %9365 = vrot.lane.b32.xlu2 %v11557_v2, %s10843_s24 }
 0x192   :  { %9360 = vrot.lane.b32.xlu1 %v11559_v6, %s10843_s24  ;;  %v11883_v59 = vpop.permute.xlu2 %9200 }
 0x193   :  { %17124 = vst [vmem:[#allocation40_spill] sm:$0xff] %v11883_v59 }
 0x194   :  { %9370 = vrot.lane.b32.xlu0 %v11563_v7, %s10843_s24  ;;  %v9151_v2 = vpop.permute.xlu1 %9150  ;;  %v8833_v7 = vunpack.i.h.bf16 %v11555_v1 }
 0x195   :  { %v9152_v22 = vunpack.i.l.bf16 %v9151_v2  ;;  %v9153_v10 = vunpack.i.h.bf16 %v9151_v2 }
 0x196   :  { %v11888_v49 = vpop.permute.xlu0 %9160  ;;  %v2615_v1 = vsel %vm291_vm0, %v502_v58, %v8833_v7  ;;  %v861_v7 = vld [vmem:[#allocation2 + $0x22a] sm:$0xff]  ;;  %v862_v58 = vld [vmem:[#allocation2 + $0x232] sm:$0xff] }
 0x197   :  { %v2744_v6 = vsel %vm2743_vm2, %v2679_v50, %v9152_v22  ;;  %v854_v22 = vld [vmem:[#allocation2 + $0x1d2] sm:$0xff]  ;;  %v2680_v4 = vsel %vm2678_vm1, %v2615_v1, %v8993_v55 }
 0x198   :  { %3208 = vmatmul.f32.vlgmr.msra.gmra.mxu0 %v2744_v6  ;;  %9380 = vrot.lane.b32.xlu2 %v11573_v15, %s10843_s24  ;;  %v9394_v15 = vpack.i.bf16 %v856_v29, %v855_v46  ;;  %v2745_v2 = vsel %vm2743_vm2, %v2680_v4, %v9153_v10  ;;  %v533_v29 = vld [vmem:[#allocation2 + $0x1b0] sm:$0xff]  ;;  %v8837_v46 = vunpack.i.l.bf16 %v11575_v18  ;;  %v9157_v10 = vunpack.i.l.bf16 %v11842_v32 }
 0x199   :  { %v430_v55 = vld [vmem:[%s17001_s5 + $0xf0] sm:$0xff] }
 0x19a   :  { %9375 = vrot.lane.b32.xlu1 %v11577_v19, %s10843_s24  ;;  %v11898_v34 = vpop.permute.xlu2 %9215  ;;  %v9389_v19 = vpack.i.bf16 %v854_v22, %v853_v25  ;;  %v859_v1 = vld [vmem:[#allocation2 + $0x212] sm:$0xff]  ;;  %3402 = vmatpush.msrb.mxu1 %v430_v55 }
 0x19b   :  { %17125 = vst [vmem:[#allocation41_spill] sm:$0xff] %v11898_v34  ;;  %v8912_v34 = vunpack.i.l.bf16 %v11622_v38 }
 0x19c   :  { %9385 = vrot.lane.b32.xlu0 %v9384_v13, %s10843_s24  ;;  %v11901_v50 = vpop.permute.xlu1 %9165  ;;  %v9399_v13 = vpack.i.bf16 %v858_v5, %v857_v56  ;;  %v860_v56 = vld [vmem:[#allocation2 + $0x21a] sm:$0xff] }
 0x19e   :  { %v11904_v6 = vpop.permute.xlu0 %9175 }
 0x1a0   :  { %3211 = vmatmul.f32.gmra.mxu0 %v2745_v2  ;;  %9395 = vrot.lane.b32.xlu2 %v9394_v15, %s10843_s24  ;;  %v2646_v15 = vsel %vm291_vm0, %v533_v29, %v8912_v34  ;;  %v2616_v2 = vsel %vm291_vm0, %v11649_v12, %v8837_v46  ;;  %v9404_v29 = vpack.i.bf16 %v860_v56, %v859_v1  ;;  %v534_v46 = vld [vmem:[#allocation2 + $0x1b8] sm:$0xff] }
 0x1a1   :  { %v2711_v4 = vsel %vm2678_vm1, %v2646_v15, %v9072_v40  ;;  %v2681_v34 = vsel %vm2678_vm1, %v2616_v2, %v8997_v60  ;;  %v9073_v40 = vunpack.i.h.bf16 %v11790_v35  ;;  %v9414_v12 = vpack.i.bf16 %v864_v23, %v863_v11  ;;  %v868_v15 = vld [vmem:[#allocation2 + $0x27a] sm:$0xff]  ;;  %v866_v35 = vld [vmem:[#allocation2 + $0x262] sm:$0xff]  ;;  %v870_v56 = vld [vmem:[#allocation2 + $0x292] sm:$0xff] }
 0x1a2   :  { %9390 = vrot.lane.b32.xlu1 %v9389_v19, %s10843_s24  ;;  %v9231_v25 = vpop.permute.xlu2 %9230  ;;  %v9409_v19 = vpack.i.bf16 %v862_v58, %v861_v7  ;;  %v2746_v55 = vsel %vm2743_vm2, %v2681_v34, %v9157_v10  ;;  %v8838_v7 = vunpack.i.h.bf16 %v11575_v18  ;;  %v8998_v60 = vunpack.i.h.bf16 %v11700_v20  ;;  %v865_v10 = vld [vmem:[#allocation2 + $0x25a] sm:$0xff] }
 0x1a3   :  { %v9232_v22 = vunpack.i.l.bf16 %v9231_v25  ;;  %v9233_v58 = vunpack.i.h.bf16 %v9231_v25  ;;  %v869_v25 = vld [vmem:[#allocation2 + $0x28a] sm:$0xff] }
 0x1a4   :  { %9400 = vrot.lane.b32.xlu0 %v9399_v13, %s10843_s24  ;;  %v11920_v5 = vpop.permute.xlu1 %9180  ;;  %v8913_v13 = vunpack.i.h.bf16 %v11622_v38  ;;  %v9158_v38 = vunpack.i.h.bf16 %v11842_v32  ;;  %v2617_v11 = vsel %vm291_vm0, %v11651_v16, %v8838_v7  ;;  %v9429_v34 = vpack.i.bf16 %v870_v56, %v869_v25  ;;  %v874_v16 = vld [vmem:[#allocation2 + $0x2c2] sm:$0xff]  ;;  %v872_v7 = vld [vmem:[#allocation2 + $0x2aa] sm:$0xff] }
 0x1a5   :  { %v2776_v59 = vsel %vm2743_vm2, %v2711_v4, %v9232_v22  ;;  %v867_v22 = vld [vmem:[#allocation2 + $0x272] sm:$0xff]  ;;  %v2682_v32 = vsel %vm2678_vm1, %v2617_v11, %v8998_v60  ;;  %v879_v25 = vld [vmem:[#allocation2 + $0x302] sm:$0xff]  ;;  %v880_v56 = vld [vmem:[#allocation2 + $0x30a] sm:$0xff] }
 0x1a6   :  { %v11926_v62 = vpop.permute.xlu0 %9190  ;;  %3304 = vmatmul.f32.vlgmr.msra.gmra.mxu1 %v2776_v59  ;;  %v2647_v59 = vsel %vm291_vm0, %v534_v46, %v8913_v13  ;;  %v9424_v18 = vpack.i.bf16 %v868_v15, %v867_v22  ;;  %v2747_v2 = vsel %vm2743_vm2, %v2682_v32, %v9158_v38  ;;  %v873_v13 = vld [vmem:[#allocation2 + $0x2ba] sm:$0xff]  ;;  %v871_v46 = vld [vmem:[#allocation2 + $0x2a2] sm:$0xff]  ;;  %v875_v60 = vld [vmem:[#allocation2 + $0x2d2] sm:$0xff] }
 0x1a7   :  { %v2712_v23 = vsel %vm2678_vm1, %v2647_v59, %v9073_v40  ;;  %v429_v40 = vld [vmem:[%s17001_s5 + $0xe8] sm:$0xff]  ;;  %v9439_v22 = vpack.i.bf16 %v874_v16, %v873_v13  ;;  %v876_v38 = vld [vmem:[#allocation2 + $0x2da] sm:$0xff]  ;;  %v9077_v13 = vunpack.i.l.bf16 %v11806_v43 }
 0x1a8   :  { %3214 = vmatmul.f32.gmra.mxu0 %v2746_v55  ;;  %9410 = vrot.lane.b32.xlu2 %v9409_v19, %s10843_s24  ;;  %v2777_v20 = vsel %vm2743_vm2, %v2712_v23, %v9233_v58  ;;  %v9419_v19 = vpack.i.bf16 %v866_v35, %v865_v10  ;;  %v9002_v55 = vunpack.i.l.bf16 %v11719_v48  ;;  %v9434_v23 = vpack.i.bf16 %v872_v7, %v871_v46  ;;  %v506_v32 = vld [vmem:[#allocation2 + $0x38] sm:$0xff] }
 0x1a9   :  { %3403 = vmatpush.msrb.mxu1 %v429_v40  ;;  %v9444_v11 = vpack.i.bf16 %v876_v38, %v875_v60  ;;  %v881_v40 = vld [vmem:[#allocation2 + $0x31a] sm:$0xff] }
 0x1aa   :  { %9405 = vrot.lane.b32.xlu1 %v9404_v29, %s10843_s24  ;;  %v8842_v29 = vunpack.i.l.bf16 %v11571_v14  ;;  %v11962_v59 = vpop.permute.xlu2 %9245 }
 0x1ac   :  { %9415 = vrot.lane.b32.xlu0 %v9414_v12, %s10843_s24  ;;  %v11939_v1 = vpop.permute.xlu1 %9195  ;;  %v9162_v12 = vunpack.i.l.bf16 %v11888_v49  ;;  %v2618_v15 = vsel %vm291_vm0, %v11636_v61, %v8842_v29  ;;  %v9003_v61 = vunpack.i.h.bf16 %v11719_v48  ;;  %v878_v29 = vld [vmem:[#allocation2 + $0x2f2] sm:$0xff]  ;;  %v882_v48 = vld [vmem:[#allocation2 + $0x322] sm:$0xff] }
 0x1ad   :  { %v2683_v35 = vsel %vm2678_vm1, %v2618_v15, %v9002_v55 }
 0x1ae   :  { %v11945_v4 = vpop.permute.xlu0 %9205  ;;  %3307 = vmatmul.f32.gmra.mxu1 %v2777_v20  ;;  %v8843_v20 = vunpack.i.h.bf16 %v11571_v14  ;;  %v9454_v14 = vpack.i.bf16 %v880_v56, %v879_v25  ;;  %v507_v25 = vld [vmem:[#allocation2 + $0x48] sm:$0xff]  ;;  %v8918_v56 = vunpack.i.h.bf16 %v11592_v36 }
 0x1b0   :  { %3217 = vmatmul.f32.gmra.mxu0 %v2747_v2  ;;  %9425 = vrot.lane.b32.xlu2 %v9424_v18, %s10843_s24  ;;  %v2748_v18 = vsel %vm2743_vm2, %v2683_v35, %v9162_v12  ;;  %v9163_v2 = vunpack.i.h.bf16 %v11888_v49  ;;  %v2619_v55 = vsel %vm291_vm0, %v506_v32, %v8843_v20  ;;  %v9459_v35 = vpack.i.bf16 %v882_v48, %v881_v40 }
 0x1b1   :  { %v2684_v46 = vsel %vm2678_vm1, %v2619_v55, %v9003_v61  ;;  %v9007_v20 = vunpack.i.l.bf16 %v11677_v27  ;;  %v9167_v61 = vunpack.i.l.bf16 %v11901_v50 }
 0x1b2   :  { %9420 = vrot.lane.b32.xlu1 %v9419_v19, %s10843_s24  ;;  %v8917_v19 = vunpack.i.l.bf16 %v11592_v36  ;;  %v2749_v49 = vsel %vm2743_vm2, %v2684_v46, %v9163_v2  ;;  %v11983_v60 = vpop.permute.xlu2 %9260  ;;  %v884_v2 = vld [vmem:[#allocation2 + $0x33a] sm:$0xff] }
 0x1b4   :  { %9430 = vrot.lane.b32.xlu0 %v9429_v34, %s10843_s24  ;;  %v11958_v58 = vpop.permute.xlu1 %9210  ;;  %v877_v34 = vld [vmem:[#allocation2 + $0x2ea] sm:$0xff]  ;;  %v2648_v15 = vsel %vm291_vm0, %v11706_v21, %v8917_v19  ;;  %v428_v21 = vld [vmem:[%s17001_s5 + $0xe0] sm:$0xff]  ;;  %v883_v19 = vld [vmem:[#allocation2 + $0x332] sm:$0xff] }
 0x1b5   :  { %v9449_v7 = vpack.i.bf16 %v878_v29, %v877_v34  ;;  %v2713_v38 = vsel %vm2678_vm1, %v2648_v15, %v9077_v13  ;;  %3404 = vmatpush.msrb.mxu1 %v428_v21  ;;  %v9078_v34 = vunpack.i.h.bf16 %v11806_v43  ;;  %v9464_v36 = vpack.i.bf16 %v884_v2, %v883_v19  ;;  %v890_v21 = vld [vmem:[#allocation2 + $0x60] sm:$0xff] }
 0x1b6   :  { %v11964_v10 = vpop.permute.xlu0 %9220  ;;  %v9008_v15 = vunpack.i.h.bf16 %v11677_v27 }
 0x1b7   :  { %17126 = vst [vmem:[#allocation42_spill] sm:$0xff] %v11964_v10  ;;  %v9248_v10 = vunpack.i.h.bf16 %v11962_v59 }
 0x1b8   :  { %3220 = vmatmul.f32.gmra.mxu0 %v2748_v18  ;;  %9440 = vrot.lane.b32.xlu2 %v9439_v22, %s10843_s24 }
 0x1ba   :  { %9435 = vrot.lane.b32.xlu1 %v9434_v23, %s10843_s24  ;;  %v8847_v23 = vunpack.i.l.bf16 %v11586_v26 }
 0x1bc   :  { %9445 = vrot.lane.b32.xlu0 %v9444_v11, %s10843_s24  ;;  %v11976_v16 = vpop.permute.xlu1 %9225  ;;  %v886_v11 = vld [vmem:[#allocation2 + $0x30] sm:$0xff]  ;;  %v2620_v55 = vsel %vm291_vm0, %v507_v25, %v8847_v23  ;;  %v12017_v23 = vld [vmem:[#allocation2 + $0x78] sm:$0xff] }
 0x1bd   :  { %17127 = vst [vmem:[#allocation43_spill] sm:$0xff] %v11976_v16  ;;  %v9469_v13 = vpack.i.bf16 %v506_v32, %v886_v11  ;;  %v2685_v48 = vsel %vm2678_vm1, %v2620_v55, %v9007_v20  ;;  %v9082_v11 = vunpack.i.l.bf16 %v11746_v63 }
 0x1be   :  { %v9236_v12 = vpop.permute.xlu0 %9235  ;;  %v2750_v46 = vsel %vm2743_vm2, %v2685_v48, %v9167_v61 }
 0x1bf   :  { %v9237_v22 = vunpack.i.l.bf16 %v9236_v12 }
 0x1c0   :  { %3223 = vmatmul.f32.gmra.mxu0 %v2749_v49  ;;  %9455 = vrot.lane.b32.xlu2 %v9454_v14, %s10843_s24  ;;  %v9238_v14 = vunpack.i.h.bf16 %v9236_v12  ;;  %v8848_v12 = vunpack.i.h.bf16 %v11586_v26 }
 0x1c1   :  { %v2778_v18 = vsel %vm2743_vm2, %v2713_v38, %v9237_v22  ;;  %v889_v22 = vld [vmem:[#allocation2 + $0x50] sm:$0xff]  ;;  %v12012_v38 = vpop.permute.xlu2 %9275 }
 0x1c2   :  { %3310 = vmatmul.f32.gmra.mxu1 %v2778_v18  ;;  %9450 = vrot.lane.b32.xlu1 %v9449_v7, %s10843_s24  ;;  %v2649_v7 = vsel %vm291_vm0, %v11714_v31, %v8918_v56  ;;  %v9474_v32 = vpack.i.bf16 %v889_v22, %v507_v25  ;;  %v8922_v31 = vunpack.i.l.bf16 %v11624_v45  ;;  %v12019_v18 = vld [vmem:[#allocation2 + $0x80] sm:$0xff]  ;;  %v2621_v25 = vsel %vm291_vm0, %v889_v22, %v8848_v12  ;;  %v891_v56 = vld [vmem:[#allocation2 + $0x68] sm:$0xff] }
 0x1c3   :  { %v2714_v43 = vsel %vm2678_vm1, %v2649_v7, %v9078_v34  ;;  %v9484_v27 = vpack.i.bf16 %v12019_v18, %v12017_v23  ;;  %v9479_v61 = vpack.i.bf16 %v891_v56, %v890_v21  ;;  %v12033_v34 = vld [vmem:[#allocation2 + $0x90] sm:$0xff]  ;;  %v427_v7 = vld [vmem:[%s17001_s5 + $0xd8] sm:$0xff]  ;;  %v8923_v22 = vunpack.i.h.bf16 %v11624_v45  ;;  %v12054_v12 = vld [vmem:[#allocation2 + $0xc8] sm:$0xff] }
 0x1c4   :  { %9460 = vrot.lane.b32.xlu0 %v9459_v35, %s10843_s24  ;;  %v11998_v29 = vpop.permute.xlu1 %9240  ;;  %v2779_v49 = vsel %vm2743_vm2, %v2714_v43, %v9238_v14  ;;  %v9168_v35 = vunpack.i.h.bf16 %v11901_v50  ;;  %v2686_v50 = vsel %vm2678_vm1, %v2621_v25, %v9008_v15  ;;  %v2650_v2 = vsel %vm291_vm0, %v11727_v3, %v8922_v31  ;;  %3405 = vmatpush.msrb.mxu1 %v427_v7  ;;  %v12092_v7 = vld [vmem:[#allocation2 + $0x108] sm:$0xff] }
 0x1c5   :  { %v9242_v20 = vunpack.i.l.bf16 %v11998_v29  ;;  %v2715_v55 = vsel %vm2678_vm1, %v2650_v2, %v9082_v11  ;;  %v9012_v3 = vunpack.i.l.bf16 %v11725_v51  ;;  %v9172_v43 = vunpack.i.l.bf16 %v11854_v37  ;;  %v12078_v2 = vld [vmem:[#allocation2 + $0xe0] sm:$0xff] }
 0x1c6   :  { %v12001_v40 = vpop.permute.xlu0 %9250  ;;  %v2751_v19 = vsel %vm2743_vm2, %v2686_v50, %v9168_v35  ;;  %v9243_v45 = vunpack.i.h.bf16 %v11998_v29 }
 0x1c8   :  { %3226 = vmatmul.f32.gmra.mxu0 %v2750_v46  ;;  %9470 = vrot.lane.b32.xlu2 %v9469_v13, %s10844_s16  ;;  %v12035_v13 = vld [vmem:[#allocation2 + $0x98] sm:$0xff]  ;;  %v2780_v46 = vsel %vm2743_vm2, %v2715_v55, %v9242_v20  ;;  %v12068_v20 = vld [vmem:[#allocation2 + $0xb0] sm:$0xff]  ;;  %v8853_v55 = vunpack.i.h.bf16 %v11523_v44 }
 0x1c9   :  { %v9489_v48 = vpack.i.bf16 %v12035_v13, %v12033_v34  ;;  %v12057_v15 = vpop.permute.xlu2 %9290 }
 0x1ca   :  { %3313 = vmatmul.f32.gmra.mxu1 %v2779_v49  ;;  %9465 = vrot.lane.b32.xlu1 %v9464_v36, %s10843_s24  ;;  %v8852_v36 = vunpack.i.l.bf16 %v11523_v44  ;;  %v9083_v49 = vunpack.i.h.bf16 %v11746_v63  ;;  %17128 = vst [vmem:[#allocation44_spill] sm:$0xff] %v12057_v15  ;;  %v912_v15 = vld [vmem:[#allocation2 + $0x168] sm:$0xff] }
 0x1cc   :  { %9475 = vrot.lane.b32.xlu0 %v9474_v32, %s10844_s16  ;;  %v12023_v26 = vpop.permute.xlu1 %9255  ;;  %v12052_v32 = vld [vmem:[#allocation2 + $0xc0] sm:$0xff]  ;;  %v2622_v11 = vsel %vm291_vm0, %v890_v21, %v8852_v36  ;;  %v9013_v36 = vunpack.i.h.bf16 %v11725_v51  ;;  %v12100_v51 = vld [vmem:[#allocation2 + $0x1f8] sm:$0xff] }
 0x1cd   :  { %v9499_v35 = vpack.i.bf16 %v12054_v12, %v12052_v32  ;;  %v2687_v25 = vsel %vm2678_vm1, %v2622_v11, %v9012_v3  ;;  %v9173_v3 = vunpack.i.h.bf16 %v11854_v37  ;;  %v12106_v37 = vld [vmem:[#allocation2 + $0xf0] sm:$0xff]  ;;  %v12108_v11 = vld [vmem:[#allocation2 + $0xf8] sm:$0xff] }
 0x1ce   :  { %v12037_v14 = vpop.permute.xlu0 %9265  ;;  %v2752_v50 = vsel %vm2743_vm2, %v2687_v25, %v9172_v43  ;;  %v9087_v43 = vunpack.i.l.bf16 %v11811_v47 }
 0x1d0   :  { %3229 = vmatmul.f32.gmra.mxu0 %v2751_v19  ;;  %9485 = vrot.lane.b32.xlu2 %v9484_v27, %s10844_s16  ;;  %v12066_v27 = vld [vmem:[#allocation2 + $0xa8] sm:$0xff]  ;;  %v12076_v19 = vld [vmem:[#allocation2 + $0xd8] sm:$0xff] }
 0x1d1   :  { %v9494_v63 = vpack.i.bf16 %v12068_v20, %v12066_v27  ;;  %v9504_v21 = vpack.i.bf16 %v12078_v2, %v12076_v19  ;;  %v12110_v25 = vpop.permute.xlu2 %9305 }
 0x1d2   :  { %3316 = vmatmul.f32.gmra.mxu1 %v2780_v46  ;;  %9480 = vrot.lane.b32.xlu1 %v9479_v61, %s10844_s16  ;;  %v2651_v61 = vsel %vm291_vm0, %v11729_v33, %v8923_v22  ;;  %v8927_v33 = vunpack.i.l.bf16 %v11646_v8  ;;  %v12094_v22 = vld [vmem:[#allocation2 + $0x110] sm:$0xff]  ;;  %17130 = vst [vmem:[#allocation46_spill] sm:$0xff] %v12110_v25  ;;  %v909_v25 = vld [vmem:[#allocation2 + $0x140] sm:$0xff] }
 0x1d3   :  { %v2716_v29 = vsel %vm2678_vm1, %v2651_v61, %v9083_v49  ;;  %v9514_v49 = vpack.i.bf16 %v12094_v22, %v12092_v7 }
 0x1d4   :  { %9490 = vrot.lane.b32.xlu0 %v9489_v48, %s10844_s16  ;;  %v12060_v31 = vpop.permute.xlu1 %9270  ;;  %v2781_v48 = vsel %vm2743_vm2, %v2716_v29, %v9243_v45  ;;  %v2623_v45 = vsel %vm291_vm0, %v891_v56, %v8853_v55  ;;  %v2652_v29 = vsel %vm291_vm0, %v12100_v51, %v8927_v33  ;;  %v9017_v33 = vunpack.i.l.bf16 %v11740_v17 }
 0x1d5   :  { %v2717_v56 = vsel %vm2678_vm1, %v2652_v29, %v9087_v43  ;;  %v426_v43 = vld [vmem:[%s17001_s5 + $0xd0] sm:$0xff]  ;;  %v908_v29 = vld [vmem:[#allocation2 + $0x138] sm:$0xff] }
 0x1d6   :  { %v12087_v46 = vpop.permute.xlu0 %9280  ;;  %3406 = vmatpush.msrb.mxu1 %v426_v43 }
 0x1d8   :  { %3232 = vmatmul.f32.gmra.mxu0 %v2752_v50  ;;  %9500 = vrot.lane.b32.xlu2 %v9499_v35, %s10844_s16  ;;  %v9247_v35 = vunpack.i.l.bf16 %v11962_v59  ;;  %v9509_v50 = vpack.i.bf16 %v12108_v11, %v12106_v37 }
 0x1da   :  { %3319 = vmatmul.f32.gmra.mxu1 %v2781_v48  ;;  %9495 = vrot.lane.b32.xlu1 %v9494_v63, %s10844_s16  ;;  %v2688_v63 = vsel %vm2678_vm1, %v2623_v45, %v9013_v36  ;;  %v12120_v48 = vld [vmem:[#allocation2 + $0x128] sm:$0xff]  ;;  %v8857_v36 = vunpack.i.l.bf16 %v11537_v53  ;;  %v2782_v45 = vsel %vm2743_vm2, %v2717_v56, %v9247_v35  ;;  %v9088_v35 = vunpack.i.h.bf16 %v11811_v47 }
 0x1db   :  { %v2753_v61 = vsel %vm2743_vm2, %v2688_v63, %v9173_v3  ;;  %17131 = vst [vmem:[#allocation47_spill] sm:$0xff] %v12120_v48  ;;  %v910_v3 = vld [vmem:[#allocation2 + $0x150] sm:$0xff]  ;;  %v911_v63 = vld [vmem:[#allocation2 + $0x158] sm:$0xff] }
 0x1dc   :  { %9505 = vrot.lane.b32.xlu0 %v9504_v21, %s10844_s16  ;;  %v12098_v44 = vpop.permute.xlu1 %9285  ;;  %v12118_v21 = vld [vmem:[#allocation2 + $0x120] sm:$0xff]  ;;  %v9529_v16 = vpack.i.bf16 %v911_v63, %v910_v3  ;;  %v916_v63 = vld [vmem:[#allocation2 + $0x198] sm:$0xff] }
 0x1dd   :  { %17129 = vst [vmem:[#allocation45_spill] sm:$0xff] %v12098_v44  ;;  %v9519_v55 = vpack.i.bf16 %v12120_v48, %v12118_v21  ;;  %v913_v48 = vld [vmem:[#allocation2 + $0x170] sm:$0xff]  ;;  %v9524_v44 = vpack.i.bf16 %v909_v25, %v908_v29  ;;  %v9018_v25 = vunpack.i.h.bf16 %v11740_v17  ;;  %v914_v29 = vld [vmem:[#allocation2 + $0x180] sm:$0xff] }
 0x1de   :  { %v12136_v56 = vpop.permute.xlu0 %9295  ;;  %v9534_v59 = vpack.i.bf16 %v913_v48, %v912_v15  ;;  %v9252_v48 = vunpack.i.l.bf16 %v12001_v40 }
 0x1df   :  { %17132 = vst [vmem:[#allocation48_spill] sm:$0xff] %v12136_v56  ;;  %v12150_v56 = vpop.permute.xlu2 %9320 }
 0x1e0   :  { %3235 = vmatmul.f32.gmra.mxu0 %v2753_v61  ;;  %9515 = vrot.lane.b32.xlu2 %v9514_v49, %s10844_s16  ;;  %v8928_v49 = vunpack.i.h.bf16 %v11646_v8  ;;  %v9177_v61 = vunpack.i.l.bf16 %v11904_v6  ;;  %v2624_v8 = vsel %vm291_vm0, %v12017_v23, %v8857_v36  ;;  %v8858_v23 = vunpack.i.h.bf16 %v11537_v53 }
 0x1e1   :  { %v2689_v43 = vsel %vm2678_vm1, %v2624_v8, %v9017_v33  ;;  %v917_v33 = vld [vmem:[#allocation2 + $0x1a0] sm:$0xff]  ;;  %v919_v8 = vld [vmem:[#allocation2 + $0x1e8] sm:$0xff] }
 0x1e2   :  { %3322 = vmatmul.f32.gmra.mxu1 %v2782_v45  ;;  %9510 = vrot.lane.b32.xlu1 %v9509_v50, %s10844_s16  ;;  %v12141_v50 = vld [vmem:[#allocation2 + $0x200] sm:$0xff]  ;;  %v2754_v47 = vsel %vm2743_vm2, %v2689_v43, %v9177_v61  ;;  %v9178_v61 = vunpack.i.h.bf16 %v11904_v6  ;;  %v9544_v15 = vpack.i.bf16 %v917_v33, %v916_v63  ;;  %v2625_v17 = vsel %vm291_vm0, %v12019_v18, %v8858_v23 }
 0x1e3   :  { %v2690_v6 = vsel %vm2678_vm1, %v2625_v17, %v9018_v25  ;;  %v8862_v63 = vunpack.i.l.bf16 %v11588_v30  ;;  %v9022_v23 = vunpack.i.l.bf16 %v11686_v0  ;;  %v425_v25 = vld [vmem:[%s17001_s5 + $0xc8] sm:$0xff] }
 0x1e4   :  { %9520 = vrot.lane.b32.xlu0 %v9519_v55, %s10844_s16  ;;  %v12139_v45 = vpop.permute.xlu1 %9300  ;;  %v2653_v55 = vsel %vm291_vm0, %v12141_v50, %v8928_v49  ;;  %v8932_v49 = vunpack.i.l.bf16 %v11601_v9  ;;  %3407 = vmatpush.msrb.mxu1 %v425_v25  ;;  %v9257_v25 = vunpack.i.l.bf16 %v12023_v26 }
 0x1e5   :  { %v2718_v3 = vsel %vm2678_vm1, %v2653_v55, %v9088_v35  ;;  %v915_v35 = vld [vmem:[#allocation2 + $0x188] sm:$0xff]  ;;  %v2755_v55 = vsel %vm2743_vm2, %v2690_v6, %v9178_v61  ;;  %v9182_v61 = vunpack.i.l.bf16 %v11920_v5  ;;  %v2626_v17 = vsel %vm291_vm0, %v12033_v34, %v8862_v63  ;;  %v12209_v63 = vld [vmem:[#allocation2 + $0x260] sm:$0xff] }
 0x1e6   :  { %v2783_v36 = vsel %vm2743_vm2, %v2718_v3, %v9248_v10  ;;  %v541_v10 = vld [vmem:[#allocation2 + $0x210] sm:$0xff]  ;;  %v12167_v43 = vpop.permute.xlu0 %9310  ;;  %v8863_v34 = vunpack.i.h.bf16 %v11588_v30 }
 0x1e7   :  { %v2654_v3 = vsel %vm291_vm0, %v541_v10, %v8932_v49  ;;  %v12177_v33 = vpop.permute.xlu2 %9335  ;;  %v8933_v49 = vunpack.i.h.bf16 %v11601_v9  ;;  %v9554_v9 = vpack.i.bf16 %v12141_v50, %v12100_v51  ;;  %v9023_v51 = vunpack.i.h.bf16 %v11686_v0 }
 0x1e8   :  { %3238 = vmatmul.f32.gmra.mxu0 %v2754_v47  ;;  %9530 = vrot.lane.b32.xlu2 %v9529_v16, %s10844_s16  ;;  %v9092_v16 = vunpack.i.l.bf16 %v11828_v39  ;;  %v9539_v47 = vpack.i.bf16 %v915_v35, %v914_v29  ;;  %v542_v29 = vld [vmem:[#allocation2 + $0x218] sm:$0xff]  ;;  %v9093_v35 = vunpack.i.h.bf16 %v11828_v39  ;;  %v924_v39 = vld [vmem:[#allocation2 + $0x228] sm:$0xff]  ;;  %v8937_v50 = vunpack.i.l.bf16 %v11660_v28 }
 0x1e9   :  { %v2655_v6 = vsel %vm291_vm0, %v542_v29, %v8933_v49  ;;  %v12222_v49 = vld [vmem:[#allocation2 + $0x240] sm:$0xff] }
 0x1ea   :  { %3325 = vmatmul.f32.gmra.mxu1 %v2783_v36  ;;  %9525 = vrot.lane.b32.xlu1 %v9524_v44, %s10844_s16  ;;  %v918_v44 = vld [vmem:[#allocation2 + $0x1e0] sm:$0xff] }
 0x1eb   :  { %v9549_v36 = vpack.i.bf16 %v919_v8, %v918_v44  ;;  %v2691_v44 = vsel %vm2678_vm1, %v2626_v17, %v9022_v23  ;;  %v12231_v17 = vld [vmem:[#allocation2 + $0x270] sm:$0xff] }
 0x1ec   :  { %9535 = vrot.lane.b32.xlu0 %v9534_v59, %s10844_s16  ;;  %v12162_v53 = vpop.permute.xlu1 %9315  ;;  %v2719_v59 = vsel %vm2678_vm1, %v2654_v3, %v9092_v16  ;;  %v2756_v8 = vsel %vm2743_vm2, %v2691_v44, %v9182_v61  ;;  %v12224_v61 = vld [vmem:[#allocation2 + $0x248] sm:$0xff]  ;;  %v12233_v44 = vld [vmem:[#allocation2 + $0x278] sm:$0xff] }
 0x1ed   :  { %v2784_v18 = vsel %vm2743_vm2, %v2719_v59, %v9252_v48  ;;  %v9253_v48 = vunpack.i.h.bf16 %v12001_v40  ;;  %v9183_v59 = vunpack.i.h.bf16 %v11920_v5  ;;  %v2627_v5 = vsel %vm291_vm0, %v12035_v13, %v8863_v34 }
 0x1ee   :  { %v8938_v34 = vunpack.i.h.bf16 %v11660_v28 }
 0x1ef   :  { %v12212_v23 = vpop.permute.xlu2 %9350 }
 0x1f0   :  { %3241 = vmatmul.f32.gmra.mxu0 %v2755_v55  ;;  %9545 = vrot.lane.b32.xlu2 %v9544_v15, %s10844_s16  ;;  %v9559_v15 = vpack.i.bf16 %v542_v29, %v541_v10  ;;  %v12197_v55 = vpop.permute.xlu0 %9325  ;;  %v2720_v10 = vsel %vm2678_vm1, %v2655_v6, %v9093_v35  ;;  %17133 = vst [vmem:[#allocation49_spill] sm:$0xff] %v12212_v23  ;;  %v948_v23 = vld [vmem:[#allocation2 + $0x348] sm:$0xff] }
 0x1f1   :  { %v2785_v3 = vsel %vm2743_vm2, %v2720_v10, %v9253_v48  ;;  %v2692_v29 = vsel %vm2678_vm1, %v2627_v5, %v9023_v51  ;;  %v9569_v35 = vpack.i.bf16 %v12224_v61, %v12222_v49  ;;  %v2656_v48 = vsel %vm291_vm0, %v924_v39, %v8937_v50  ;;  %v12250_v51 = vld [vmem:[#allocation2 + $0x2a0] sm:$0xff]  ;;  %v12252_v50 = vld [vmem:[#allocation2 + $0x2a8] sm:$0xff] }
 0x1f2   :  { %3328 = vmatmul.f32.gmra.mxu1 %v2784_v18  ;;  %9540 = vrot.lane.b32.xlu1 %v9539_v47, %s10844_s16  ;;  %v925_v47 = vld [vmem:[#allocation2 + $0x230] sm:$0xff]  ;;  %v9097_v18 = vunpack.i.l.bf16 %v11758_v57  ;;  %v9027_v10 = vunpack.i.l.bf16 %v11742_v54  ;;  %v12263_v5 = vld [vmem:[#allocation2 + $0x288] sm:$0xff] }
 0x1f3   :  { %v9564_v40 = vpack.i.bf16 %v925_v47, %v924_v39  ;;  %v424_v39 = vld [vmem:[%s17001_s5 + $0xc0] sm:$0xff] }
 0x1f4   :  { %9550 = vrot.lane.b32.xlu0 %v9549_v36, %s10844_s16  ;;  %v12187_v16 = vpop.permute.xlu1 %9330  ;;  %v12207_v36 = vld [vmem:[#allocation2 + $0x258] sm:$0xff]  ;;  %v2721_v13 = vsel %vm2678_vm1, %v2656_v48, %v9097_v18  ;;  %3408 = vmatpush.msrb.mxu1 %v424_v39  ;;  %v9028_v39 = vunpack.i.h.bf16 %v11742_v54 }
 0x1f5   :  { %v9574_v0 = vpack.i.bf16 %v12209_v63, %v12207_v36  ;;  %v2786_v6 = vsel %vm2743_vm2, %v2721_v13, %v9257_v25  ;;  %v9258_v25 = vunpack.i.h.bf16 %v12023_v26  ;;  %v2657_v13 = vsel %vm291_vm0, %v925_v47, %v8938_v34  ;;  %v12276_v26 = vld [vmem:[#allocation2 + $0x2c0] sm:$0xff] }
 0x1f6   :  { %v8942_v47 = vunpack.i.l.bf16 %v11671_v52  ;;  %v9188_v34 = vunpack.i.h.bf16 %v11866_v41 }
 0x1f8   :  { %3244 = vmatmul.f32.gmra.mxu0 %v2756_v8  ;;  %9560 = vrot.lane.b32.xlu2 %v9559_v15, %s10844_s16  ;;  %v2757_v15 = vsel %vm2743_vm2, %v2692_v29, %v9183_v59  ;;  %v8867_v8 = vunpack.i.l.bf16 %v11595_v42  ;;  %v9098_v59 = vunpack.i.h.bf16 %v11758_v57  ;;  %v12265_v29 = vld [vmem:[#allocation2 + $0x290] sm:$0xff] }
 0x1fa   :  { %3331 = vmatmul.f32.gmra.mxu1 %v2785_v3  ;;  %9555 = vrot.lane.b32.xlu1 %v9554_v9, %s10844_s16  ;;  %v9579_v9 = vpack.i.bf16 %v12233_v44, %v12231_v17  ;;  %v9187_v3 = vunpack.i.l.bf16 %v11866_v41  ;;  %v2628_v28 = vsel %vm291_vm0, %v12066_v27, %v8867_v8  ;;  %v2722_v27 = vsel %vm2678_vm1, %v2657_v13, %v9098_v59  ;;  %v12290_v59 = vld [vmem:[#allocation2 + $0x2f0] sm:$0xff] }
 0x1fb   :  { %v2693_v57 = vsel %vm2678_vm1, %v2628_v28, %v9027_v10  ;;  %v2787_v10 = vsel %vm2743_vm2, %v2722_v27, %v9258_v25  ;;  %v9262_v25 = vunpack.i.l.bf16 %v11983_v60 }
 0x1fc   :  { %9565 = vrot.lane.b32.xlu0 %v9564_v40, %s10844_s16  ;;  %v12215_v30 = vpop.permute.xlu1 %9345  ;;  %v12242_v40 = vpop.permute.xlu0 %9340  ;;  %v2758_v48 = vsel %vm2743_vm2, %v2693_v57, %v9187_v3  ;;  %v12288_v3 = vld [vmem:[#allocation2 + $0x2e8] sm:$0xff]  ;;  %v12303_v57 = vld [vmem:[#allocation2 + $0x2d0] sm:$0xff] }
 0x1fd   :  { %17134 = vst [vmem:[#allocation50_spill] sm:$0xff] %v12215_v30  ;;  %v9604_v54 = vpack.i.bf16 %v12290_v59, %v12288_v3 }
 0x200   :  { %3247 = vmatmul.f32.gmra.mxu0 %v2757_v15  ;;  %9575 = vrot.lane.b32.xlu2 %v9574_v0, %s10844_s16  ;;  %v9589_v0 = vpack.i.bf16 %v12252_v50, %v12250_v51  ;;  %v9584_v15 = vpack.i.bf16 %v12265_v29, %v12263_v5 }
 0x202   :  { %3334 = vmatmul.f32.gmra.mxu1 %v2786_v6  ;;  %9570 = vrot.lane.b32.xlu1 %v9569_v35, %s10844_s16  ;;  %v12267_v35 = vpop.permute.xlu2 %9365  ;;  %v8868_v6 = vunpack.i.h.bf16 %v11595_v42 }
 0x203   :  { %17136 = vst [vmem:[#allocation52_spill] sm:$0xff] %v12267_v35 }
 0x204   :  { %9580 = vrot.lane.b32.xlu0 %v9579_v9, %s10844_s16  ;;  %v12256_v18 = vpop.permute.xlu1 %9360  ;;  %v12274_v9 = vld [vmem:[#allocation2 + $0x2b8] sm:$0xff]  ;;  %v12293_v28 = vpop.permute.xlu0 %9355  ;;  %v2629_v41 = vsel %vm291_vm0, %v12068_v20, %v8868_v6 }
 0x205   :  { %17135 = vst [vmem:[#allocation51_spill] sm:$0xff] %v12256_v18  ;;  %v9594_v8 = vpack.i.bf16 %v12276_v26, %v12274_v9 }
 0x206   :  { %17137 = vst [vmem:[#allocation53_spill] sm:$0xff] %v12293_v28  ;;  %v12339_v28 = vld [vmem:[#allocation2 + $0x318] sm:$0xff] }
 0x208   :  { %3250 = vmatmul.f32.gmra.mxu0 %v2758_v48  ;;  %9590 = vrot.lane.b32.xlu2 %v9589_v0, %s10844_s16  ;;  %v9102_v0 = vunpack.i.l.bf16 %v11833_v24  ;;  %v2694_v48 = vsel %vm2678_vm1, %v2629_v41, %v9028_v39  ;;  %v17140_v39 = vld [vmem:[#allocation6_spill] sm:$0xff] }
 0x209   :  { %v2759_v27 = vsel %vm2743_vm2, %v2694_v48, %v9188_v34  ;;  %v8872_v41 = vunpack.i.l.bf16 %v17140_v39  ;;  %v946_v48 = vld [vmem:[#allocation2 + $0x330] sm:$0xff] }
 0x20a   :  { %3337 = vmatmul.f32.gmra.mxu1 %v2787_v10  ;;  %9585 = vrot.lane.b32.xlu1 %v9584_v15, %s10844_s16  ;;  %v12305_v15 = vld [vmem:[#allocation2 + $0x2d8] sm:$0xff]  ;;  %v12313_v10 = vld [vmem:[#allocation2 + $0x300] sm:$0xff]  ;;  %v12317_v35 = vpop.permute.xlu2 %9380 }
 0x20b   :  { %v9599_v13 = vpack.i.bf16 %v12305_v15, %v12303_v57  ;;  %17139 = vst [vmem:[#allocation55_spill] sm:$0xff] %v12317_v35  ;;  %v9103_v35 = vunpack.i.h.bf16 %v11833_v24 }
 0x20c   :  { %9595 = vrot.lane.b32.xlu0 %v9594_v8, %s10844_s16  ;;  %v12296_v42 = vpop.permute.xlu1 %9375  ;;  %v2658_v8 = vsel %vm291_vm0, %v12222_v49, %v8942_v47  ;;  %v947_v49 = vld [vmem:[#allocation2 + $0x338] sm:$0xff]  ;;  %v17141_v47 = vld [vmem:[#allocation26_spill] sm:$0xff]  ;;  %v12341_v30 = vpop.permute.xlu0 %9370 }
 0x20d   :  { %17138 = vst [vmem:[#allocation54_spill] sm:$0xff] %v12296_v42  ;;  %v12315_v42 = vld [vmem:[#allocation2 + $0x308] sm:$0xff]  ;;  %v2723_v20 = vsel %vm2678_vm1, %v2658_v8, %v9102_v0  ;;  %v9032_v18 = vunpack.i.l.bf16 %v17141_v47  ;;  %v423_v0 = vld [vmem:[%s17001_s5 + $0xb8] sm:$0xff]  ;;  %v945_v8 = vld [vmem:[#allocation2 + $0x320] sm:$0xff] }
 0x20e   :  { %v9609_v6 = vpack.i.bf16 %v12315_v42, %v12313_v10  ;;  %v2788_v34 = vsel %vm2743_vm2, %v2723_v20, %v9262_v25  ;;  %3409 = vmatpush.msrb.mxu1 %v423_v0  ;;  %v9619_v20 = vpack.i.bf16 %v947_v49, %v946_v48  ;;  %17143 = vst [vmem:[#allocation26_spill] sm:$0xff] %v12341_v30  ;;  %v953_v30 = vld [vmem:[#allocation2 + $0x51] sm:$0xff] }
 0x20f   :  { %v9614_v24 = vpack.i.bf16 %v945_v8, %v12339_v28 }
 0x210   :  { %3253 = vmatmul.f32.gmra.mxu0 %v2759_v27  ;;  %9605 = vrot.lane.b32.xlu2 %v9604_v54, %s10844_s16  ;;  %v8943_v54 = vunpack.i.h.bf16 %v11671_v52  ;;  %v9192_v27 = vunpack.i.l.bf16 %v11926_v62  ;;  %v949_v52 = vld [vmem:[#allocation2 + $0x350] sm:$0xff] }
 0x212   :  { %3340 = vmatmul.f32.gmra.mxu1 %v2788_v34  ;;  %9600 = vrot.lane.b32.xlu1 %v9599_v13, %s10844_s16  ;;  %v9263_v34 = vunpack.i.h.bf16 %v11983_v60  ;;  %v2630_v13 = vsel %vm291_vm0, %v12052_v32, %v8872_v41  ;;  %v2659_v48 = vsel %vm291_vm0, %v12224_v61, %v8943_v54  ;;  %v9624_v32 = vpack.i.bf16 %v949_v52, %v948_v23  ;;  %v12353_v8 = vpop.permute.xlu2 %9395  ;;  %v17144_v61 = vld [vmem:[#allocation12_spill] sm:$0xff]  ;;  %v17145_v23 = vld [vmem:[#allocation34_spill] sm:$0xff] }
 0x213   :  { %v2695_v0 = vsel %vm2678_vm1, %v2630_v13, %v9032_v18  ;;  %v2724_v60 = vsel %vm2678_vm1, %v2659_v48, %v9103_v35  ;;  %v8873_v41 = vunpack.i.h.bf16 %v17140_v39  ;;  %v9033_v18 = vunpack.i.h.bf16 %v17141_v47 }
 0x214   :  { %9610 = vrot.lane.b32.xlu0 %v9609_v6, %s10844_s16  ;;  %v12334_v25 = vpop.permute.xlu1 %9390  ;;  %v2760_v6 = vsel %vm2743_vm2, %v2695_v0, %v9192_v27  ;;  %v2789_v49 = vsel %vm2743_vm2, %v2724_v60, %v9263_v34  ;;  %v8947_v54 = vunpack.i.l.bf16 %v17144_v61  ;;  %v9193_v35 = vunpack.i.h.bf16 %v11926_v62  ;;  %v950_v27 = vld [vmem:[#allocation2 + $0x31] sm:$0xff]  ;;  %v954_v0 = vld [vmem:[#allocation2 + $0x61] sm:$0xff] }
 0x215   :  { %17142 = vst [vmem:[#allocation6_spill] sm:$0xff] %v12334_v25  ;;  %v952_v25 = vld [vmem:[#allocation2 + $0x49] sm:$0xff]  ;;  %v9107_v13 = vunpack.i.l.bf16 %v17145_v23  ;;  %v9267_v47 = vunpack.i.l.bf16 %v12037_v14  ;;  %v2631_v52 = vsel %vm291_vm0, %v12054_v12, %v8873_v41 }
 0x216   :  { %v9634_v34 = vpack.i.bf16 %v953_v30, %v952_v25  ;;  %v2660_v60 = vsel %vm291_vm0, %v12207_v36, %v8947_v54  ;;  %v422_v36 = vld [vmem:[%s17001_s5 + $0xb0] sm:$0xff]  ;;  %v8948_v54 = vunpack.i.h.bf16 %v17144_v61 }
 0x217   :  { %v2725_v30 = vsel %vm2678_vm1, %v2660_v60, %v9107_v13  ;;  %v956_v13 = vld [vmem:[#allocation2 + $0x79] sm:$0xff]  ;;  %3410 = vmatpush.msrb.mxu1 %v422_v36  ;;  %v960_v61 = vld [vmem:[#allocation2 + $0xa9] sm:$0xff] }
 0x218   :  { %3256 = vmatmul.f32.gmra.mxu0 %v2760_v6  ;;  %9620 = vrot.lane.b32.xlu2 %v9619_v20, %s10844_s16  ;;  %v951_v20 = vld [vmem:[#allocation2 + $0x39] sm:$0xff]  ;;  %v2696_v6 = vsel %vm2678_vm1, %v2631_v52, %v9033_v18  ;;  %v2790_v41 = vsel %vm2743_vm2, %v2725_v30, %v9267_v47  ;;  %v9108_v47 = vunpack.i.h.bf16 %v17145_v23  ;;  %v2661_v23 = vsel %vm291_vm0, %v12209_v63, %v8948_v54 }
 0x219   :  { %v9629_v48 = vpack.i.bf16 %v951_v20, %v950_v27  ;;  %v2761_v62 = vsel %vm2743_vm2, %v2696_v6, %v9193_v35  ;;  %v959_v18 = vld [vmem:[#allocation2 + $0x99] sm:$0xff]  ;;  %v9197_v35 = vunpack.i.l.bf16 %v11939_v1  ;;  %v9268_v6 = vunpack.i.h.bf16 %v12037_v14 }
 0x21a   :  { %3343 = vmatmul.f32.gmra.mxu1 %v2789_v49  ;;  %9615 = vrot.lane.b32.xlu1 %v9614_v24, %s10844_s16  ;;  %v955_v24 = vld [vmem:[#allocation2 + $0x69] sm:$0xff]  ;;  %v12369_v49 = vpop.permute.xlu0 %9385  ;;  %v17148_v27 = vld [vmem:[#allocation22_spill] sm:$0xff]  ;;  %v12383_v52 = vpop.permute.xlu2 %9410  ;;  %v17149_v63 = vld [vmem:[#allocation17_spill] sm:$0xff] }
 0x21b   :  { %v9639_v25 = vpack.i.bf16 %v955_v24, %v954_v0  ;;  %v9037_v20 = vunpack.i.l.bf16 %v17148_v27  ;;  %v8952_v54 = vunpack.i.l.bf16 %v17149_v63 }
 0x21c   :  { %9625 = vrot.lane.b32.xlu0 %v9624_v32, %s10844_s16  ;;  %v12360_v39 = vpop.permute.xlu1 %9405  ;;  %v17147_v32 = vld [vmem:[#allocation9_spill] sm:$0xff] }
 0x21d   :  { %17146 = vst [vmem:[#allocation12_spill] sm:$0xff] %v12360_v39  ;;  %v8877_v12 = vunpack.i.l.bf16 %v17147_v32  ;;  %v958_v39 = vld [vmem:[#allocation2 + $0x91] sm:$0xff]  ;;  %v8878_v14 = vunpack.i.h.bf16 %v17147_v32 }
 0x21e   :  { %v9649_v24 = vpack.i.bf16 %v959_v18, %v958_v39  ;;  %v965_v18 = vld [vmem:[#allocation2 + $0xe1] sm:$0xff] }
 0x220   :  { %3259 = vmatmul.f32.gmra.mxu0 %v2761_v62  ;;  %9635 = vrot.lane.b32.xlu2 %v9634_v34, %s10845_s1  ;;  %v957_v34 = vld [vmem:[#allocation2 + $0x81] sm:$0xff]  ;;  %v961_v62 = vld [vmem:[#allocation2 + $0xb1] sm:$0xff] }
 0x221   :  { %v9644_v30 = vpack.i.bf16 %v957_v34, %v956_v13  ;;  %v9654_v39 = vpack.i.bf16 %v961_v62, %v960_v61  ;;  %v962_v13 = vld [vmem:[#allocation2 + $0xc1] sm:$0xff]  ;;  %v963_v34 = vld [vmem:[#allocation2 + $0xc9] sm:$0xff]  ;;  %v2633_v61 = vsel %vm291_vm0, %v12078_v2, %v8878_v14  ;;  %v966_v62 = vld [vmem:[#allocation2 + $0xf1] sm:$0xff] }
 0x222   :  { %3346 = vmatmul.f32.gmra.mxu1 %v2790_v41  ;;  %9630 = vrot.lane.b32.xlu1 %v9629_v48, %s10845_s1  ;;  %v2632_v48 = vsel %vm291_vm0, %v12076_v19, %v8877_v12  ;;  %v964_v12 = vld [vmem:[#allocation2 + $0xd9] sm:$0xff]  ;;  %v12400_v36 = vpop.permute.xlu0 %9400 }
 0x223   :  { %v2697_v60 = vsel %vm2678_vm1, %v2632_v48, %v9037_v20  ;;  %v9038_v20 = vunpack.i.h.bf16 %v17148_v27  ;;  %v9272_v27 = vunpack.i.l.bf16 %v12060_v31  ;;  %v12410_v48 = vpop.f32.mrf.mxu1 }
 0x224   :  { %9640 = vrot.lane.b32.xlu0 %v9639_v25, %s10845_s1  ;;  %v12386_v0 = vpop.permute.xlu1 %9420  ;;  %v2762_v41 = vsel %vm2743_vm2, %v2697_v60, %v9197_v35  ;;  %v2726_v25 = vsel %vm2678_vm1, %v2661_v23, %v9108_v47  ;;  %v9198_v35 = vunpack.i.h.bf16 %v11939_v1  ;;  %v17150_v47 = vld [vmem:[#allocation30_spill] sm:$0xff]  ;;  %17152 = vst [vmem:[#allocation9_spill] sm:$0xff] %v12410_v48  ;;  %v17155_v48 = vld [vmem:[#allocation27_spill] sm:$0xff] }
 0x225   :  { %v2791_v19 = vsel %vm2743_vm2, %v2726_v25, %v9268_v6  ;;  %v9664_v6 = vpack.i.bf16 %v965_v18, %v964_v12  ;;  %v967_v60 = vld [vmem:[#allocation2 + $0xf9] sm:$0xff]  ;;  %v2698_v1 = vsel %vm2678_vm1, %v2633_v61, %v9038_v20  ;;  %v2662_v25 = vsel %vm291_vm0, %v12231_v17, %v8952_v54  ;;  %v970_v18 = vld [vmem:[#allocation2 + $0x121] sm:$0xff] }
 0x226   :  { %v2763_v23 = vsel %vm2743_vm2, %v2698_v1, %v9198_v35  ;;  %v17154_v12 = vld [vmem:[#allocation10_spill] sm:$0xff]  ;;  %v9042_v20 = vunpack.i.l.bf16 %v17155_v48  ;;  %v421_v17 = vld [vmem:[%s17001_s5 + $0xa8] sm:$0xff]  ;;  %v8953_v54 = vunpack.i.h.bf16 %v17149_v63  ;;  %v17156_v35 = vld [vmem:[#allocation40_spill] sm:$0xff] }
 0x227   :  { %v8882_v2 = vunpack.i.l.bf16 %v17154_v12  ;;  %3411 = vmatpush.msrb.mxu1 %v421_v17  ;;  %v972_v63 = vld [vmem:[#allocation2 + $0x139] sm:$0xff]  ;;  %v9043_v17 = vunpack.i.h.bf16 %v17155_v48 }
 0x228   :  { %3262 = vmatmul.f32.gmra.mxu0 %v2762_v41  ;;  %9650 = vrot.lane.b32.xlu2 %v9649_v24, %s10845_s1  ;;  %v9112_v24 = vunpack.i.l.bf16 %v17150_v47  ;;  %v9659_v41 = vpack.i.bf16 %v963_v34, %v962_v13  ;;  %v9202_v13 = vunpack.i.l.bf16 %v17156_v35  ;;  %v968_v34 = vld [vmem:[#allocation2 + $0x109] sm:$0xff] }
 0x229   :  { %v2634_v1 = vsel %vm291_vm0, %v12106_v37, %v8882_v2 }
 0x22a   :  { %3349 = vmatmul.f32.gmra.mxu1 %v2791_v19  ;;  %9645 = vrot.lane.b32.xlu1 %v9644_v30, %s10845_s1  ;;  %v12414_v30 = vpop.permute.xlu2 %9425  ;;  %v9669_v19 = vpack.i.bf16 %v967_v60, %v966_v62  ;;  %v9273_v60 = vunpack.i.h.bf16 %v12060_v31 }
 0x22b   :  { %17153 = vst [vmem:[#allocation22_spill] sm:$0xff] %v12414_v30 }
 0x22c   :  { %9655 = vrot.lane.b32.xlu0 %v9654_v39, %s10845_s1  ;;  %v12407_v32 = vpop.permute.xlu1 %9435  ;;  %v2727_v39 = vsel %vm2678_vm1, %v2662_v25, %v9112_v24  ;;  %v969_v24 = vld [vmem:[#allocation2 + $0x111] sm:$0xff] }
 0x22d   :  { %17151 = vst [vmem:[#allocation34_spill] sm:$0xff] %v12407_v32  ;;  %v2792_v14 = vsel %vm2743_vm2, %v2727_v39, %v9272_v27  ;;  %v971_v32 = vld [vmem:[#allocation2 + $0x129] sm:$0xff]  ;;  %v12432_v27 = vpop.permute.xlu0 %9415  ;;  %v9674_v25 = vpack.i.bf16 %v969_v24, %v968_v34  ;;  %v12441_v39 = vpop.f32.mrf.mxu1  ;;  %v974_v34 = vld [vmem:[#allocation2 + $0x151] sm:$0xff]  ;;  %v975_v24 = vld [vmem:[#allocation2 + $0x159] sm:$0xff] }
 0x22e   :  { %v9679_v62 = vpack.i.bf16 %v971_v32, %v970_v18  ;;  %17158 = vst [vmem:[#allocation30_spill] sm:$0xff] %v12441_v39  ;;  %v8883_v32 = vunpack.i.h.bf16 %v17154_v12  ;;  %v976_v18 = vld [vmem:[#allocation2 + $0x169] sm:$0xff] }
 0x230   :  { %3265 = vmatmul.f32.gmra.mxu0 %v2763_v23  ;;  %9665 = vrot.lane.b32.xlu2 %v9664_v6, %s10845_s1  ;;  %v9113_v6 = vunpack.i.h.bf16 %v17150_v47  ;;  %v2699_v23 = vsel %vm2678_vm1, %v2634_v1, %v9042_v20  ;;  %v977_v20 = vld [vmem:[#allocation2 + $0x171] sm:$0xff]  ;;  %v9277_v1 = vunpack.i.l.bf16 %v12012_v38  ;;  %v2635_v48 = vsel %vm291_vm0, %v12108_v11, %v8883_v32  ;;  %v17165_v32 = vld [vmem:[#allocation7_spill] sm:$0xff] }
 0x231   :  { %v2764_v47 = vsel %vm2743_vm2, %v2699_v23, %v9202_v13  ;;  %v9203_v13 = vunpack.i.h.bf16 %v17156_v35  ;;  %v2700_v35 = vsel %vm2678_vm1, %v2635_v48, %v9043_v17  ;;  %v983_v17 = vld [vmem:[#allocation2 + $0x1e9] sm:$0xff] }
 0x232   :  { %3352 = vmatmul.f32.gmra.mxu1 %v2792_v14  ;;  %9660 = vrot.lane.b32.xlu1 %v9659_v41, %s10845_s1  ;;  %v973_v41 = vld [vmem:[#allocation2 + $0x141] sm:$0xff]  ;;  %v12446_v14 = vpop.permute.xlu2 %9440 }
 0x233   :  { %17159 = vst [vmem:[#allocation10_spill] sm:$0xff] %v12446_v14  ;;  %v9684_v37 = vpack.i.bf16 %v973_v41, %v972_v63  ;;  %v978_v63 = vld [vmem:[#allocation2 + $0x181] sm:$0xff]  ;;  %v979_v41 = vld [vmem:[#allocation2 + $0x189] sm:$0xff] }
 0x234   :  { %9670 = vrot.lane.b32.xlu0 %v9669_v19, %s10845_s1  ;;  %v12435_v61 = vpop.permute.xlu1 %9450  ;;  %v2663_v19 = vsel %vm291_vm0, %v12233_v44, %v8953_v54  ;;  %v17160_v44 = vld [vmem:[#allocation18_spill] sm:$0xff]  ;;  %v9699_v11 = vpack.i.bf16 %v979_v41, %v978_v63  ;;  %v9278_v41 = vunpack.i.h.bf16 %v12012_v38 }
 0x235   :  { %17157 = vst [vmem:[#allocation17_spill] sm:$0xff] %v12435_v61  ;;  %v2728_v31 = vsel %vm2678_vm1, %v2663_v19, %v9113_v6  ;;  %v8957_v54 = vunpack.i.l.bf16 %v17160_v44  ;;  %v17161_v6 = vld [vmem:[#allocation35_spill] sm:$0xff]  ;;  %v12463_v23 = vpop.permute.xlu0 %9430  ;;  %v2765_v19 = vsel %vm2743_vm2, %v2700_v35, %v9203_v13  ;;  %v9207_v13 = vunpack.i.l.bf16 %v11945_v4 }
 0x236   :  { %v2793_v2 = vsel %vm2743_vm2, %v2728_v31, %v9273_v60  ;;  %v9694_v60 = vpack.i.bf16 %v977_v20, %v976_v18  ;;  %17163 = vst [vmem:[#allocation40_spill] sm:$0xff] %v12463_v23  ;;  %v982_v20 = vld [vmem:[#allocation2 + $0x1e1] sm:$0xff] }
 0x237   :  { %v2664_v31 = vsel %vm291_vm0, %v12263_v5, %v8957_v54  ;;  %v420_v5 = vld [vmem:[%s17001_s5 + $0xa0] sm:$0xff]  ;;  %v8958_v54 = vunpack.i.h.bf16 %v17160_v44  ;;  %v9709_v63 = vpack.i.bf16 %v983_v17, %v982_v20  ;;  %v988_v17 = vld [vmem:[#allocation2 + $0x229] sm:$0xff] }
 0x238   :  { %3268 = vmatmul.f32.gmra.mxu0 %v2764_v47  ;;  %9680 = vrot.lane.b32.xlu2 %v9679_v62, %s10845_s1  ;;  %v9117_v62 = vunpack.i.l.bf16 %v17161_v6 }
 0x239   :  { %3412 = vmatpush.msrb.mxu1 %v420_v5 }
 0x23a   :  { %3355 = vmatmul.f32.gmra.mxu1 %v2793_v2  ;;  %9675 = vrot.lane.b32.xlu1 %v9674_v25, %s10845_s1  ;;  %v9689_v25 = vpack.i.bf16 %v975_v24, %v974_v34  ;;  %v8887_v2 = vunpack.i.l.bf16 %v17165_v32  ;;  %v17166_v34 = vld [vmem:[#allocation28_spill] sm:$0xff]  ;;  %v12476_v48 = vpop.permute.xlu2 %9455 }
 0x23b   :  { %v9047_v24 = vunpack.i.l.bf16 %v17166_v34  ;;  %17167 = vst [vmem:[#allocation35_spill] sm:$0xff] %v12476_v48 }
 0x23c   :  { %9685 = vrot.lane.b32.xlu0 %v9684_v37, %s10845_s1  ;;  %v12458_v12 = vpop.permute.xlu1 %9465  ;;  %v2729_v37 = vsel %vm2678_vm1, %v2664_v31, %v9117_v62  ;;  %v980_v62 = vld [vmem:[#allocation2 + $0x199] sm:$0xff]  ;;  %v2636_v35 = vsel %vm291_vm0, %v12092_v7, %v8887_v2  ;;  %v8888_v2 = vunpack.i.h.bf16 %v17165_v32 }
 0x23d   :  { %17162 = vst [vmem:[#allocation27_spill] sm:$0xff] %v12458_v12  ;;  %v2794_v18 = vsel %vm2743_vm2, %v2729_v37, %v9277_v1  ;;  %v9118_v1 = vunpack.i.h.bf16 %v17161_v6  ;;  %v2701_v44 = vsel %vm2678_vm1, %v2636_v35, %v9047_v24  ;;  %v2665_v6 = vsel %vm291_vm0, %v12265_v29, %v8958_v54  ;;  %v989_v24 = vld [vmem:[#allocation2 + $0x231] sm:$0xff]  ;;  %v17170_v29 = vld [vmem:[#allocation15_spill] sm:$0xff] }
 0x23e   :  { %v2766_v5 = vsel %vm2743_vm2, %v2701_v44, %v9207_v13  ;;  %v12504_v13 = vpop.f32.mrf.mxu0  ;;  %v8962_v54 = vunpack.i.l.bf16 %v17170_v29  ;;  %v17171_v35 = vld [vmem:[#allocation36_spill] sm:$0xff]  ;;  %v990_v44 = vld [vmem:[#allocation2 + $0x241] sm:$0xff] }
 0x23f   :  { %v12466_v47 = vpop.f32.mrf.mxu1  ;;  %v2730_v38 = vsel %vm2678_vm1, %v2665_v6, %v9118_v1  ;;  %v986_v1 = vld [vmem:[#allocation2 + $0x211] sm:$0xff] }
 0x240   :  { %17164 = vst [vmem:[#allocation18_spill] sm:$0xff] %v12466_v47  ;;  %3271 = vmatmul.f32.gmra.mxu0 %v2765_v19  ;;  %9695 = vrot.lane.b32.xlu2 %v9694_v60, %s10845_s1  ;;  %v981_v60 = vld [vmem:[#allocation2 + $0x1a1] sm:$0xff]  ;;  %v2795_v20 = vsel %vm2743_vm2, %v2730_v38, %v9278_v41  ;;  %v9724_v41 = vpack.i.bf16 %v989_v24, %v988_v17  ;;  %v17199_v47 = vld [vmem:[#allocation25_spill] sm:$0xff] }
 0x241   :  { %v985_v19 = vld [vmem:[#allocation2 + $0x201] sm:$0xff]  ;;  %v9704_v37 = vpack.i.bf16 %v981_v60, %v980_v62  ;;  %v9048_v62 = vunpack.i.h.bf16 %v17166_v34  ;;  %v9208_v60 = vunpack.i.h.bf16 %v11945_v4  ;;  %v9282_v34 = vunpack.i.l.bf16 %v12087_v46 }
 0x242   :  { %3358 = vmatmul.f32.gmra.mxu1 %v2794_v18  ;;  %9690 = vrot.lane.b32.xlu1 %v9689_v25, %s10845_s1  ;;  %v984_v25 = vld [vmem:[#allocation2 + $0x1f9] sm:$0xff]  ;;  %v12510_v32 = vpop.permute.xlu2 %9470 }
 0x243   :  { %v9714_v7 = vpack.i.bf16 %v985_v19, %v984_v25  ;;  %v9122_v25 = vunpack.i.l.bf16 %v17171_v35  ;;  %v2637_v19 = vsel %vm291_vm0, %v12094_v22, %v8888_v2  ;;  %v17173_v2 = vld [vmem:[#allocation11_spill] sm:$0xff] }
 0x244   :  { %9700 = vrot.lane.b32.xlu0 %v9699_v11, %s10845_s1  ;;  %v12489_v31 = vpop.permute.xlu1 %9480  ;;  %v12497_v11 = vpop.permute.xlu0 %9445  ;;  %v8892_v17 = vunpack.i.l.bf16 %v17173_v2 }
 0x245   :  { %17169 = vst [vmem:[#allocation28_spill] sm:$0xff] %v12497_v11 }
 0x247   :  { %v12492_v18 = vpop.f32.mrf.mxu1 }
 0x248   :  { %17168 = vst [vmem:[#allocation7_spill] sm:$0xff] %v12492_v18  ;;  %3274 = vmatmul.f32.gmra.mxu0 %v2766_v5  ;;  %9710 = vrot.lane.b32.xlu2 %v9709_v63, %s10845_s1  ;;  %v987_v63 = vld [vmem:[#allocation2 + $0x219] sm:$0xff]  ;;  %v2702_v5 = vsel %vm2678_vm1, %v2637_v19, %v9048_v62  ;;  %v994_v62 = vld [vmem:[#allocation2 + $0x271] sm:$0xff] }
 0x249   :  { %v9719_v6 = vpack.i.bf16 %v987_v63, %v986_v1  ;;  %v2767_v38 = vsel %vm2743_vm2, %v2702_v5, %v9208_v60  ;;  %v995_v1 = vld [vmem:[#allocation2 + $0x279] sm:$0xff]  ;;  %v17174_v63 = vld [vmem:[#allocation24_spill] sm:$0xff] }
 0x24a   :  { %3361 = vmatmul.f32.gmra.mxu1 %v2795_v20  ;;  %9705 = vrot.lane.b32.xlu1 %v9704_v37, %s10845_s1  ;;  %v991_v37 = vld [vmem:[#allocation2 + $0x249] sm:$0xff]  ;;  %v2666_v20 = vsel %vm291_vm0, %v12250_v51, %v8962_v54  ;;  %v9052_v19 = vunpack.i.l.bf16 %v17174_v63  ;;  %v419_v51 = vld [vmem:[%s17001_s5 + $0x98] sm:$0xff]  ;;  %v8963_v54 = vunpack.i.h.bf16 %v17170_v29  ;;  %v9739_v5 = vpack.i.bf16 %v995_v1, %v994_v62  ;;  %v12544_v29 = vpop.permute.xlu2 %9485 }
 0x24b   :  { %v9729_v22 = vpack.i.bf16 %v991_v37, %v990_v44  ;;  %v993_v44 = vld [vmem:[#allocation2 + $0x261] sm:$0xff]  ;;  %3413 = vmatpush.msrb.mxu1 %v419_v51  ;;  %v12538_v37 = vpop.f32.mrf.mxu0  ;;  %v1000_v1 = vld [vmem:[#allocation2 + $0x2b9] sm:$0xff] }
 0x24c   :  { %9715 = vrot.lane.b32.xlu0 %v9714_v7, %s10845_s1  ;;  %v12522_v12 = vpop.permute.xlu1 %9495  ;;  %v2731_v7 = vsel %vm2678_vm1, %v2666_v20, %v9122_v25  ;;  %v12529_v60 = vpop.permute.xlu0 %9460  ;;  %v9212_v25 = vunpack.i.l.bf16 %v11958_v58  ;;  %v996_v20 = vld [vmem:[#allocation2 + $0x289] sm:$0xff] }
 0x24d   :  { %v2796_v24 = vsel %vm2743_vm2, %v2731_v7, %v9282_v34  ;;  %17175 = vst [vmem:[#allocation36_spill] sm:$0xff] %v12529_v60  ;;  %v9123_v34 = vunpack.i.h.bf16 %v17171_v35  ;;  %v997_v7 = vld [vmem:[#allocation2 + $0x291] sm:$0xff] }
 0x24f   :  { %v12517_v4 = vpop.f32.mrf.mxu1 }
 0x250   :  { %17172 = vst [vmem:[#allocation15_spill] sm:$0xff] %v12517_v4  ;;  %3277 = vmatmul.f32.gmra.mxu0 %v2767_v38  ;;  %9725 = vrot.lane.b32.xlu2 %v9724_v41, %s10845_s1  ;;  %v992_v41 = vld [vmem:[#allocation2 + $0x259] sm:$0xff]  ;;  %v2638_v38 = vsel %vm291_vm0, %v12118_v21, %v8892_v17  ;;  %v9744_v21 = vpack.i.bf16 %v997_v7, %v996_v20  ;;  %v8893_v17 = vunpack.i.h.bf16 %v17173_v2 }
 0x251   :  { %v9734_v60 = vpack.i.bf16 %v993_v44, %v992_v41  ;;  %v9053_v41 = vunpack.i.h.bf16 %v17174_v63  ;;  %v17179_v7 = vld [vmem:[#allocation45_spill] sm:$0xff] }
 0x252   :  { %3364 = vmatmul.f32.gmra.mxu1 %v2796_v24  ;;  %9720 = vrot.lane.b32.xlu1 %v9719_v6, %s10845_s1  ;;  %v9283_v6 = vunpack.i.h.bf16 %v12087_v46  ;;  %v2703_v24 = vsel %vm2678_vm1, %v2638_v38, %v9052_v19  ;;  %v1001_v19 = vld [vmem:[#allocation2 + $0x2c1] sm:$0xff]  ;;  %v17178_v38 = vld [vmem:[#allocation32_spill] sm:$0xff]  ;;  %v9287_v63 = vunpack.i.l.bf16 %v17179_v7 }
 0x253   :  { %v2768_v35 = vsel %vm2743_vm2, %v2703_v24, %v9212_v25  ;;  %v9213_v25 = vunpack.i.h.bf16 %v11958_v58  ;;  %v9127_v20 = vunpack.i.l.bf16 %v17178_v38  ;;  %v17180_v24 = vld [vmem:[#allocation47_spill] sm:$0xff] }
 0x254   :  { %9730 = vrot.lane.b32.xlu0 %v9729_v22, %s10845_s1  ;;  %v2667_v22 = vsel %vm291_vm0, %v12252_v50, %v8963_v54  ;;  %v12557_v44 = vpop.permute.xlu1 %9510  ;;  %v17177_v50 = vld [vmem:[#allocation19_spill] sm:$0xff]  ;;  %v12563_v2 = vpop.permute.xlu0 %9475 }
 0x255   :  { %v2732_v46 = vsel %vm2678_vm1, %v2667_v22, %v9123_v34  ;;  %v8967_v54 = vunpack.i.l.bf16 %v17177_v50  ;;  %v998_v34 = vld [vmem:[#allocation2 + $0x2a1] sm:$0xff]  ;;  %v1002_v22 = vld [vmem:[#allocation2 + $0x2d1] sm:$0xff] }
 0x256   :  { %v2797_v62 = vsel %vm2743_vm2, %v2732_v46, %v9283_v6  ;;  %v9754_v6 = vpack.i.bf16 %v1001_v19, %v1000_v1  ;;  %v12569_v46 = vpop.f32.mrf.mxu0  ;;  %v12577_v1 = vpop.permute.xlu2 %9500 }
 0x257   :  { %v12547_v51 = vpop.f32.mrf.mxu1 }
 0x258   :  { %17176 = vst [vmem:[#allocation11_spill] sm:$0xff] %v12547_v51  ;;  %3280 = vmatmul.f32.gmra.mxu0 %v2768_v35  ;;  %9740 = vrot.lane.b32.xlu2 %v9739_v5, %s10845_s1  ;;  %v999_v5 = vld [vmem:[#allocation2 + $0x2a9] sm:$0xff]  ;;  %v2639_v35 = vsel %vm291_vm0, %v17180_v24, %v8893_v17  ;;  %v17182_v24 = vld [vmem:[#allocation13_spill] sm:$0xff] }
 0x259   :  { %v2704_v58 = vsel %vm2678_vm1, %v2639_v35, %v9053_v41  ;;  %v8897_v51 = vunpack.i.l.bf16 %v17182_v24  ;;  %v17183_v35 = vld [vmem:[#allocation29_spill] sm:$0xff] }
 0x25a   :  { %3367 = vmatmul.f32.gmra.mxu1 %v2797_v62  ;;  %9735 = vrot.lane.b32.xlu1 %v9734_v60, %s10845_s1  ;;  %v1003_v60 = vld [vmem:[#allocation2 + $0x2d9] sm:$0xff]  ;;  %v9749_v62 = vpack.i.bf16 %v999_v5, %v998_v34  ;;  %v2769_v61 = vsel %vm2743_vm2, %v2704_v58, %v9213_v25  ;;  %v1006_v34 = vld [vmem:[#allocation2 + $0x301] sm:$0xff]  ;;  %v1007_v5 = vld [vmem:[#allocation2 + $0x309] sm:$0xff] }
 0x25b   :  { %v9759_v17 = vpack.i.bf16 %v1003_v60, %v1002_v22  ;;  %v17184_v25 = vld [vmem:[#allocation41_spill] sm:$0xff]  ;;  %v9769_v58 = vpack.i.bf16 %v1007_v5, %v1006_v34  ;;  %v8898_v34 = vunpack.i.h.bf16 %v17182_v24  ;;  %v1012_v5 = vld [vmem:[#allocation2 + $0x349] sm:$0xff] }
 0x25c   :  { %9745 = vrot.lane.b32.xlu0 %v9744_v21, %s10845_s1  ;;  %v2668_v21 = vsel %vm291_vm0, %v12274_v9, %v8967_v54  ;;  %v527_v9 = vld [vmem:[#allocation2 + $0x138] sm:$0xff]  ;;  %v8968_v54 = vunpack.i.h.bf16 %v17177_v50  ;;  %v12591_v60 = vpop.permute.xlu1 %9525  ;;  %v12596_v11 = vpop.permute.xlu0 %9490 }
 0x25d   :  { %v2733_v19 = vsel %vm2678_vm1, %v2668_v21, %v9127_v20  ;;  %v9217_v20 = vunpack.i.l.bf16 %v17184_v25  ;;  %v1005_v22 = vld [vmem:[#allocation2 + $0x2f1] sm:$0xff]  ;;  %v2640_v21 = vsel %vm291_vm0, %v527_v9, %v8897_v51 }
 0x25e   :  { %v2798_v41 = vsel %vm2743_vm2, %v2733_v19, %v9287_v63  ;;  %v9128_v63 = vunpack.i.h.bf16 %v17178_v38  ;;  %v1008_v19 = vld [vmem:[#allocation2 + $0x319] sm:$0xff]  ;;  %v1013_v9 = vld [vmem:[#allocation2 + $0x351] sm:$0xff] }
 0x25f   :  { %v12572_v48 = vpop.f32.mrf.mxu1 }
 0x260   :  { %17181 = vst [vmem:[#allocation24_spill] sm:$0xff] %v12572_v48  ;;  %3283 = vmatmul.f32.gmra.mxu0 %v2769_v61  ;;  %9755 = vrot.lane.b32.xlu2 %v9754_v6, %s10845_s1  ;;  %v9057_v48 = vunpack.i.l.bf16 %v17183_v35  ;;  %v418_v61 = vld [vmem:[%s17001_s5 + $0x90] sm:$0xff] }
 0x261   :  { %v1004_v6 = vld [vmem:[#allocation2 + $0x2e9] sm:$0xff]  ;;  %3414 = vmatpush.msrb.mxu1 %v418_v61  ;;  %v2669_v61 = vsel %vm291_vm0, %v12276_v26, %v8968_v54  ;;  %v528_v26 = vld [vmem:[#allocation2 + $0x140] sm:$0xff] }
 0x262   :  { %3370 = vmatmul.f32.gmra.mxu1 %v2798_v41  ;;  %9750 = vrot.lane.b32.xlu1 %v9749_v62, %s10845_s1  ;;  %v9288_v62 = vunpack.i.h.bf16 %v17179_v7  ;;  %v1009_v41 = vld [vmem:[#allocation2 + $0x321] sm:$0xff]  ;;  %v2705_v50 = vsel %vm2678_vm1, %v2640_v21, %v9057_v48  ;;  %v9764_v4 = vpack.i.bf16 %v1005_v22, %v1004_v6  ;;  %v2734_v7 = vsel %vm2678_vm1, %v2669_v61, %v9128_v63  ;;  %v17186_v54 = vld [vmem:[#allocation20_spill] sm:$0xff]  ;;  %v1011_v21 = vld [vmem:[#allocation2 + $0x339] sm:$0xff] }
 0x263   :  { %v2770_v38 = vsel %vm2743_vm2, %v2705_v50, %v9217_v20  ;;  %v9774_v51 = vpack.i.bf16 %v1009_v41, %v1008_v19  ;;  %v9058_v6 = vunpack.i.h.bf16 %v17183_v35  ;;  %v12611_v20 = vpop.permute.xlu2 %9515  ;;  %v8972_v22 = vunpack.i.l.bf16 %v17186_v54  ;;  %v17187_v19 = vld [vmem:[#allocation37_spill] sm:$0xff]  ;;  %v17188_v41 = vld [vmem:[#allocation44_spill] sm:$0xff] }
 0x264   :  { %9760 = vrot.lane.b32.xlu0 %v9759_v17, %s10845_s1  ;;  %v12604_v17 = vpop.f32.mrf.mxu0  ;;  %v2799_v48 = vsel %vm2743_vm2, %v2734_v7, %v9288_v62  ;;  %v9218_v63 = vunpack.i.h.bf16 %v17184_v25  ;;  %v9132_v24 = vunpack.i.l.bf16 %v17187_v19  ;;  %v9784_v62 = vpack.i.bf16 %v1013_v9, %v1012_v5 }
 0x265   :  { %v9292_v50 = vunpack.i.l.bf16 %v17188_v41  ;;  %v2641_v35 = vsel %vm291_vm0, %v528_v26, %v8898_v34  ;;  %v17190_v34 = vld [vmem:[#allocation8_spill] sm:$0xff] }
 0x266   :  { %v8902_v5 = vunpack.i.l.bf16 %v17190_v34 }
 0x267   :  { %v12599_v14 = vpop.f32.mrf.mxu1 }
 0x268   :  { %17185 = vst [vmem:[#allocation19_spill] sm:$0xff] %v12599_v14  ;;  %3286 = vmatmul.f32.gmra.mxu0 %v2770_v38  ;;  %9770 = vrot.lane.b32.xlu2 %v9769_v58, %s10845_s1  ;;  %v1010_v58 = vld [vmem:[#allocation2 + $0x331] sm:$0xff]  ;;  %v12620_v38 = vpop.permute.xlu1 %9540  ;;  %v12628_v14 = vpop.permute.xlu0 %9505 }
 0x269   :  { %v9779_v61 = vpack.i.bf16 %v1011_v21, %v1010_v58  ;;  %v17192_v21 = vld [vmem:[#allocation42_spill] sm:$0xff] }
 0x26a   :  { %3373 = vmatmul.f32.gmra.mxu1 %v2799_v48  ;;  %9765 = vrot.lane.b32.xlu1 %v9764_v4, %s10845_s1  ;;  %v2706_v4 = vsel %vm2678_vm1, %v2641_v35, %v9058_v6  ;;  %v2670_v48 = vsel %vm291_vm0, %v12303_v57, %v8972_v22  ;;  %v17191_v6 = vld [vmem:[#allocation31_spill] sm:$0xff]  ;;  %v8973_v22 = vunpack.i.h.bf16 %v17186_v54  ;;  %v9293_v35 = vunpack.i.h.bf16 %v17188_v41 }
 0x26b   :  { %v2771_v25 = vsel %vm2743_vm2, %v2706_v4, %v9218_v63  ;;  %v9062_v26 = vunpack.i.l.bf16 %v17191_v6  ;;  %v529_v63 = vld [vmem:[#allocation2 + $0x150] sm:$0xff]  ;;  %v417_v57 = vld [vmem:[%s17001_s5 + $0x88] sm:$0xff] }
 0x26c   :  { %9775 = vrot.lane.b32.xlu0 %v9774_v51, %s10845_s1  ;;  %v2735_v51 = vsel %vm2678_vm1, %v2670_v48, %v9132_v24  ;;  %v12635_v58 = vpop.f32.mrf.mxu0  ;;  %v9222_v24 = vunpack.i.l.bf16 %v17192_v21  ;;  %3415 = vmatpush.msrb.mxu1 %v417_v57  ;;  %v2642_v4 = vsel %vm291_vm0, %v529_v63, %v8902_v5  ;;  %v2671_v54 = vsel %vm291_vm0, %v12305_v15, %v8973_v22  ;;  %v17194_v57 = vld [vmem:[#allocation16_spill] sm:$0xff]  ;;  %v17195_v15 = vld [vmem:[#allocation38_spill] sm:$0xff] }
 0x26d   :  { %v2800_v9 = vsel %vm2743_vm2, %v2735_v51, %v9292_v50  ;;  %v12644_v50 = vpop.permute.xlu2 %9530  ;;  %v9063_v5 = vunpack.i.h.bf16 %v17191_v6  ;;  %v9137_v22 = vunpack.i.l.bf16 %v17195_v15 }
 0x26f   :  { %v12623_v7 = vpop.f32.mrf.mxu1 }
 0x270   :  { %17189 = vst [vmem:[#allocation32_spill] sm:$0xff] %v12623_v7  ;;  %3289 = vmatmul.f32.gmra.mxu0 %v2771_v25  ;;  %9785 = vrot.lane.b32.xlu2 %v9784_v62, %s10845_s1  ;;  %v9133_v62 = vunpack.i.h.bf16 %v17187_v19  ;;  %v12654_v51 = vpop.permute.xlu1 %9555  ;;  %v12660_v63 = vpop.permute.xlu0 %9520 }
 0x272   :  { %3376 = vmatmul.f32.gmra.mxu1 %v2800_v9  ;;  %9780 = vrot.lane.b32.xlu1 %v9779_v61, %s10845_s1  ;;  %v2707_v61 = vsel %vm2678_vm1, %v2642_v4, %v9062_v26  ;;  %v2736_v19 = vsel %vm2678_vm1, %v2671_v54, %v9133_v62  ;;  %v8903_v9 = vunpack.i.h.bf16 %v17190_v34  ;;  %v530_v26 = vld [vmem:[#allocation2 + $0x158] sm:$0xff]  ;;  %v9223_v4 = vunpack.i.h.bf16 %v17192_v21 }
 0x273   :  { %v2772_v48 = vsel %vm2743_vm2, %v2707_v61, %v9222_v24  ;;  %v2801_v41 = vsel %vm2743_vm2, %v2736_v19, %v9293_v35  ;;  %v8977_v24 = vunpack.i.l.bf16 %v17194_v57 }
 0x274   :  { %v12665_v61 = vpop.f32.mrf.mxu0  ;;  %v2643_v34 = vsel %vm291_vm0, %v530_v26, %v8903_v9  ;;  %v9067_v9 = vunpack.i.l.bf16 %v17199_v47 }
 0x275   :  { %v12669_v54 = vpop.permute.xlu2 %9545  ;;  %v2708_v6 = vsel %vm2678_vm1, %v2643_v34, %v9063_v5  ;;  %v531_v5 = vld [vmem:[#allocation2 + $0x168] sm:$0xff]  ;;  %v8978_v34 = vunpack.i.h.bf16 %v17194_v57 }
 0x276   :  { %v2773_v19 = vsel %vm2743_vm2, %v2708_v6, %v9223_v4  ;;  %v416_v4 = vld [vmem:[%s17001_s5 + $0x80] sm:$0xff] }
 0x277   :  { %v12649_v25 = vpop.f32.mrf.mxu1  ;;  %3416 = vmatpush.msrb.mxu1 %v416_v4 }
 0x278   :  { %17193 = vst [vmem:[#allocation45_spill] sm:$0xff] %v12649_v25  ;;  %3292 = vmatmul.f32.gmra.mxu0 %v2772_v48  ;;  %v17196_v48 = vld [vmem:[#allocation48_spill] sm:$0xff]  ;;  %v17198_v25 = vld [vmem:[#allocation14_spill] sm:$0xff]  ;;  %v12681_v26 = vpop.permute.xlu1 %9570  ;;  %v12689_v6 = vpop.permute.xlu0 %9535 }
 0x279   :  { %v9297_v62 = vunpack.i.l.bf16 %v17196_v48  ;;  %v8907_v7 = vunpack.i.l.bf16 %v17198_v25 }
 0x27a   :  { %3379 = vmatmul.f32.gmra.mxu1 %v2801_v41  ;;  %v2672_v41 = vsel %vm291_vm0, %v12288_v3, %v8977_v24  ;;  %v17200_v3 = vld [vmem:[#allocation43_spill] sm:$0xff] }
 0x27b   :  { %v2737_v21 = vsel %vm2678_vm1, %v2672_v41, %v9137_v22  ;;  %v9227_v24 = vunpack.i.l.bf16 %v17200_v3  ;;  %v9138_v22 = vunpack.i.h.bf16 %v17195_v15  ;;  %v2673_v15 = vsel %vm291_vm0, %v12290_v59, %v8978_v34  ;;  %v532_v59 = vld [vmem:[#allocation2 + $0x170] sm:$0xff]  ;;  %v433_v34 = vld [vmem:[%s17001_s5 + $0x108] sm:$0xff] }
 0x27c   :  { %v2802_v18 = vsel %vm2743_vm2, %v2737_v21, %v9297_v62  ;;  %v9298_v62 = vunpack.i.h.bf16 %v17196_v48  ;;  %v12693_v41 = vpop.f32.mrf.mxu0  ;;  %v435_v21 = vld [vmem:[%s17001_s5 + $0x118] sm:$0xff] }
 0x27d   :  { %3622 = vmatpush.msra.mxu2 %v435_v21  ;;  %8813 = vmatpush.msra.mxu3 %v435_v21  ;;  %v12707_v48 = vpop.permute.xlu2 %9560  ;;  %v17202_v21 = vld [vmem:[#allocation21_spill] sm:$0xff] }
 0x27f   :  { %v12672_v35 = vpop.f32.mrf.mxu1 }
 0x280   :  { %17197 = vst [vmem:[#allocation47_spill] sm:$0xff] %v12672_v35  ;;  %3295 = vmatmul.f32.gmra.mxu0 %v2773_v19  ;;  %v2644_v19 = vsel %vm291_vm0, %v531_v5, %v8907_v7  ;;  %v434_v7 = vld [vmem:[%s17001_s5 + $0x110] sm:$0xff]  ;;  %v8908_v5 = vunpack.i.h.bf16 %v17198_v25  ;;  %v9228_v25 = vunpack.i.h.bf16 %v17200_v3 }
 0x281   :  { %3623 = vmatpush.msra.mxu2 %v434_v7  ;;  %8814 = vmatpush.msra.mxu3 %v434_v7  ;;  %v9302_v7 = vunpack.i.l.bf16 %v12139_v45 }
 0x282   :  { %3382 = vmatmul.f32.gmra.mxu1 %v2802_v18  ;;  %v2709_v18 = vsel %vm2678_vm1, %v2644_v19, %v9067_v9  ;;  %v2738_v9 = vsel %vm2678_vm1, %v2673_v15, %v9138_v22  ;;  %v8982_v22 = vunpack.i.l.bf16 %v17202_v21 }
 0x283   :  { %v2774_v4 = vsel %vm2743_vm2, %v2709_v18, %v9227_v24  ;;  %v2803_v19 = vsel %vm2743_vm2, %v2738_v9, %v9298_v62  ;;  %v9068_v24 = vunpack.i.h.bf16 %v17199_v47  ;;  %v432_v18 = vld [vmem:[%s17001_s5 + $0x100] sm:$0xff]  ;;  %3624 = vmatpush.msra.mxu2 %v433_v34  ;;  %v1014_v62 = vld [vmem:[#allocation2 + $0x32] sm:$0xff]  ;;  %8815 = vmatpush.msra.mxu3 %v433_v34  ;;  %v12722_v47 = vpop.permute.xlu1 %9585  ;;  %v2645_v9 = vsel %vm291_vm0, %v532_v59, %v8908_v5 }
 0x284   :  { %17204 = vst [vmem:[#allocation29_spill] sm:$0xff] %v12722_v47  ;;  %v2674_v35 = vsel %vm291_vm0, %v12313_v10, %v8982_v22  ;;  %v12735_v39 = vpop.f32.mrf.mxu0 }
 0x285   :  { %3625 = vmatpush.msra.mxu2 %v432_v18  ;;  %8816 = vmatpush.msra.mxu3 %v432_v18  ;;  %v12739_v18 = vpop.permute.xlu2 %9575 }
 0x286   :  { %8669 = vmatmul.msk.f32.vlgmr.msra.gmra.mxu2 %vm291_vm0, %v1014_v62  ;;  %v1015_v62 = vld [vmem:[#allocation2 + $0x3a] sm:$0xff] }
 0x287   :  { %v12699_v57 = vpop.f32.mrf.mxu1 }
 0x288   :  { %17201 = vst [vmem:[#allocation13_spill] sm:$0xff] %v12699_v57  ;;  %3298 = vmatmul.f32.gmra.mxu0 %v2774_v4  ;;  %v17203_v4 = vld [vmem:[#allocation33_spill] sm:$0xff]  ;;  %v2710_v57 = vsel %vm2678_vm1, %v2645_v9, %v9068_v24  ;;  %v8983_v24 = vunpack.i.h.bf16 %v17202_v21 }
 0x289   :  { %v9142_v15 = vunpack.i.l.bf16 %v17203_v4  ;;  %v2775_v34 = vsel %vm2743_vm2, %v2710_v57, %v9228_v25  ;;  %v9143_v9 = vunpack.i.h.bf16 %v17203_v4  ;;  %v9303_v57 = vunpack.i.h.bf16 %v12139_v45  ;;  %v17209_v45 = vld [vmem:[#allocation39_spill] sm:$0xff] }
 0x28a   :  { %3385 = vmatmul.f32.gmra.mxu1 %v2803_v19  ;;  %v12726_v19 = vpop.permute.xlu0 %9550 }
 0x28b   :  { %v2739_v5 = vsel %vm2678_vm1, %v2674_v35, %v9142_v15  ;;  %v12744_v25 = vpop.permute.xlu1 %9600  ;;  %v2675_v35 = vsel %vm291_vm0, %v12315_v42, %v8983_v24 }
 0x28c   :  { %v2804_v59 = vsel %vm2743_vm2, %v2739_v5, %v9302_v7  ;;  %17206 = vst [vmem:[#allocation20_spill] sm:$0xff] %v12744_v25  ;;  %v2740_v15 = vsel %vm2678_vm1, %v2675_v35, %v9143_v9  ;;  %v17208_v7 = vld [vmem:[#allocation23_spill] sm:$0xff]  ;;  %v9147_v5 = vunpack.i.l.bf16 %v17209_v45  ;;  %v9148_v25 = vunpack.i.h.bf16 %v17209_v45 }
 0x28d   :  { %v2805_v21 = vsel %vm2743_vm2, %v2740_v15, %v9303_v57  ;;  %v8987_v4 = vunpack.i.l.bf16 %v17208_v7  ;;  %v8988_v15 = vunpack.i.h.bf16 %v17208_v7  ;;  %v9312_v7 = vunpack.i.l.bf16 %v12167_v43  ;;  %v1018_v45 = vld [vmem:[#allocation2 + $0x62] sm:$0xff] }
 0x28e   :  { %8670 = vmatmul.msk.f32.gmra.mxu2 %vm291_vm0, %v1015_v62  ;;  %v17211_v62 = vld [vmem:[#allocation46_spill] sm:$0xff] }
 0x28f   :  { %v12730_v3 = vpop.f32.mrf.mxu1  ;;  %v2676_v42 = vsel %vm291_vm0, %v12339_v28, %v8987_v4 }
 0x290   :  { %17205 = vst [vmem:[#allocation41_spill] sm:$0xff] %v12730_v3  ;;  %3301 = vmatmul.f32.gmra.mxu0 %v2775_v34  ;;  %v1016_v34 = vld [vmem:[#allocation2 + $0x4a] sm:$0xff]  ;;  %v9307_v3 = vunpack.i.l.bf16 %v17211_v62  ;;  %v2741_v9 = vsel %vm2678_vm1, %v2676_v42, %v9147_v5 }
 0x292   :  { %3388 = vmatmul.f32.gmra.mxu1 %v2804_v59  ;;  %v12751_v22 = vpop.permute.xlu0 %9565  ;;  %v12757_v59 = vpop.permute.xlu2 %9590  ;;  %v2806_v57 = vsel %vm2743_vm2, %v2741_v9, %v9307_v3  ;;  %v9472_v9 = vunpack.i.l.bf16 %v12510_v32 }
 0x293   :  { %17210 = vst [vmem:[#allocation44_spill] sm:$0xff] %v12757_v59  ;;  %v12765_v24 = vpop.permute.xlu1 %9615 }
 0x294   :  { %17213 = vst [vmem:[#allocation31_spill] sm:$0xff] %v12765_v24 }
 0x296   :  { %8671 = vmatmul.msk.f32.gmra.mxu2 %vm291_vm0, %v1016_v34  ;;  %v564_v34 = vld [vmem:[#allocation2 + $0x320] sm:$0xff] }
 0x297   :  { %v12747_v10 = vpop.f32.mrf.mxu1  ;;  %v2677_v4 = vsel %vm291_vm0, %v564_v34, %v8988_v15 }
 0x298   :  { %17207 = vst [vmem:[#allocation37_spill] sm:$0xff] %v12747_v10  ;;  %v2742_v3 = vsel %vm2678_vm1, %v2677_v4, %v9148_v25  ;;  %v4050_v4 = vld [vmem:[%s17002_s6 + $0xf8] sm:$0xff] }
 0x299   :  { %7016 = vmatpush.msrb.mxu2 %v4050_v4  ;;  %v759_v4 = vld [vmem:[#allocation2 + $0x31] sm:$0xff] }
 0x29a   :  { %3391 = vmatmul.f32.gmra.mxu1 %v2805_v21  ;;  %v12769_v35 = vpop.permute.xlu0 %9580  ;;  %v1017_v21 = vld [vmem:[#allocation2 + $0x52] sm:$0xff]  ;;  %v12774_v59 = vpop.permute.xlu2 %9605 }
 0x29b   :  { %17214 = vst [vmem:[#allocation42_spill] sm:$0xff] %v12774_v59  ;;  %v9631_v42 = vpop.permute.xlu1 %9630 }
 0x29c   :  { %v9632_v24 = vunpack.i.l.bf16 %v9631_v42 }
 0x29e   :  { %8672 = vmatmul.msk.f32.gmra.mxu2 %vm291_vm0, %v1017_v21 }
 0x29f   :  { %v12761_v10 = vpop.f32.mrf.mxu1 }
 0x2a0   :  { %17212 = vst [vmem:[#allocation8_spill] sm:$0xff] %v12761_v10  ;;  %v9308_v10 = vunpack.i.h.bf16 %v17211_v62 }
 0x2a2   :  { %3394 = vmatmul.f32.gmra.mxu1 %v2806_v57  ;;  %v2807_v5 = vsel %vm2743_vm2, %v2742_v3, %v9308_v10  ;;  %v12784_v62 = vpop.permute.xlu0 %9595  ;;  %v757_v57 = vld [vmem:[#allocation2 + $0x19] sm:$0xff]  ;;  %v12790_v25 = vpop.permute.xlu2 %9620  ;;  %v9313_v3 = vunpack.i.h.bf16 %v12167_v43 }
 0x2a3   :  { %17216 = vst [vmem:[#allocation38_spill] sm:$0xff] %v12784_v62  ;;  %v2808_v15 = vsel %vm291_vm0, %v757_v57, %v9312_v7 }
 0x2a4   :  { %17218 = vst [vmem:[#allocation14_spill] sm:$0xff] %v12790_v25  ;;  %v2872_v10 = vsel %vm2678_vm1, %v2808_v15, %v9472_v9 }
 0x2a5   :  { %v2936_v34 = vsel %vm2743_vm2, %v2872_v10, %v9632_v24  ;;  %v1048_v10 = vld [vmem:[#allocation2 + $0x1fa] sm:$0xff] }
 0x2a6   :  { %8673 = vmatmul.msk.f32.gmra.mxu2 %vm291_vm0, %v1018_v45  ;;  %v9473_v45 = vunpack.i.h.bf16 %v12510_v32  ;;  %8703 = vmatmul.msk.f32.vlgmr.msra.gmra.mxu3 %vm291_vm0, %v1048_v10  ;;  %v9317_v32 = vunpack.i.l.bf16 %v12162_v53  ;;  %v1021_v10 = vld [vmem:[#allocation2 + $0x82] sm:$0xff] }
 0x2a7   :  { %v12777_v28 = vpop.f32.mrf.mxu1 }
 0x2a8   :  { %17215 = vst [vmem:[#allocation16_spill] sm:$0xff] %v12777_v28  ;;  %v9633_v28 = vunpack.i.h.bf16 %v9631_v42  ;;  %v1020_v42 = vld [vmem:[#allocation2 + $0x7a] sm:$0xff] }
 0x2aa   :  { %3397 = vmatmul.f32.gmra.mxu1 %v2807_v5  ;;  %v1019_v5 = vld [vmem:[#allocation2 + $0x6a] sm:$0xff]  ;;  %v12799_v7 = vpop.permute.xlu0 %9610  ;;  %v9636_v43 = vpop.permute.xlu2 %9635 }
 0x2ab   :  { %17219 = vst [vmem:[#allocation25_spill] sm:$0xff] %v12799_v7 }
 0x2ae   :  { %8674 = vmatmul.msk.f32.gmra.mxu2 %vm291_vm0, %v1019_v5  ;;  %v9637_v5 = vunpack.i.l.bf16 %v9636_v43 }
 0x2af   :  { %v12787_v21 = vpop.f32.mrf.mxu1 }
 0x2b0   :  { %17217 = vst [vmem:[#allocation48_spill] sm:$0xff] %v12787_v21  ;;  %v758_v21 = vld [vmem:[#allocation2 + $0x21] sm:$0xff] }
 0x2b1   :  { %v2809_v24 = vsel %vm291_vm0, %v758_v21, %v9313_v3  ;;  %v2810_v21 = vsel %vm291_vm0, %v759_v4, %v9317_v32  ;;  %v9478_v32 = vunpack.i.h.bf16 %v12563_v2  ;;  %v9638_v4 = vunpack.i.h.bf16 %v9636_v43  ;;  %v1022_v43 = vld [vmem:[#allocation2 + $0x92] sm:$0xff] }
 0x2b2   :  { %3417 = vmatmul.f32.vlgmr.msrb.gmra.mxu1 %v2936_v34  ;;  %v2873_v57 = vsel %vm2678_vm1, %v2809_v24, %v9473_v45  ;;  %v9477_v34 = vunpack.i.l.bf16 %v12563_v2  ;;  %v12814_v3 = vpop.permute.xlu0 %9625  ;;  %v1049_v24 = vld [vmem:[#allocation2 + $0x202] sm:$0xff]  ;;  %v9322_v2 = vunpack.i.l.bf16 %v12150_v56 }
 0x2b3   :  { %v2937_v15 = vsel %vm2743_vm2, %v2873_v57, %v9633_v28  ;;  %17222 = vst [vmem:[#allocation33_spill] sm:$0xff] %v12814_v3  ;;  %8704 = vmatmul.msk.f32.gmra.mxu3 %vm291_vm0, %v1049_v24  ;;  %v4049_v57 = vld [vmem:[%s17002_s6 + $0xf0] sm:$0xff] }
 0x2b4   :  { %v2874_v28 = vsel %vm2678_vm1, %v2810_v21, %v9477_v34  ;;  %7017 = vmatpush.msrb.mxu2 %v4049_v57  ;;  %v9482_v57 = vunpack.i.l.bf16 %v12489_v31  ;;  %v4248_v3 = vld [vmem:[#allocation2 + $0xa] sm:$0xff] }
 0x2b5   :  { %v2938_v45 = vsel %vm2743_vm2, %v2874_v28, %v9637_v5 }
 0x2b6   :  { %8675 = vmatmul.msk.f32.gmra.mxu2 %vm291_vm0, %v1020_v42  ;;  %v760_v42 = vld [vmem:[#allocation2 + $0x39] sm:$0xff] }
 0x2b7   :  { %v12802_v9 = vpop.f32.mrf.mxu1 }
 0x2b8   :  { %17220 = vst [vmem:[#allocation43_spill] sm:$0xff] %v12802_v9 }
 0x2ba   :  { %3420 = vmatmul.f32.gmra.mxu1 %v2937_v15  ;;  %v9318_v15 = vunpack.i.h.bf16 %v12162_v53  ;;  %v9641_v24 = vpop.permute.xlu0 %9640  ;;  %v4054_v53 = vld [vmem:[%s17002_s6 + $0x118] sm:$0xff] }
 0x2bb   :  { %7237 = vmatpush.msrb.mxu0 %v4054_v53  ;;  %v9323_v53 = vunpack.i.h.bf16 %v12150_v56  ;;  %v9327_v56 = vunpack.i.l.bf16 %v12197_v55 }
 0x2bc   :  { %v2811_v5 = vsel %vm291_vm0, %v760_v42, %v9318_v15  ;;  %v761_v15 = vld [vmem:[#allocation2 + $0x49] sm:$0xff] }
 0x2bd   :  { %v2875_v21 = vsel %vm2678_vm1, %v2811_v5, %v9478_v32  ;;  %v2812_v42 = vsel %vm291_vm0, %v761_v15, %v9322_v2  ;;  %v1023_v2 = vld [vmem:[#allocation2 + $0x9a] sm:$0xff]  ;;  %v9643_v15 = vunpack.i.h.bf16 %v9641_v24 }
 0x2be   :  { %8676 = vmatmul.msk.f32.gmra.mxu2 %vm291_vm0, %v1021_v10  ;;  %v2939_v28 = vsel %vm2743_vm2, %v2875_v21, %v9638_v4  ;;  %v9642_v10 = vunpack.i.l.bf16 %v9641_v24  ;;  %v2876_v4 = vsel %vm2678_vm1, %v2812_v42, %v9482_v57  ;;  %v1051_v21 = vld [vmem:[#allocation2 + $0x21a] sm:$0xff]  ;;  %v762_v57 = vld [vmem:[#allocation2 + $0x51] sm:$0xff]  ;;  %v9487_v24 = vunpack.i.l.bf16 %v12544_v29 }
 0x2bf   :  { %v12811_v9 = vpop.f32.mrf.mxu1  ;;  %v2813_v42 = vsel %vm291_vm0, %v762_v57, %v9323_v53 }
 0x2c0   :  { %17221 = vst [vmem:[#allocation21_spill] sm:$0xff] %v12811_v9  ;;  %v2940_v5 = vsel %vm2743_vm2, %v2876_v4, %v9642_v10  ;;  %v1033_v9 = vld [vmem:[#allocation2 + $0x112] sm:$0xff] }
 0x2c2   :  { %3423 = vmatmul.f32.gmra.mxu1 %v2938_v45  ;;  %v1050_v45 = vld [vmem:[#allocation2 + $0x212] sm:$0xff] }
 0x2c3   :  { %8705 = vmatmul.msk.f32.gmra.mxu3 %vm291_vm0, %v1050_v45  ;;  %v4048_v45 = vld [vmem:[%s17002_s6 + $0xe8] sm:$0xff] }
 0x2c4   :  { %7018 = vmatpush.msrb.mxu2 %v4048_v45 }
 0x2c6   :  { %8677 = vmatmul.msk.f32.gmra.mxu2 %vm291_vm0, %v1022_v43  ;;  %v9483_v43 = vunpack.i.h.bf16 %v12489_v31  ;;  %v1024_v31 = vld [vmem:[#allocation2 + $0xaa] sm:$0xff] }
 0x2c7   :  { %v12825_v34 = vpop.f32.mrf.mxu1 }
 0x2c8   :  { %17223 = vst [vmem:[#allocation23_spill] sm:$0xff] %v12825_v34  ;;  %v2877_v4 = vsel %vm2678_vm1, %v2813_v42, %v9483_v43  ;;  %v4033_v42 = vld [vmem:[%s17002_s6 + $0x70] sm:$0xff] }
 0x2ca   :  { %3426 = vmatmul.f32.gmra.mxu1 %v2939_v28  ;;  %v4034_v28 = vld [vmem:[%s17002_s6 + $0x78] sm:$0xff] }
 0x2cb   :  { %8706 = vmatmul.msk.f32.gmra.mxu3 %vm291_vm0, %v1051_v21  ;;  %v1052_v21 = vld [vmem:[#allocation2 + $0x22a] sm:$0xff] }
 0x2cc   :  { %6807 = vmatpush.msrb.mxu3 %v4034_v28  ;;  %v763_v28 = vld [vmem:[#allocation2 + $0x61] sm:$0xff] }
 0x2cd   :  { %v2814_v53 = vsel %vm291_vm0, %v763_v28, %v9327_v56  ;;  %v9488_v56 = vunpack.i.h.bf16 %v12544_v29  ;;  %v9332_v29 = vunpack.i.l.bf16 %v12187_v16 }
 0x2ce   :  { %8678 = vmatmul.msk.f32.gmra.mxu2 %vm291_vm0, %v1023_v2  ;;  %v2878_v43 = vsel %vm2678_vm1, %v2814_v53, %v9487_v24  ;;  %6808 = vmatpush.msrb.mxu3 %v4033_v42  ;;  %v9492_v42 = vunpack.i.l.bf16 %v12596_v11 }
 0x2cf   :  { %v12837_v32 = vpop.f32.mrf.mxu1 }
 0x2d0   :  { %17224 = vst [vmem:[#allocation39_spill] sm:$0xff] %v12837_v32  ;;  %v9646_v32 = vpop.permute.xlu1 %9645 }
 0x2d1   :  { %v9647_v45 = vunpack.i.l.bf16 %v9646_v32  ;;  %v9648_v24 = vunpack.i.h.bf16 %v9646_v32  ;;  %v1026_v32 = vld [vmem:[#allocation2 + $0xc2] sm:$0xff] }
 0x2d2   :  { %3429 = vmatmul.f32.gmra.mxu1 %v2940_v5  ;;  %v2941_v5 = vsel %vm2743_vm2, %v2877_v4, %v9643_v15  ;;  %v1053_v15 = vld [vmem:[#allocation2 + $0x232] sm:$0xff]  ;;  %v4047_v4 = vld [vmem:[%s17002_s6 + $0xe0] sm:$0xff] }
 0x2d3   :  { %8707 = vmatmul.msk.f32.gmra.mxu3 %vm291_vm0, %v1052_v21  ;;  %v2942_v57 = vsel %vm2743_vm2, %v2878_v43, %v9647_v45  ;;  %v1025_v21 = vld [vmem:[#allocation2 + $0xb2] sm:$0xff]  ;;  %7019 = vmatpush.msrb.mxu2 %v4047_v4  ;;  %v12880_v43 = vpop.f32.mrf.mxu0 }
 0x2d4   :  { %v765_v4 = vld [vmem:[#allocation2 + $0x79] sm:$0xff] }
 0x2d6   :  { %8679 = vmatmul.msk.f32.gmra.mxu2 %vm291_vm0, %v1024_v31  ;;  %v764_v31 = vld [vmem:[#allocation2 + $0x69] sm:$0xff] }
 0x2d7   :  { %v12852_v10 = vpop.f32.mrf.mxu1 }
 0x2d8   :  { %17225 = vst [vmem:[#allocation46_spill] sm:$0xff] %v12852_v10  ;;  %v4216_v10 = vld [vmem:[#allocation2 + $0x1b9] sm:$0xff] }
 0x2da   :  { %3432 = vmatmul.f32.gmra.mxu1 %v2941_v5  ;;  %v9328_v5 = vunpack.i.h.bf16 %v12197_v55  ;;  %v1054_v55 = vld [vmem:[#allocation2 + $0x242] sm:$0xff] }
 0x2db   :  { %8708 = vmatmul.msk.f32.gmra.mxu3 %vm291_vm0, %v1053_v15  ;;  %v9651_v15 = vpop.permute.xlu2 %9650 }
 0x2dc   :  { %v2815_v45 = vsel %vm291_vm0, %v764_v31, %v9328_v5  ;;  %v4032_v31 = vld [vmem:[%s17002_s6 + $0x68] sm:$0xff] }
 0x2dd   :  { %v2879_v53 = vsel %vm2678_vm1, %v2815_v45, %v9488_v56  ;;  %v2816_v56 = vsel %vm291_vm0, %v765_v4, %v9332_v29  ;;  %6809 = vmatpush.msrb.mxu3 %v4032_v31  ;;  %v9493_v29 = vunpack.i.h.bf16 %v12596_v11  ;;  %v766_v4 = vld [vmem:[#allocation2 + $0x81] sm:$0xff]  ;;  %v9337_v11 = vunpack.i.l.bf16 %v12177_v33 }
 0x2de   :  { %8680 = vmatmul.msk.f32.gmra.mxu2 %vm291_vm0, %v1025_v21  ;;  %v9652_v21 = vunpack.i.l.bf16 %v9651_v15  ;;  %v1056_v31 = vld [vmem:[#allocation2 + $0x25a] sm:$0xff] }
 0x2df   :  { %v12861_v2 = vpop.f32.mrf.mxu1 }
 0x2e0   :  { %17226 = vst [vmem:[#allocation56_spill] sm:$0xff] %v12861_v2 }
 0x2e2   :  { %3435 = vmatmul.f32.gmra.mxu1 %v2942_v57  ;;  %v2943_v57 = vsel %vm2743_vm2, %v2879_v53, %v9648_v24  ;;  %v2880_v24 = vsel %vm2678_vm1, %v2816_v56, %v9492_v42  ;;  %v1055_v53 = vld [vmem:[#allocation2 + $0x24a] sm:$0xff] }
 0x2e3   :  { %8709 = vmatmul.msk.f32.gmra.mxu3 %vm291_vm0, %v1054_v55  ;;  %v2944_v45 = vsel %vm2743_vm2, %v2880_v24, %v9652_v21  ;;  %v12897_v55 = vpop.f32.mrf.mxu0  ;;  %v4046_v21 = vld [vmem:[%s17002_s6 + $0xd8] sm:$0xff]  ;;  %v9656_v24 = vpop.permute.xlu0 %9655 }
 0x2e4   :  { %7020 = vmatpush.msrb.mxu2 %v4046_v21 }
 0x2e6   :  { %8681 = vmatmul.msk.f32.gmra.mxu2 %vm291_vm0, %v1026_v32  ;;  %v1027_v32 = vld [vmem:[#allocation2 + $0xca] sm:$0xff] }
 0x2e7   :  { %v12876_v28 = vpop.f32.mrf.mxu1 }
 0x2e8   :  { %17227 = vst [vmem:[#allocation57_spill] sm:$0xff] %v12876_v28 }
 0x2ea   :  { %3438 = vmatmul.f32.gmra.mxu1 %v2943_v57  ;;  %v9333_v57 = vunpack.i.h.bf16 %v12187_v16 }
 0x2eb   :  { %8710 = vmatmul.msk.f32.gmra.mxu3 %vm291_vm0, %v1055_v53  ;;  %v767_v53 = vld [vmem:[#allocation2 + $0x91] sm:$0xff] }
 0x2ec   :  { %v2817_v42 = vsel %vm291_vm0, %v766_v4, %v9333_v57  ;;  %v12912_v57 = vpop.f32.mrf.mxu0  ;;  %v4031_v4 = vld [vmem:[%s17002_s6 + $0x60] sm:$0xff] }
 0x2ed   :  { %v2881_v56 = vsel %vm2678_vm1, %v2817_v42, %v9493_v29  ;;  %6810 = vmatpush.msrb.mxu3 %v4031_v4  ;;  %v9661_v4 = vpop.permute.xlu1 %9660 }
 0x2ee   :  { %8682 = vmatmul.msk.f32.gmra.mxu2 %vm291_vm0, %v1027_v32  ;;  %v9657_v32 = vunpack.i.l.bf16 %v9656_v24 }
 0x2ef   :  { %v12887_v5 = vpop.f32.mrf.mxu1 }
 0x2f0   :  { %17228 = vst [vmem:[#allocation58_spill] sm:$0xff] %v12887_v5  ;;  %v9653_v5 = vunpack.i.h.bf16 %v9651_v15  ;;  %v1028_v15 = vld [vmem:[#allocation2 + $0xda] sm:$0xff] }
 0x2f2   :  { %3441 = vmatmul.f32.gmra.mxu1 %v2944_v45  ;;  %v2945_v16 = vsel %vm2743_vm2, %v2881_v56, %v9653_v5  ;;  %v9497_v45 = vunpack.i.l.bf16 %v12522_v12  ;;  %v2818_v5 = vsel %vm291_vm0, %v767_v53, %v9337_v11  ;;  %v1057_v56 = vld [vmem:[#allocation2 + $0x262] sm:$0xff]  ;;  %v9658_v11 = vunpack.i.h.bf16 %v9656_v24  ;;  %v4053_v24 = vld [vmem:[%s17002_s6 + $0x110] sm:$0xff] }
 0x2f3   :  { %8711 = vmatmul.msk.f32.gmra.mxu3 %vm291_vm0, %v1056_v31  ;;  %v1029_v31 = vld [vmem:[#allocation2 + $0xe2] sm:$0xff]  ;;  %7238 = vmatpush.msrb.mxu0 %v4053_v24  ;;  %v9343_v24 = vunpack.i.h.bf16 %v12242_v40 }
 0x2f4   :  { %v2882_v42 = vsel %vm2678_vm1, %v2818_v5, %v9497_v45  ;;  %v12927_v53 = vpop.f32.mrf.mxu0 }
 0x2f5   :  { %v2946_v21 = vsel %vm2743_vm2, %v2882_v42, %v9657_v32  ;;  %v4045_v32 = vld [vmem:[%s17002_s6 + $0xd0] sm:$0xff] }
 0x2f6   :  { %8683 = vmatmul.msk.f32.gmra.mxu2 %vm291_vm0, %v1028_v15  ;;  %v9498_v15 = vunpack.i.h.bf16 %v12522_v12  ;;  %v1058_v12 = vld [vmem:[#allocation2 + $0x272] sm:$0xff] }
 0x2f7   :  { %v12901_v28 = vpop.f32.mrf.mxu1  ;;  %7021 = vmatpush.msrb.mxu2 %v4045_v32  ;;  %v1030_v42 = vld [vmem:[#allocation2 + $0xf2] sm:$0xff] }
 0x2f8   :  { %17229 = vst [vmem:[#allocation59_spill] sm:$0xff] %v12901_v28 }
 0x2fa   :  { %3444 = vmatmul.f32.gmra.mxu1 %v2945_v16  ;;  %v9338_v16 = vunpack.i.h.bf16 %v12177_v33 }
 0x2fb   :  { %8712 = vmatmul.msk.f32.gmra.mxu3 %vm291_vm0, %v1057_v56  ;;  %v769_v56 = vld [vmem:[#allocation2 + $0xa9] sm:$0xff] }
 0x2fc   :  { %v12951_v32 = vpop.f32.mrf.mxu0 }
 0x2fe   :  { %8684 = vmatmul.msk.f32.gmra.mxu2 %vm291_vm0, %v1029_v31 }
 0x2ff   :  { %v12915_v29 = vpop.f32.mrf.mxu1 }
 0x300   :  { %17230 = vst [vmem:[#allocation60_spill] sm:$0xff] %v12915_v29  ;;  %v768_v29 = vld [vmem:[#allocation2 + $0x99] sm:$0xff] }
 0x301   :  { %v2819_v45 = vsel %vm291_vm0, %v768_v29, %v9338_v16  ;;  %v9342_v29 = vunpack.i.l.bf16 %v12242_v40  ;;  %v9662_v16 = vunpack.i.l.bf16 %v9661_v4  ;;  %v4184_v40 = vld [vmem:[#allocation2 + $0x9] sm:$0xff] }
 0x302   :  { %3447 = vmatmul.f32.gmra.mxu1 %v2946_v21  ;;  %v2883_v5 = vsel %vm2678_vm1, %v2819_v45, %v9498_v15  ;;  %v9502_v21 = vunpack.i.l.bf16 %v12577_v1  ;;  %v4030_v45 = vld [vmem:[%s17002_s6 + $0x58] sm:$0xff] }
 0x303   :  { %v2947_v33 = vsel %vm2743_vm2, %v2883_v5, %v9658_v11  ;;  %8713 = vmatmul.msk.f32.gmra.mxu3 %vm291_vm0, %v1058_v12  ;;  %v2820_v15 = vsel %vm291_vm0, %v769_v56, %v9342_v29  ;;  %v1059_v12 = vld [vmem:[#allocation2 + $0x27a] sm:$0xff]  ;;  %v9503_v29 = vunpack.i.h.bf16 %v12577_v1 }
 0x304   :  { %v2884_v11 = vsel %vm2678_vm1, %v2820_v15, %v9502_v21  ;;  %6811 = vmatpush.msrb.mxu3 %v4030_v45  ;;  %v9663_v21 = vunpack.i.h.bf16 %v9661_v4  ;;  %v1031_v56 = vld [vmem:[#allocation2 + $0xfa] sm:$0xff]  ;;  %v12969_v2 = vpop.f32.mrf.mxu0 }
 0x305   :  { %v2948_v5 = vsel %vm2743_vm2, %v2884_v11, %v9662_v16  ;;  %v17234_v4 = vld [vmem:[#allocation50_spill] sm:$0xff] }
 0x306   :  { %8685 = vmatmul.msk.f32.gmra.mxu2 %vm291_vm0, %v1030_v42  ;;  %v770_v42 = vld [vmem:[#allocation2 + $0xb1] sm:$0xff] }
 0x307   :  { %v12929_v28 = vpop.f32.mrf.mxu1  ;;  %v2821_v16 = vsel %vm291_vm0, %v770_v42, %v9343_v24  ;;  %v9507_v24 = vunpack.i.l.bf16 %v12628_v14  ;;  %v771_v42 = vld [vmem:[#allocation2 + $0xc1] sm:$0xff] }
 0x308   :  { %17231 = vst [vmem:[#allocation61_spill] sm:$0xff] %v12929_v28  ;;  %v2885_v11 = vsel %vm2678_vm1, %v2821_v16, %v9503_v29  ;;  %v9666_v28 = vpop.permute.xlu2 %9665 }
 0x309   :  { %v2949_v45 = vsel %vm2743_vm2, %v2885_v11, %v9663_v21  ;;  %v9667_v29 = vunpack.i.l.bf16 %v9666_v28  ;;  %v1032_v21 = vld [vmem:[#allocation2 + $0x10a] sm:$0xff]  ;;  %v9668_v34 = vunpack.i.h.bf16 %v9666_v28  ;;  %v17237_v28 = vld [vmem:[#allocation49_spill] sm:$0xff] }
 0x30a   :  { %3450 = vmatmul.f32.gmra.mxu1 %v2947_v33  ;;  %v12954_v33 = vpop.f32.mrf.mxu2 }
 0x30b   :  { %8714 = vmatmul.msk.f32.gmra.mxu3 %vm291_vm0, %v1059_v12  ;;  %v1060_v12 = vld [vmem:[#allocation2 + $0x28a] sm:$0xff] }
 0x30e   :  { %8686 = vmatmul.msk.f32.gmra.mxu2 %vm291_vm0, %v1031_v56  ;;  %v9347_v56 = vunpack.i.l.bf16 %v17234_v4 }
 0x30f   :  { %v12944_v31 = vpop.f32.mrf.mxu1 }
 0x310   :  { %17232 = vst [vmem:[#allocation62_spill] sm:$0xff] %v12944_v31  ;;  %v4183_v31 = vld [vmem:[#allocation2 + $0x1] sm:$0xff]  ;;  %v2822_v11 = vsel %vm291_vm0, %v771_v42, %v9347_v56  ;;  %v9348_v42 = vunpack.i.h.bf16 %v17234_v4 }
 0x311   :  { %v9789_v1 = vpack.i.bf16 %v4184_v40, %v4183_v31  ;;  %v1061_v40 = vld [vmem:[#allocation2 + $0x292] sm:$0xff] }
 0x312   :  { %3453 = vmatmul.f32.gmra.mxu1 %v2948_v5  ;;  %v12965_v5 = vpop.f32.mrf.mxu2 }
 0x313   :  { %8715 = vmatmul.msk.f32.gmra.mxu3 %vm291_vm0, %v1060_v12  ;;  %9790 = vrot.lane.b32.xlu0 %v9789_v1, %s10843_s24  ;;  %v4044_v1 = vld [vmem:[%s17002_s6 + $0xc8] sm:$0xff] }
 0x314   :  { %7022 = vmatpush.msrb.mxu2 %v4044_v1  ;;  %v1062_v1 = vld [vmem:[#allocation2 + $0x2a2] sm:$0xff] }
 0x316   :  { %8687 = vmatmul.msk.f32.gmra.mxu2 %vm291_vm0, %v1032_v21  ;;  %v4029_v21 = vld [vmem:[%s17002_s6 + $0x50] sm:$0xff] }
 0x317   :  { %v12960_v15 = vpop.f32.mrf.mxu1  ;;  %6812 = vmatpush.msrb.mxu3 %v4029_v21  ;;  %v9671_v21 = vpop.permute.xlu0 %9670 }
 0x318   :  { %17233 = vst [vmem:[#allocation63_spill] sm:$0xff] %v12960_v15  ;;  %v4215_v15 = vld [vmem:[#allocation2 + $0x1b1] sm:$0xff] }
 0x319   :  { %v9794_v56 = vpack.i.bf16 %v4216_v10, %v4215_v15 }
 0x31a   :  { %3456 = vmatmul.f32.gmra.mxu1 %v2949_v45  ;;  %v2886_v45 = vsel %vm2678_vm1, %v2822_v11, %v9507_v24  ;;  %v12979_v12 = vpop.f32.mrf.mxu2  ;;  %v4279_v24 = vld [vmem:[#allocation2 + $0x1b2] sm:$0xff]  ;;  %v9508_v11 = vunpack.i.h.bf16 %v12628_v14 }
 0x31b   :  { %v2950_v31 = vsel %vm2743_vm2, %v2886_v45, %v9667_v29  ;;  %8716 = vmatmul.msk.f32.gmra.mxu3 %vm291_vm0, %v1061_v40  ;;  %v4280_v29 = vld [vmem:[#allocation2 + $0x1ba] sm:$0xff]  ;;  %v772_v45 = vld [vmem:[#allocation2 + $0xc9] sm:$0xff]  ;;  %9795 = vrot.lane.b32.xlu1 %v9794_v56, %s10843_s24  ;;  %v9352_v56 = vunpack.i.l.bf16 %v17237_v28 }
 0x31c   :  { %v2823_v15 = vsel %vm291_vm0, %v772_v45, %v9348_v42 }
 0x31d   :  { %v2887_v4 = vsel %vm2678_vm1, %v2823_v15, %v9508_v11  ;;  %v13013_v15 = vld [vmem:[%s16999_s3] ss:$0 sm:$0xff] }
 0x31e   :  { %8688 = vmatmul.msk.f32.gmra.mxu2 %vm291_vm0, %v1033_v9  ;;  %v2951_v14 = vsel %vm2743_vm2, %v2887_v4, %v9668_v34  ;;  %v773_v9 = vld [vmem:[#allocation2 + $0xd9] sm:$0xff] }
 0x31f   :  { %v12974_v16 = vpop.f32.mrf.mxu1  ;;  %v2824_v34 = vsel %vm291_vm0, %v773_v9, %v9352_v56  ;;  %v4043_v56 = vld [vmem:[%s17002_s6 + $0xc0] sm:$0xff] }
 0x320   :  { %17235 = vst [vmem:[#allocation50_spill] sm:$0xff] %v12974_v16  ;;  %v12991_v16 = vpop.f32.mrf.mxu0  ;;  %7023 = vmatpush.msrb.mxu2 %v4043_v56  ;;  %v9676_v56 = vpop.permute.xlu1 %9675 }
 0x322   :  { %3459 = vmatmul.f32.gmra.mxu1 %v2950_v31  ;;  %v9804_v31 = vpack.i.bf16 %v4280_v29, %v4279_v24  ;;  %v13000_v40 = vpop.f32.mrf.mxu2  ;;  %v9512_v24 = vunpack.i.l.bf16 %v12557_v44  ;;  %v9672_v29 = vunpack.i.l.bf16 %v9671_v21 }
 0x323   :  { %8717 = vmatmul.msk.f32.gmra.mxu3 %vm291_vm0, %v1062_v1 }
 0x324   :  { %9805 = vrot.lane.b32.xlu0 %v9804_v31, %s10844_s16  ;;  %v1034_v31 = vld [vmem:[#allocation2 + $0x122] sm:$0xff]  ;;  %v2888_v4 = vsel %vm2678_vm1, %v2824_v34, %v9512_v24 }
 0x325   :  { %v4028_v24 = vld [vmem:[%s17002_s6 + $0x48] sm:$0xff] }
 0x326   :  { %8689 = vmatmul.msk.f32.gmra.mxu2 %vm291_vm0, %v1034_v31  ;;  %v4247_v31 = vld [vmem:[#allocation2 + $0x2] sm:$0xff]  ;;  %6813 = vmatpush.msrb.mxu3 %v4028_v24 }
 0x327   :  { %v12995_v10 = vpop.f32.mrf.mxu1  ;;  %v9799_v9 = vpack.i.bf16 %v4248_v3, %v4247_v31  ;;  %v774_v34 = vld [vmem:[#allocation2 + $0xe1] sm:$0xff] }
 0x328   :  { %17236 = vst [vmem:[#allocation64_spill] sm:$0xff] %v12995_v10  ;;  %v13006_v42 = vpop.f32.mrf.mxu0  ;;  %v1063_v10 = vld [vmem:[#allocation2 + $0x2aa] sm:$0xff]  ;;  %v13053_v31 = vld [vmem:[%s17002_s6 + $0x100] sm:$0xff] }
 0x329   :  { %9800 = vrot.lane.b32.xlu2 %v9799_v9, %s10844_s16  ;;  %v13042_v3 = vld [vmem:[%s17002_s6 + $0x108] sm:$0xff] }
 0x32a   :  { %3462 = vmatmul.f32.gmra.mxu1 %v2951_v14  ;;  %v2952_v14 = vsel %vm2743_vm2, %v2888_v4, %v9672_v29  ;;  %v13017_v1 = vpop.f32.mrf.mxu2  ;;  %v9353_v29 = vunpack.i.h.bf16 %v17237_v28  ;;  %7239 = vmatpush.msrb.mxu0 %v13042_v3 }
 0x32b   :  { %8718 = vmatmul.msk.f32.gmra.mxu3 %vm291_vm0, %v1063_v10 }
 0x32c   :  { %v2825_v59 = vsel %vm291_vm0, %v774_v34, %v9353_v29  ;;  %7240 = vmatpush.msrb.mxu0 %v13053_v31  ;;  %v9517_v29 = vunpack.i.l.bf16 %v12611_v20  ;;  %v9677_v34 = vunpack.i.l.bf16 %v9676_v56 }
 0x32f   :  { %v3418_v11 = vpop.f32.mrf.mxu1 }
 0x330   :  { %v3419_v45 = vadd.f32 %v3418_v11, %v12504_v13  ;;  %v13023_v13 = vld [vmem:[%s17000_s4] ss:$0 sm:$0xff] }
 0x332   :  { %v3628_v25 = vadd.f32 %v12954_v33, %v3419_v45  ;;  %3465 = vmatmul.f32.gmra.mxu1 %v2952_v14  ;;  %v9513_v33 = vunpack.i.h.bf16 %v12557_v44  ;;  %v9673_v45 = vunpack.i.h.bf16 %v9671_v21  ;;  %v1035_v14 = vld [vmem:[#allocation2 + $0x12a] sm:$0xff]  ;;  %v13047_v21 = vpop.f32.mrf.mxu0 }
 0x333   :  { %8690 = vmatmul.msk.f32.gmra.mxu2 %vm291_vm0, %v1035_v14 }
 0x334   :  { %v3823_v11 = vmul.f32 %v13013_v15, %v3628_v25  ;;  %v2889_v10 = vsel %vm2678_vm1, %v2825_v59, %v9513_v33  ;;  %v1064_v59 = vld [vmem:[#allocation2 + $0x2ba] sm:$0xff] }
 0x335   :  { %v2953_v28 = vsel %vm2743_vm2, %v2889_v10, %v9673_v45  ;;  %8719 = vmatmul.msk.f32.gmra.mxu3 %vm291_vm0, %v1064_v59 }
 0x336   :  { %v3891_v4 = vadd.f32 %v13023_v13, %v3823_v11  ;;  %v775_v11 = vld [vmem:[#allocation2 + $0xf1] sm:$0xff] }
 0x337   :  { %v3421_v7 = vpop.f32.mrf.mxu1 }
 0x338   :  { %v3955_v44 = vmax.f32 %v3891_v4, 0.0  ;;  %v3422_v25 = vadd.f32 %v3421_v7, %v12538_v37  ;;  %v13057_v37 = vpop.f32.mrf.mxu2  ;;  %v17238_v7 = vld [vmem:[#allocation53_spill] sm:$0xff]  ;;  %v13065_v4 = vpop.f32.mrf.mxu3 }
 0x339   :  { %v9357_v9 = vunpack.i.l.bf16 %v17238_v7  ;;  %17239 = vst [vmem:[#allocation49_spill] sm:$0xff] %v13065_v4 }
 0x33a   :  { %4055 = vst.msk [vmem:[#allocation2 + $0x19] sm:$0xff] %vm291_vm0, %v3955_v44  ;;  %v3631_v24 = vadd.f32 %v12965_v5, %v3422_v25  ;;  %3468 = vmatmul.f32.gmra.mxu1 %v2953_v28  ;;  %v1036_v5 = vld [vmem:[#allocation2 + $0x13a] sm:$0xff] }
 0x33b   :  { %v2826_v44 = vsel %vm291_vm0, %v775_v11, %v9357_v9  ;;  %8691 = vmatmul.msk.f32.gmra.mxu2 %vm291_vm0, %v1036_v5  ;;  %v4027_v9 = vld [vmem:[%s17002_s6 + $0x40] sm:$0xff] }
 0x33c   :  { %v3824_v33 = vmul.f32 %v13013_v15, %v3631_v24  ;;  %v2890_v28 = vsel %vm2678_vm1, %v2826_v44, %v9517_v29  ;;  %v9358_v29 = vunpack.i.h.bf16 %v17238_v7  ;;  %6814 = vmatpush.msrb.mxu3 %v4027_v9  ;;  %v776_v5 = vld [vmem:[#allocation2 + $0xf9] sm:$0xff] }
 0x33d   :  { %v2954_v59 = vsel %vm2743_vm2, %v2890_v28, %v9677_v34  ;;  %v9518_v34 = vunpack.i.h.bf16 %v12611_v20 }
 0x33e   :  { %v3892_v45 = vadd.f32 %v13023_v13, %v3824_v33  ;;  %v4042_v33 = vld [vmem:[%s17002_s6 + $0xb8] sm:$0xff]  ;;  %v2827_v7 = vsel %vm291_vm0, %v776_v5, %v9358_v29 }
 0x33f   :  { %v3424_v14 = vpop.f32.mrf.mxu1  ;;  %7024 = vmatpush.msrb.mxu2 %v4042_v33  ;;  %v2891_v33 = vsel %vm2678_vm1, %v2827_v7, %v9518_v34  ;;  %v9522_v34 = vunpack.i.l.bf16 %v12660_v63  ;;  %v777_v7 = vld [vmem:[#allocation2 + $0x109] sm:$0xff] }
 0x340   :  { %v3956_v25 = vmax.f32 %v3892_v45, 0.0  ;;  %v3425_v10 = vadd.f32 %v3424_v14, %v12569_v46  ;;  %v13080_v11 = vpop.f32.mrf.mxu2  ;;  %v1065_v46 = vld [vmem:[#allocation2 + $0x2c2] sm:$0xff]  ;;  %v13084_v45 = vpop.f32.mrf.mxu0  ;;  %v9678_v14 = vunpack.i.h.bf16 %v9676_v56 }
 0x341   :  { %8720 = vmatmul.msk.f32.gmra.mxu3 %vm291_vm0, %v1065_v46  ;;  %v4311_v62 = vld [vmem:[#allocation2 + $0x18] sm:$0xff] }
 0x342   :  { %4056 = vst.msk [vmem:[#allocation2 + $0x21] sm:$0xff] %vm291_vm0, %v3956_v25  ;;  %v3634_v24 = vadd.f32 %v12979_v12, %v3425_v10  ;;  %3471 = vmatmul.f32.gmra.mxu1 %v2954_v59  ;;  %v13089_v25 = vpop.f32.mrf.mxu3  ;;  %v1037_v10 = vld [vmem:[#allocation2 + $0x142] sm:$0xff]  ;;  %v2955_v9 = vsel %vm2743_vm2, %v2891_v33, %v9678_v14  ;;  %v1038_v33 = vld [vmem:[#allocation2 + $0x152] sm:$0xff] }
 0x343   :  { %17240 = vst [vmem:[#allocation53_spill] sm:$0xff] %v13089_v25  ;;  %8692 = vmatmul.msk.f32.gmra.mxu2 %vm291_vm0, %v1037_v10 }
 0x344   :  { %v3825_v12 = vmul.f32 %v13013_v15, %v3634_v24  ;;  %v4185_v24 = vld [vmem:[#allocation2 + $0x19] sm:$0xff] }
 0x346   :  { %v3893_v44 = vadd.f32 %v13023_v13, %v3825_v12  ;;  %v9681_v12 = vpop.permute.xlu2 %9680 }
 0x347   :  { %v3427_v28 = vpop.f32.mrf.mxu1 }
 0x348   :  { %v3957_v59 = vmax.f32 %v3893_v44, 0.0  ;;  %v3428_v20 = vadd.f32 %v3427_v28, %v12604_v17  ;;  %v13098_v10 = vpop.f32.mrf.mxu2  ;;  %v1066_v44 = vld [vmem:[#allocation2 + $0x2d2] sm:$0xff]  ;;  %v17241_v17 = vld [vmem:[#allocation51_spill] sm:$0xff] }
 0x349   :  { %v4249_v46 = vld [vmem:[#allocation2 + $0x1a] sm:$0xff]  ;;  %v4250_v56 = vld [vmem:[#allocation2 + $0x22] sm:$0xff]  ;;  %v9362_v28 = vunpack.i.l.bf16 %v17241_v17  ;;  %8721 = vmatmul.msk.f32.gmra.mxu3 %vm291_vm0, %v1066_v44 }
 0x34a   :  { %v4186_v4 = vld [vmem:[#allocation2 + $0x21] sm:$0xff]  ;;  %4057 = vst.msk [vmem:[#allocation2 + $0x31] sm:$0xff] %vm291_vm0, %v3957_v59  ;;  %v3637_v25 = vadd.f32 %v13000_v40, %v3428_v20  ;;  %3474 = vmatmul.f32.gmra.mxu1 %v2955_v9  ;;  %v9814_v29 = vpack.i.bf16 %v4250_v56, %v4249_v46  ;;  %v9682_v59 = vunpack.i.l.bf16 %v9681_v12  ;;  %v13106_v40 = vpop.f32.mrf.mxu0  ;;  %v13109_v20 = vpop.f32.mrf.mxu3 }
 0x34b   :  { %v9809_v5 = vpack.i.bf16 %v4186_v4, %v4185_v24  ;;  %17242 = vst [vmem:[#allocation51_spill] sm:$0xff] %v13109_v20  ;;  %v2828_v9 = vsel %vm291_vm0, %v777_v7, %v9362_v28  ;;  %v4312_v46 = vld [vmem:[#allocation2 + $0x20] sm:$0xff]  ;;  %8693 = vmatmul.msk.f32.gmra.mxu2 %vm291_vm0, %v1038_v33  ;;  %v4026_v28 = vld [vmem:[%s17002_s6 + $0x38] sm:$0xff]  ;;  %v4041_v7 = vld [vmem:[%s17002_s6 + $0xb0] sm:$0xff]  ;;  %v9683_v33 = vunpack.i.h.bf16 %v9681_v12 }
 0x34c   :  { %v3826_v14 = vmul.f32 %v13013_v15, %v3637_v25  ;;  %9815 = vrot.lane.b32.xlu0 %v9814_v29, %s10844_s16  ;;  %v9819_v20 = vpack.i.bf16 %v4312_v46, %v4311_v62  ;;  %6815 = vmatpush.msrb.mxu3 %v4026_v28  ;;  %v778_v62 = vld [vmem:[#allocation2 + $0x111] sm:$0xff]  ;;  %v1039_v46 = vld [vmem:[#allocation2 + $0x15a] sm:$0xff] }
 0x34d   :  { %9810 = vrot.lane.b32.xlu1 %v9809_v5, %s10843_s24  ;;  %v2892_v5 = vsel %vm2678_vm1, %v2828_v9, %v9522_v34  ;;  %v1067_v34 = vld [vmem:[#allocation2 + $0x2da] sm:$0xff]  ;;  %7025 = vmatpush.msrb.mxu2 %v4041_v7  ;;  %v13142_v7 = vpop.permute.xlu0 %9685 }
 0x34e   :  { %v3894_v4 = vadd.f32 %v13023_v13, %v3826_v14  ;;  %v2956_v44 = vsel %vm2743_vm2, %v2892_v5, %v9682_v59  ;;  %v9363_v59 = vunpack.i.h.bf16 %v17241_v17 }
 0x34f   :  { %v3430_v24 = vpop.f32.mrf.mxu1 }
 0x350   :  { %v3958_v25 = vmax.f32 %v3894_v4, 0.0  ;;  %v3431_v56 = vadd.f32 %v3430_v24, %v12635_v58  ;;  %v13124_v58 = vpop.f32.mrf.mxu2  ;;  %v9523_v4 = vunpack.i.h.bf16 %v12660_v63 }
 0x351   :  { %8722 = vmatmul.msk.f32.gmra.mxu3 %vm291_vm0, %v1067_v34  ;;  %v4187_v12 = vld [vmem:[#allocation2 + $0x31] sm:$0xff] }
 0x352   :  { %4058 = vst.msk [vmem:[#allocation2 + $0x39] sm:$0xff] %vm291_vm0, %v3958_v25  ;;  %v3640_v14 = vadd.f32 %v13017_v1, %v3431_v56  ;;  %3477 = vmatmul.f32.gmra.mxu1 %v2956_v44  ;;  %v13133_v9 = vpop.f32.mrf.mxu3  ;;  %v2829_v25 = vsel %vm291_vm0, %v778_v62, %v9363_v59  ;;  %v13137_v63 = vpop.f32.mrf.mxu0  ;;  %v17244_v62 = vld [vmem:[#allocation52_spill] sm:$0xff] }
 0x353   :  { %17243 = vst [vmem:[#allocation65_spill] sm:$0xff] %v13133_v9  ;;  %8694 = vmatmul.msk.f32.gmra.mxu2 %vm291_vm0, %v1039_v46  ;;  %v4503_v9 = vld [vmem:[#allocation2 + $0x30] sm:$0xff] }
 0x354   :  { %v3827_v1 = vmul.f32 %v13013_v15, %v3640_v14  ;;  %9825 = vrot.lane.b32.xlu0 %v9814_v29, %s10843_s24 }
 0x355   :  { %9820 = vrot.lane.b32.xlu1 %v9819_v20, %s10845_s1  ;;  %v2893_v20 = vsel %vm2678_vm1, %v2829_v25, %v9523_v4  ;;  %v1068_v4 = vld [vmem:[#allocation2 + $0x2ea] sm:$0xff]  ;;  %v13227_v23 = vpop.permute.xlu0 %9700 }
 0x356   :  { %v3895_v24 = vadd.f32 %v13023_v13, %v3827_v1  ;;  %v2957_v5 = vsel %vm2743_vm2, %v2893_v20, %v9683_v33  ;;  %v9367_v33 = vunpack.i.l.bf16 %v17244_v62 }
 0x357   :  { %v3433_v17 = vpop.f32.mrf.mxu1 }
 0x358   :  { %v3959_v56 = vmax.f32 %v3895_v24, 0.0  ;;  %v3434_v29 = vadd.f32 %v3433_v17, %v12665_v61  ;;  %v13149_v61 = vpop.f32.mrf.mxu2  ;;  %v9527_v24 = vunpack.i.l.bf16 %v12591_v60  ;;  %v9687_v17 = vunpack.i.l.bf16 %v13142_v7 }
 0x359   :  { %v4631_v44 = vld [vmem:[#allocation2 + $0x32] sm:$0xff]  ;;  %v4442_v14 = vld [vmem:[#allocation2 + $0x3a] sm:$0xff]  ;;  %8723 = vmatmul.msk.f32.gmra.mxu3 %vm291_vm0, %v1068_v4 }
 0x35a   :  { %v4188_v28 = vld [vmem:[#allocation2 + $0x39] sm:$0xff]  ;;  %4059 = vst.msk [vmem:[#allocation2 + $0x49] sm:$0xff] %vm291_vm0, %v3959_v56  ;;  %v3643_v34 = vadd.f32 %v13057_v37, %v3434_v29  ;;  %3480 = vmatmul.f32.gmra.mxu1 %v2957_v5  ;;  %8733 = vmatmul.msk.f32.vlgmr.msrb.gmra.mxu0 %vm291_vm0, %v4631_v44  ;;  %v9854_v59 = vpack.i.bf16 %v4442_v14, %v4631_v44  ;;  %v779_v37 = vld [vmem:[#allocation2 + $0x121] sm:$0xff]  ;;  %v13161_v56 = vpop.f32.mrf.mxu3  ;;  %v1040_v29 = vld [vmem:[#allocation2 + $0x16a] sm:$0xff]  ;;  %v13168_v4 = vpop.f32.mrf.mxu0 }
 0x35b   :  { %v13147_v1 = vpack.i.bf16 %v4188_v28, %v4187_v12  ;;  %17245 = vst [vmem:[#allocation52_spill] sm:$0xff] %v13161_v56  ;;  %v2830_v12 = vsel %vm291_vm0, %v779_v37, %v9367_v33  ;;  %v4504_v5 = vld [vmem:[#allocation2 + $0x38] sm:$0xff]  ;;  %8695 = vmatmul.msk.f32.gmra.mxu2 %vm291_vm0, %v1040_v29  ;;  %v4025_v37 = vld [vmem:[%s17002_s6 + $0x30] sm:$0xff]  ;;  %v9688_v29 = vunpack.i.h.bf16 %v13142_v7 }
 0x35c   :  { %v3828_v46 = vmul.f32 %v13013_v15, %v3643_v34  ;;  %9855 = vrot.lane.b32.xlu0 %v9854_v59, %s10843_s24  ;;  %v2894_v34 = vsel %vm2678_vm1, %v2830_v12, %v9527_v24  ;;  %v9844_v33 = vpack.i.bf16 %v4504_v5, %v4503_v9  ;;  %6816 = vmatpush.msrb.mxu3 %v4025_v37  ;;  %v780_v9 = vld [vmem:[#allocation2 + $0x129] sm:$0xff] }
 0x35d   :  { %9835 = vrot.lane.b32.xlu1 %v9854_v59, %s10844_s16  ;;  %9830 = vrot.lane.b32.xlu2 %v13147_v1, %s10843_s24  ;;  %v2958_v59 = vsel %vm2743_vm2, %v2894_v34, %v9687_v17  ;;  %v1069_v17 = vld [vmem:[#allocation2 + $0x2f2] sm:$0xff] }
 0x35e   :  { %v3896_v25 = vadd.f32 %v13023_v13, %v3828_v46 }
 0x35f   :  { %v3436_v20 = vpop.f32.mrf.mxu1 }
 0x360   :  { %v3960_v44 = vmax.f32 %v3896_v25, 0.0  ;;  %v3437_v28 = vadd.f32 %v3436_v20, %v12693_v41  ;;  %v4040_v41 = vld [vmem:[%s17002_s6 + $0xa8] sm:$0xff]  ;;  %v13179_v24 = vpop.f32.mrf.mxu2  ;;  %v9368_v25 = vunpack.i.h.bf16 %v17244_v62  ;;  %v1041_v62 = vld [vmem:[#allocation2 + $0x172] sm:$0xff] }
 0x361   :  { %7026 = vmatpush.msrb.mxu2 %v4040_v41  ;;  %8724 = vmatmul.msk.f32.gmra.mxu3 %vm291_vm0, %v1069_v17  ;;  %v4505_v7 = vld [vmem:[#allocation2 + $0x48] sm:$0xff] }
 0x362   :  { %4060 = vst.msk [vmem:[#allocation2 + $0x51] sm:$0xff] %vm291_vm0, %v3960_v44  ;;  %v3646_v46 = vadd.f32 %v13080_v11, %v3437_v28  ;;  %3483 = vmatmul.f32.gmra.mxu1 %v2958_v59  ;;  %8734 = vmatmul.msk.f32.gmra.mxu0 %vm291_vm0, %v4442_v14  ;;  %v9528_v11 = vunpack.i.h.bf16 %v12591_v60  ;;  %v13189_v12 = vpop.f32.mrf.mxu3  ;;  %v2831_v44 = vsel %vm291_vm0, %v780_v9, %v9368_v25  ;;  %v4189_v59 = vld [vmem:[#allocation2 + $0x49] sm:$0xff] }
 0x363   :  { %17246 = vst [vmem:[#allocation66_spill] sm:$0xff] %v13189_v12  ;;  %8696 = vmatmul.msk.f32.gmra.mxu2 %vm291_vm0, %v1041_v62  ;;  %v17247_v62 = vld [vmem:[#allocation26_spill] sm:$0xff] }
 0x364   :  { %v3829_v14 = vmul.f32 %v13013_v15, %v3646_v46  ;;  %v2895_v34 = vsel %vm2678_vm1, %v2831_v44, %v9528_v11  ;;  %v13195_v46 = vpop.permute.xlu2 %9695  ;;  %v13209_v44 = vpop.f32.mrf.mxu0 }
 0x365   :  { %9845 = vrot.lane.b32.xlu1 %v9844_v33, %s10844_s16  ;;  %9840 = vrot.lane.b32.xlu2 %v9844_v33, %s10845_s1  ;;  %v2959_v33 = vsel %vm2743_vm2, %v2895_v34, %v9688_v29  ;;  %v9372_v29 = vunpack.i.l.bf16 %v17247_v62 }
 0x366   :  { %v3897_v20 = vadd.f32 %v13023_v13, %v3829_v14  ;;  %v13198_v14 = vpop.permute.xlu1 %9690 }
 0x367   :  { %v3439_v5 = vpop.f32.mrf.mxu1 }
 0x368   :  { %v3961_v60 = vmax.f32 %v3897_v20, 0.0  ;;  %v3440_v28 = vadd.f32 %v3439_v5, %v12735_v39  ;;  %v13205_v9 = vpop.f32.mrf.mxu2  ;;  %v1070_v20 = vld [vmem:[#allocation2 + $0x302] sm:$0xff]  ;;  %v9532_v5 = vunpack.i.l.bf16 %v12644_v50 }
 0x369   :  { %v4633_v37 = vld [vmem:[#allocation2 + $0x4a] sm:$0xff]  ;;  %8725 = vmatmul.msk.f32.gmra.mxu3 %vm291_vm0, %v1070_v20  ;;  %v4634_v56 = vld [vmem:[#allocation2 + $0x52] sm:$0xff] }
 0x36a   :  { %v4506_v41 = vld [vmem:[#allocation2 + $0x50] sm:$0xff]  ;;  %4061 = vst.msk [vmem:[#allocation2 + $0x61] sm:$0xff] %vm291_vm0, %v3961_v60  ;;  %v3649_v25 = vadd.f32 %v13098_v10, %v3440_v28  ;;  %3486 = vmatmul.f32.gmra.mxu1 %v2959_v33  ;;  %8735 = vmatmul.msk.f32.gmra.mxu0 %vm291_vm0, %v4633_v37  ;;  %v781_v10 = vld [vmem:[#allocation2 + $0x139] sm:$0xff]  ;;  %v9692_v60 = vunpack.i.l.bf16 %v13198_v14 }
 0x36b   :  { %v4190_v17 = vld [vmem:[#allocation2 + $0x51] sm:$0xff]  ;;  %v9874_v39 = vpack.i.bf16 %v4506_v41, %v4505_v7  ;;  %v13220_v7 = vpop.f32.mrf.mxu3  ;;  %v2832_v41 = vsel %vm291_vm0, %v781_v10, %v9372_v29  ;;  %v4024_v29 = vld [vmem:[%s17002_s6 + $0x28] sm:$0xff] }
 0x36c   :  { %v13203_v11 = vpack.i.bf16 %v4190_v17, %v4189_v59  ;;  %v3830_v34 = vmul.f32 %v13013_v15, %v3649_v25  ;;  %17248 = vst [vmem:[#allocation26_spill] sm:$0xff] %v13220_v7  ;;  %v1042_v59 = vld [vmem:[#allocation2 + $0x182] sm:$0xff]  ;;  %v2896_v12 = vsel %vm2678_vm1, %v2832_v41, %v9532_v5  ;;  %v13241_v10 = vpop.permute.xlu2 %9710  ;;  %6817 = vmatpush.msrb.mxu3 %v4024_v29  ;;  %v13249_v41 = vpop.f32.mrf.mxu0 }
 0x36d   :  { %9875 = vrot.lane.b32.xlu1 %v9874_v39, %s10844_s16  ;;  %9850 = vrot.lane.b32.xlu2 %v13147_v1, %s10845_s1  ;;  %v2960_v1 = vsel %vm2743_vm2, %v2896_v12, %v9692_v60  ;;  %v1071_v12 = vld [vmem:[#allocation2 + $0x30a] sm:$0xff]  ;;  %v9864_v60 = vpack.i.bf16 %v4634_v56, %v4633_v37 }
 0x36e   :  { %9860 = vrot.lane.b32.xlu0 %v13203_v11, %s10843_s24  ;;  %v3898_v28 = vadd.f32 %v13023_v13, %v3830_v34  ;;  %8697 = vmatmul.msk.f32.gmra.mxu2 %vm291_vm0, %v1042_v59  ;;  %v9373_v34 = vunpack.i.h.bf16 %v17247_v62  ;;  %v782_v59 = vld [vmem:[#allocation2 + $0x141] sm:$0xff]  ;;  %v1043_v37 = vld [vmem:[#allocation2 + $0x18a] sm:$0xff] }
 0x36f   :  { %v3442_v33 = vpop.f32.mrf.mxu1 }
 0x370   :  { %v3962_v17 = vmax.f32 %v3898_v28, 0.0  ;;  %v3443_v25 = vadd.f32 %v3442_v33, %v12880_v43  ;;  %v4039_v43 = vld [vmem:[%s17002_s6 + $0xa0] sm:$0xff]  ;;  %v13238_v5 = vpop.f32.mrf.mxu2  ;;  %v9693_v33 = vunpack.i.h.bf16 %v13198_v14 }
 0x371   :  { %7027 = vmatpush.msrb.mxu2 %v4039_v43  ;;  %8726 = vmatmul.msk.f32.gmra.mxu3 %vm291_vm0, %v1071_v12  ;;  %v4191_v29 = vld [vmem:[#allocation2 + $0x61] sm:$0xff]  ;;  %v13259_v12 = vpop.permute.xlu1 %9705 }
 0x372   :  { %4062 = vst.msk [vmem:[#allocation2 + $0x69] sm:$0xff] %vm291_vm0, %v3962_v17  ;;  %v3652_v20 = vadd.f32 %v13124_v58, %v3443_v25  ;;  %3489 = vmatmul.f32.gmra.mxu1 %v2960_v1  ;;  %8736 = vmatmul.msk.f32.gmra.mxu0 %vm291_vm0, %v4634_v56  ;;  %v9533_v58 = vunpack.i.h.bf16 %v12644_v50  ;;  %v2833_v50 = vsel %vm291_vm0, %v782_v59, %v9373_v34  ;;  %v1072_v59 = vld [vmem:[#allocation2 + $0x31a] sm:$0xff] }
 0x373   :  { %v13252_v56 = vpop.f32.mrf.mxu3 }
 0x374   :  { %v3831_v28 = vmul.f32 %v13013_v15, %v3652_v20  ;;  %17249 = vst [vmem:[#allocation67_spill] sm:$0xff] %v13252_v56  ;;  %v2897_v14 = vsel %vm2678_vm1, %v2833_v50, %v9533_v58  ;;  %v783_v50 = vld [vmem:[#allocation2 + $0x151] sm:$0xff]  ;;  %v13287_v56 = vpop.f32.mrf.mxu0 }
 0x375   :  { %9865 = vrot.lane.b32.xlu2 %v9864_v60, %s10844_s16  ;;  %v2961_v1 = vsel %vm2743_vm2, %v2897_v14, %v9693_v33  ;;  %v17250_v33 = vld [vmem:[#allocation54_spill] sm:$0xff] }
 0x376   :  { %9870 = vrot.lane.b32.xlu0 %v9874_v39, %s10845_s1  ;;  %v3899_v62 = vadd.f32 %v13023_v13, %v3831_v28  ;;  %8698 = vmatmul.msk.f32.gmra.mxu2 %vm291_vm0, %v1043_v37  ;;  %v9537_v37 = vunpack.i.l.bf16 %v12689_v6 }
 0x377   :  { %v3445_v17 = vpop.f32.mrf.mxu1 }
 0x378   :  { %v3963_v39 = vmax.f32 %v3899_v62, 0.0  ;;  %v3446_v25 = vadd.f32 %v3445_v17, %v12897_v55  ;;  %v4023_v55 = vld [vmem:[%s17002_s6 + $0x20] sm:$0xff]  ;;  %v13267_v58 = vpop.f32.mrf.mxu2  ;;  %v9377_v62 = vunpack.i.l.bf16 %v17250_v33  ;;  %v13271_v17 = vpop.permute.xlu0 %9715 }
 0x379   :  { %v4635_v20 = vld [vmem:[#allocation2 + $0x62] sm:$0xff]  ;;  %6818 = vmatpush.msrb.mxu3 %v4023_v55 }
 0x37a   :  { %v4192_v43 = vld [vmem:[#allocation2 + $0x69] sm:$0xff]  ;;  %4063 = vst.msk [vmem:[#allocation2 + $0x79] sm:$0xff] %vm291_vm0, %v3963_v39  ;;  %v3655_v28 = vadd.f32 %v13149_v61, %v3446_v25  ;;  %3492 = vmatmul.f32.gmra.mxu1 %v2961_v1  ;;  %8737 = vmatmul.msk.f32.gmra.mxu0 %vm291_vm0, %v4635_v20  ;;  %v9697_v39 = vunpack.i.l.bf16 %v13195_v46  ;;  %v13277_v25 = vpop.permute.xlu2 %9725 }
 0x37b   :  { %v9889_v34 = vpack.i.bf16 %v4192_v43, %v4191_v29  ;;  %8727 = vmatmul.msk.f32.gmra.mxu3 %vm291_vm0, %v1072_v59  ;;  %v13283_v1 = vpop.f32.mrf.mxu3  ;;  %v1044_v29 = vld [vmem:[#allocation2 + $0x19a] sm:$0xff]  ;;  %v4318_v55 = vld [vmem:[#allocation2 + $0x68] sm:$0xff] }
 0x37c   :  { %v3832_v61 = vmul.f32 %v13013_v15, %v3655_v28  ;;  %17251 = vst [vmem:[#allocation54_spill] sm:$0xff] %v13283_v1  ;;  %v4636_v28 = vld [vmem:[#allocation2 + $0x6a] sm:$0xff] }
 0x37d   :  { %9890 = vrot.lane.b32.xlu1 %v9889_v34, %s10843_s24  ;;  %9880 = vrot.lane.b32.xlu2 %v13203_v11, %s10845_s1 }
 0x37e   :  { %9885 = vrot.lane.b32.xlu0 %v9864_v60, %s10843_s24  ;;  %v3900_v14 = vadd.f32 %v13023_v13, %v3832_v61  ;;  %v2834_v60 = vsel %vm291_vm0, %v783_v50, %v9377_v62  ;;  %8699 = vmatmul.msk.f32.gmra.mxu2 %vm291_vm0, %v1044_v29  ;;  %v4317_v61 = vld [vmem:[#allocation2 + $0x60] sm:$0xff]  ;;  %v9894_v62 = vpack.i.bf16 %v4636_v28, %v4635_v20  ;;  %v9698_v20 = vunpack.i.h.bf16 %v13195_v46 }
 0x37f   :  { %v3448_v43 = vpop.f32.mrf.mxu1  ;;  %v2898_v11 = vsel %vm2678_vm1, %v2834_v60, %v9537_v37  ;;  %v9899_v50 = vpack.i.bf16 %v4318_v55, %v4317_v61  ;;  %v9378_v37 = vunpack.i.h.bf16 %v17250_v33  ;;  %v1045_v60 = vld [vmem:[#allocation2 + $0x1a2] sm:$0xff] }
 0x380   :  { %v3964_v7 = vmax.f32 %v3900_v14, 0.0  ;;  %v3449_v47 = vadd.f32 %v3448_v43, %v12912_v57  ;;  %v2962_v59 = vsel %vm2743_vm2, %v2898_v11, %v9697_v39  ;;  %v4038_v14 = vld [vmem:[%s17002_s6 + $0x98] sm:$0xff]  ;;  %v13298_v29 = vpop.f32.mrf.mxu2  ;;  %v1073_v57 = vld [vmem:[#allocation2 + $0x322] sm:$0xff]  ;;  %v9538_v39 = vunpack.i.h.bf16 %v12689_v6  ;;  %v13310_v43 = vpop.permute.xlu0 %9730 }
 0x381   :  { %7028 = vmatpush.msrb.mxu2 %v4038_v14  ;;  %v4193_v14 = vld [vmem:[#allocation2 + $0x79] sm:$0xff] }
 0x382   :  { %4064 = vst.msk [vmem:[#allocation2 + $0x81] sm:$0xff] %vm291_vm0, %v3964_v7  ;;  %v3658_v1 = vadd.f32 %v13179_v24, %v3449_v47  ;;  %3495 = vmatmul.f32.gmra.mxu1 %v2962_v59  ;;  %8738 = vmatmul.msk.f32.gmra.mxu0 %vm291_vm0, %v4636_v28  ;;  %v13302_v7 = vpop.permute.xlu1 %9720  ;;  %v784_v24 = vld [vmem:[#allocation2 + $0x159] sm:$0xff]  ;;  %v13315_v28 = vpop.permute.xlu2 %9740 }
 0x383   :  { %8728 = vmatmul.msk.f32.gmra.mxu3 %vm291_vm0, %v1073_v57  ;;  %v13313_v6 = vpop.f32.mrf.mxu3  ;;  %17253 = vst [vmem:[#allocation69_spill] sm:$0xff] %v13315_v28  ;;  %v2835_v55 = vsel %vm291_vm0, %v784_v24, %v9378_v37  ;;  %v1074_v24 = vld [vmem:[#allocation2 + $0x332] sm:$0xff] }
 0x384   :  { %v3833_v47 = vmul.f32 %v13013_v15, %v3658_v1  ;;  %17252 = vst [vmem:[#allocation68_spill] sm:$0xff] %v13313_v6 }
 0x385   :  { %9900 = vrot.lane.b32.xlu1 %v9899_v50, %s10845_s1  ;;  %9910 = vrot.lane.b32.xlu2 %v9889_v34, %s10845_s1  ;;  %v2899_v34 = vsel %vm2678_vm1, %v2835_v55, %v9538_v39  ;;  %v9702_v55 = vunpack.i.l.bf16 %v13227_v23 }
 0x386   :  { %9895 = vrot.lane.b32.xlu0 %v9894_v62, %s10844_s16  ;;  %v3901_v33 = vadd.f32 %v13023_v13, %v3833_v47  ;;  %8700 = vmatmul.msk.f32.gmra.mxu2 %vm291_vm0, %v1045_v60  ;;  %v2963_v59 = vsel %vm2743_vm2, %v2899_v34, %v9698_v20  ;;  %v13322_v47 = vpop.f32.mrf.mxu0  ;;  %v17254_v20 = vld [vmem:[#allocation55_spill] sm:$0xff]  ;;  %v9542_v60 = vunpack.i.l.bf16 %v12620_v38 }
 0x387   :  { %v3451_v1 = vpop.f32.mrf.mxu1 }
 0x388   :  { %v3965_v11 = vmax.f32 %v3901_v33, 0.0  ;;  %v3452_v46 = vadd.f32 %v3451_v1, %v12927_v53  ;;  %v4022_v53 = vld [vmem:[%s17002_s6 + $0x18] sm:$0xff]  ;;  %v13332_v39 = vpop.f32.mrf.mxu2  ;;  %v9382_v33 = vunpack.i.l.bf16 %v17254_v20 }
 0x389   :  { %v4637_v61 = vld [vmem:[#allocation2 + $0x7a] sm:$0xff]  ;;  %6819 = vmatpush.msrb.mxu3 %v4022_v53 }
 0x38a   :  { %v4194_v57 = vld [vmem:[#allocation2 + $0x81] sm:$0xff]  ;;  %4065 = vst.msk [vmem:[#allocation2 + $0x91] sm:$0xff] %vm291_vm0, %v3965_v11  ;;  %v3661_v6 = vadd.f32 %v13205_v9, %v3452_v46  ;;  %3498 = vmatmul.f32.gmra.mxu1 %v2963_v59  ;;  %8739 = vmatmul.msk.f32.gmra.mxu0 %vm291_vm0, %v4637_v61  ;;  %v785_v9 = vld [vmem:[#allocation2 + $0x169] sm:$0xff]  ;;  %v13343_v11 = vpop.permute.xlu1 %9735  ;;  %v13354_v28 = vpop.permute.xlu2 %9755 }
 0x38b   :  { %v13327_v37 = vpack.i.bf16 %v4194_v57, %v4193_v14  ;;  %8729 = vmatmul.msk.f32.gmra.mxu3 %vm291_vm0, %v1074_v24  ;;  %v13346_v34 = vpop.f32.mrf.mxu3  ;;  %v1046_v59 = vld [vmem:[#allocation2 + $0x1e2] sm:$0xff]  ;;  %17256 = vst [vmem:[#allocation70_spill] sm:$0xff] %v13354_v28 }
 0x38c   :  { %v3834_v1 = vmul.f32 %v13013_v15, %v3661_v6  ;;  %17255 = vst [vmem:[#allocation55_spill] sm:$0xff] %v13346_v34  ;;  %v4638_v14 = vld [vmem:[#allocation2 + $0x82] sm:$0xff] }
 0x38d   :  { %9905 = vrot.lane.b32.xlu1 %v9899_v50, %s10844_s16  ;;  %9920 = vrot.lane.b32.xlu2 %v13327_v37, %s10843_s24  ;;  %v13350_v50 = vpop.permute.xlu0 %9745  ;;  %v4320_v30 = vld [vmem:[#allocation2 + $0x80] sm:$0xff] }
 0x38e   :  { %9915 = vrot.lane.b32.xlu0 %v9894_v62, %s10843_s24  ;;  %v3902_v46 = vadd.f32 %v13023_v13, %v3834_v1  ;;  %v2836_v62 = vsel %vm291_vm0, %v785_v9, %v9382_v33  ;;  %8701 = vmatmul.msk.f32.gmra.mxu2 %vm291_vm0, %v1046_v59  ;;  %v9944_v33 = vpack.i.bf16 %v4638_v14, %v4637_v61  ;;  %v4319_v9 = vld [vmem:[#allocation2 + $0x78] sm:$0xff]  ;;  %v9383_v59 = vunpack.i.h.bf16 %v17254_v20 }
 0x38f   :  { %v3454_v6 = vpop.f32.mrf.mxu1  ;;  %v2900_v24 = vsel %vm2678_vm1, %v2836_v62, %v9542_v60  ;;  %v1075_v60 = vld [vmem:[#allocation2 + $0x33a] sm:$0xff]  ;;  %v13367_v62 = vpop.f32.mrf.mxu0  ;;  %v786_v61 = vld [vmem:[#allocation2 + $0x171] sm:$0xff] }
 0x390   :  { %v3966_v57 = vmax.f32 %v3902_v46, 0.0  ;;  %v3455_v53 = vadd.f32 %v3454_v6, %v12951_v32  ;;  %v2964_v1 = vsel %vm2743_vm2, %v2900_v24, %v9702_v55  ;;  %v4037_v32 = vld [vmem:[%s17002_s6 + $0x90] sm:$0xff]  ;;  %v13363_v46 = vpop.f32.mrf.mxu2  ;;  %v9929_v6 = vpack.i.bf16 %v4320_v30, %v4319_v9 }
 0x391   :  { %7029 = vmatpush.msrb.mxu2 %v4037_v32  ;;  %v9543_v55 = vunpack.i.h.bf16 %v12620_v38  ;;  %v1047_v38 = vld [vmem:[#allocation2 + $0x1ea] sm:$0xff] }
 0x392   :  { %4066 = vst.msk [vmem:[#allocation2 + $0x99] sm:$0xff] %vm291_vm0, %v3966_v57  ;;  %v3664_v34 = vadd.f32 %v13238_v5, %v3455_v53  ;;  %3501 = vmatmul.f32.gmra.mxu1 %v2964_v1  ;;  %8740 = vmatmul.msk.f32.gmra.mxu0 %vm291_vm0, %v4638_v14  ;;  %v9703_v14 = vunpack.i.h.bf16 %v13227_v23  ;;  %v2837_v53 = vsel %vm291_vm0, %v786_v61, %v9383_v59  ;;  %v4195_v32 = vld [vmem:[#allocation2 + $0x91] sm:$0xff] }
 0x393   :  { %8730 = vmatmul.msk.f32.gmra.mxu3 %vm291_vm0, %v1075_v60  ;;  %v13376_v20 = vpop.f32.mrf.mxu3  ;;  %v2901_v23 = vsel %vm2678_vm1, %v2837_v53, %v9543_v55  ;;  %v787_v53 = vld [vmem:[#allocation2 + $0x181] sm:$0xff] }
 0x394   :  { %v3835_v5 = vmul.f32 %v13013_v15, %v3664_v34  ;;  %17257 = vst [vmem:[#allocation71_spill] sm:$0xff] %v13376_v20  ;;  %v13380_v34 = vpop.permute.xlu1 %9750 }
 0x395   :  { %9925 = vrot.lane.b32.xlu1 %v9944_v33, %s10844_s16  ;;  %9930 = vrot.lane.b32.xlu2 %v9929_v6, %s10845_s1 }
 0x396   :  { %9945 = vrot.lane.b32.xlu0 %v9944_v33, %s10843_s24  ;;  %v3903_v30 = vadd.f32 %v13023_v13, %v3835_v5  ;;  %8702 = vmatmul.msk.f32.gmra.mxu2 %vm291_vm0, %v1047_v38  ;;  %v2965_v33 = vsel %vm2743_vm2, %v2901_v23, %v9703_v14  ;;  %v13385_v5 = vpop.permute.xlu0 %9760  ;;  %v1076_v14 = vld [vmem:[#allocation2 + $0x34a] sm:$0xff]  ;;  %v13398_v38 = vpop.permute.xlu2 %9770 }
 0x397   :  { %v3457_v57 = vpop.f32.mrf.mxu1  ;;  %17258 = vst [vmem:[#allocation72_spill] sm:$0xff] %v13385_v5  ;;  %v4511_v5 = vld [vmem:[#allocation2 + $0x90] sm:$0xff] }
 0x398   :  { %v3967_v24 = vmax.f32 %v3903_v30, 0.0  ;;  %v3458_v1 = vadd.f32 %v3457_v57, %v12969_v2  ;;  %v4021_v2 = vld [vmem:[%s17002_s6 + $0x10] sm:$0xff]  ;;  %v13395_v55 = vpop.f32.mrf.mxu2  ;;  %v9387_v30 = vunpack.i.l.bf16 %v12369_v49  ;;  %17259 = vst [vmem:[#allocation73_spill] sm:$0xff] %v13398_v38  ;;  %v9547_v57 = vunpack.i.l.bf16 %v12669_v54 }
 0x399   :  { %v4639_v9 = vld [vmem:[#allocation2 + $0x92] sm:$0xff]  ;;  %6820 = vmatpush.msrb.mxu3 %v4021_v2  ;;  %v4640_v38 = vld [vmem:[#allocation2 + $0x9a] sm:$0xff] }
 0x39a   :  { %v4196_v60 = vld [vmem:[#allocation2 + $0x99] sm:$0xff]  ;;  %4067 = vst.msk [vmem:[#allocation2 + $0xa9] sm:$0xff] %vm291_vm0, %v3967_v24  ;;  %v3667_v59 = vadd.f32 %v13267_v58, %v3458_v1  ;;  %3504 = vmatmul.f32.gmra.mxu1 %v2965_v33  ;;  %8741 = vmatmul.msk.f32.gmra.mxu0 %vm291_vm0, %v4639_v9  ;;  %v9707_v24 = vunpack.i.l.bf16 %v13259_v12  ;;  %v13409_v1 = vpop.f32.mrf.mxu0 }
 0x39b   :  { %v13390_v61 = vpack.i.bf16 %v4196_v60, %v4195_v32  ;;  %8731 = vmatmul.msk.f32.gmra.mxu3 %vm291_vm0, %v1076_v14  ;;  %v13412_v33 = vpop.f32.mrf.mxu3  ;;  %v4512_v60 = vld [vmem:[#allocation2 + $0x98] sm:$0xff] }
 0x39c   :  { %v3836_v58 = vmul.f32 %v13013_v15, %v3667_v59  ;;  %17260 = vst [vmem:[#allocation74_spill] sm:$0xff] %v13412_v33  ;;  %v13418_v14 = vpop.permute.xlu1 %9765 }
 0x39d   :  { %9935 = vrot.lane.b32.xlu1 %v9929_v6, %s10844_s16  ;;  %9940 = vrot.lane.b32.xlu2 %v13327_v37, %s10845_s1  ;;  %v2838_v6 = vsel %vm291_vm0, %v787_v53, %v9387_v30  ;;  %17261 = vst [vmem:[#allocation75_spill] sm:$0xff] %v13418_v14  ;;  %v9964_v30 = vpack.i.bf16 %v4512_v60, %v4511_v5  ;;  %v4020_v60 = vld [vmem:[%s17002_s6 + $0x8] sm:$0xff] }
 0x39e   :  { %9950 = vrot.lane.b32.xlu0 %v13390_v61, %s10843_s24  ;;  %v3904_v23 = vadd.f32 %v13023_v13, %v3836_v58  ;;  %v2902_v20 = vsel %vm2678_vm1, %v2838_v6, %v9547_v57  ;;  %v9954_v57 = vpack.i.bf16 %v4640_v38, %v4639_v9  ;;  %v9708_v6 = vunpack.i.h.bf16 %v13259_v12  ;;  %v13433_v5 = vpop.permute.xlu2 %9785  ;;  %6821 = vmatpush.msrb.mxu3 %v4020_v60 }
 0x39f   :  { %v3460_v32 = vpop.f32.mrf.mxu1  ;;  %v2966_v37 = vsel %vm2743_vm2, %v2902_v20, %v9707_v24  ;;  %v13427_v20 = vpop.permute.xlu0 %9775  ;;  %17263 = vst [vmem:[#allocation77_spill] sm:$0xff] %v13433_v5 }
 0x3a0   :  { %v3968_v59 = vmax.f32 %v3904_v23, 0.0  ;;  %v3461_v2 = vadd.f32 %v3460_v32, %v12991_v16  ;;  %v13423_v53 = vpop.f32.mrf.mxu2  ;;  %v1077_v23 = vld [vmem:[#allocation2 + $0x352] sm:$0xff]  ;;  %v9388_v16 = vunpack.i.h.bf16 %v12369_v49  ;;  %v9548_v32 = vunpack.i.h.bf16 %v12669_v54  ;;  %17262 = vst [vmem:[#allocation76_spill] sm:$0xff] %v13427_v20 }
 0x3a2   :  { %4068 = vst.msk [vmem:[#allocation2 + $0xb1] sm:$0xff] %vm291_vm0, %v3968_v59  ;;  %v3670_v58 = vadd.f32 %v13298_v29, %v3461_v2  ;;  %3507 = vmatmul.f32.gmra.mxu1 %v2966_v37  ;;  %8742 = vmatmul.msk.f32.gmra.mxu0 %vm291_vm0, %v4640_v38  ;;  %v788_v29 = vld [vmem:[#allocation2 + $0x189] sm:$0xff]  ;;  %v13444_v59 = vpop.f32.mrf.mxu0 }
 0x3a3   :  { %8732 = vmatmul.msk.f32.gmra.mxu3 %vm291_vm0, %v1077_v23  ;;  %v13438_v54 = vpop.f32.mrf.mxu3  ;;  %v2839_v38 = vsel %vm291_vm0, %v788_v29, %v9388_v16  ;;  %v4197_v23 = vld [vmem:[#allocation2 + $0xa9] sm:$0xff] }
 0x3a4   :  { %v3837_v24 = vmul.f32 %v13013_v15, %v3670_v58  ;;  %17264 = vst [vmem:[#allocation78_spill] sm:$0xff] %v13438_v54  ;;  %v2903_v37 = vsel %vm2678_vm1, %v2839_v38, %v9548_v32  ;;  %v4019_v32 = vld [vmem:[%s17002_s6] sm:$0xff]  ;;  %v13462_v38 = vpop.permute.xlu1 %9780 }
 0x3a5   :  { %9965 = vrot.lane.b32.xlu1 %v9964_v30, %s10844_s16  ;;  %9955 = vrot.lane.b32.xlu2 %v9954_v57, %s10844_s16  ;;  %v2967_v58 = vsel %vm2743_vm2, %v2903_v37, %v9708_v6  ;;  %v17265_v6 = vld [vmem:[#allocation6_spill] sm:$0xff]  ;;  %v9712_v37 = vunpack.i.l.bf16 %v13241_v10 }
 0x3a6   :  { %9960 = vrot.lane.b32.xlu0 %v9964_v30, %s10845_s1  ;;  %v3905_v49 = vadd.f32 %v13023_v13, %v3837_v24  ;;  %6822 = vmatpush.msrb.mxu3 %v4019_v32  ;;  %17266 = vst [vmem:[#allocation6_spill] sm:$0xff] %v13462_v38 }
 0x3a7   :  { %v3463_v9 = vpop.f32.mrf.mxu1 }
 0x3a8   :  { %v3969_v12 = vmax.f32 %v3905_v49, 0.0  ;;  %v3464_v2 = vadd.f32 %v3463_v9, %v13006_v42  ;;  %v4036_v42 = vld [vmem:[%s17002_s6 + $0x88] sm:$0xff]  ;;  %v13455_v49 = vpop.f32.mrf.mxu2  ;;  %v9392_v9 = vunpack.i.l.bf16 %v17265_v6 }
 0x3a9   :  { %v4641_v30 = vld [vmem:[#allocation2 + $0xaa] sm:$0xff]  ;;  %7030 = vmatpush.msrb.mxu2 %v4036_v42  ;;  %v4642_v42 = vld [vmem:[#allocation2 + $0xb2] sm:$0xff] }
 0x3aa   :  { %v4198_v24 = vld [vmem:[#allocation2 + $0xb1] sm:$0xff]  ;;  %4069 = vst.msk [vmem:[#allocation2 + $0xc1] sm:$0xff] %vm291_vm0, %v3969_v12  ;;  %v3673_v16 = vadd.f32 %v13332_v39, %v3464_v2  ;;  %3510 = vmatmul.f32.gmra.mxu1 %v2967_v58  ;;  %8743 = vmatmul.msk.f32.gmra.mxu0 %vm291_vm0, %v4641_v30  ;;  %v9552_v39 = vunpack.i.l.bf16 %v12726_v19  ;;  %v13467_v12 = vpop.permute.xlu0 %9790  ;;  %v789_v2 = vld [vmem:[#allocation2 + $0x1c9] sm:$0xff]  ;;  %v13472_v58 = vpop.permute.xlu2 %9800 }
 0x3ab   :  { %v9979_v29 = vpack.i.bf16 %v4198_v24, %v4197_v23  ;;  %v10740_v23 = vld [vmem:[%s17002_s6 + $0x118] sm:$0xff]  ;;  %v4324_v32 = vld [vmem:[#allocation2 + $0xb0] sm:$0xff]  ;;  %v9802_v38 = vunpack.i.l.bf16 %v13472_v58  ;;  %v9803_v14 = vunpack.i.h.bf16 %v13472_v58 }
 0x3ac   :  { %v3838_v60 = vmul.f32 %v13013_v15, %v3673_v16  ;;  %8817 = vmatpush.msra.mxu3 %v10740_v23  ;;  %v2840_v16 = vsel %vm291_vm0, %v789_v2, %v9392_v9  ;;  %v9984_v2 = vpack.i.bf16 %v4642_v42, %v4641_v30  ;;  %v9713_v30 = vunpack.i.h.bf16 %v13241_v10 }
 0x3ad   :  { %9980 = vrot.lane.b32.xlu1 %v9979_v29, %s10843_s24  ;;  %9970 = vrot.lane.b32.xlu2 %v13390_v61, %s10845_s1  ;;  %v10741_v61 = vld [vmem:[%s17002_s6 + $0x110] sm:$0xff]  ;;  %v2904_v5 = vsel %vm2678_vm1, %v2840_v16, %v9552_v39 }
 0x3ae   :  { %9975 = vrot.lane.b32.xlu0 %v9954_v57, %s10843_s24  ;;  %v3906_v15 = vadd.f32 %v13023_v13, %v3838_v60  ;;  %v13478_v57 = vpop.f32.mrf.mxu3  ;;  %8818 = vmatpush.msra.mxu3 %v10741_v61  ;;  %v2968_v23 = vsel %vm2743_vm2, %v2904_v5, %v9712_v37  ;;  %v4323_v13 = vld [vmem:[#allocation2 + $0xa8] sm:$0xff]  ;;  %v13488_v60 = vpop.f32.mrf.mxu0  ;;  %v9553_v5 = vunpack.i.h.bf16 %v12726_v19  ;;  %v13513_v19 = vld [vmem:[%s17000_s4] ss:$0 sm:$0xff] }
 0x3af   :  { %17267 = vst [vmem:[#allocation79_spill] sm:$0xff] %v13478_v57  ;;  %v3466_v24 = vpop.f32.mrf.mxu1 }
 0x3b0   :  { %v3970_v54 = vmax.f32 %v3906_v15, 0.0  ;;  %v3467_v33 = vadd.f32 %v3466_v24, %v13047_v21  ;;  %8819 = vmatpush.msra.mxu3 %v13042_v3  ;;  %v9989_v15 = vpack.i.bf16 %v4324_v32, %v4323_v13  ;;  %v13493_v61 = vpop.f32.mrf.mxu2  ;;  %v9393_v21 = vunpack.i.h.bf16 %v17265_v6  ;;  %v13501_v3 = vld [vmem:[%s16999_s3] ss:$0 sm:$0xff] }
 0x3b1   :  { %v4199_v13 = vld [vmem:[#allocation2 + $0xc1] sm:$0xff] }
 0x3b2   :  { %4070 = vst.msk [vmem:[#allocation2 + $0xc9] sm:$0xff] %vm291_vm0, %v3970_v54  ;;  %v3676_v9 = vadd.f32 %v13363_v46, %v3467_v33  ;;  %3513 = vmatmul.f32.gmra.mxu1 %v2968_v23  ;;  %8744 = vmatmul.msk.f32.gmra.mxu0 %vm291_vm0, %v4642_v42  ;;  %v13506_v33 = vpop.permute.xlu1 %9795  ;;  %v790_v54 = vld [vmem:[#allocation2 + $0x1d1] sm:$0xff]  ;;  %v13516_v6 = vpop.permute.xlu0 %9805 }
 0x3b3   :  { %8820 = vmatpush.msra.mxu3 %v13053_v31  ;;  %17268 = vst [vmem:[#allocation80_spill] sm:$0xff] %v13506_v33  ;;  %v2841_v16 = vsel %vm291_vm0, %v790_v54, %v9393_v21  ;;  %v9557_v54 = vunpack.i.l.bf16 %v12654_v51  ;;  %v4119_v33 = vld [vmem:[#allocation2] sm:$0xff] }
 0x3b4   :  { %v3839_v46 = vmul.f32 %v13501_v3, %v3676_v9  ;;  %17269 = vst [vmem:[#allocation81_spill] sm:$0xff] %v13516_v6 }
 0x3b5   :  { %9990 = vrot.lane.b32.xlu1 %v9989_v15, %s10845_s1  ;;  %10000 = vrot.lane.b32.xlu2 %v9979_v29, %s10845_s1  ;;  %v2905_v29 = vsel %vm2678_vm1, %v2841_v16, %v9553_v5  ;;  %v9397_v5 = vunpack.i.l.bf16 %v12353_v8 }
 0x3b6   :  { %9985 = vrot.lane.b32.xlu0 %v9984_v2, %s10844_s16  ;;  %v3907_v31 = vadd.f32 %v13513_v19, %v3839_v46  ;;  %v13518_v39 = vpop.f32.mrf.mxu3  ;;  %v2969_v32 = vsel %vm2743_vm2, %v2905_v29, %v9713_v30  ;;  %v13538_v30 = vpop.f32.mrf.mxu0 }
 0x3b7   :  { %17270 = vst [vmem:[#allocation82_spill] sm:$0xff] %v13518_v39  ;;  %v13520_v37 = vpop.permute.xlu2 %9830  ;;  %v3469_v24 = vpop.f32.mrf.mxu1 }
 0x3b8   :  { %v3971_v42 = vmax.f32 %v3907_v31, 0.0  ;;  %v3470_v10 = vadd.f32 %v3469_v24, %v13084_v45  ;;  %v4035_v45 = vld [vmem:[%s17002_s6 + $0x80] sm:$0xff]  ;;  %v13534_v21 = vpop.f32.mrf.mxu2  ;;  %v9717_v24 = vunpack.i.l.bf16 %v13271_v17 }
 0x3b9   :  { %v4643_v23 = vld [vmem:[#allocation2 + $0xc2] sm:$0xff]  ;;  %7031 = vmatpush.msrb.mxu2 %v4035_v45 }
 0x3ba   :  { %v4200_v9 = vld [vmem:[#allocation2 + $0xc9] sm:$0xff]  ;;  %4071 = vst.msk [vmem:[#allocation2 + $0xd9] sm:$0xff] %vm291_vm0, %v3971_v42  ;;  %v3679_v46 = vadd.f32 %v13395_v55, %v3470_v10  ;;  %3516 = vmatmul.f32.gmra.mxu1 %v2969_v32  ;;  %8745 = vmatmul.msk.f32.gmra.mxu0 %vm291_vm0, %v4643_v23  ;;  %v791_v31 = vld [vmem:[#allocation2 + $0x1e1] sm:$0xff]  ;;  %v9792_v10 = vunpack.i.l.bf16 %v13467_v12 }
 0x3bb   :  { %v13529_v6 = vpack.i.bf16 %v4200_v9, %v4199_v13  ;;  %v2842_v13 = vsel %vm291_vm0, %v791_v31, %v9397_v5  ;;  %v4326_v45 = vld [vmem:[#allocation2 + $0xc8] sm:$0xff]  ;;  %v4325_v31 = vld [vmem:[#allocation2 + $0xc0] sm:$0xff] }
 0x3bc   :  { %v3840_v55 = vmul.f32 %v13501_v3, %v3679_v46  ;;  %v2906_v46 = vsel %vm2678_vm1, %v2842_v13, %v9557_v54  ;;  %v6231_v13 = vsel %vm291_vm0, %v4119_v33, %v9792_v10 }
 0x3bd   :  { %9995 = vrot.lane.b32.xlu1 %v9989_v15, %s10844_s16  ;;  %10010 = vrot.lane.b32.xlu2 %v13529_v6, %s10843_s24  ;;  %v2970_v57 = vsel %vm2743_vm2, %v2906_v46, %v9717_v24  ;;  %v9558_v24 = vunpack.i.h.bf16 %v12654_v51  ;;  %v6295_v33 = vsel %vm2678_vm1, %v6231_v13, %v9802_v38  ;;  %v9793_v51 = vunpack.i.h.bf16 %v13467_v12 }
 0x3be   :  { %10005 = vrot.lane.b32.xlu0 %v9984_v2, %s10843_s24  ;;  %v3908_v16 = vadd.f32 %v13513_v19, %v3840_v55  ;;  %v4644_v2 = vld [vmem:[#allocation2 + $0xca] sm:$0xff]  ;;  %v13555_v39 = vpop.f32.mrf.mxu3  ;;  %v13557_v55 = vpop.permute.xlu0 %9815 }
 0x3bf   :  { %v13547_v42 = vpop.permute.xlu1 %9810  ;;  %v13550_v29 = vpop.permute.xlu2 %9840  ;;  %17271 = vst [vmem:[#allocation83_spill] sm:$0xff] %v13555_v39  ;;  %v9817_v28 = vunpack.i.l.bf16 %v13557_v55 }
 0x3c0   :  { %v3472_v32 = vpop.f32.mrf.mxu1  ;;  %v3972_v9 = vmax.f32 %v3908_v16, 0.0  ;;  %v13564_v54 = vpop.f32.mrf.mxu2  ;;  %v9398_v16 = vunpack.i.h.bf16 %v12353_v8 }
 0x3c1   :  { %v3473_v15 = vadd.f32 %v3472_v32, %v13106_v40  ;;  %v10034_v40 = vpack.i.bf16 %v4644_v2, %v4643_v23  ;;  %v10019_v32 = vpack.i.bf16 %v4326_v45, %v4325_v31  ;;  %v13574_v23 = vpop.f32.mrf.mxu0  ;;  %v4120_v31 = vld [vmem:[#allocation2 + $0x8] sm:$0xff]  ;;  %v4201_v12 = vld [vmem:[#allocation2 + $0xd9] sm:$0xff] }
 0x3c2   :  { %4072 = vst.msk [vmem:[#allocation2 + $0xe1] sm:$0xff] %vm291_vm0, %v3972_v9  ;;  %3519 = vmatmul.f32.gmra.mxu1 %v2970_v57  ;;  %8746 = vmatmul.msk.f32.gmra.mxu0 %vm291_vm0, %v4644_v2  ;;  %v9718_v57 = vunpack.i.h.bf16 %v13271_v17 }
 0x3c3   :  { %v3682_v5 = vadd.f32 %v13423_v53, %v3473_v15  ;;  %v792_v53 = vld [vmem:[#allocation2 + $0x1e9] sm:$0xff] }
 0x3c4   :  { %v2843_v45 = vsel %vm291_vm0, %v792_v53, %v9398_v16 }
 0x3c5   :  { %v3841_v46 = vmul.f32 %v13501_v3, %v3682_v5  ;;  %10015 = vrot.lane.b32.xlu1 %v10034_v40, %s10844_s16  ;;  %10020 = vrot.lane.b32.xlu2 %v10019_v32, %s10845_s1 }
 0x3c6   :  { %10035 = vrot.lane.b32.xlu0 %v10034_v40, %s10843_s24  ;;  %v2907_v40 = vsel %vm2678_vm1, %v2843_v45, %v9558_v24  ;;  %v13584_v39 = vpop.f32.mrf.mxu3  ;;  %v9402_v24 = vunpack.i.l.bf16 %v12400_v36  ;;  %v13594_v53 = vpop.permute.xlu0 %9825 }
 0x3c7   :  { %v3909_v8 = vadd.f32 %v13513_v19, %v3841_v46  ;;  %v9821_v2 = vpop.permute.xlu1 %9820  ;;  %v13579_v9 = vpop.permute.xlu2 %9850  ;;  %17272 = vst [vmem:[#allocation84_spill] sm:$0xff] %v13584_v39  ;;  %v2971_v46 = vsel %vm2743_vm2, %v2907_v40, %v9718_v57  ;;  %v6232_v57 = vsel %vm291_vm0, %v4120_v31, %v9793_v51 }
 0x3c8   :  { %v9822_v10 = vunpack.i.l.bf16 %v9821_v2  ;;  %v3475_v15 = vpop.f32.mrf.mxu1  ;;  %v6296_v45 = vsel %vm2678_vm1, %v6232_v57, %v9803_v14  ;;  %v9563_v14 = vunpack.i.h.bf16 %v12707_v48 }
 0x3c9   :  { %v3973_v5 = vmax.f32 %v3909_v8, 0.0  ;;  %v3476_v17 = vadd.f32 %v3475_v15, %v13137_v63  ;;  %v4645_v13 = vld [vmem:[#allocation2 + $0xda] sm:$0xff]  ;;  %v9562_v8 = vunpack.i.l.bf16 %v12707_v48 }
 0x3ca   :  { %v6359_v38 = vsel %vm2743_vm2, %v6295_v33, %v9822_v10  ;;  %v4202_v20 = vld [vmem:[#allocation2 + $0xe1] sm:$0xff]  ;;  %3522 = vmatmul.f32.gmra.mxu1 %v2971_v46  ;;  %8747 = vmatmul.msk.f32.gmra.mxu0 %vm291_vm0, %v4645_v13  ;;  %v9722_v33 = vunpack.i.l.bf16 %v13302_v7  ;;  %v9823_v10 = vunpack.i.h.bf16 %v9821_v2  ;;  %v9403_v46 = vunpack.i.h.bf16 %v12400_v36  ;;  %v13617_v2 = vpop.f32.mrf.mxu0 }
 0x3cb   :  { %4073 = vst.msk [vmem:[#allocation2 + $0xf1] sm:$0xff] %vm291_vm0, %v3973_v5  ;;  %v3685_v16 = vadd.f32 %v13455_v49, %v3476_v17  ;;  %6823 = vmatmul.f32.vlgmr.msrb.gmra.mxu3 %v6359_v38  ;;  %v13591_v63 = vpack.i.bf16 %v4202_v20, %v4201_v12  ;;  %v793_v49 = vld [vmem:[#allocation2 + $0x1f9] sm:$0xff]  ;;  %v13603_v20 = vpop.f32.mrf.mxu2  ;;  %v9723_v36 = vunpack.i.h.bf16 %v13302_v7 }
 0x3cc   :  { %v2844_v40 = vsel %vm291_vm0, %v793_v49, %v9402_v24  ;;  %v4518_v31 = vld [vmem:[#allocation2 + $0xe0] sm:$0xff]  ;;  %v6360_v39 = vsel %vm2743_vm2, %v6296_v45, %v9823_v10  ;;  %v4517_v24 = vld [vmem:[#allocation2 + $0xd8] sm:$0xff]  ;;  %v9827_v10 = vunpack.i.l.bf16 %v13594_v53 }
 0x3cd   :  { %v3842_v58 = vmul.f32 %v13501_v3, %v3685_v16  ;;  %10025 = vrot.lane.b32.xlu1 %v10019_v32, %s10844_s16  ;;  %10030 = vrot.lane.b32.xlu2 %v13529_v6, %s10845_s1  ;;  %v9812_v32 = vunpack.i.l.bf16 %v13547_v42  ;;  %v2908_v12 = vsel %vm2678_vm1, %v2844_v40, %v9562_v8  ;;  %v4646_v16 = vld [vmem:[#allocation2 + $0xe2] sm:$0xff]  ;;  %v10054_v8 = vpack.i.bf16 %v4518_v31, %v4517_v24 }
 0x3ce   :  { %10040 = vrot.lane.b32.xlu0 %v13591_v63, %s10843_s24  ;;  %v2972_v57 = vsel %vm2743_vm2, %v2908_v12, %v9722_v33  ;;  %v794_v49 = vld [vmem:[#allocation2 + $0x201] sm:$0xff]  ;;  %v10044_v48 = vpack.i.bf16 %v4646_v16, %v4645_v13  ;;  %v9852_v24 = vunpack.i.l.bf16 %v13579_v9 }
 0x3cf   :  { %v3910_v51 = vadd.f32 %v13513_v19, %v3842_v58  ;;  %v13609_v15 = vpop.permute.xlu1 %9835  ;;  %v13613_v5 = vpop.permute.xlu2 %9865  ;;  %v2845_v7 = vsel %vm291_vm0, %v794_v49, %v9403_v46  ;;  %v9842_v46 = vunpack.i.l.bf16 %v13550_v29 }
 0x3d0   :  { %v3478_v17 = vpop.f32.mrf.mxu1  ;;  %v13621_v58 = vpop.f32.mrf.mxu3 }
 0x3d1   :  { %v3974_v38 = vmax.f32 %v3910_v51, 0.0  ;;  %v3479_v6 = vadd.f32 %v3478_v17, %v13168_v4  ;;  %17273 = vst [vmem:[#allocation85_spill] sm:$0xff] %v13621_v58  ;;  %v4121_v51 = vld [vmem:[#allocation2 + $0x18] sm:$0xff] }
 0x3d2   :  { %3525 = vmatmul.f32.gmra.mxu1 %v2972_v57  ;;  %8748 = vmatmul.msk.f32.gmra.mxu0 %vm291_vm0, %v4646_v16  ;;  %v6233_v33 = vsel %vm291_vm0, %v4121_v51, %v9812_v32 }
 0x3d3   :  { %4074 = vst.msk [vmem:[#allocation2 + $0xf9] sm:$0xff] %vm291_vm0, %v3974_v38  ;;  %v3688_v4 = vadd.f32 %v13493_v61, %v3479_v6  ;;  %6826 = vmatmul.f32.gmra.mxu3 %v6360_v39  ;;  %v13637_v61 = vpop.permute.xlu0 %9855  ;;  %v2909_v39 = vsel %vm2678_vm1, %v2845_v7, %v9563_v14  ;;  %v6297_v40 = vsel %vm2678_vm1, %v6233_v33, %v9817_v28  ;;  %v13644_v31 = vpop.f32.mrf.mxu2  ;;  %v9818_v38 = vunpack.i.h.bf16 %v13557_v55  ;;  %v4375_v14 = vld [vmem:[#allocation2 + $0x19] sm:$0xff] }
 0x3d4   :  { %v2973_v32 = vsel %vm2743_vm2, %v2909_v39, %v9723_v36  ;;  %v9813_v6 = vunpack.i.h.bf16 %v13547_v42  ;;  %v6423_v28 = vsel %vm291_vm0, %v4375_v14, %v9827_v10  ;;  %v9828_v55 = vunpack.i.h.bf16 %v13594_v53  ;;  %v4122_v53 = vld [vmem:[#allocation2 + $0x20] sm:$0xff] }
 0x3d5   :  { %v3843_v45 = vmul.f32 %v13501_v3, %v3688_v4  ;;  %10055 = vrot.lane.b32.xlu1 %v10054_v8, %s10844_s16  ;;  %10045 = vrot.lane.b32.xlu2 %v10044_v48, %s10844_s16  ;;  %v6361_v42 = vsel %vm2743_vm2, %v6297_v40, %v9842_v46  ;;  %v9567_v46 = vunpack.i.l.bf16 %v12751_v22  ;;  %v9727_v14 = vunpack.i.l.bf16 %v13277_v25 }
 0x3d6   :  { %10050 = vrot.lane.b32.xlu0 %v10054_v8, %s10845_s1  ;;  %v6234_v40 = vsel %vm291_vm0, %v4122_v53, %v9813_v6 }
 0x3d7   :  { %v3911_v13 = vadd.f32 %v13513_v19, %v3843_v45  ;;  %v9846_v17 = vpop.permute.xlu1 %9845  ;;  %v13649_v16 = vpop.permute.xlu2 %9880  ;;  %v4203_v45 = vld [vmem:[#allocation2 + $0xf1] sm:$0xff] }
 0x3d8   :  { %v9847_v12 = vunpack.i.l.bf16 %v9846_v17  ;;  %v3481_v57 = vpop.f32.mrf.mxu1  ;;  %v13653_v4 = vpop.f32.mrf.mxu0  ;;  %v9848_v8 = vunpack.i.h.bf16 %v9846_v17  ;;  %v17275_v17 = vld [vmem:[#allocation12_spill] sm:$0xff] }
 0x3d9   :  { %v3975_v49 = vmax.f32 %v3911_v13, 0.0  ;;  %v3482_v36 = vadd.f32 %v3481_v57, %v13209_v44  ;;  %v13659_v39 = vpop.f32.mrf.mxu3  ;;  %v9407_v57 = vunpack.i.l.bf16 %v17275_v17 }
 0x3da   :  { %v4647_v51 = vld [vmem:[#allocation2 + $0xf2] sm:$0xff]  ;;  %v6487_v33 = vsel %vm2678_vm1, %v6423_v28, %v9847_v12  ;;  %17274 = vst [vmem:[#allocation86_spill] sm:$0xff] %v13659_v39  ;;  %3528 = vmatmul.f32.gmra.mxu1 %v2973_v32  ;;  %v4376_v32 = vld [vmem:[#allocation2 + $0x21] sm:$0xff] }
 0x3db   :  { %v4204_v7 = vld [vmem:[#allocation2 + $0xf9] sm:$0xff]  ;;  %4075 = vst.msk [vmem:[#allocation2 + $0x109] sm:$0xff] %vm291_vm0, %v3975_v49  ;;  %v3691_v44 = vadd.f32 %v13534_v21, %v3482_v36  ;;  %6829 = vmatmul.f32.gmra.mxu3 %v6361_v42  ;;  %v6551_v10 = vsel %vm2743_vm2, %v6487_v33, %v9852_v24  ;;  %8749 = vmatmul.msk.f32.gmra.mxu0 %vm291_vm0, %v4647_v51  ;;  %v795_v21 = vld [vmem:[#allocation2 + $0x211] sm:$0xff]  ;;  %v9853_v42 = vunpack.i.h.bf16 %v13579_v9  ;;  %v9857_v9 = vunpack.i.l.bf16 %v13637_v61 }
 0x3dc   :  { %v10069_v13 = vpack.i.bf16 %v4204_v7, %v4203_v45  ;;  %7032 = vmatmul.f32.vlgmr.msrb.gmra.mxu2 %v6551_v10  ;;  %v6424_v24 = vsel %vm291_vm0, %v4376_v32, %v9828_v55  ;;  %v6298_v36 = vsel %vm2678_vm1, %v6234_v40, %v9818_v38  ;;  %v2846_v7 = vsel %vm291_vm0, %v795_v21, %v9407_v57  ;;  %v4329_v21 = vld [vmem:[#allocation2 + $0xf0] sm:$0xff]  ;;  %v13696_v32 = vpop.f32.mrf.mxu2  ;;  %v17332_v39 = vld [vmem:[#allocation45_spill] sm:$0xff] }
 0x3dd   :  { %v3844_v12 = vmul.f32 %v13501_v3, %v3691_v44  ;;  %10060 = vrot.lane.b32.xlu2 %v13591_v63, %s10845_s1  ;;  %v6488_v28 = vsel %vm2678_vm1, %v6424_v24, %v9848_v8  ;;  %v4648_v63 = vld [vmem:[#allocation2 + $0xfa] sm:$0xff]  ;;  %v9408_v55 = vunpack.i.h.bf16 %v17275_v17 }
 0x3de   :  { %10065 = vrot.lane.b32.xlu0 %v10044_v48, %s10843_s24  ;;  %10070 = vrot.lane.b32.xlu1 %v10069_v13, %s10843_s24  ;;  %v9843_v48 = vunpack.i.h.bf16 %v13550_v29  ;;  %v4330_v44 = vld [vmem:[#allocation2 + $0xf8] sm:$0xff]  ;;  %v2910_v29 = vsel %vm2678_vm1, %v2846_v7, %v9567_v46  ;;  %v6552_v57 = vsel %vm2743_vm2, %v6488_v28, %v9853_v42  ;;  %v9568_v46 = vunpack.i.h.bf16 %v12751_v22 }
 0x3df   :  { %v3912_v49 = vadd.f32 %v13513_v19, %v3844_v12  ;;  %v13682_v33 = vpop.permute.xlu2 %9910  ;;  %v13686_v53 = vpop.permute.xlu1 %9875  ;;  %v2974_v8 = vsel %vm2743_vm2, %v2910_v29, %v9727_v14  ;;  %v10079_v24 = vpack.i.bf16 %v4330_v44, %v4329_v21  ;;  %v9728_v22 = vunpack.i.h.bf16 %v13277_v25 }
 0x3e0   :  { %v13676_v6 = vpop.permute.xlu0 %9860  ;;  %v3484_v45 = vpop.f32.mrf.mxu1  ;;  %v6362_v12 = vsel %vm2743_vm2, %v6298_v36, %v9843_v48  ;;  %v9877_v14 = vunpack.i.l.bf16 %v13686_v53  ;;  %v796_v36 = vld [vmem:[#allocation2 + $0x219] sm:$0xff]  ;;  %v9837_v48 = vunpack.i.l.bf16 %v13609_v15 }
 0x3e1   :  { %v3976_v10 = vmax.f32 %v3912_v49, 0.0  ;;  %v3485_v38 = vadd.f32 %v3484_v45, %v13249_v41  ;;  %v13689_v40 = vpop.f32.mrf.mxu0  ;;  %v10074_v41 = vpack.i.bf16 %v4648_v63, %v4647_v51  ;;  %v9832_v49 = vunpack.i.l.bf16 %v13520_v37  ;;  %v13704_v28 = vpop.f32.mrf.mxu3  ;;  %v4377_v51 = vld [vmem:[#allocation2 + $0x31] sm:$0xff] }
 0x3e2   :  { %3531 = vmatmul.f32.gmra.mxu1 %v2974_v8  ;;  %17276 = vst [vmem:[#allocation12_spill] sm:$0xff] %v13704_v28  ;;  %v2847_v7 = vsel %vm291_vm0, %v796_v36, %v9408_v55  ;;  %v6425_v44 = vsel %vm291_vm0, %v4377_v51, %v9857_v9  ;;  %v9858_v36 = vunpack.i.h.bf16 %v13637_v61  ;;  %v4205_v51 = vld [vmem:[#allocation2 + $0x109] sm:$0xff]  ;;  %v9833_v61 = vunpack.i.h.bf16 %v13520_v37 }
 0x3e3   :  { %4076 = vst.msk [vmem:[#allocation2 + $0x111] sm:$0xff] %vm291_vm0, %v3976_v10  ;;  %v3694_v17 = vadd.f32 %v13564_v54, %v3485_v38  ;;  %6832 = vmatmul.f32.gmra.mxu3 %v6362_v12  ;;  %8750 = vmatmul.msk.f32.gmra.mxu0 %vm291_vm0, %v4648_v63  ;;  %v4123_v63 = vld [vmem:[#allocation2 + $0x30] sm:$0xff]  ;;  %v2911_v8 = vsel %vm2678_vm1, %v2847_v7, %v9568_v46  ;;  %v9882_v12 = vunpack.i.l.bf16 %v13649_v16  ;;  %v9572_v7 = vunpack.i.l.bf16 %v12681_v26 }
 0x3e4   :  { %7035 = vmatmul.f32.gmra.mxu2 %v6552_v57  ;;  %v6235_v25 = vsel %vm291_vm0, %v4123_v63, %v9832_v49  ;;  %v797_v63 = vld [vmem:[#allocation2 + $0x229] sm:$0xff] }
 0x3e5   :  { %v3845_v54 = vmul.f32 %v13501_v3, %v3694_v17  ;;  %10090 = vrot.lane.b32.xlu2 %v10069_v13, %s10845_s1  ;;  %v6489_v13 = vsel %vm2678_vm1, %v6425_v44, %v9877_v14  ;;  %v6299_v9 = vsel %vm2678_vm1, %v6235_v25, %v9837_v48  ;;  %v9412_v17 = vunpack.i.l.bf16 %v12383_v52  ;;  %v13741_v44 = vpop.f32.mrf.mxu2 }
 0x3e6   :  { %10075 = vrot.lane.b32.xlu0 %v10074_v41, %s10844_s16  ;;  %10080 = vrot.lane.b32.xlu1 %v10079_v24, %s10845_s1 }
 0x3e7   :  { %v3913_v42 = vadd.f32 %v13513_v19, %v3845_v54  ;;  %v13718_v38 = vpop.permute.xlu2 %9920  ;;  %v2975_v54 = vsel %vm2743_vm2, %v2911_v8, %v9728_v22  ;;  %v9878_v22 = vunpack.i.h.bf16 %v13686_v53  ;;  %v4378_v53 = vld [vmem:[#allocation2 + $0x39] sm:$0xff] }
 0x3e8   :  { %v13713_v45 = vpop.permute.xlu0 %9870  ;;  %v3487_v29 = vpop.f32.mrf.mxu1 }
 0x3e9   :  { %v9872_v10 = vunpack.i.l.bf16 %v13713_v45  ;;  %v3977_v57 = vmax.f32 %v3913_v42, 0.0  ;;  %v3488_v21 = vadd.f32 %v3487_v29, %v13287_v56  ;;  %v13725_v55 = vpop.f32.mrf.mxu0  ;;  %v6553_v56 = vsel %vm2743_vm2, %v6489_v13, %v9882_v12  ;;  %v13751_v8 = vpop.f32.mrf.mxu3  ;;  %v4124_v12 = vld [vmem:[#allocation2 + $0x38] sm:$0xff] }
 0x3ea   :  { %v4649_v49 = vld [vmem:[#allocation2 + $0x10a] sm:$0xff]  ;;  %3534 = vmatmul.f32.gmra.mxu1 %v2975_v54  ;;  %v9732_v29 = vunpack.i.l.bf16 %v13310_v43  ;;  %v9873_v37 = vunpack.i.h.bf16 %v13713_v45  ;;  %17277 = vst [vmem:[#allocation87_spill] sm:$0xff] %v13751_v8  ;;  %v4650_v54 = vld [vmem:[#allocation2 + $0x112] sm:$0xff] }
 0x3eb   :  { %v6363_v46 = vsel %vm2743_vm2, %v6299_v9, %v9872_v10  ;;  %v4206_v14 = vld [vmem:[#allocation2 + $0x111] sm:$0xff]  ;;  %4077 = vst.msk [vmem:[#allocation2 + $0x121] sm:$0xff] %vm291_vm0, %v3977_v57  ;;  %v3697_v42 = vadd.f32 %v13603_v20, %v3488_v21  ;;  %8751 = vmatmul.msk.f32.gmra.mxu0 %vm291_vm0, %v4649_v49  ;;  %v9838_v20 = vunpack.i.h.bf16 %v13609_v15  ;;  %v6236_v9 = vsel %vm291_vm0, %v4124_v12, %v9833_v61 }
 0x3ec   :  { %6835 = vmatmul.f32.gmra.mxu3 %v6363_v46  ;;  %v13735_v48 = vpack.i.bf16 %v4206_v14, %v4205_v51  ;;  %7038 = vmatmul.f32.gmra.mxu2 %v6553_v56  ;;  %v9883_v51 = vunpack.i.h.bf16 %v13649_v16 }
 0x3ed   :  { %v3846_v10 = vmul.f32 %v13501_v3, %v3697_v42 }
 0x3ee   :  { %10095 = vrot.lane.b32.xlu0 %v10074_v41, %s10843_s24  ;;  %10085 = vrot.lane.b32.xlu1 %v10079_v24, %s10844_s16  ;;  %v2848_v41 = vsel %vm291_vm0, %v797_v63, %v9412_v17  ;;  %v6426_v24 = vsel %vm291_vm0, %v4378_v53, %v9858_v36  ;;  %v6300_v17 = vsel %vm2678_vm1, %v6236_v9, %v9838_v20  ;;  %v4332_v36 = vld [vmem:[#allocation2 + $0x110] sm:$0xff]  ;;  %v9413_v63 = vunpack.i.h.bf16 %v12383_v52  ;;  %v4331_v53 = vld [vmem:[#allocation2 + $0x108] sm:$0xff] }
 0x3ef   :  { %10100 = vrot.lane.b32.xlu2 %v13735_v48, %s10843_s24  ;;  %v3914_v25 = vadd.f32 %v13513_v19, %v3846_v10  ;;  %v13756_v15 = vpop.permute.xlu1 %9890  ;;  %v13760_v57 = vpop.permute.xlu2 %9930  ;;  %v2912_v21 = vsel %vm2678_vm1, %v2848_v41, %v9572_v7  ;;  %v6490_v46 = vsel %vm2678_vm1, %v6426_v24, %v9878_v22  ;;  %v9862_v10 = vunpack.i.l.bf16 %v13676_v6 }
 0x3f0   :  { %v13754_v13 = vpop.permute.xlu0 %9885  ;;  %v3490_v45 = vpop.f32.mrf.mxu1  ;;  %v2976_v7 = vsel %vm2743_vm2, %v2912_v21, %v9732_v29  ;;  %v6364_v61 = vsel %vm2743_vm2, %v6300_v17, %v9873_v37  ;;  %v10124_v22 = vpack.i.bf16 %v4650_v54, %v4649_v49  ;;  %v9573_v20 = vunpack.i.h.bf16 %v12681_v26 }
 0x3f1   :  { %v3978_v14 = vmax.f32 %v3914_v25, 0.0  ;;  %v3491_v42 = vadd.f32 %v3490_v45, %v13322_v47  ;;  %v13767_v56 = vpop.f32.mrf.mxu0  ;;  %v6554_v47 = vsel %vm2743_vm2, %v6490_v46, %v9883_v51  ;;  %v10109_v52 = vpack.i.bf16 %v4332_v36, %v4331_v53  ;;  %v798_v25 = vld [vmem:[#allocation2 + $0x231] sm:$0xff]  ;;  %v13785_v41 = vpop.f32.mrf.mxu2 }
 0x3f2   :  { %3537 = vmatmul.f32.gmra.mxu1 %v2976_v7  ;;  %v9733_v37 = vunpack.i.h.bf16 %v13310_v43  ;;  %v9867_v26 = vunpack.i.l.bf16 %v13613_v5  ;;  %v2849_v21 = vsel %vm291_vm0, %v798_v25, %v9413_v63  ;;  %v9863_v51 = vunpack.i.h.bf16 %v13676_v6 }
 0x3f3   :  { %4078 = vst.msk [vmem:[#allocation2 + $0x129] sm:$0xff] %vm291_vm0, %v3978_v14  ;;  %v3700_v16 = vadd.f32 %v13644_v31, %v3491_v42  ;;  %8752 = vmatmul.msk.f32.gmra.mxu0 %vm291_vm0, %v4650_v54  ;;  %v4125_v31 = vld [vmem:[#allocation2 + $0x48] sm:$0xff]  ;;  %v2913_v43 = vsel %vm2678_vm1, %v2849_v21, %v9573_v20  ;;  %v9577_v6 = vunpack.i.l.bf16 %v12739_v18  ;;  %v9737_v25 = vunpack.i.l.bf16 %v13343_v11 }
 0x3f4   :  { %6838 = vmatmul.f32.gmra.mxu3 %v6364_v61  ;;  %7041 = vmatmul.f32.gmra.mxu2 %v6554_v47  ;;  %v6237_v49 = vsel %vm291_vm0, %v4125_v31, %v9862_v10  ;;  %v9417_v10 = vunpack.i.l.bf16 %v12432_v27  ;;  %v2977_v7 = vsel %vm2743_vm2, %v2913_v43, %v9733_v37  ;;  %v799_v20 = vld [vmem:[#allocation2 + $0x241] sm:$0xff]  ;;  %v9887_v31 = vunpack.i.l.bf16 %v13754_v13 }
 0x3f5   :  { %v3847_v29 = vmul.f32 %v13501_v3, %v3700_v16  ;;  %v6301_v36 = vsel %vm2678_vm1, %v6237_v49, %v9867_v26  ;;  %v4207_v16 = vld [vmem:[#allocation2 + $0x121] sm:$0xff]  ;;  %v9868_v49 = vunpack.i.h.bf16 %v13613_v5  ;;  %v9418_v21 = vunpack.i.h.bf16 %v12432_v27 }
 0x3f6   :  { %10125 = vrot.lane.b32.xlu0 %v10124_v22, %s10843_s24  ;;  %10105 = vrot.lane.b32.xlu1 %v10124_v22, %s10844_s16  ;;  %v13803_v22 = vpop.f32.mrf.mxu3  ;;  %v9888_v27 = vunpack.i.h.bf16 %v13754_v13 }
 0x3f7   :  { %10110 = vrot.lane.b32.xlu2 %v10109_v52, %s10845_s1  ;;  %v3915_v12 = vadd.f32 %v13513_v19, %v3847_v29  ;;  %v9901_v45 = vpop.permute.xlu1 %9900  ;;  %v13792_v54 = vpop.permute.xlu2 %9940  ;;  %17278 = vst [vmem:[#allocation88_spill] sm:$0xff] %v13803_v22  ;;  %v4126_v29 = vld [vmem:[#allocation2 + $0x50] sm:$0xff] }
 0x3f8   :  { %v13789_v24 = vpop.permute.xlu0 %9895  ;;  %v9902_v9 = vunpack.i.l.bf16 %v9901_v45  ;;  %v3493_v46 = vpop.f32.mrf.mxu1  ;;  %v9903_v26 = vunpack.i.h.bf16 %v9901_v45 }
 0x3f9   :  { %v3979_v14 = vmax.f32 %v3915_v12, 0.0  ;;  %v3494_v42 = vadd.f32 %v3493_v46, %v13367_v62  ;;  %v13797_v17 = vpop.f32.mrf.mxu0  ;;  %v2850_v12 = vsel %vm291_vm0, %v799_v20, %v9417_v10  ;;  %v9897_v20 = vunpack.i.l.bf16 %v13789_v24 }
 0x3fa   :  { %v6365_v63 = vsel %vm2743_vm2, %v6301_v36, %v9902_v9  ;;  %v4651_v61 = vld [vmem:[#allocation2 + $0x122] sm:$0xff]  ;;  %3540 = vmatmul.f32.gmra.mxu1 %v2977_v7  ;;  %v2914_v43 = vsel %vm2678_vm1, %v2850_v12, %v9577_v6 }
 0x3fb   :  { %v4208_v47 = vld [vmem:[#allocation2 + $0x129] sm:$0xff]  ;;  %4079 = vst.msk [vmem:[#allocation2 + $0x139] sm:$0xff] %vm291_vm0, %v3979_v14  ;;  %v3703_v62 = vadd.f32 %v13696_v32, %v3494_v42  ;;  %8753 = vmatmul.msk.f32.gmra.mxu0 %vm291_vm0, %v4651_v61  ;;  %v6238_v32 = vsel %vm291_vm0, %v4126_v29, %v9863_v51  ;;  %v9912_v14 = vunpack.i.l.bf16 %v13682_v33  ;;  %v2978_v45 = vsel %vm2743_vm2, %v2914_v43, %v9737_v25 }
 0x3fc   :  { %6841 = vmatmul.f32.gmra.mxu3 %v6365_v63  ;;  %v13808_v53 = vpack.i.bf16 %v4208_v47, %v4207_v16  ;;  %v4379_v36 = vld [vmem:[#allocation2 + $0x49] sm:$0xff] }
 0x3fd   :  { %v3848_v37 = vmul.f32 %v13501_v3, %v3703_v62  ;;  %v4524_v10 = vld [vmem:[#allocation2 + $0x128] sm:$0xff]  ;;  %v6427_v6 = vsel %vm291_vm0, %v4379_v36, %v9887_v31  ;;  %v9892_v62 = vunpack.i.l.bf16 %v13756_v15 }
 0x3fe   :  { %10115 = vrot.lane.b32.xlu1 %v10109_v52, %s10844_s16  ;;  %10130 = vrot.lane.b32.xlu0 %v13808_v53, %s10843_s24  ;;  %v4652_v47 = vld [vmem:[#allocation2 + $0x12a] sm:$0xff]  ;;  %v13848_v43 = vpop.f32.mrf.mxu3 }
 0x3ff   :  { %10120 = vrot.lane.b32.xlu2 %v13735_v48, %s10845_s1  ;;  %v3916_v9 = vadd.f32 %v13513_v19, %v3848_v37  ;;  %v9906_v52 = vpop.permute.xlu1 %9905  ;;  %v13828_v42 = vpop.permute.xlu2 %9955  ;;  %v6302_v48 = vsel %vm2678_vm1, %v6238_v32, %v9868_v49  ;;  %v4523_v37 = vld [vmem:[#allocation2 + $0x120] sm:$0xff]  ;;  %v9578_v49 = vunpack.i.h.bf16 %v12739_v18  ;;  %17279 = vst [vmem:[#allocation89_spill] sm:$0xff] %v13848_v43 }
 0x400   :  { %v13824_v46 = vpop.permute.xlu0 %9915  ;;  %v9907_v51 = vunpack.i.l.bf16 %v9906_v52  ;;  %v3496_v5 = vpop.f32.mrf.mxu1  ;;  %v6366_v25 = vsel %vm2743_vm2, %v6302_v48, %v9903_v26  ;;  %v10144_v31 = vpack.i.bf16 %v4524_v10, %v4523_v37  ;;  %v9908_v12 = vunpack.i.h.bf16 %v9906_v52  ;;  %v4380_v52 = vld [vmem:[#allocation2 + $0x51] sm:$0xff] }
 0x401   :  { %v3980_v7 = vmax.f32 %v3916_v9, 0.0  ;;  %v3497_v63 = vadd.f32 %v3496_v5, %v13409_v1  ;;  %v13834_v16 = vpop.f32.mrf.mxu0  ;;  %v13841_v32 = vpop.f32.mrf.mxu2  ;;  %v10134_v26 = vpack.i.bf16 %v4652_v47, %v4651_v61  ;;  %v800_v9 = vld [vmem:[#allocation2 + $0x249] sm:$0xff]  ;;  %v6428_v10 = vsel %vm291_vm0, %v4380_v52, %v9888_v27 }
 0x402   :  { %v6491_v29 = vsel %vm2678_vm1, %v6427_v6, %v9907_v51  ;;  %3543 = vmatmul.f32.gmra.mxu1 %v2978_v45  ;;  %v2851_v48 = vsel %vm291_vm0, %v800_v9, %v9418_v21  ;;  %v9893_v27 = vunpack.i.h.bf16 %v13756_v15  ;;  %v4209_v9 = vld [vmem:[#allocation2 + $0x139] sm:$0xff] }
 0x403   :  { %4080 = vst.msk [vmem:[#allocation2 + $0x141] sm:$0xff] %vm291_vm0, %v3980_v7  ;;  %v3706_v1 = vadd.f32 %v13741_v44, %v3497_v63  ;;  %v6555_v13 = vsel %vm2743_vm2, %v6491_v29, %v9912_v14  ;;  %8754 = vmatmul.msk.f32.gmra.mxu0 %vm291_vm0, %v4652_v47  ;;  %v4127_v44 = vld [vmem:[#allocation2 + $0x60] sm:$0xff]  ;;  %v9738_v14 = vunpack.i.h.bf16 %v13343_v11  ;;  %v9422_v7 = vunpack.i.l.bf16 %v12386_v0  ;;  %v17280_v15 = vld [vmem:[#allocation69_spill] sm:$0xff] }
 0x404   :  { %6844 = vmatmul.f32.gmra.mxu3 %v6366_v25  ;;  %7044 = vmatmul.f32.gmra.mxu2 %v6555_v13  ;;  %v6239_v18 = vsel %vm291_vm0, %v4127_v44, %v9892_v62  ;;  %v9932_v11 = vunpack.i.l.bf16 %v13760_v57  ;;  %v2915_v6 = vsel %vm2678_vm1, %v2851_v48, %v9578_v49  ;;  %v6492_v62 = vsel %vm2678_vm1, %v6428_v10, %v9908_v12  ;;  %v801_v44 = vld [vmem:[#allocation2 + $0x259] sm:$0xff] }
 0x405   :  { %v3849_v51 = vmul.f32 %v13501_v3, %v3706_v1  ;;  %v6303_v36 = vsel %vm2678_vm1, %v6239_v18, %v9897_v20  ;;  %v9582_v25 = vunpack.i.l.bf16 %v12769_v35  ;;  %v9913_v29 = vunpack.i.h.bf16 %v13682_v33 }
 0x406   :  { %10145 = vrot.lane.b32.xlu1 %v10144_v31, %s10844_s16  ;;  %10140 = vrot.lane.b32.xlu0 %v10144_v31, %s10845_s1  ;;  %v9898_v1 = vunpack.i.h.bf16 %v13789_v24  ;;  %v2979_v13 = vsel %vm2743_vm2, %v2915_v6, %v9738_v14  ;;  %v6367_v31 = vsel %vm2743_vm2, %v6303_v36, %v9932_v11  ;;  %v9742_v18 = vunpack.i.l.bf16 %v17280_v15  ;;  %v13894_v36 = vpop.f32.mrf.mxu3 }
 0x407   :  { %10135 = vrot.lane.b32.xlu2 %v10134_v26, %s10844_s16  ;;  %v3917_v5 = vadd.f32 %v13513_v19, %v3849_v51  ;;  %v13859_v45 = vpop.permute.xlu1 %9925  ;;  %v13866_v63 = vpop.permute.xlu2 %9970  ;;  %v9917_v14 = vunpack.i.l.bf16 %v13824_v46  ;;  %17281 = vst [vmem:[#allocation69_spill] sm:$0xff] %v13894_v36 }
 0x408   :  { %v13857_v61 = vpop.permute.xlu0 %9945  ;;  %v3499_v47 = vpop.f32.mrf.mxu1 }
 0x409   :  { %v3981_v21 = vmax.f32 %v3917_v5, 0.0  ;;  %v3500_v20 = vadd.f32 %v3499_v47, %v13444_v59  ;;  %v13873_v37 = vpop.f32.mrf.mxu0  ;;  %v6556_v59 = vsel %vm2743_vm2, %v6492_v62, %v9913_v29  ;;  %v13884_v24 = vpop.f32.mrf.mxu2  ;;  %v2852_v5 = vsel %vm291_vm0, %v801_v44, %v9422_v7 }
 0x40a   :  { %v4653_v49 = vld [vmem:[#allocation2 + $0x13a] sm:$0xff]  ;;  %3546 = vmatmul.f32.gmra.mxu1 %v2979_v13  ;;  %v2916_v6 = vsel %vm2678_vm1, %v2852_v5, %v9582_v25  ;;  %v4654_v62 = vld [vmem:[#allocation2 + $0x142] sm:$0xff]  ;;  %v9423_v29 = vunpack.i.h.bf16 %v12386_v0  ;;  %v9918_v0 = vunpack.i.h.bf16 %v13824_v46  ;;  %v9583_v5 = vunpack.i.h.bf16 %v12769_v35 }
 0x40b   :  { %v4210_v12 = vld [vmem:[#allocation2 + $0x141] sm:$0xff]  ;;  %4081 = vst.msk [vmem:[#allocation2 + $0x151] sm:$0xff] %vm291_vm0, %v3981_v21  ;;  %v3709_v33 = vadd.f32 %v13785_v41, %v3500_v20  ;;  %8755 = vmatmul.msk.f32.gmra.mxu0 %vm291_vm0, %v4653_v49  ;;  %v10164_v44 = vpack.i.bf16 %v4654_v62, %v4653_v49  ;;  %v9927_v49 = vunpack.i.l.bf16 %v13859_v45  ;;  %v4382_v35 = vld [vmem:[#allocation2 + $0x69] sm:$0xff] }
 0x40c   :  { %6847 = vmatmul.f32.gmra.mxu3 %v6367_v31  ;;  %v10159_v51 = vpack.i.bf16 %v4210_v12, %v4209_v9  ;;  %7047 = vmatmul.f32.gmra.mxu2 %v6556_v59  ;;  %v4128_v41 = vld [vmem:[#allocation2 + $0x68] sm:$0xff]  ;;  %v4336_v31 = vld [vmem:[#allocation2 + $0x140] sm:$0xff]  ;;  %v9942_v9 = vunpack.i.l.bf16 %v13792_v54 }
 0x40d   :  { %v3850_v52 = vmul.f32 %v13501_v3, %v3709_v33  ;;  %v6240_v48 = vsel %vm291_vm0, %v4128_v41, %v9893_v27  ;;  %v2980_v27 = vsel %vm2743_vm2, %v2916_v6, %v9742_v18  ;;  %v4381_v13 = vld [vmem:[#allocation2 + $0x61] sm:$0xff] }
 0x40e   :  { %10155 = vrot.lane.b32.xlu0 %v10134_v26, %s10843_s24  ;;  %10160 = vrot.lane.b32.xlu1 %v10159_v51, %s10843_s24  ;;  %v6304_v26 = vsel %vm2678_vm1, %v6240_v48, %v9898_v1  ;;  %v6429_v1 = vsel %vm291_vm0, %v4381_v13, %v9917_v14  ;;  %v9922_v14 = vunpack.i.l.bf16 %v13718_v38  ;;  %v802_v48 = vld [vmem:[#allocation2 + $0x261] sm:$0xff] }
 0x40f   :  { %10150 = vrot.lane.b32.xlu2 %v13808_v53, %s10845_s1  ;;  %v3918_v10 = vadd.f32 %v13513_v19, %v3850_v52  ;;  %v9936_v11 = vpop.permute.xlu1 %9935  ;;  %v9933_v53 = vunpack.i.h.bf16 %v13760_v57  ;;  %v13903_v7 = vpop.permute.xlu2 %10000  ;;  %v4335_v52 = vld [vmem:[#allocation2 + $0x138] sm:$0xff] }
 0x410   :  { %v13897_v47 = vpop.permute.xlu0 %9950  ;;  %v9937_v21 = vunpack.i.l.bf16 %v9936_v11  ;;  %v3502_v20 = vpop.f32.mrf.mxu1  ;;  %v10169_v41 = vpack.i.bf16 %v4336_v31, %v4335_v52  ;;  %v9938_v46 = vunpack.i.h.bf16 %v9936_v11  ;;  %v9943_v31 = vunpack.i.h.bf16 %v13792_v54 }
 0x411   :  { %v3982_v12 = vmax.f32 %v3918_v10, 0.0  ;;  %v3503_v25 = vadd.f32 %v3502_v20, %v13488_v60  ;;  %v13908_v33 = vpop.f32.mrf.mxu0  ;;  %v6368_v57 = vsel %vm2743_vm2, %v6304_v26, %v9933_v53  ;;  %v13926_v6 = vpop.f32.mrf.mxu2  ;;  %v2853_v53 = vsel %vm291_vm0, %v802_v48, %v9423_v29  ;;  %v17285_v48 = vld [vmem:[#allocation29_spill] sm:$0xff] }
 0x412   :  { %v6493_v59 = vsel %vm2678_vm1, %v6429_v1, %v9937_v21  ;;  %3549 = vmatmul.f32.gmra.mxu1 %v2980_v27  ;;  %v6430_v21 = vsel %vm291_vm0, %v4382_v35, %v9918_v0  ;;  %v9947_v0 = vunpack.i.l.bf16 %v13857_v61  ;;  %v803_v35 = vld [vmem:[#allocation2 + $0x271] sm:$0xff] }
 0x413   :  { %4082 = vst.msk [vmem:[#allocation2 + $0x159] sm:$0xff] %vm291_vm0, %v3982_v12  ;;  %v3712_v18 = vadd.f32 %v13841_v32, %v3503_v25  ;;  %v6557_v60 = vsel %vm2743_vm2, %v6493_v59, %v9942_v9  ;;  %8756 = vmatmul.msk.f32.gmra.mxu0 %vm291_vm0, %v4654_v62  ;;  %v9743_v32 = vunpack.i.h.bf16 %v17280_v15  ;;  %v17282_v25 = vld [vmem:[#allocation22_spill] sm:$0xff] }
 0x414   :  { %6850 = vmatmul.f32.gmra.mxu3 %v6368_v57  ;;  %7050 = vmatmul.f32.gmra.mxu2 %v6557_v60  ;;  %v9427_v1 = vunpack.i.l.bf16 %v17282_v25  ;;  %v4211_v60 = vld [vmem:[#allocation2 + $0x151] sm:$0xff] }
 0x415   :  { %v3851_v10 = vmul.f32 %v13501_v3, %v3712_v18  ;;  %v4129_v3 = vld [vmem:[#allocation2 + $0x78] sm:$0xff] }
 0x416   :  { %10165 = vrot.lane.b32.xlu0 %v10164_v44, %s10844_s16  ;;  %10170 = vrot.lane.b32.xlu1 %v10169_v41, %s10845_s1  ;;  %v6241_v13 = vsel %vm291_vm0, %v4129_v3, %v9922_v14  ;;  %v13950_v14 = vpop.f32.mrf.mxu3 }
 0x417   :  { %10180 = vrot.lane.b32.xlu2 %v10159_v51, %s10845_s1  ;;  %v3919_v11 = vadd.f32 %v13513_v19, %v3851_v10  ;;  %v13929_v26 = vpop.permute.xlu1 %9965  ;;  %v13936_v27 = vpop.permute.xlu2 %10010  ;;  %v2917_v51 = vsel %vm2678_vm1, %v2853_v53, %v9583_v5  ;;  %v6494_v19 = vsel %vm2678_vm1, %v6430_v21, %v9938_v46  ;;  %v6305_v29 = vsel %vm2678_vm1, %v6241_v13, %v9927_v49  ;;  %v4383_v21 = vld [vmem:[#allocation2 + $0x79] sm:$0xff] }
 0x418   :  { %v13931_v62 = vpop.permute.xlu0 %9960  ;;  %v3505_v15 = vpop.f32.mrf.mxu1  ;;  %v2981_v59 = vsel %vm2743_vm2, %v2917_v51, %v9743_v32  ;;  %17284 = vst [vmem:[#allocation90_spill] sm:$0xff] %v13950_v14  ;;  %v6558_v54 = vsel %vm2743_vm2, %v6494_v19, %v9943_v31  ;;  %v9587_v49 = vunpack.i.l.bf16 %v17285_v48  ;;  %v9923_v10 = vunpack.i.h.bf16 %v13718_v38  ;;  %v4130_v51 = vld [vmem:[#allocation2 + $0x80] sm:$0xff] }
 0x419   :  { %v9962_v20 = vunpack.i.l.bf16 %v13931_v62  ;;  %v3983_v9 = vmax.f32 %v3919_v11, 0.0  ;;  %v3506_v12 = vadd.f32 %v3505_v15, %v13538_v30  ;;  %v13946_v57 = vpop.f32.mrf.mxu0  ;;  %v9967_v32 = vunpack.i.l.bf16 %v13929_v26 }
 0x41a   :  { %17283 = vst [vmem:[#allocation22_spill] sm:$0xff] %v13946_v57  ;;  %v4655_v18 = vld [vmem:[#allocation2 + $0x152] sm:$0xff]  ;;  %3552 = vmatmul.f32.gmra.mxu1 %v2981_v59  ;;  %v9928_v11 = vunpack.i.h.bf16 %v13859_v45  ;;  %v9747_v38 = vunpack.i.l.bf16 %v13350_v50  ;;  %v9963_v3 = vunpack.i.h.bf16 %v13931_v62  ;;  %v13977_v45 = vld [vmem:[%s17000_s4] ss:$0 sm:$0xff]  ;;  %v6431_v62 = vsel %vm291_vm0, %v4383_v21, %v9947_v0  ;;  %v17337_v57 = vld [vmem:[#allocation47_spill] sm:$0xff] }
 0x41b   :  { %v6369_v52 = vsel %vm2743_vm2, %v6305_v29, %v9962_v20  ;;  %v4212_v5 = vld [vmem:[#allocation2 + $0x159] sm:$0xff]  ;;  %4083 = vst.msk [vmem:[#allocation2 + $0x169] sm:$0xff] %vm291_vm0, %v3983_v9  ;;  %v3715_v30 = vadd.f32 %v13884_v24, %v3506_v12  ;;  %8757 = vmatmul.msk.f32.gmra.mxu0 %vm291_vm0, %v4655_v18  ;;  %v9428_v13 = vunpack.i.h.bf16 %v17282_v25  ;;  %v6242_v12 = vsel %vm291_vm0, %v4130_v51, %v9923_v10  ;;  %v3720_v10 = vpop.f32.mrf.mxu2 }
 0x41c   :  { %6853 = vmatmul.f32.gmra.mxu3 %v6369_v52  ;;  %v13955_v46 = vpack.i.bf16 %v4212_v5, %v4211_v60  ;;  %7053 = vmatmul.f32.gmra.mxu2 %v6558_v54  ;;  %v13965_v24 = vld [vmem:[%s16999_s3] ss:$0 sm:$0xff]  ;;  %v6495_v59 = vsel %vm2678_vm1, %v6431_v62, %v9967_v32  ;;  %v9972_v52 = vunpack.i.l.bf16 %v13866_v63  ;;  %v6306_v5 = vsel %vm2678_vm1, %v6242_v12, %v9928_v11  ;;  %v4338_v0 = vld [vmem:[#allocation2 + $0x158] sm:$0xff]  ;;  %v4337_v11 = vld [vmem:[#allocation2 + $0x150] sm:$0xff] }
 0x41d   :  { %v3852_v53 = vmul.f32 %v13965_v24, %v3715_v30  ;;  %v4656_v29 = vld [vmem:[#allocation2 + $0x15a] sm:$0xff]  ;;  %v9948_v25 = vunpack.i.h.bf16 %v13857_v61  ;;  %v9952_v30 = vunpack.i.l.bf16 %v13897_v47  ;;  %v9968_v61 = vunpack.i.h.bf16 %v13929_v26 }
 0x41e   :  { %10185 = vrot.lane.b32.xlu0 %v10164_v44, %s10843_s24  ;;  %10175 = vrot.lane.b32.xlu1 %v10169_v41, %s10844_s16  ;;  %v2854_v41 = vsel %vm291_vm0, %v803_v35, %v9427_v1  ;;  %v10214_v35 = vpack.i.bf16 %v4656_v29, %v4655_v18  ;;  %v4131_v18 = vld [vmem:[#allocation2 + $0x90] sm:$0xff]  ;;  %v9957_v51 = vunpack.i.l.bf16 %v13828_v42 }
 0x41f   :  { %10190 = vrot.lane.b32.xlu2 %v13955_v46, %s10843_s24  ;;  %v3920_v20 = vadd.f32 %v13977_v45, %v3852_v53  ;;  %v13982_v44 = vpop.permute.xlu1 %9980  ;;  %v13987_v19 = vpop.permute.xlu2 %10020  ;;  %v2918_v9 = vsel %vm2678_vm1, %v2854_v41, %v9587_v49  ;;  %v6370_v49 = vsel %vm2743_vm2, %v6306_v5, %v9963_v3  ;;  %v9588_v53 = vunpack.i.h.bf16 %v17285_v48  ;;  %v804_v3 = vld [vmem:[#allocation2 + $0x279] sm:$0xff]  ;;  %v4384_v41 = vld [vmem:[#allocation2 + $0x81] sm:$0xff] }
 0x420   :  { %v13980_v15 = vpop.permute.xlu0 %9975  ;;  %v3508_v31 = vpop.f32.mrf.mxu1  ;;  %v2982_v54 = vsel %vm2743_vm2, %v2918_v9, %v9747_v38  ;;  %v10199_v38 = vpack.i.bf16 %v4338_v0, %v4337_v11  ;;  %v9748_v48 = vunpack.i.h.bf16 %v13350_v50  ;;  %v6243_v26 = vsel %vm291_vm0, %v4131_v18, %v9952_v30 }
 0x421   :  { %v3984_v60 = vmax.f32 %v3920_v20, 0.0  ;;  %v3509_v1 = vadd.f32 %v3508_v31, %v13574_v23  ;;  %v6559_v23 = vsel %vm2743_vm2, %v6495_v59, %v9972_v52  ;;  %v14004_v21 = vpop.f32.mrf.mxu0  ;;  %v14007_v20 = vpop.f32.mrf.mxu3  ;;  %v2855_v12 = vsel %vm291_vm0, %v804_v3, %v9428_v13 }
 0x422   :  { %3555 = vmatmul.f32.gmra.mxu1 %v2982_v54  ;;  %17286 = vst [vmem:[#allocation29_spill] sm:$0xff] %v14004_v21  ;;  %v9973_v59 = vunpack.i.h.bf16 %v13866_v63  ;;  %v9953_v0 = vunpack.i.h.bf16 %v13897_v47  ;;  %v6307_v13 = vsel %vm2678_vm1, %v6243_v26, %v9957_v51  ;;  %v4213_v3 = vld [vmem:[#allocation2 + $0x169] sm:$0xff]  ;;  %v9752_v18 = vunpack.i.l.bf16 %v13380_v34  ;;  %v4132_v26 = vld [vmem:[#allocation2 + $0x98] sm:$0xff] }
 0x423   :  { %4084 = vst.msk [vmem:[#allocation2 + $0x171] sm:$0xff] %vm291_vm0, %v3984_v60  ;;  %v3718_v32 = vadd.f32 %v13926_v6, %v3509_v1  ;;  %8758 = vmatmul.msk.f32.gmra.mxu0 %vm291_vm0, %v4656_v29  ;;  %v6432_v29 = vsel %vm291_vm0, %v4384_v41, %v9948_v25  ;;  %v2919_v1 = vsel %vm2678_vm1, %v2855_v12, %v9588_v53  ;;  %v9977_v41 = vunpack.i.l.bf16 %v13980_v15 }
 0x424   :  { %6856 = vmatmul.f32.gmra.mxu3 %v6370_v49  ;;  %7056 = vmatmul.f32.gmra.mxu2 %v6559_v23  ;;  %17287 = vst [vmem:[#allocation91_spill] sm:$0xff] %v14007_v20  ;;  %v6496_v5 = vsel %vm2678_vm1, %v6432_v29, %v9968_v61  ;;  %v17288_v49 = vld [vmem:[#allocation40_spill] sm:$0xff]  ;;  %v2983_v23 = vsel %vm2743_vm2, %v2919_v1, %v9748_v48  ;;  %v3723_v48 = vpop.f32.mrf.mxu2 }
 0x425   :  { %v3853_v6 = vmul.f32 %v13965_v24, %v3718_v32  ;;  %v9432_v25 = vunpack.i.l.bf16 %v17288_v49  ;;  %v17289_v32 = vld [vmem:[#allocation44_spill] sm:$0xff] }
 0x426   :  { %10215 = vrot.lane.b32.xlu0 %v10214_v35, %s10843_s24  ;;  %10195 = vrot.lane.b32.xlu1 %v10214_v35, %s10844_s16  ;;  %v9592_v63 = vunpack.i.l.bf16 %v17289_v32 }
 0x427   :  { %10200 = vrot.lane.b32.xlu2 %v10199_v38, %s10845_s1  ;;  %v3921_v62 = vadd.f32 %v13977_v45, %v3853_v6  ;;  %v14019_v9 = vpop.permute.xlu1 %9990  ;;  %v14025_v52 = vpop.permute.xlu2 %10030  ;;  %v805_v6 = vld [vmem:[#allocation2 + $0x289] sm:$0xff] }
 0x428   :  { %v14017_v31 = vpop.permute.xlu0 %9985  ;;  %v9992_v50 = vunpack.i.l.bf16 %v14019_v9  ;;  %v3511_v60 = vpop.f32.mrf.mxu1  ;;  %v9993_v12 = vunpack.i.h.bf16 %v14019_v9  ;;  %v10002_v9 = vunpack.i.l.bf16 %v13903_v7 }
 0x429   :  { %v3985_v30 = vmax.f32 %v3921_v62, 0.0  ;;  %v3512_v54 = vadd.f32 %v3511_v60, %v13617_v2  ;;  %v6560_v2 = vsel %vm2743_vm2, %v6496_v5, %v9973_v59  ;;  %v9958_v62 = vunpack.i.h.bf16 %v13828_v42  ;;  %v14050_v29 = vpop.f32.mrf.mxu0 }
 0x42a   :  { %v6371_v35 = vsel %vm2743_vm2, %v6307_v13, %v9992_v50  ;;  %v4657_v11 = vld [vmem:[#allocation2 + $0x16a] sm:$0xff]  ;;  %3558 = vmatmul.f32.gmra.mxu1 %v2983_v23  ;;  %17290 = vst [vmem:[#allocation40_spill] sm:$0xff] %v14050_v29  ;;  %v2856_v59 = vsel %vm291_vm0, %v805_v6, %v9432_v25  ;;  %v14055_v50 = vpop.f32.mrf.mxu3  ;;  %v9987_v6 = vunpack.i.l.bf16 %v14017_v31 }
 0x42b   :  { %v4214_v53 = vld [vmem:[#allocation2 + $0x171] sm:$0xff]  ;;  %4085 = vst.msk [vmem:[#allocation2 + $0x181] sm:$0xff] %vm291_vm0, %v3985_v30  ;;  %v3721_v61 = vadd.f32 %v3720_v10, %v3512_v54  ;;  %8759 = vmatmul.msk.f32.gmra.mxu0 %vm291_vm0, %v4657_v11  ;;  %v6244_v10 = vsel %vm291_vm0, %v4132_v26, %v9953_v0  ;;  %v2920_v42 = vsel %vm2678_vm1, %v2856_v59, %v9592_v63  ;;  %v9593_v59 = vunpack.i.h.bf16 %v17289_v32 }
 0x42c   :  { %6859 = vmatmul.f32.gmra.mxu3 %v6371_v35  ;;  %v14038_v47 = vpack.i.bf16 %v4214_v53, %v4213_v3  ;;  %7059 = vmatmul.f32.gmra.mxu2 %v6560_v2  ;;  %17291 = vst [vmem:[#allocation44_spill] sm:$0xff] %v14055_v50  ;;  %v6308_v13 = vsel %vm2678_vm1, %v6244_v10, %v9958_v62  ;;  %v4385_v25 = vld [vmem:[#allocation2 + $0x91] sm:$0xff]  ;;  %v9982_v2 = vunpack.i.l.bf16 %v13982_v44 }
 0x42d   :  { %v3854_v51 = vmul.f32 %v13965_v24, %v3721_v61  ;;  %v4530_v23 = vld [vmem:[#allocation2 + $0x170] sm:$0xff]  ;;  %v17292_v3 = vld [vmem:[#allocation9_spill] sm:$0xff]  ;;  %v6433_v63 = vsel %vm291_vm0, %v4385_v25, %v9977_v41  ;;  %v6372_v26 = vsel %vm2743_vm2, %v6308_v13, %v9993_v12 }
 0x42e   :  { %10205 = vrot.lane.b32.xlu1 %v10199_v38, %s10844_s16  ;;  %10220 = vrot.lane.b32.xlu0 %v14038_v47, %s10843_s24  ;;  %v9433_v38 = vunpack.i.h.bf16 %v17288_v49  ;;  %v9978_v49 = vunpack.i.h.bf16 %v13980_v15  ;;  %v4658_v61 = vld [vmem:[#allocation2 + $0x172] sm:$0xff] }
 0x42f   :  { %10210 = vrot.lane.b32.xlu2 %v13955_v46, %s10845_s1  ;;  %v3922_v60 = vadd.f32 %v13977_v45, %v3854_v51  ;;  %v9996_v5 = vpop.permute.xlu1 %9995  ;;  %v14063_v30 = vpop.permute.xlu2 %10045  ;;  %v2984_v46 = vsel %vm2743_vm2, %v2920_v42, %v9752_v18  ;;  %v4529_v51 = vld [vmem:[#allocation2 + $0x168] sm:$0xff]  ;;  %v806_v42 = vld [vmem:[#allocation2 + $0x291] sm:$0xff] }
 0x430   :  { %v14059_v1 = vpop.permute.xlu0 %10005  ;;  %v9997_v0 = vunpack.i.l.bf16 %v9996_v5  ;;  %v3514_v54 = vpop.f32.mrf.mxu1  ;;  %v10234_v62 = vpack.i.bf16 %v4530_v23, %v4529_v51  ;;  %v9998_v41 = vunpack.i.h.bf16 %v9996_v5  ;;  %v4386_v5 = vld [vmem:[#allocation2 + $0x99] sm:$0xff]  ;;  %v2857_v13 = vsel %vm291_vm0, %v806_v42, %v9433_v38 }
 0x431   :  { %v3986_v35 = vmax.f32 %v3922_v60, 0.0  ;;  %v3515_v53 = vadd.f32 %v3514_v54, %v17292_v3  ;;  %v10224_v60 = vpack.i.bf16 %v4658_v61, %v4657_v11  ;;  %v6434_v23 = vsel %vm291_vm0, %v4386_v5, %v9978_v49 }
 0x432   :  { %v6497_v18 = vsel %vm2678_vm1, %v6433_v63, %v9997_v0  ;;  %3561 = vmatmul.f32.gmra.mxu1 %v2984_v46  ;;  %v9753_v0 = vunpack.i.h.bf16 %v13380_v34  ;;  %v10022_v3 = vunpack.i.l.bf16 %v13987_v19  ;;  %v2921_v63 = vsel %vm2678_vm1, %v2857_v13, %v9593_v59 }
 0x433   :  { %4086 = vst.msk [vmem:[#allocation2 + $0x189] sm:$0xff] %vm291_vm0, %v3986_v35  ;;  %v3724_v10 = vadd.f32 %v3723_v48, %v3515_v53  ;;  %v6561_v15 = vsel %vm2743_vm2, %v6497_v18, %v10002_v9  ;;  %8760 = vmatmul.msk.f32.gmra.mxu0 %vm291_vm0, %v4658_v61  ;;  %v4133_v48 = vld [vmem:[#allocation2 + $0xa8] sm:$0xff]  ;;  %v3726_v9 = vpop.f32.mrf.mxu2  ;;  %v17293_v35 = vld [vmem:[#allocation34_spill] sm:$0xff]  ;;  %v10003_v51 = vunpack.i.h.bf16 %v13903_v7  ;;  %v9983_v49 = vunpack.i.h.bf16 %v13982_v44 }
 0x434   :  { %6862 = vmatmul.f32.gmra.mxu3 %v6372_v26  ;;  %7062 = vmatmul.f32.gmra.mxu2 %v6561_v15  ;;  %v6245_v32 = vsel %vm291_vm0, %v4133_v48, %v9982_v2  ;;  %v9437_v34 = vunpack.i.l.bf16 %v17293_v35  ;;  %v6498_v2 = vsel %vm2678_vm1, %v6434_v23, %v9998_v41  ;;  %v17294_v26 = vld [vmem:[#allocation38_spill] sm:$0xff]  ;;  %v9988_v15 = vunpack.i.h.bf16 %v14017_v31 }
 0x435   :  { %v3855_v12 = vmul.f32 %v13965_v24, %v3724_v10  ;;  %v6309_v25 = vsel %vm2678_vm1, %v6245_v32, %v9987_v6  ;;  %v9597_v18 = vunpack.i.l.bf16 %v17294_v26  ;;  %v17295_v10 = vld [vmem:[#allocation30_spill] sm:$0xff]  ;;  %v2985_v42 = vsel %vm2743_vm2, %v2921_v63, %v9753_v0  ;;  %v14107_v32 = vpop.f32.mrf.mxu3 }
 0x436   :  { %10235 = vrot.lane.b32.xlu1 %v10234_v62, %s10844_s16  ;;  %10230 = vrot.lane.b32.xlu0 %v10234_v62, %s10845_s1  ;;  %v14103_v62 = vpop.f32.mrf.mxu0  ;;  %v4341_v48 = vld [vmem:[#allocation2 + $0x180] sm:$0xff]  ;;  %17297 = vst [vmem:[#allocation34_spill] sm:$0xff] %v14107_v32  ;;  %v6562_v44 = vsel %vm2743_vm2, %v6498_v2, %v10003_v51  ;;  %v10007_v0 = vunpack.i.l.bf16 %v14059_v1 }
 0x437   :  { %10225 = vrot.lane.b32.xlu2 %v10224_v60, %s10844_s16  ;;  %v3923_v54 = vadd.f32 %v13977_v45, %v3855_v12  ;;  %v14087_v11 = vpop.permute.xlu1 %10015  ;;  %v14094_v53 = vpop.permute.xlu2 %10060  ;;  %17296 = vst [vmem:[#allocation9_spill] sm:$0xff] %v14103_v62  ;;  %v6373_v12 = vsel %vm2743_vm2, %v6309_v25, %v10022_v3  ;;  %v807_v31 = vld [vmem:[#allocation2 + $0x2a1] sm:$0xff] }
 0x438   :  { %v14085_v46 = vpop.permute.xlu0 %10035  ;;  %v3517_v61 = vpop.f32.mrf.mxu1  ;;  %v2858_v23 = vsel %vm291_vm0, %v807_v31, %v9437_v34 }
 0x439   :  { %v3987_v38 = vmax.f32 %v3923_v54, 0.0  ;;  %v3518_v6 = vadd.f32 %v3517_v61, %v17295_v10  ;;  %v17298_v54 = vld [vmem:[#allocation70_spill] sm:$0xff]  ;;  %v9438_v61 = vunpack.i.h.bf16 %v17293_v35 }
 0x43a   :  { %v4659_v59 = vld [vmem:[#allocation2 + $0x182] sm:$0xff]  ;;  %3564 = vmatmul.f32.gmra.mxu1 %v2985_v42  ;;  %v9757_v13 = vunpack.i.l.bf16 %v17298_v54  ;;  %v4597_v10 = vld [vmem:[#allocation2 + $0x199] sm:$0xff]  ;;  %v9598_v42 = vunpack.i.h.bf16 %v17294_v26 }
 0x43b   :  { %v4342_v41 = vld [vmem:[#allocation2 + $0x188] sm:$0xff]  ;;  %4087 = vst.msk [vmem:[#allocation2 + $0x1c9] sm:$0xff] %vm291_vm0, %v3987_v38  ;;  %v3727_v7 = vadd.f32 %v3726_v9, %v3518_v6  ;;  %8761 = vmatmul.msk.f32.gmra.mxu0 %vm291_vm0, %v4659_v59  ;;  %v4134_v9 = vld [vmem:[#allocation2 + $0xb0] sm:$0xff]  ;;  %v2922_v38 = vsel %vm2678_vm1, %v2858_v23, %v9597_v18  ;;  %v17299_v18 = vld [vmem:[#allocation18_spill] sm:$0xff] }
 0x43c   :  { %6865 = vmatmul.f32.gmra.mxu3 %v6373_v12  ;;  %v10249_v5 = vpack.i.bf16 %v4342_v41, %v4341_v48  ;;  %7065 = vmatmul.f32.gmra.mxu2 %v6562_v44  ;;  %v6246_v3 = vsel %vm291_vm0, %v4134_v9, %v9983_v49  ;;  %v4598_v6 = vld [vmem:[#allocation2 + $0x1a1] sm:$0xff]  ;;  %v2986_v35 = vsel %vm2743_vm2, %v2922_v38, %v9757_v13  ;;  %v4660_v48 = vld [vmem:[#allocation2 + $0x18a] sm:$0xff]  ;;  %v17300_v23 = vld [vmem:[#allocation49_spill] sm:$0xff] }
 0x43d   :  { %v3856_v25 = vmul.f32 %v13965_v24, %v3727_v7  ;;  %v4387_v41 = vld [vmem:[#allocation2 + $0xa9] sm:$0xff]  ;;  %v10032_v7 = vunpack.i.l.bf16 %v14025_v52  ;;  %v10264_v9 = vpack.i.bf16 %v4598_v6, %v4597_v10  ;;  %v10017_v10 = vunpack.i.l.bf16 %v14087_v11 }
 0x43e   :  { %10245 = vrot.lane.b32.xlu0 %v10224_v60, %s10843_s24  ;;  %10250 = vrot.lane.b32.xlu1 %v10249_v5, %s10845_s1  ;;  %v6310_v60 = vsel %vm2678_vm1, %v6246_v3, %v9988_v15  ;;  %v6435_v15 = vsel %vm291_vm0, %v4387_v41, %v10007_v0  ;;  %v808_v38 = vld [vmem:[#allocation2 + $0x2a9] sm:$0xff]  ;;  %v14142_v0 = vpop.f32.mrf.mxu0 }
 0x43f   :  { %10240 = vrot.lane.b32.xlu2 %v14038_v47, %s10845_s1  ;;  %v3924_v63 = vadd.f32 %v13977_v45, %v3856_v25  ;;  %v10026_v2 = vpop.permute.xlu1 %10025  ;;  %v10023_v47 = vunpack.i.h.bf16 %v13987_v19  ;;  %v14129_v12 = vpop.permute.xlu2 %10090  ;;  %v10008_v25 = vunpack.i.h.bf16 %v14059_v1  ;;  %17301 = vst [vmem:[#allocation38_spill] sm:$0xff] %v14142_v0 }
 0x440   :  { %v14123_v51 = vpop.permute.xlu0 %10040  ;;  %v10027_v34 = vunpack.i.l.bf16 %v10026_v2  ;;  %v3520_v49 = vpop.f32.mrf.mxu1  ;;  %v10028_v1 = vunpack.i.h.bf16 %v10026_v2  ;;  %v4388_v2 = vld [vmem:[#allocation2 + $0xb1] sm:$0xff] }
 0x441   :  { %v3988_v44 = vmax.f32 %v3924_v63, 0.0  ;;  %v3521_v31 = vadd.f32 %v3520_v49, %v17299_v18  ;;  %v6374_v26 = vsel %vm2743_vm2, %v6310_v60, %v10023_v47  ;;  %v10274_v63 = vpack.i.bf16 %v4660_v48, %v4659_v59  ;;  %v14145_v60 = vpop.f32.mrf.mxu3  ;;  %v4135_v18 = vld [vmem:[#allocation2 + $0xc0] sm:$0xff] }
 0x442   :  { %v6499_v19 = vsel %vm2678_vm1, %v6435_v15, %v10027_v34  ;;  %3567 = vmatmul.f32.gmra.mxu1 %v2986_v35  ;;  %v10012_v49 = vunpack.i.l.bf16 %v13936_v27  ;;  %17302 = vst [vmem:[#allocation30_spill] sm:$0xff] %v14145_v60  ;;  %v9758_v59 = vunpack.i.h.bf16 %v17298_v54  ;;  %v2859_v47 = vsel %vm291_vm0, %v808_v38, %v9438_v61  ;;  %v4533_v34 = vld [vmem:[#allocation2 + $0x198] sm:$0xff]  ;;  %v4534_v35 = vld [vmem:[#allocation2 + $0x1a0] sm:$0xff] }
 0x443   :  { %4088 = vst.msk [vmem:[#allocation2 + $0x1d1] sm:$0xff] %vm291_vm0, %v3988_v44  ;;  %v3730_v13 = vadd.f32 %v17300_v23, %v3521_v31  ;;  %v6563_v3 = vsel %vm2743_vm2, %v6499_v19, %v10032_v7  ;;  %8762 = vmatmul.msk.f32.gmra.mxu0 %vm291_vm0, %v4660_v48  ;;  %v2923_v44 = vsel %vm2678_vm1, %v2859_v47, %v9598_v42  ;;  %v10033_v54 = vunpack.i.h.bf16 %v14025_v52  ;;  %v17303_v23 = vld [vmem:[#allocation7_spill] sm:$0xff]  ;;  %v4661_v42 = vld [vmem:[#allocation2 + $0x19a] sm:$0xff] }
 0x444   :  { %6868 = vmatmul.f32.gmra.mxu3 %v6374_v26  ;;  %7068 = vmatmul.f32.gmra.mxu2 %v6563_v3  ;;  %v6247_v26 = vsel %vm291_vm0, %v4135_v18, %v10012_v49  ;;  %v10259_v38 = vpack.i.bf16 %v4534_v35, %v4533_v34  ;;  %v10037_v52 = vunpack.i.l.bf16 %v14085_v46  ;;  %v2987_v47 = vsel %vm2743_vm2, %v2923_v44, %v9758_v59  ;;  %v4595_v18 = vld [vmem:[#allocation2 + $0x181] sm:$0xff]  ;;  %v17306_v35 = vld [vmem:[#allocation20_spill] sm:$0xff] }
 0x445   :  { %v3857_v6 = vmul.f32 %v13965_v24, %v3730_v13  ;;  %v6311_v3 = vsel %vm2678_vm1, %v6247_v26, %v10017_v10  ;;  %v10018_v26 = vunpack.i.h.bf16 %v14087_v11 }
 0x446   :  { %10275 = vrot.lane.b32.xlu0 %v10274_v63, %s10843_s24  ;;  %10255 = vrot.lane.b32.xlu1 %v10249_v5, %s10844_s16  ;;  %v6436_v5 = vsel %vm291_vm0, %v4388_v2, %v10008_v25  ;;  %v4596_v63 = vld [vmem:[#allocation2 + $0x189] sm:$0xff]  ;;  %v17304_v25 = vld [vmem:[#allocation10_spill] sm:$0xff] }
 0x447   :  { %10265 = vrot.lane.b32.xlu2 %v10264_v9, %s10845_s1  ;;  %v3925_v48 = vadd.f32 %v13977_v45, %v3857_v6  ;;  %v14155_v41 = vpop.permute.xlu1 %10055  ;;  %v6500_v19 = vsel %vm2678_vm1, %v6436_v5, %v10028_v1  ;;  %v9442_v6 = vunpack.i.l.bf16 %v17304_v25  ;;  %v17305_v1 = vld [vmem:[#allocation53_spill] sm:$0xff]  ;;  %v9602_v5 = vunpack.i.l.bf16 %v17306_v35 }
 0x448   :  { %v14157_v7 = vpop.permute.xlu0 %10050  ;;  %v3523_v61 = vpop.f32.mrf.mxu1  ;;  %v6564_v10 = vsel %vm2743_vm2, %v6500_v19, %v10033_v54  ;;  %v10057_v59 = vunpack.i.l.bf16 %v14155_v41  ;;  %v10269_v44 = vpack.i.bf16 %v4596_v63, %v4595_v18 }
 0x449   :  { %v10052_v31 = vunpack.i.l.bf16 %v14157_v7  ;;  %v14163_v15 = vpop.permute.xlu2 %10100  ;;  %v3989_v9 = vmax.f32 %v3925_v48, 0.0  ;;  %v3524_v13 = vadd.f32 %v3523_v61, %v17303_v23  ;;  %v10013_v61 = vunpack.i.h.bf16 %v13936_v27  ;;  %v14185_v19 = vpop.f32.mrf.mxu0 }
 0x44a   :  { %v4471_v60 = vld [vmem:[#allocation2 + $0x1ca] sm:$0xff]  ;;  %v4472_v49 = vld [vmem:[#allocation2 + $0x1d2] sm:$0xff]  ;;  %3570 = vmatmul.f32.gmra.mxu1 %v2987_v47  ;;  %17308 = vst [vmem:[#allocation70_spill] sm:$0xff] %v14185_v19  ;;  %v10053_v27 = vunpack.i.h.bf16 %v14157_v7  ;;  %v10103_v58 = vunpack.i.h.bf16 %v14163_v15 }
 0x44b   :  { %v6375_v2 = vsel %vm2743_vm2, %v6311_v3, %v10052_v31  ;;  %4089 = vst.msk [vmem:[#allocation2 + $0x1e1] sm:$0xff] %vm291_vm0, %v3989_v9  ;;  %v3733_v48 = vadd.f32 %v17305_v1, %v3524_v13  ;;  %v10294_v34 = vpack.i.bf16 %v4472_v49, %v4471_v60  ;;  %8763 = vmatmul.msk.f32.gmra.mxu0 %vm291_vm0, %v4661_v42  ;;  %v809_v31 = vld [vmem:[#allocation2 + $0x2b9] sm:$0xff]  ;;  %v17307_v60 = vld [vmem:[#allocation72_spill] sm:$0xff]  ;;  %v4389_v13 = vld [vmem:[#allocation2 + $0xc1] sm:$0xff] }
 0x44c   :  { %6871 = vmatmul.f32.gmra.mxu3 %v6375_v2  ;;  %7071 = vmatmul.f32.gmra.mxu2 %v6564_v10  ;;  %v9762_v54 = vunpack.i.l.bf16 %v17307_v60  ;;  %v2860_v63 = vsel %vm291_vm0, %v809_v31, %v9442_v6  ;;  %v6437_v47 = vsel %vm291_vm0, %v4389_v13, %v10037_v52  ;;  %v10062_v10 = vunpack.i.l.bf16 %v14094_v53  ;;  %v4662_v6 = vld [vmem:[#allocation2 + $0x1a2] sm:$0xff]  ;;  %v4218_v31 = vld [vmem:[#allocation2 + $0x1d1] sm:$0xff] }
 0x44d   :  { %v3858_v9 = vmul.f32 %v13965_v24, %v3733_v48  ;;  %v2924_v7 = vsel %vm2678_vm1, %v2860_v63, %v9602_v5  ;;  %v6501_v48 = vsel %vm2678_vm1, %v6437_v47, %v10057_v59  ;;  %v10038_v52 = vunpack.i.h.bf16 %v14085_v46  ;;  %v17310_v59 = vld [vmem:[#allocation51_spill] sm:$0xff] }
 0x44e   :  { %10295 = vrot.lane.b32.xlu0 %v10294_v34, %s10843_s24  ;;  %10260 = vrot.lane.b32.xlu1 %v10259_v38, %s10844_s16  ;;  %v14189_v23 = vpop.f32.mrf.mxu3  ;;  %v4136_v38 = vld [vmem:[#allocation2 + $0xc8] sm:$0xff]  ;;  %v10042_v13 = vunpack.i.l.bf16 %v14123_v51  ;;  %v2988_v50 = vsel %vm2743_vm2, %v2924_v7, %v9762_v54  ;;  %v9603_v54 = vunpack.i.h.bf16 %v17306_v35  ;;  %v10047_v35 = vunpack.i.l.bf16 %v14063_v30 }
 0x44f   :  { %10270 = vrot.lane.b32.xlu2 %v10269_v44, %s10845_s1  ;;  %v3926_v3 = vadd.f32 %v13977_v45, %v3858_v9  ;;  %v6248_v1 = vsel %vm291_vm0, %v4136_v38, %v10013_v61  ;;  %v17309_v44 = vld [vmem:[#allocation15_spill] sm:$0xff]  ;;  %v10058_v61 = vunpack.i.h.bf16 %v14155_v41  ;;  %v9443_v38 = vunpack.i.h.bf16 %v17304_v25 }
 0x450   :  { %v14192_v11 = vpop.permute.xlu0 %10065  ;;  %v14194_v42 = vpop.permute.xlu1 %10070  ;;  %v6312_v32 = vsel %vm2678_vm1, %v6248_v1, %v10018_v26  ;;  %v6565_v26 = vsel %vm2743_vm2, %v6501_v48, %v10062_v10  ;;  %v4217_v63 = vld [vmem:[#allocation2 + $0x1c9] sm:$0xff]  ;;  %v810_v41 = vld [vmem:[#allocation2 + $0x2c1] sm:$0xff] }
 0x451   :  { %v14198_v2 = vpop.permute.xlu2 %10110  ;;  %v3526_v49 = vpop.f32.mrf.mxu1  ;;  %v3990_v18 = vmax.f32 %v3926_v3, 0.0  ;;  %v6376_v5 = vsel %vm2743_vm2, %v6312_v32, %v10053_v27  ;;  %v10279_v46 = vpack.i.bf16 %v4218_v31, %v4217_v63  ;;  %v4137_v27 = vld [vmem:[#allocation2 + $0xd8] sm:$0xff]  ;;  %v4390_v47 = vld [vmem:[#allocation2 + $0xc9] sm:$0xff] }
 0x452   :  { %v3527_v9 = vadd.f32 %v3526_v49, %v17309_v44  ;;  %3573 = vmatmul.f32.gmra.mxu1 %v2988_v50  ;;  %v9763_v50 = vunpack.i.h.bf16 %v17307_v60  ;;  %v6249_v25 = vsel %vm291_vm0, %v4137_v27, %v10042_v13  ;;  %v6438_v7 = vsel %vm291_vm0, %v4390_v47, %v10038_v52  ;;  %v17311_v1 = vld [vmem:[#allocation28_spill] sm:$0xff]  ;;  %v17312_v44 = vld [vmem:[#allocation42_spill] sm:$0xff] }
 0x453   :  { %4090 = vst.msk [vmem:[#allocation2 + $0x1e9] sm:$0xff] %vm291_vm0, %v3990_v18  ;;  %8764 = vmatmul.msk.f32.gmra.mxu0 %vm291_vm0, %v4662_v6  ;;  %v9447_v48 = vunpack.i.l.bf16 %v17311_v1  ;;  %v6502_v60 = vsel %vm2678_vm1, %v6438_v7, %v10058_v61  ;;  %v10063_v6 = vunpack.i.h.bf16 %v14094_v53  ;;  %v6313_v61 = vsel %vm2678_vm1, %v6249_v25, %v10047_v35  ;;  %v4219_v27 = vld [vmem:[#allocation2 + $0x1e1] sm:$0xff] }
 0x454   :  { %v3736_v3 = vadd.f32 %v17310_v59, %v3527_v9  ;;  %6874 = vmatmul.f32.gmra.mxu3 %v6376_v5  ;;  %7074 = vmatmul.f32.gmra.mxu2 %v6565_v26  ;;  %v9607_v9 = vunpack.i.l.bf16 %v17312_v44  ;;  %v2861_v5 = vsel %vm291_vm0, %v810_v41, %v9443_v38  ;;  %v14239_v59 = vpop.f32.mrf.mxu0  ;;  %v17314_v26 = vld [vmem:[#allocation11_spill] sm:$0xff]  ;;  %v4535_v47 = vld [vmem:[#allocation2 + $0x1e0] sm:$0xff]  ;;  %v10043_v53 = vunpack.i.h.bf16 %v14123_v51  ;;  %v811_v51 = vld [vmem:[#allocation2 + $0x2d1] sm:$0xff] }
 0x455   :  { %17313 = vst [vmem:[#allocation18_spill] sm:$0xff] %v14239_v59  ;;  %v6566_v38 = vsel %vm2743_vm2, %v6502_v60, %v10063_v6  ;;  %v4343_v25 = vld [vmem:[#allocation2 + $0x1c8] sm:$0xff]  ;;  %v4138_v6 = vld [vmem:[#allocation2 + $0xe0] sm:$0xff] }
 0x456   :  { %v3859_v32 = vmul.f32 %v13965_v24, %v3736_v3  ;;  %10285 = vrot.lane.b32.xlu1 %v10294_v34, %s10844_s16  ;;  %v14221_v49 = vpop.f32.mrf.mxu3 }
 0x457   :  { %10280 = vrot.lane.b32.xlu2 %v10279_v46, %s10843_s24  ;;  %v2925_v46 = vsel %vm2678_vm1, %v2861_v5, %v9603_v54 }
 0x458   :  { %v3927_v10 = vadd.f32 %v13977_v45, %v3859_v32  ;;  %v14228_v34 = vpop.permute.xlu0 %10075  ;;  %v14230_v18 = vpop.permute.xlu1 %10080  ;;  %v4344_v32 = vld [vmem:[#allocation2 + $0x1d0] sm:$0xff]  ;;  %v2989_v7 = vsel %vm2743_vm2, %v2925_v46, %v9763_v50  ;;  %v2862_v46 = vsel %vm291_vm0, %v811_v51, %v9447_v48  ;;  %v4391_v51 = vld [vmem:[#allocation2 + $0xd9] sm:$0xff] }
 0x459   :  { %v10082_v31 = vunpack.i.l.bf16 %v14230_v18  ;;  %v14236_v13 = vpop.permute.xlu2 %10120  ;;  %v3529_v52 = vpop.f32.mrf.mxu1  ;;  %v10077_v36 = vunpack.i.l.bf16 %v14228_v34 }
 0x45a   :  { %v3991_v3 = vmax.f32 %v3927_v10, 0.0  ;;  %v3530_v63 = vadd.f32 %v3529_v52, %v17314_v26  ;;  %v4663_v14 = vld [vmem:[#allocation2 + $0x1e2] sm:$0xff]  ;;  %v17315_v52 = vld [vmem:[#allocation65_spill] sm:$0xff]  ;;  %3576 = vmatmul.f32.gmra.mxu1 %v2989_v7  ;;  %v2926_v7 = vsel %vm2678_vm1, %v2862_v46, %v9607_v9 }
 0x45b   :  { %v6377_v20 = vsel %vm2743_vm2, %v6313_v61, %v10082_v31  ;;  %v4220_v41 = vld [vmem:[#allocation2 + $0x1e9] sm:$0xff]  ;;  %8765 = vmatmul.msk.f32.gmra.mxu0 %vm291_vm0, %v4663_v14  ;;  %v10289_v31 = vpack.i.bf16 %v4344_v32, %v4343_v25  ;;  %v6250_v61 = vsel %vm291_vm0, %v4138_v6, %v10043_v53  ;;  %v10048_v32 = vunpack.i.h.bf16 %v14063_v30 }
 0x45c   :  { %v4536_v10 = vld [vmem:[#allocation2 + $0x1e8] sm:$0xff]  ;;  %4091 = vst.msk [vmem:[#allocation2 + $0x1f9] sm:$0xff] %vm291_vm0, %v3991_v3  ;;  %v3739_v54 = vadd.f32 %v17315_v52, %v3530_v63  ;;  %6877 = vmatmul.f32.gmra.mxu3 %v6377_v20  ;;  %v14250_v35 = vpack.i.bf16 %v4220_v41, %v4219_v27  ;;  %7077 = vmatmul.f32.gmra.mxu2 %v6566_v38  ;;  %v10067_v20 = vunpack.i.l.bf16 %v14192_v11  ;;  %v10083_v3 = vunpack.i.h.bf16 %v14230_v18 }
 0x45d   :  { %v10314_v5 = vpack.i.bf16 %v4536_v10, %v4535_v47  ;;  %v17316_v26 = vld [vmem:[#allocation75_spill] sm:$0xff]  ;;  %v10092_v10 = vunpack.i.l.bf16 %v14129_v12  ;;  %v6314_v30 = vsel %vm2678_vm1, %v6250_v61, %v10048_v32  ;;  %v10068_v32 = vunpack.i.h.bf16 %v14192_v11 }
 0x45e   :  { %v9767_v50 = vunpack.i.l.bf16 %v17316_v26  ;;  %v3860_v60 = vmul.f32 %v13965_v24, %v3739_v54  ;;  %10300 = vrot.lane.b32.xlu0 %v14250_v35, %s10843_s24  ;;  %v14261_v63 = vpop.f32.mrf.mxu3  ;;  %v4664_v25 = vld [vmem:[#allocation2 + $0x1ea] sm:$0xff]  ;;  %v6378_v6 = vsel %vm2743_vm2, %v6314_v30, %v10083_v3  ;;  %v6439_v46 = vsel %vm291_vm0, %v4391_v51, %v10067_v20 }
 0x45f   :  { %10315 = vrot.lane.b32.xlu1 %v10314_v5, %s10844_s16  ;;  %10290 = vrot.lane.b32.xlu2 %v10289_v31, %s10845_s1  ;;  %v14274_v54 = vpop.f32.mrf.mxu2  ;;  %v10072_v31 = vunpack.i.l.bf16 %v14194_v42  ;;  %v10304_v20 = vpack.i.bf16 %v4664_v25, %v4663_v14  ;;  %v9768_v30 = vunpack.i.h.bf16 %v17316_v26  ;;  %v4392_v26 = vld [vmem:[#allocation2 + $0xe1] sm:$0xff] }
 0x460   :  { %v3928_v27 = vadd.f32 %v13977_v45, %v3860_v60  ;;  %v14267_v47 = vpop.permute.xlu0 %10095  ;;  %v10086_v38 = vpop.permute.xlu1 %10085  ;;  %v2990_v18 = vsel %vm2743_vm2, %v2926_v7, %v9767_v50  ;;  %v17317_v60 = vld [vmem:[#allocation24_spill] sm:$0xff]  ;;  %v9448_v50 = vunpack.i.h.bf16 %v17311_v1 }
 0x461   :  { %v14270_v41 = vpop.permute.xlu2 %10135  ;;  %v10087_v48 = vunpack.i.l.bf16 %v10086_v38  ;;  %v3532_v53 = vpop.f32.mrf.mxu1  ;;  %v10088_v51 = vunpack.i.h.bf16 %v10086_v38  ;;  %v10112_v38 = vunpack.i.l.bf16 %v14198_v2 }
 0x462   :  { %v3992_v52 = vmax.f32 %v3928_v27, 0.0  ;;  %v3533_v9 = vadd.f32 %v3532_v53, %v17317_v60  ;;  %v9608_v27 = vunpack.i.h.bf16 %v17312_v44  ;;  %v14283_v7 = vpop.f32.mrf.mxu0  ;;  %3579 = vmatmul.f32.gmra.mxu1 %v2990_v18  ;;  %v17319_v53 = vld [vmem:[#allocation52_spill] sm:$0xff]  ;;  %v812_v44 = vld [vmem:[#allocation2 + $0x2d9] sm:$0xff] }
 0x463   :  { %17318 = vst [vmem:[#allocation49_spill] sm:$0xff] %v14283_v7  ;;  %v6503_v61 = vsel %vm2678_vm1, %v6439_v46, %v10087_v48  ;;  %8766 = vmatmul.msk.f32.gmra.mxu0 %vm291_vm0, %v4664_v25  ;;  %v4139_v18 = vld [vmem:[#allocation2 + $0xf0] sm:$0xff]  ;;  %v2863_v14 = vsel %vm291_vm0, %v812_v44, %v9448_v50  ;;  %v6440_v46 = vsel %vm291_vm0, %v4392_v26, %v10068_v32  ;;  %v10078_v32 = vunpack.i.h.bf16 %v14228_v34  ;;  %v4140_v34 = vld [vmem:[#allocation2 + $0xf8] sm:$0xff] }
 0x464   :  { %4092 = vst.msk [vmem:[#allocation2 + $0x201] sm:$0xff] %vm291_vm0, %v3992_v52  ;;  %6880 = vmatmul.f32.gmra.mxu3 %v6378_v6  ;;  %v3742_v3 = vadd.f32 %v17319_v53, %v3533_v9  ;;  %v6567_v1 = vsel %vm2743_vm2, %v6503_v61, %v10092_v10  ;;  %v6251_v48 = vsel %vm291_vm0, %v4139_v18, %v10072_v31  ;;  %v10093_v31 = vunpack.i.h.bf16 %v14129_v12 }
 0x465   :  { %7080 = vmatmul.f32.gmra.mxu2 %v6567_v1  ;;  %v6315_v10 = vsel %vm2678_vm1, %v6251_v48, %v10077_v36  ;;  %v2927_v6 = vsel %vm2678_vm1, %v2863_v14, %v9608_v27  ;;  %v6504_v36 = vsel %vm2678_vm1, %v6440_v46, %v10088_v51  ;;  %v10073_v53 = vunpack.i.h.bf16 %v14194_v42  ;;  %v17320_v1 = vld [vmem:[#allocation19_spill] sm:$0xff]  ;;  %v4221_v48 = vld [vmem:[#allocation2 + $0x1f9] sm:$0xff] }
 0x466   :  { %10310 = vrot.lane.b32.xlu0 %v10314_v5, %s10845_s1  ;;  %v3861_v52 = vmul.f32 %v13965_v24, %v3742_v3  ;;  %v14296_v11 = vpop.f32.mrf.mxu3  ;;  %v2991_v50 = vsel %vm2743_vm2, %v2927_v6, %v9768_v30  ;;  %v6379_v18 = vsel %vm2743_vm2, %v6315_v10, %v10112_v38  ;;  %v17321_v27 = vld [vmem:[#allocation17_spill] sm:$0xff]  ;;  %v17323_v42 = vld [vmem:[#allocation66_spill] sm:$0xff]  ;;  %v6568_v10 = vsel %vm2743_vm2, %v6504_v36, %v10093_v31  ;;  %v813_v38 = vld [vmem:[#allocation2 + $0x2e9] sm:$0xff] }
 0x467   :  { %10305 = vrot.lane.b32.xlu2 %v10304_v20, %s10844_s16  ;;  %v9452_v14 = vunpack.i.l.bf16 %v17321_v27  ;;  %v14319_v12 = vpop.f32.mrf.mxu2  ;;  %v17322_v51 = vld [vmem:[#allocation25_spill] sm:$0xff]  ;;  %v6252_v31 = vsel %vm291_vm0, %v4140_v34, %v10073_v53  ;;  %v10122_v53 = vunpack.i.l.bf16 %v14236_v13 }
 0x468   :  { %v14299_v60 = vpop.permute.xlu0 %10125  ;;  %v3929_v5 = vadd.f32 %v13977_v45, %v3861_v52  ;;  %v14305_v25 = vpop.permute.xlu1 %10105  ;;  %v9612_v26 = vunpack.i.l.bf16 %v17322_v51  ;;  %v17324_v6 = vld [vmem:[#allocation73_spill] sm:$0xff] }
 0x469   :  { %v14307_v9 = vpop.permute.xlu2 %10150  ;;  %v3535_v61 = vpop.f32.mrf.mxu1  ;;  %v9772_v46 = vunpack.i.l.bf16 %v17324_v6 }
 0x46a   :  { %v3993_v3 = vmax.f32 %v3929_v5, 0.0  ;;  %v3536_v44 = vadd.f32 %v3535_v61, %v17320_v1  ;;  %3582 = vmatmul.f32.gmra.mxu1 %v2991_v50  ;;  %v14327_v61 = vpop.f32.mrf.mxu0  ;;  %v2864_v1 = vsel %vm291_vm0, %v813_v38, %v9452_v14  ;;  %v4393_v38 = vld [vmem:[#allocation2 + $0xf1] sm:$0xff] }
 0x46b   :  { %v4665_v52 = vld [vmem:[#allocation2 + $0x1fa] sm:$0xff]  ;;  %17325 = vst [vmem:[#allocation7_spill] sm:$0xff] %v14327_v61 }
 0x46c   :  { %v4222_v43 = vld [vmem:[#allocation2 + $0x201] sm:$0xff]  ;;  %6883 = vmatmul.f32.gmra.mxu3 %v6379_v18  ;;  %4093 = vst.msk [vmem:[#allocation2 + $0x211] sm:$0xff] %vm291_vm0, %v3993_v3  ;;  %v3745_v5 = vadd.f32 %v17323_v42, %v3536_v44  ;;  %8767 = vmatmul.msk.f32.gmra.mxu0 %vm291_vm0, %v4665_v52  ;;  %v10113_v44 = vunpack.i.h.bf16 %v14198_v2  ;;  %v17326_v2 = vld [vmem:[#allocation32_spill] sm:$0xff] }
 0x46d   :  { %v10329_v30 = vpack.i.bf16 %v4222_v43, %v4221_v48  ;;  %7083 = vmatmul.f32.gmra.mxu2 %v6568_v10  ;;  %v10097_v43 = vunpack.i.l.bf16 %v14267_v47  ;;  %v9453_v10 = vunpack.i.h.bf16 %v17321_v27 }
 0x46e   :  { %10325 = vrot.lane.b32.xlu0 %v10304_v20, %s10843_s24  ;;  %v3862_v50 = vmul.f32 %v13965_v24, %v3745_v5  ;;  %v6316_v20 = vsel %vm2678_vm1, %v6252_v31, %v10078_v32  ;;  %v4666_v5 = vld [vmem:[#allocation2 + $0x202] sm:$0xff] }
 0x46f   :  { %10320 = vrot.lane.b32.xlu2 %v14250_v35, %s10845_s1  ;;  %10330 = vrot.lane.b32.xlu1 %v10329_v30, %s10843_s24  ;;  %v14335_v3 = vpop.f32.mrf.mxu3  ;;  %v2928_v35 = vsel %vm2678_vm1, %v2864_v1, %v9612_v26  ;;  %v4348_v32 = vld [vmem:[#allocation2 + $0x200] sm:$0xff]  ;;  %v6441_v8 = vsel %vm291_vm0, %v4393_v38, %v10097_v43  ;;  %v9613_v26 = vunpack.i.h.bf16 %v17322_v51  ;;  %v10102_v1 = vunpack.i.l.bf16 %v14163_v15 }
 0x470   :  { %v14338_v36 = vpop.permute.xlu0 %10130  ;;  %v3930_v18 = vadd.f32 %v13977_v45, %v3862_v50  ;;  %v10116_v48 = vpop.permute.xlu1 %10115  ;;  %v2992_v14 = vsel %vm2743_vm2, %v2928_v35, %v9772_v46  ;;  %v6380_v50 = vsel %vm2743_vm2, %v6316_v20, %v10113_v44  ;;  %v14356_v28 = vpack.i.bf16 %v4666_v5, %v4665_v52  ;;  %v4347_v46 = vld [vmem:[#allocation2 + $0x1f8] sm:$0xff] }
 0x471   :  { %v14344_v42 = vpop.permute.xlu2 %10180  ;;  %v10117_v34 = vunpack.i.l.bf16 %v10116_v48  ;;  %v3538_v61 = vpop.f32.mrf.mxu1  ;;  %v814_v35 = vld [vmem:[#allocation2 + $0x2f1] sm:$0xff]  ;;  %v14363_v43 = vpack.i.bf16 %v4348_v32, %v4347_v46  ;;  %v9773_v44 = vunpack.i.h.bf16 %v17324_v6  ;;  %v817_v15 = vld [vmem:[#allocation2 + $0x319] sm:$0xff] }
 0x472   :  { %v3994_v31 = vmax.f32 %v3930_v18, 0.0  ;;  %v3539_v22 = vadd.f32 %v3538_v61, %v17326_v2  ;;  %3585 = vmatmul.f32.gmra.mxu1 %v2992_v14  ;;  %v10098_v18 = vunpack.i.h.bf16 %v14267_v47  ;;  %v17327_v61 = vld [vmem:[#allocation26_spill] sm:$0xff]  ;;  %v14367_v52 = vpop.f32.mrf.mxu2  ;;  %v2865_v6 = vsel %vm291_vm0, %v814_v35, %v9453_v10  ;;  %v14381_v32 = vpop.f32.mrf.mxu0 }
 0x473   :  { %v6505_v27 = vsel %vm2678_vm1, %v6441_v8, %v10117_v34  ;;  %v10107_v8 = vunpack.i.l.bf16 %v14305_v25  ;;  %v10118_v34 = vunpack.i.h.bf16 %v10116_v48  ;;  %v17329_v48 = vld [vmem:[#allocation27_spill] sm:$0xff]  ;;  %17330 = vst [vmem:[#allocation10_spill] sm:$0xff] %v14381_v32  ;;  %v4394_v2 = vld [vmem:[#allocation2 + $0xf9] sm:$0xff] }
 0x474   :  { %6886 = vmatmul.f32.gmra.mxu3 %v6380_v50  ;;  %4094 = vst.msk [vmem:[#allocation2 + $0x219] sm:$0xff] %vm291_vm0, %v3994_v31  ;;  %v3748_v20 = vadd.f32 %v17327_v61, %v3539_v22  ;;  %8768 = vmatmul.msk.f32.gmra.mxu0 %vm291_vm0, %v4666_v5  ;;  %v6569_v51 = vsel %vm2743_vm2, %v6505_v27, %v10122_v53  ;;  %v17328_v5 = vld [vmem:[#allocation35_spill] sm:$0xff]  ;;  %v9467_v38 = vunpack.i.l.bf16 %v17329_v48 }
 0x475   :  { %7086 = vmatmul.f32.gmra.mxu2 %v6569_v51  ;;  %v9458_v53 = vunpack.i.h.bf16 %v17328_v5  ;;  %v9457_v14 = vunpack.i.l.bf16 %v17328_v5  ;;  %v6442_v61 = vsel %vm291_vm0, %v4394_v2, %v10098_v18  ;;  %v17331_v51 = vld [vmem:[#allocation36_spill] sm:$0xff]  ;;  %v17333_v2 = vld [vmem:[#allocation31_spill] sm:$0xff] }
 0x476   :  { %10335 = vrot.lane.b32.xlu0 %v14356_v28, %s10844_s16  ;;  %v3863_v47 = vmul.f32 %v13965_v24, %v3748_v20  ;;  %v2929_v24 = vsel %vm2678_vm1, %v2865_v6, %v9613_v26  ;;  %v819_v20 = vld [vmem:[#allocation2 + $0x331] sm:$0xff]  ;;  %v9462_v18 = vunpack.i.l.bf16 %v17331_v51  ;;  %v9617_v5 = vunpack.i.l.bf16 %v17333_v2 }
 0x477   :  { %10350 = vrot.lane.b32.xlu2 %v10329_v30, %s10845_s1  ;;  %10340 = vrot.lane.b32.xlu1 %v14363_v43, %s10845_s1  ;;  %v14375_v22 = vpop.f32.mrf.mxu3  ;;  %v4141_v30 = vld [vmem:[#allocation2 + $0x108] sm:$0xff]  ;;  %v2993_v26 = vsel %vm2743_vm2, %v2929_v24, %v9773_v44 }
 0x478   :  { %v14383_v31 = vpop.permute.xlu0 %10140  ;;  %v3931_v50 = vadd.f32 %v13977_v45, %v3863_v47  ;;  %v14387_v27 = vpop.permute.xlu1 %10145  ;;  %v6253_v35 = vsel %vm291_vm0, %v4141_v30, %v10102_v1  ;;  %v6506_v45 = vsel %vm2678_vm1, %v6442_v61, %v10118_v34  ;;  %v10123_v47 = vunpack.i.h.bf16 %v14236_v13  ;;  %v815_v1 = vld [vmem:[#allocation2 + $0x301] sm:$0xff]  ;;  %v816_v30 = vld [vmem:[#allocation2 + $0x309] sm:$0xff] }
 0x479   :  { %v10142_v10 = vunpack.i.l.bf16 %v14383_v31  ;;  %v14390_v46 = vpop.permute.xlu2 %10190  ;;  %v3541_v32 = vpop.f32.mrf.mxu1  ;;  %v6317_v6 = vsel %vm2678_vm1, %v6253_v35, %v10107_v8  ;;  %v4223_v8 = vld [vmem:[#allocation2 + $0x211] sm:$0xff]  ;;  %v14405_v13 = vsel %vm291_vm0, %v819_v20, %v9467_v38  ;;  %v7034_v61 = vadd.f32 %v14274_v54, %v14189_v23 }
 0x47a   :  { %v3995_v7 = vmax.f32 %v3931_v50, 0.0  ;;  %v3542_v59 = vadd.f32 %v3541_v32, %v17332_v39  ;;  %3588 = vmatmul.f32.gmra.mxu1 %v2993_v26  ;;  %v10127_v39 = vunpack.i.l.bf16 %v14299_v60  ;;  %v17334_v32 = vld [vmem:[#allocation67_spill] sm:$0xff]  ;;  %v6570_v50 = vsel %vm2743_vm2, %v6506_v45, %v10123_v47  ;;  %v14438_v45 = vpop.f32.mrf.mxu2  ;;  %v14462_v21 = vpop.f32.mrf.mxu0 }
 0x47b   :  { %v6381_v62 = vsel %vm2743_vm2, %v6317_v6, %v10142_v10  ;;  %v4667_v44 = vld [vmem:[#allocation2 + $0x212] sm:$0xff]  ;;  %v10108_v38 = vunpack.i.h.bf16 %v14305_v25  ;;  %v10147_v20 = vunpack.i.l.bf16 %v14387_v27  ;;  %v2866_v54 = vsel %vm291_vm0, %v815_v1, %v9457_v14  ;;  %v17336_v25 = vld [vmem:[#allocation14_spill] sm:$0xff] }
 0x47c   :  { %6889 = vmatmul.f32.gmra.mxu3 %v6381_v62  ;;  %v4224_v34 = vld [vmem:[#allocation2 + $0x219] sm:$0xff]  ;;  %4095 = vst.msk [vmem:[#allocation2 + $0x229] sm:$0xff] %vm291_vm0, %v3995_v7  ;;  %v3751_v24 = vadd.f32 %v17334_v32, %v3542_v59  ;;  %8769 = vmatmul.msk.f32.gmra.mxu0 %vm291_vm0, %v4667_v44  ;;  %v17335_v62 = vld [vmem:[#allocation76_spill] sm:$0xff]  ;;  %v10143_v59 = vunpack.i.h.bf16 %v14383_v31  ;;  %v9622_v31 = vunpack.i.l.bf16 %v17336_v25  ;;  %v9618_v6 = vunpack.i.h.bf16 %v17333_v2 }
 0x47d   :  { %v14412_v10 = vpack.i.bf16 %v4224_v34, %v4223_v8  ;;  %v9777_v35 = vunpack.i.l.bf16 %v17335_v62  ;;  %7089 = vmatmul.f32.gmra.mxu2 %v6570_v50  ;;  %v14425_v7 = vld [vmem:[%s16999_s3] ss:$0 sm:$0xff]  ;;  %v2930_v8 = vsel %vm2678_vm1, %v2866_v54, %v9617_v5  ;;  %v4142_v34 = vld [vmem:[#allocation2 + $0x110] sm:$0xff]  ;;  %v4350_v19 = vld [vmem:[#allocation2 + $0x218] sm:$0xff] }
 0x47e   :  { %10355 = vrot.lane.b32.xlu0 %v14356_v28, %s10843_s24  ;;  %v3864_v26 = vmul.f32 %v14425_v7, %v3751_v24  ;;  %v2867_v28 = vsel %vm291_vm0, %v816_v30, %v9458_v53  ;;  %v4395_v32 = vld [vmem:[#allocation2 + $0x109] sm:$0xff]  ;;  %v9778_v24 = vunpack.i.h.bf16 %v17335_v62  ;;  %v14448_v53 = vld [vmem:[%s17000_s4] ss:$0 sm:$0xff]  ;;  %v6254_v2 = vsel %vm291_vm0, %v4142_v34, %v10103_v58 }
 0x47f   :  { %10360 = vrot.lane.b32.xlu2 %v14412_v10, %s10843_s24  ;;  %10345 = vrot.lane.b32.xlu1 %v14363_v43, %s10844_s16  ;;  %v14432_v23 = vpop.f32.mrf.mxu3  ;;  %v2868_v43 = vsel %vm291_vm0, %v817_v15, %v9462_v18  ;;  %v4668_v5 = vld [vmem:[#allocation2 + $0x21a] sm:$0xff]  ;;  %v6443_v50 = vsel %vm291_vm0, %v4395_v32, %v10127_v39  ;;  %v7243_v18 = vadd.f32 %v13653_v4, %v7034_v61  ;;  %v10132_v61 = vunpack.i.l.bf16 %v14338_v36 }
 0x480   :  { %v14440_v47 = vpop.permute.xlu0 %10155  ;;  %v3932_v14 = vadd.f32 %v14448_v53, %v3864_v26  ;;  %v14451_v1 = vpop.permute.xlu1 %10160  ;;  %v2994_v62 = vsel %vm2743_vm2, %v2930_v8, %v9777_v35  ;;  %v6318_v54 = vsel %vm2678_vm1, %v6254_v2, %v10108_v38  ;;  %v6507_v29 = vsel %vm2678_vm1, %v6443_v50, %v10147_v20  ;;  %v818_v39 = vld [vmem:[#allocation2 + $0x321] sm:$0xff]  ;;  %v4349_v38 = vld [vmem:[#allocation2 + $0x210] sm:$0xff] }
 0x481   :  { %v14453_v30 = vpop.permute.xlu2 %10200  ;;  %v3544_v15 = vpop.f32.mrf.mxu1  ;;  %v10152_v26 = vunpack.i.l.bf16 %v14307_v9  ;;  %v6382_v34 = vsel %vm2743_vm2, %v6318_v54, %v10143_v59  ;;  %v7037_v4 = vadd.f32 %v14319_v12, %v14221_v49  ;;  %v10128_v35 = vunpack.i.h.bf16 %v14299_v60  ;;  %v17338_v32 = vld [vmem:[#allocation54_spill] sm:$0xff] }
 0x482   :  { %v3996_v0 = vmax.f32 %v3932_v14, 0.0  ;;  %v3545_v58 = vadd.f32 %v3544_v15, %v17337_v57  ;;  %3591 = vmatmul.f32.gmra.mxu1 %v2994_v62  ;;  %v10384_v20 = vpack.i.bf16 %v4668_v5, %v4667_v44  ;;  %v10148_v8 = vunpack.i.h.bf16 %v14387_v27  ;;  %v10748_v60 = vld [vmem:[%s16996_s0] sm:$0xff] }
 0x483   :  { %v6571_v59 = vsel %vm2743_vm2, %v6507_v29, %v10152_v26  ;;  %v14475_v14 = vpack.i.bf16 %v4350_v19, %v4349_v38  ;;  %v9468_v49 = vunpack.i.h.bf16 %v17329_v48  ;;  %v14481_v12 = vadd.f32 %v10748_v60, %v7243_v18  ;;  %v4143_v50 = vld [vmem:[#allocation2 + $0x120] sm:$0xff]  ;;  %v4396_v18 = vld [vmem:[#allocation2 + $0x111] sm:$0xff] }
 0x484   :  { %6892 = vmatmul.f32.gmra.mxu3 %v6382_v34  ;;  %4096 = vst.msk [vmem:[#allocation2 + $0x231] sm:$0xff] %vm291_vm0, %v3996_v0  ;;  %v3754_v57 = vadd.f32 %v17338_v32, %v3545_v58  ;;  %8770 = vmatmul.msk.f32.gmra.mxu0 %vm291_vm0, %v4668_v5  ;;  %v2931_v0 = vsel %vm2678_vm1, %v2867_v28, %v9618_v6  ;;  %v17339_v27 = vunpack.i.h.bf16 %v17331_v51  ;;  %v9623_v29 = vunpack.i.h.bf16 %v17336_v25  ;;  %v17340_v51 = vld [vmem:[#allocation6_spill] sm:$0xff]  ;;  %v4147_v48 = vld [vmem:[#allocation2 + $0x150] sm:$0xff] }
 0x485   :  { %7092 = vmatmul.f32.gmra.mxu2 %v6571_v59  ;;  %v2995_v5 = vsel %vm2743_vm2, %v2931_v0, %v9778_v24  ;;  %v2932_v28 = vsel %vm2678_vm1, %v2868_v43, %v9622_v31  ;;  %v9782_v6 = vunpack.i.l.bf16 %v17340_v51  ;;  %v7246_v15 = vadd.f32 %v13689_v40, %v7037_v4 }
 0x486   :  { %10385 = vrot.lane.b32.xlu0 %v10384_v20, %s10843_s24  ;;  %v2869_v44 = vsel %vm291_vm0, %v818_v39, %v17339_v27  ;;  %v3865_v19 = vmul.f32 %v14425_v7, %v3754_v57  ;;  %v6255_v54 = vsel %vm291_vm0, %v4143_v50, %v10132_v61  ;;  %v6444_v26 = vsel %vm291_vm0, %v4396_v18, %v10128_v35  ;;  %v17341_v57 = vld [vmem:[#allocation13_spill] sm:$0xff]  ;;  %v4225_v27 = vld [vmem:[#allocation2 + $0x229] sm:$0xff]  ;;  %v10750_v50 = vld [vmem:[%s16996_s0 + $0x20] sm:$0xff] }
 0x487   :  { %10370 = vrot.lane.b32.xlu2 %v14475_v14, %s10845_s1  ;;  %10365 = vrot.lane.b32.xlu1 %v10384_v20, %s10844_s16  ;;  %v14493_v2 = vpop.f32.mrf.mxu3  ;;  %v7045_v25 = vpop.f32.mrf.mxu2  ;;  %v10137_v58 = vunpack.i.l.bf16 %v14270_v41  ;;  %v6508_v43 = vsel %vm2678_vm1, %v6444_v26, %v10148_v8  ;;  %v7501_v40 = vrot.slane %v14481_v12, 4  ;;  %v10153_v4 = vunpack.i.h.bf16 %v14307_v9  ;;  %v10749_v8 = vld [vmem:[%s16996_s0 + $0x8] sm:$0xff] }
 0x488   :  { %v14499_v62 = vpop.permute.xlu0 %10165  ;;  %v3933_v34 = vadd.f32 %v14448_v53, %v3865_v19  ;;  %v7046_v24 = vadd.f32 %v7045_v25, %v14335_v3  ;;  %v14506_v39 = vpop.permute.xlu1 %10170  ;;  %v10133_v61 = vunpack.i.h.bf16 %v14338_v36  ;;  %v14521_v60 = vadd.f32 %v10749_v8, %v7246_v15  ;;  %v17342_v15 = vld [vmem:[#allocation68_spill] sm:$0xff] }
 0x489   :  { %v14508_v31 = vpop.permute.xlu2 %10210  ;;  %v10172_v35 = vunpack.i.l.bf16 %v14506_v39  ;;  %v3547_v38 = vpop.f32.mrf.mxu1  ;;  %v6319_v59 = vsel %vm2678_vm1, %v6255_v54, %v10137_v58  ;;  %v6572_v0 = vsel %vm2743_vm2, %v6508_v43, %v10153_v4  ;;  %v17343_v54 = vld [vmem:[#allocation33_spill] sm:$0xff]  ;;  %v9783_v58 = vunpack.i.h.bf16 %v17340_v51 }
 0x48a   :  { %v3997_v20 = vmax.f32 %v3933_v34, 0.0  ;;  %v7255_v32 = vadd.f32 %v13797_v17, %v7046_v24  ;;  %v3548_v3 = vadd.f32 %v3547_v38, %v17341_v57  ;;  %3594 = vmatmul.f32.gmra.mxu1 %v2995_v5  ;;  %v14525_v17 = vpop.f32.mrf.mxu0  ;;  %v9627_v26 = vunpack.i.l.bf16 %v17343_v54  ;;  %v4144_v24 = vld [vmem:[#allocation2 + $0x128] sm:$0xff] }
 0x48b   :  { %v6383_v9 = vsel %vm2743_vm2, %v6319_v59, %v10172_v35  ;;  %v4669_v36 = vld [vmem:[#allocation2 + $0x22a] sm:$0xff]  ;;  %v7040_v34 = vadd.f32 %v14367_v52, %v14261_v63  ;;  %v14540_v43 = vsel %vm2678_vm1, %v2869_v44, %v9623_v29  ;;  %v6256_v63 = vsel %vm291_vm0, %v4144_v24, %v10133_v61 }
 0x48c   :  { %v4226_v19 = vld [vmem:[#allocation2 + $0x231] sm:$0xff]  ;;  %4097 = vst.msk [vmem:[#allocation2 + $0x241] sm:$0xff] %vm291_vm0, %v3997_v20  ;;  %v7438_v18 = vadd.f32 %v10750_v50, %v7255_v32  ;;  %v3757_v25 = vadd.f32 %v17342_v15, %v3548_v3  ;;  %6895 = vmatmul.f32.gmra.mxu3 %v6383_v9  ;;  %8771 = vmatmul.msk.f32.gmra.mxu0 %vm291_vm0, %v4669_v36  ;;  %v10138_v52 = vunpack.i.h.bf16 %v14270_v41  ;;  %v10157_v44 = vunpack.i.l.bf16 %v14440_v47  ;;  %v4397_v50 = vld [vmem:[#allocation2 + $0x121] sm:$0xff] }
 0x48d   :  { %v14533_v5 = vpack.i.bf16 %v4226_v19, %v4225_v27  ;;  %7095 = vmatmul.f32.gmra.mxu2 %v6572_v0  ;;  %v10173_v29 = vunpack.i.h.bf16 %v14506_v39  ;;  %v7725_v57 = vrot.slane %v14521_v60, 4  ;;  %v10182_v8 = vunpack.i.l.bf16 %v14344_v42  ;;  %v17344_v15 = vld [vmem:[#allocation41_spill] sm:$0xff] }
 0x48e   :  { %v7498_v4 = vrot.slane %v7438_v18, 4  ;;  %v14543_v35 = vsel %vm7499_vm3, %v7438_v18, %v7501_v40  ;;  %v3866_v38 = vmul.f32 %v14425_v7, %v3757_v25  ;;  %v6320_v9 = vsel %vm2678_vm1, %v6256_v63, %v10138_v52  ;;  %v4352_v18 = vld [vmem:[#allocation2 + $0x230] sm:$0xff]  ;;  %v17345_v52 = vld [vmem:[#allocation55_spill] sm:$0xff] }
 0x48f   :  { %10380 = vrot.lane.b32.xlu2 %v14412_v10, %s10845_s1  ;;  %10390 = vrot.lane.b32.xlu0 %v14533_v5, %s10843_s24  ;;  %v14550_v20 = vpop.f32.mrf.mxu3  ;;  %v7048_v40 = vpop.f32.mrf.mxu2  ;;  %v2996_v10 = vsel %vm2743_vm2, %v2932_v28, %v9782_v6  ;;  %v7043_v28 = vadd.f32 %v14438_v45, %v14296_v11  ;;  %v10162_v0 = vunpack.i.l.bf16 %v14451_v1  ;;  %v6384_v11 = vsel %vm2743_vm2, %v6320_v9, %v10173_v29 }
 0x490   :  { %10375 = vrot.lane.b32.xlu1 %v14475_v14, %s10844_s16  ;;  %v14558_v32 = vpop.permute.xlu0 %10185  ;;  %v14564_v3 = vsel %vm7499_vm3, %v7498_v4, %v14481_v12  ;;  %v3934_v41 = vadd.f32 %v14448_v53, %v3866_v38  ;;  %v7049_v61 = vadd.f32 %v7048_v40, %v14375_v22  ;;  %v14568_v59 = vpop.permute.xlu1 %10175  ;;  %v7249_v14 = vadd.f32 %v13725_v55, %v7040_v34  ;;  %v4670_v12 = vld [vmem:[#allocation2 + $0x232] sm:$0xff]  ;;  %v10751_v34 = vld [vmem:[%s16996_s0 + $0x28] sm:$0xff] }
 0x491   :  { %v14570_v39 = vpop.permute.xlu2 %10225  ;;  %v3550_v6 = vpop.f32.mrf.mxu1  ;;  %v10177_v19 = vunpack.i.l.bf16 %v14568_v59  ;;  %v10167_v55 = vunpack.i.l.bf16 %v14499_v62  ;;  %v6445_v45 = vsel %vm291_vm0, %v4397_v50, %v10157_v44  ;;  %v14590_v4 = vpack.i.bf16 %v4670_v12, %v4669_v36  ;;  %v4351_v38 = vld [vmem:[#allocation2 + $0x228] sm:$0xff]  ;;  %v4145_v36 = vld [vmem:[#allocation2 + $0x138] sm:$0xff] }
 0x492   :  { %v3998_v27 = vmax.f32 %v3934_v41, 0.0  ;;  %v7258_v22 = vadd.f32 %v13834_v16, %v7049_v61  ;;  %v3551_v25 = vadd.f32 %v3550_v6, %v17344_v15  ;;  %3597 = vmatmul.f32.gmra.mxu1 %v2996_v10  ;;  %v10158_v63 = vunpack.i.h.bf16 %v14440_v47  ;;  %v17346_v10 = vld [vmem:[#allocation77_spill] sm:$0xff]  ;;  %v14596_v61 = vpop.f32.mrf.mxu0 }
 0x493   :  { %v6509_v24 = vsel %vm2678_vm1, %v6445_v45, %v10177_v19  ;;  %v10399_v40 = vpack.i.bf16 %v4352_v18, %v4351_v38  ;;  %v9787_v41 = vunpack.i.l.bf16 %v17346_v10  ;;  %v6257_v50 = vsel %vm291_vm0, %v4145_v36, %v10162_v0  ;;  %v10752_v18 = vld [vmem:[%s16996_s0 + $0x10] sm:$0xff] }
 0x494   :  { %4098 = vst.msk [vmem:[#allocation2 + $0x249] sm:$0xff] %vm291_vm0, %v3998_v27  ;;  %v7439_v16 = vadd.f32 %v10751_v34, %v7258_v22  ;;  %6898 = vmatmul.f32.gmra.mxu3 %v6384_v11  ;;  %8772 = vmatmul.msk.f32.gmra.mxu0 %vm291_vm0, %v4670_v12  ;;  %v3760_v29 = vadd.f32 %v17345_v52, %v3551_v25  ;;  %v10178_v27 = vunpack.i.h.bf16 %v14568_v59  ;;  %v10846_v12 = vmov 1983009808  }
 0x495   :  { %v6573_v44 = vsel %vm2743_vm2, %v6509_v24, %v10182_v8  ;;  %v7504_v8 = vunpack.c.l.s4 %v10846_v12  ;;  %v2997_v59 = vsel %vm2743_vm2, %v14540_v43, %v9783_v58  ;;  %v7436_v15 = vadd.f32 %v10752_v18, %v7249_v14  ;;  %v4398_v58 = vld [vmem:[#allocation2 + $0x129] sm:$0xff]  ;;  %v4146_v18 = vld [vmem:[#allocation2 + $0x140] sm:$0xff] }
 0x496   :  { %v7723_v6 = vrot.slane %v7439_v16, 4  ;;  %v14599_v9 = vsel %vm7499_vm3, %v7439_v16, %v7725_v57  ;;  %7098 = vmatmul.f32.gmra.mxu2 %v6573_v44  ;;  %v3867_v22 = vmul.f32 %v14425_v7, %v3760_v29  ;;  %v6321_v51 = vsel %vm2678_vm1, %v6257_v50, %v10167_v55  ;;  %v17347_v44 = vld [vmem:[#allocation37_spill] sm:$0xff] }
 0x497   :  { %10395 = vrot.lane.b32.xlu2 %v14590_v4, %s10844_s16  ;;  %v14604_v47 = vpop.f32.mrf.mxu3  ;;  %10400 = vrot.lane.b32.xlu0 %v10399_v40, %s10845_s1  ;;  %v7051_v19 = vpop.f32.mrf.mxu2  ;;  %v7252_v43 = vadd.f32 %v13767_v56, %v7043_v28  ;;  %v10202_v0 = vunpack.i.l.bf16 %v14453_v30  ;;  %v6446_v24 = vsel %vm291_vm0, %v4398_v58, %v10158_v63  ;;  %v10168_v55 = vunpack.i.h.bf16 %v14499_v62 }
 0x498   :  { %10405 = vrot.lane.b32.xlu1 %v10399_v40, %s10844_s16  ;;  %v14609_v57 = vpop.permute.xlu0 %10215  ;;  %v14621_v25 = vsel %vm7499_vm3, %v7723_v6, %v14521_v60  ;;  %v7052_v11 = vadd.f32 %v7051_v19, %v14432_v23  ;;  %v14624_v45 = vpop.permute.xlu1 %10195  ;;  %v3935_v16 = vadd.f32 %v14448_v53, %v3867_v22  ;;  %v10183_v60 = vunpack.i.h.bf16 %v14344_v42  ;;  %v4227_v6 = vld [vmem:[#allocation2 + $0x241] sm:$0xff] }
 0x499   :  { %v14626_v34 = vpop.permute.xlu2 %10240  ;;  %v3553_v14 = vpop.f32.mrf.mxu1  ;;  %v10163_v23 = vunpack.i.h.bf16 %v14451_v1  ;;  %v6510_v52 = vsel %vm2678_vm1, %v6446_v24, %v10178_v27  ;;  %v6385_v28 = vsel %vm2743_vm2, %v6321_v51, %v10202_v0  ;;  %v9628_v42 = vunpack.i.h.bf16 %v17343_v54  ;;  %v10754_v27 = vld [vmem:[%s16996_s0 + $0x18] sm:$0xff]  ;;  %v17348_v22 = vld [vmem:[#allocation71_spill] sm:$0xff] }
 0x49a   :  { %v7261_v38 = vadd.f32 %v13873_v37, %v7052_v11  ;;  %v3999_v29 = vmax.f32 %v3935_v16, 0.0  ;;  %v3554_v56 = vadd.f32 %v3553_v14, %v17347_v44  ;;  %3600 = vmatmul.f32.gmra.mxu1 %v2997_v59  ;;  %v7513_v36 = vrot.slane %v7436_v15, 4  ;;  %v10753_v37 = vld [vmem:[%s16996_s0 + $0x30] sm:$0xff] }
 0x49b   :  { %v14640_v40 = vld [vmem:[#allocation2 + $0x242] sm:$0xff]  ;;  %v14653_v12 = vadd.f32 %v10754_v27, %v7252_v43  ;;  %v6574_v59 = vsel %vm2743_vm2, %v6510_v52, %v10183_v60  ;;  %v2934_v50 = vsel %vm2678_vm1, %v14405_v13, %v9627_v26  ;;  %v6258_v0 = vsel %vm291_vm0, %v4146_v18, %v10163_v23 }
 0x49c   :  { %v4228_v63 = vld [vmem:[#allocation2 + $0x249] sm:$0xff]  ;;  %v7440_v1 = vadd.f32 %v10753_v37, %v7261_v38  ;;  %6901 = vmatmul.f32.gmra.mxu3 %v6385_v28  ;;  %8773 = vmatmul.msk.f32.gmra.mxu0 %vm291_vm0, %v14640_v40  ;;  %4099 = vst.msk [vmem:[#allocation2 + $0x259] sm:$0xff] %vm291_vm0, %v3999_v29  ;;  %v3763_v19 = vadd.f32 %v17348_v22, %v3554_v56  ;;  %v14673_v16 = vunpack.c.0.s8 %v7504_v8  ;;  %v10187_v13 = vunpack.i.l.bf16 %v14558_v32 }
 0x49d   :  { %v14648_v62 = vpack.i.bf16 %v4228_v63, %v4227_v6  ;;  %v2998_v43 = vsel %vm2743_vm2, %v2934_v50, %v9787_v41  ;;  %v6322_v24 = vsel %vm2678_vm1, %v6258_v0, %v10168_v55  ;;  %v10192_v41 = vunpack.i.l.bf16 %v14390_v46  ;;  %v4672_v28 = vld [vmem:[#allocation2 + $0x24a] sm:$0xff]  ;;  %v14696_v6 = vpop.f32.mrf.mxu0  ;;  %v4353_v0 = vld [vmem:[#allocation2 + $0x240] sm:$0xff] }
 0x49e   :  { %v7511_v11 = vrot.slane %v7440_v1, 4  ;;  %v14663_v51 = vsel %vm7499_vm3, %v7440_v1, %v7513_v36  ;;  %7101 = vmatmul.f32.gmra.mxu2 %v6574_v59  ;;  %v3868_v26 = vmul.f32 %v14425_v7, %v3763_v19  ;;  %v10203_v8 = vunpack.i.h.bf16 %v14453_v30  ;;  %v4399_v36 = vld [vmem:[#allocation2 + $0x139] sm:$0xff]  ;;  %v4354_v37 = vld [vmem:[#allocation2 + $0x248] sm:$0xff]  ;;  %v17349_v22 = vld [vmem:[#allocation8_spill] sm:$0xff] }
 0x49f   :  { %10410 = vrot.lane.b32.xlu2 %v14533_v5, %s10845_s1  ;;  %v14667_v58 = vpop.f32.mrf.mxu3  ;;  %10415 = vrot.lane.b32.xlu0 %v14590_v4, %s10843_s24  ;;  %v7054_v5 = vpop.f32.mrf.mxu2  ;;  %v7737_v4 = vrot.slane %v14653_v12, 4  ;;  %v10212_v29 = vunpack.i.l.bf16 %v14508_v31  ;;  %v14700_v30 = vperm.slane %v14564_v3, %v14673_v16  ;;  %v6447_v59 = vsel %vm291_vm0, %v4399_v36, %v10187_v13  ;;  %v10755_v3 = vld [vmem:[%s16996_s0 + $0x38] sm:$0xff]  ;;  %v17350_v13 = vld [vmem:[#allocation74_spill] sm:$0xff] }
 0x4a0   :  { %10420 = vrot.lane.b32.xlu1 %v14648_v62, %s10843_s24  ;;  %v14681_v14 = vpop.permute.xlu0 %10220  ;;  %v7512_v60 = vsel %vm7499_vm3, %v7511_v11, %v7436_v15  ;;  %v7055_v23 = vadd.f32 %v7054_v5, %v14493_v2  ;;  %v10206_v38 = vpop.permute.xlu1 %10205  ;;  %v3936_v55 = vadd.f32 %v14448_v53, %v3868_v26  ;;  %v6386_v63 = vsel %vm2743_vm2, %v6322_v24, %v10203_v8  ;;  %v820_v26 = vld [vmem:[#allocation2 + $0x339] sm:$0xff] }
 0x4a1   :  { %v14688_v52 = vpop.permute.xlu2 %10265  ;;  %v14693_v44 = vperm.slane %v7512_v60, %v14673_v16  ;;  %v3556_v56 = vpop.f32.mrf.mxu1  ;;  %v10207_v15 = vunpack.i.l.bf16 %v10206_v38  ;;  %v10188_v50 = vunpack.i.h.bf16 %v14558_v32  ;;  %v14714_v11 = vpack.i.bf16 %v4672_v28, %v14640_v40 }
 0x4a2   :  { %v7264_v2 = vadd.f32 %v13908_v33, %v7055_v23  ;;  %v4000_v27 = vmax.f32 %v3936_v55, 0.0  ;;  %v3557_v19 = vadd.f32 %v3556_v56, %v17349_v22  ;;  %3603 = vmatmul.f32.gmra.mxu1 %v2998_v43  ;;  %v10208_v43 = vunpack.i.h.bf16 %v10206_v38  ;;  %v4400_v56 = vld [vmem:[#allocation2 + $0x141] sm:$0xff] }
 0x4a3   :  { %v7547_v1 = vrot.slane %v14693_v44, 4  ;;  %v6511_v18 = vsel %vm2678_vm1, %v6447_v59, %v10207_v15  ;;  %v14719_v24 = vpack.i.bf16 %v4354_v37, %v4353_v0  ;;  %v9788_v8 = vunpack.i.h.bf16 %v17346_v10 }
 0x4a4   :  { %v7441_v33 = vadd.f32 %v10755_v3, %v7264_v2  ;;  %6904 = vmatmul.f32.gmra.mxu3 %v6386_v63  ;;  %8774 = vmatmul.msk.f32.gmra.mxu0 %vm291_vm0, %v4672_v28  ;;  %4100 = vst.msk [vmem:[#allocation2 + $0x261] sm:$0xff] %vm291_vm0, %v4000_v27  ;;  %v3766_v32 = vadd.f32 %v17350_v13, %v3557_v19  ;;  %v10197_v60 = vunpack.i.l.bf16 %v14624_v45  ;;  %v10193_v22 = vunpack.i.h.bf16 %v14390_v46 }
 0x4a5   :  { %v6575_v5 = vsel %vm2743_vm2, %v6511_v18, %v10212_v29  ;;  %v10213_v19 = vunpack.i.h.bf16 %v14508_v31  ;;  %v14767_v3 = vperm.slane %v14543_v35, %v14673_v16  ;;  %v7549_v18 = vrot.slane %v14700_v30, 4  ;;  %v14772_v0 = vpop.f32.mrf.mxu0 }
 0x4a6   :  { %v7735_v23 = vrot.slane %v7441_v33, 4  ;;  %v7738_v55 = vsel %vm7499_vm3, %v7441_v33, %v7737_v4  ;;  %7104 = vmatmul.f32.gmra.mxu2 %v6575_v5  ;;  %v3869_v38 = vmul.f32 %v14425_v7, %v3766_v32  ;;  %v2871_v4 = vsel %vm291_vm0, %v820_v26, %v9468_v49  ;;  %v17352_v5 = vld [vmem:[#allocation78_spill] sm:$0xff] }
 0x4a7   :  { %10440 = vrot.lane.b32.xlu2 %v14648_v62, %s10845_s1  ;;  %v14726_v40 = vpop.f32.mrf.mxu3  ;;  %10425 = vrot.lane.b32.xlu0 %v14714_v11, %s10844_s16  ;;  %v7057_v10 = vpop.f32.mrf.mxu2  ;;  %v14740_v62 = vsel %vm7499_vm3, %v7547_v1, %v14700_v30  ;;  %v6448_v49 = vsel %vm291_vm0, %v4400_v56, %v10188_v50  ;;  %v2935_v1 = vsel %vm2678_vm1, %v2871_v4, %v9628_v42  ;;  %v17351_v42 = vld [vmem:[#allocation16_spill] sm:$0xff]  ;;  %v10217_v31 = vunpack.i.l.bf16 %v14609_v57 }
 0x4a8   :  { %10430 = vrot.lane.b32.xlu1 %v14719_v24, %s10845_s1  ;;  %v14733_v29 = vpop.permute.xlu0 %10230  ;;  %v7736_v28 = vsel %vm7499_vm3, %v7735_v23, %v14653_v12  ;;  %v14745_v2 = vadd.f32 %v7057_v10, %v14550_v20  ;;  %v14747_v15 = vpop.permute.xlu1 %10235  ;;  %v3937_v37 = vadd.f32 %v14448_v53, %v3869_v38  ;;  %v6259_v20 = vsel %vm291_vm0, %v4147_v48, %v10192_v41 }
 0x4a9   :  { %v10232_v63 = vunpack.i.l.bf16 %v14733_v29  ;;  %v14750_v36 = vpop.permute.xlu2 %10270  ;;  %v3559_v27 = vpop.f32.mrf.mxu1  ;;  %v6512_v12 = vsel %vm2678_vm1, %v6448_v49, %v10208_v43  ;;  %v2999_v59 = vsel %vm2743_vm2, %v2935_v1, %v9788_v8  ;;  %v6323_v50 = vsel %vm2678_vm1, %v6259_v20, %v10197_v60  ;;  %v4229_v43 = vld [vmem:[#allocation2 + $0x259] sm:$0xff] }
 0x4aa   :  { %v4001_v54 = vmax.f32 %v3937_v37, 0.0  ;;  %v3560_v33 = vadd.f32 %v3559_v27, %v17351_v42  ;;  %3606 = vmatmul.f32.gmra.mxu1 %v2999_v59  ;;  %v14776_v46 = vperm.slane %v14663_v51, %v14673_v16  ;;  %v6576_v35 = vsel %vm2743_vm2, %v6512_v12, %v10213_v19  ;;  %v4148_v60 = vld [vmem:[#allocation2 + $0x158] sm:$0xff]  ;;  %v17353_v19 = vld [vmem:[#allocation48_spill] sm:$0xff] }
 0x4ab   :  { %v6387_v41 = vsel %vm2743_vm2, %v6323_v50, %v10232_v63  ;;  %v4673_v26 = vld [vmem:[#allocation2 + $0x25a] sm:$0xff]  ;;  %v14781_v32 = vperm.slane %v7736_v28, %v14673_v16  ;;  %v10237_v30 = vunpack.i.l.bf16 %v14747_v15  ;;  %v10198_v23 = vunpack.i.h.bf16 %v14624_v45  ;;  %v4401_v45 = vld [vmem:[#allocation2 + $0x151] sm:$0xff] }
 0x4ac   :  { %6907 = vmatmul.f32.gmra.mxu3 %v6387_v41  ;;  %v4230_v13 = vld [vmem:[#allocation2 + $0x261] sm:$0xff]  ;;  %4101 = vst.msk [vmem:[#allocation2 + $0x271] sm:$0xff] %vm291_vm0, %v4001_v54  ;;  %v3769_v8 = vadd.f32 %v17352_v5, %v3560_v33  ;;  %8775 = vmatmul.msk.f32.gmra.mxu0 %vm291_vm0, %v4673_v26  ;;  %v6260_v10 = vsel %vm291_vm0, %v4148_v60, %v10193_v22  ;;  %v10233_v56 = vunpack.i.h.bf16 %v14733_v29  ;;  %v7561_v49 = vrot.slane %v14767_v3, 4 }
 0x4ad   :  { %v14787_v51 = vpack.i.bf16 %v4230_v13, %v4229_v43  ;;  %v14794_v4 = vperm.slane %v7738_v55, %v14673_v16  ;;  %v14804_v48 = vsel %vm7499_vm3, %v14693_v44, %v7549_v18  ;;  %v7730_v55 = vperm.slane %v14621_v25, %v14673_v16  ;;  %v4356_v22 = vld [vmem:[#allocation2 + $0x260] sm:$0xff]  ;;  %v17354_v13 = vld [vmem:[#allocation79_spill] sm:$0xff] }
 0x4ae   :  { %7107 = vmatmul.f32.gmra.mxu2 %v6576_v35  ;;  %v3870_v28 = vmul.f32 %v14425_v7, %v3769_v8  ;;  %v6449_v27 = vsel %vm291_vm0, %v4401_v45, %v10217_v31  ;;  %v7559_v44 = vrot.slane %v14776_v46, 4  ;;  %v7771_v1 = vrot.slane %v14781_v32, 4  ;;  %v4674_v54 = vld [vmem:[#allocation2 + $0x262] sm:$0xff]  ;;  %v4355_v35 = vld [vmem:[#allocation2 + $0x258] sm:$0xff] }
 0x4af   :  { %v14790_v38 = vpop.f32.mrf.mxu3  ;;  %10450 = vrot.lane.b32.xlu2 %v14787_v51, %s10843_s24  ;;  %10445 = vrot.lane.b32.xlu0 %v14714_v11, %s10843_s24  ;;  %v7060_v63 = vpop.f32.mrf.mxu2  ;;  %v6513_v25 = vsel %vm2678_vm1, %v6449_v27, %v10237_v30  ;;  %v6324_v50 = vsel %vm2678_vm1, %v6260_v10, %v10198_v23  ;;  %v14829_v42 = vperm.slane %v14599_v9, %v14673_v16  ;;  %v7783_v33 = vrot.slane %v14794_v4, 4  ;;  %v4149_v23 = vld [vmem:[#allocation2 + $0x168] sm:$0xff] }
 0x4b0   :  { %10435 = vrot.lane.b32.xlu1 %v14719_v24, %s10844_s16  ;;  %v14812_v29 = vadd.f32 %v7060_v63, %v14604_v47  ;;  %v14816_v11 = vpop.permute.xlu1 %10250  ;;  %v3938_v20 = vadd.f32 %v14448_v53, %v3870_v28  ;;  %v10242_v24 = vunpack.i.l.bf16 %v14626_v34  ;;  %v10222_v47 = vunpack.i.l.bf16 %v14681_v14  ;;  %v14832_v18 = vpop.permute.xlu0 %10245 }
 0x4b1   :  { %v14814_v37 = vpop.permute.xlu2 %10280  ;;  %v3562_v12 = vpop.f32.mrf.mxu1  ;;  %v6388_v31 = vsel %vm2743_vm2, %v6324_v50, %v10233_v56  ;;  %v10218_v43 = vunpack.i.h.bf16 %v14609_v57  ;;  %v10459_v8 = vpack.i.bf16 %v4356_v22, %v4355_v35  ;;  %v7773_v60 = vrot.slane %v7730_v55, 4 }
 0x4b2   :  { %v3563_v59 = vadd.f32 %v3562_v12, %v17353_v19  ;;  %v4002_v41 = vmax.f32 %v3938_v20, 0.0  ;;  %v6577_v5 = vsel %vm2743_vm2, %v6513_v25, %v10242_v24  ;;  %v10474_v9 = vpack.i.bf16 %v4674_v54, %v4673_v26  ;;  %v14847_v57 = vpop.f32.mrf.mxu0 }
 0x4b3   :  { %v14842_v10 = vsel %vm7499_vm3, %v7559_v44, %v14767_v3  ;;  %v14845_v56 = vsel %vm7499_vm3, %v7771_v1, %v7730_v55  ;;  %v10238_v28 = vunpack.i.h.bf16 %v14747_v15  ;;  %v6261_v27 = vsel %vm291_vm0, %v4149_v23, %v10222_v47  ;;  %v17357_v47 = vld [vmem:[#allocation43_spill] sm:$0xff] }
 0x4b4   :  { %v3772_v30 = vadd.f32 %v17354_v13, %v3563_v59  ;;  %6910 = vmatmul.f32.gmra.mxu3 %v6388_v31  ;;  %4102 = vst.msk [vmem:[#allocation2 + $0x279] sm:$0xff] %vm291_vm0, %v4002_v41  ;;  %8776 = vmatmul.msk.f32.gmra.mxu0 %vm291_vm0, %v4674_v54  ;;  %v10252_v26 = vunpack.i.l.bf16 %v14816_v11  ;;  %v14859_v55 = vsel %vm7499_vm3, %v14776_v46, %v7561_v49  ;;  %v10227_v1 = vunpack.i.l.bf16 %v14570_v39  ;;  %v4402_v46 = vld [vmem:[#allocation2 + $0x159] sm:$0xff] }
 0x4b5   :  { %17355 = vst [vmem:[#allocation53_spill] sm:$0xff] %v14845_v56  ;;  %v14863_v15 = vsel %vm7499_vm3, %v14781_v32, %v7773_v60  ;;  %v14867_v44 = vsel %vm7499_vm3, %v7783_v33, %v14829_v42  ;;  %v6450_v32 = vsel %vm291_vm0, %v4402_v46, %v10218_v43  ;;  %v10243_v54 = vunpack.i.h.bf16 %v14626_v34  ;;  %v17358_v41 = vld [vmem:[#allocation82_spill] sm:$0xff]  ;;  %v4231_v43 = vld [vmem:[#allocation2 + $0x271] sm:$0xff] }
 0x4b6   :  { %v3871_v63 = vmul.f32 %v14425_v7, %v3772_v30  ;;  %7110 = vmatmul.f32.gmra.mxu2 %v6577_v5  ;;  %17356 = vst [vmem:[#allocation20_spill] sm:$0xff] %v14867_v44  ;;  %v6325_v59 = vsel %vm2678_vm1, %v6261_v27, %v10227_v1  ;;  %v6514_v50 = vsel %vm2678_vm1, %v6450_v32, %v10238_v28  ;;  %v10247_v30 = vunpack.i.l.bf16 %v14832_v18  ;;  %v4150_v28 = vld [vmem:[#allocation2 + $0x170] sm:$0xff] }
 0x4b7   :  { %v14851_v45 = vpop.f32.mrf.mxu3  ;;  %10460 = vrot.lane.b32.xlu2 %v10459_v8, %s10845_s1  ;;  %10475 = vrot.lane.b32.xlu0 %v10474_v9, %s10843_s24  ;;  %v7063_v3 = vpop.f32.mrf.mxu2  ;;  %v6389_v33 = vsel %vm2743_vm2, %v6325_v59, %v10252_v26  ;;  %v6578_v34 = vsel %vm2743_vm2, %v6514_v50, %v10243_v54  ;;  %v17361_v59 = vld [vmem:[#allocation21_spill] sm:$0xff] }
 0x4b8   :  { %v3939_v20 = vadd.f32 %v14448_v53, %v3871_v63  ;;  %10455 = vrot.lane.b32.xlu1 %v10474_v9, %s10844_s16  ;;  %v14873_v12 = vadd.f32 %v7063_v3, %v14667_v58  ;;  %v14878_v24 = vpop.permute.xlu1 %10255  ;;  %v10223_v58 = vunpack.i.h.bf16 %v14681_v14  ;;  %v14889_v5 = vpop.permute.xlu0 %10275  ;;  %v10253_v63 = vunpack.i.h.bf16 %v14816_v11 }
 0x4b9   :  { %v14875_v25 = vpop.permute.xlu2 %10290  ;;  %v3565_v49 = vpop.f32.mrf.mxu1  ;;  %v10257_v14 = vunpack.i.l.bf16 %v14878_v24  ;;  %v10228_v3 = vunpack.i.h.bf16 %v14570_v39 }
 0x4ba   :  { %v4003_v22 = vmax.f32 %v3939_v20, 0.0  ;;  %v3566_v19 = vadd.f32 %v3565_v49, %v17357_v47  ;;  %v6262_v26 = vsel %vm291_vm0, %v4150_v28, %v10223_v58  ;;  %v14906_v1 = vpop.f32.mrf.mxu0  ;;  %v17360_v49 = vld [vmem:[#allocation80_spill] sm:$0xff] }
 0x4bb   :  { %v4675_v35 = vld [vmem:[#allocation2 + $0x272] sm:$0xff]  ;;  %17359 = vst [vmem:[#allocation72_spill] sm:$0xff] %v14906_v1  ;;  %v9797_v32 = vunpack.i.l.bf16 %v17360_v49  ;;  %v6326_v50 = vsel %vm2678_vm1, %v6262_v26, %v10228_v3  ;;  %v4676_v54 = vld [vmem:[#allocation2 + $0x27a] sm:$0xff] }
 0x4bc   :  { %4103 = vst.msk [vmem:[#allocation2 + $0x289] sm:$0xff] %vm291_vm0, %v4003_v22  ;;  %v3775_v31 = vadd.f32 %v17358_v41, %v3566_v19  ;;  %6913 = vmatmul.f32.gmra.mxu3 %v6389_v33  ;;  %v4232_v13 = vld [vmem:[#allocation2 + $0x279] sm:$0xff]  ;;  %8777 = vmatmul.msk.f32.gmra.mxu0 %vm291_vm0, %v4675_v35  ;;  %v10272_v33 = vunpack.i.l.bf16 %v14750_v36  ;;  %v6390_v41 = vsel %vm2743_vm2, %v6326_v50, %v10253_v63  ;;  %v4404_v50 = vld [vmem:[#allocation2 + $0x171] sm:$0xff] }
 0x4bd   :  { %v14893_v60 = vpack.i.bf16 %v4232_v13, %v4231_v43  ;;  %v17362_v43 = vld [vmem:[#allocation81_spill] sm:$0xff]  ;;  %v10484_v26 = vpack.i.bf16 %v4676_v54, %v4675_v35 }
 0x4be   :  { %v3872_v9 = vmul.f32 %v14425_v7, %v3775_v31  ;;  %7113 = vmatmul.f32.gmra.mxu2 %v6578_v34  ;;  %v4151_v31 = vld [vmem:[#allocation2 + $0x1b0] sm:$0xff]  ;;  %v9807_v13 = vunpack.i.l.bf16 %v17362_v43 }
 0x4bf   :  { %v14897_v23 = vpop.f32.mrf.mxu3  ;;  %10470 = vrot.lane.b32.xlu2 %v14787_v51, %s10845_s1  ;;  %10480 = vrot.lane.b32.xlu0 %v14893_v60, %s10843_s24  ;;  %v7066_v27 = vpop.f32.mrf.mxu2  ;;  %v4403_v51 = vld [vmem:[#allocation2 + $0x169] sm:$0xff] }
 0x4c0   :  { %v3940_v20 = vadd.f32 %v14448_v53, %v3872_v9  ;;  %10465 = vrot.lane.b32.xlu1 %v10459_v8, %s10844_s16  ;;  %v14911_v46 = vadd.f32 %v7066_v27, %v14726_v40  ;;  %v6451_v47 = vsel %vm291_vm0, %v4403_v51, %v10247_v30  ;;  %v4358_v8 = vld [vmem:[#allocation2 + $0x278] sm:$0xff]  ;;  %v7785_v40 = vrot.slane %v14829_v42, 4  ;;  %v17363_v30 = vld [vmem:[#allocation22_spill] sm:$0xff]  ;;  %v14928_v28 = vpop.permute.xlu1 %10260  ;;  %v4357_v42 = vld [vmem:[#allocation2 + $0x270] sm:$0xff] }
 0x4c1   :  { %v14913_v11 = vpop.permute.xlu2 %10305  ;;  %v3568_v22 = vpop.f32.mrf.mxu1  ;;  %v6515_v58 = vsel %vm2678_vm1, %v6451_v47, %v10257_v14  ;;  %v7267_v34 = vadd.f32 %v17363_v30, %v14745_v2  ;;  %v10248_v9 = vunpack.i.h.bf16 %v14832_v18  ;;  %v17364_v14 = vld [vmem:[#allocation83_spill] sm:$0xff]  ;;  %v10489_v3 = vpack.i.bf16 %v4358_v8, %v4357_v42 }
 0x4c2   :  { %v4004_v19 = vmax.f32 %v3940_v20, 0.0  ;;  %v3569_v39 = vadd.f32 %v3568_v22, %v17361_v59  ;;  %v6579_v63 = vsel %vm2743_vm2, %v6515_v58, %v10272_v33  ;;  %v14935_v20 = vsel %vm7499_vm3, %v14794_v4, %v7785_v40  ;;  %v10756_v4 = vld [vmem:[%s16996_s0 + $0x40] sm:$0xff]  ;;  %v14958_v33 = vpop.f32.mrf.mxu0 }
 0x4c3   :  { %v10258_v2 = vunpack.i.h.bf16 %v14878_v24  ;;  %v6263_v22 = vsel %vm291_vm0, %v4151_v31, %v9797_v32  ;;  %v10292_v47 = vunpack.i.l.bf16 %v14875_v25  ;;  %v7442_v24 = vadd.f32 %v10756_v4, %v7267_v34  ;;  %17365 = vst [vmem:[#allocation15_spill] sm:$0xff] %v14958_v33  ;;  %v17366_v31 = vld [vmem:[#allocation38_spill] sm:$0xff]  ;;  %v17367_v34 = vld [vmem:[#allocation23_spill] sm:$0xff]  ;;  %v17369_v4 = vld [vmem:[#allocation84_spill] sm:$0xff] }
 0x4c4   :  { %4104 = vst.msk [vmem:[#allocation2 + $0x291] sm:$0xff] %vm291_vm0, %v4004_v19  ;;  %v3778_v27 = vadd.f32 %v17364_v14, %v3569_v39  ;;  %6916 = vmatmul.f32.gmra.mxu3 %v6390_v41  ;;  %8778 = vmatmul.msk.f32.gmra.mxu0 %vm291_vm0, %v4676_v54  ;;  %v14943_v19 = vpop.permute.xlu0 %10295  ;;  %v9798_v54 = vunpack.i.h.bf16 %v17360_v49  ;;  %v6327_v8 = vsel %vm2678_vm1, %v6263_v22, %v9807_v13  ;;  %v10273_v42 = vunpack.i.h.bf16 %v14750_v36 }
 0x4c5   :  { %v6452_v40 = vsel %vm291_vm0, %v4404_v50, %v10248_v9  ;;  %v4233_v9 = vld [vmem:[#allocation2 + $0x289] sm:$0xff]  ;;  %v7525_v22 = vrot.slane %v7442_v24, 4 }
 0x4c6   :  { %v3873_v18 = vmul.f32 %v14425_v7, %v3778_v27  ;;  %7116 = vmatmul.f32.gmra.mxu2 %v6579_v63  ;;  %v6516_v27 = vsel %vm2678_vm1, %v6452_v40, %v10258_v2  ;;  %v17368_v63 = vld [vmem:[#allocation29_spill] sm:$0xff] }
 0x4c7   :  { %v14939_v51 = vpop.f32.mrf.mxu3  ;;  %10485 = vrot.lane.b32.xlu2 %v10484_v26, %s10844_s16  ;;  %10490 = vrot.lane.b32.xlu0 %v10489_v3, %s10845_s1  ;;  %v7069_v35 = vpop.f32.mrf.mxu2  ;;  %v7270_v49 = vadd.f32 %v17368_v63, %v14812_v29  ;;  %v9808_v29 = vunpack.i.h.bf16 %v17362_v43  ;;  %v4405_v63 = vld [vmem:[#allocation2 + $0x181] sm:$0xff] }
 0x4c8   :  { %v3941_v59 = vadd.f32 %v14448_v53, %v3873_v18  ;;  %10495 = vrot.lane.b32.xlu1 %v10489_v3, %s10844_s16  ;;  %v7070_v32 = vadd.f32 %v7069_v35, %v14790_v38  ;;  %v4152_v38 = vld [vmem:[#allocation2 + $0x1b8] sm:$0xff]  ;;  %v6391_v3 = vsel %vm2743_vm2, %v6327_v8, %v10292_v47  ;;  %v10757_v35 = vld [vmem:[%s16996_s0 + $0x60] sm:$0xff]  ;;  %v10277_v47 = vunpack.i.l.bf16 %v14889_v5 }
 0x4c9   :  { %v14953_v39 = vpop.permute.xlu2 %10320  ;;  %v3571_v58 = vpop.f32.mrf.mxu1  ;;  %v6264_v50 = vsel %vm291_vm0, %v4152_v38, %v9798_v54  ;;  %v10758_v38 = vld [vmem:[%s16996_s0 + $0x48] sm:$0xff] }
 0x4ca   :  { %v4005_v41 = vmax.f32 %v3941_v59, 0.0  ;;  %v7279_v30 = vadd.f32 %v17366_v31, %v7070_v32  ;;  %v3572_v14 = vadd.f32 %v3571_v58, %v17367_v34  ;;  %v6580_v32 = vsel %vm2743_vm2, %v6516_v27, %v10273_v42 }
 0x4cb   :  { %v14967_v13 = vld [vmem:[#allocation2 + $0x28a] sm:$0xff]  ;;  %v10262_v58 = vunpack.i.l.bf16 %v14928_v28 }
 0x4cc   :  { %v4234_v18 = vld [vmem:[#allocation2 + $0x291] sm:$0xff]  ;;  %4105 = vst.msk [vmem:[#allocation2 + $0x2a1] sm:$0xff] %vm291_vm0, %v4005_v41  ;;  %v7446_v2 = vadd.f32 %v10757_v35, %v7279_v30  ;;  %v3781_v59 = vadd.f32 %v17369_v4, %v3572_v14  ;;  %6919 = vmatmul.f32.gmra.mxu3 %v6391_v3  ;;  %8779 = vmatmul.msk.f32.gmra.mxu0 %vm291_vm0, %v14967_v13  ;;  %v14986_v41 = vpop.permute.xlu1 %10285  ;;  %v10293_v30 = vunpack.i.h.bf16 %v14875_v25  ;;  %v10847_v14 = vmov 1934713408  }
 0x4cd   :  { %v14974_v36 = vpack.i.bf16 %v4234_v18, %v4233_v9  ;;  %v7552_v27 = vunpack.c.l.s4 %v10847_v14  ;;  %v6328_v9 = vsel %vm2678_vm1, %v6264_v50, %v9808_v29  ;;  %v6453_v18 = vsel %vm291_vm0, %v4405_v63, %v10277_v47  ;;  %v4360_v29 = vld [vmem:[#allocation2 + $0x290] sm:$0xff]  ;;  %v15019_v50 = vpop.f32.mrf.mxu0  ;;  %v4359_v63 = vld [vmem:[#allocation2 + $0x288] sm:$0xff] }
 0x4ce   :  { %v7523_v8 = vrot.slane %v7446_v2, 4  ;;  %v14984_v40 = vsel %vm7499_vm3, %v7446_v2, %v7525_v22  ;;  %v3874_v31 = vmul.f32 %v14425_v7, %v3781_v59  ;;  %7119 = vmatmul.f32.gmra.mxu2 %v6580_v32  ;;  %v7443_v7 = vadd.f32 %v10758_v38, %v7270_v49  ;;  %v4678_v2 = vld [vmem:[#allocation2 + $0x292] sm:$0xff]  ;;  %v17372_v32 = vld [vmem:[#allocation39_spill] sm:$0xff]  ;;  %17373 = vst [vmem:[#allocation51_spill] sm:$0xff] %v15019_v50 }
 0x4cf   :  { %v14989_v43 = vpop.f32.mrf.mxu3  ;;  %10500 = vrot.lane.b32.xlu2 %v14893_v60, %s10845_s1  ;;  %10505 = vrot.lane.b32.xlu0 %v10484_v26, %s10843_s24  ;;  %v7072_v54 = vpop.f32.mrf.mxu2  ;;  %v10267_v49 = vunpack.i.l.bf16 %v14688_v52  ;;  %v10282_v4 = vunpack.i.l.bf16 %v14814_v37  ;;  %v15026_v38 = vunpack.c.0.s8 %v7552_v27  ;;  %v15039_v27 = vpack.i.bf16 %v4360_v29, %v4359_v63  ;;  %v17377_v63 = vld [vmem:[#allocation46_spill] sm:$0xff] }
 0x4d0   :  { %v14995_v34 = vpop.permute.xlu0 %10300  ;;  %v15001_v42 = vsel %vm7499_vm3, %v7523_v8, %v7442_v24  ;;  %v3942_v25 = vadd.f32 %v14448_v53, %v3874_v31  ;;  %10510 = vrot.lane.b32.xlu1 %v14974_v36, %s10843_s24  ;;  %v7073_v60 = vadd.f32 %v7072_v54, %v14851_v45  ;;  %v17370_v24 = vld [vmem:[#allocation70_spill] sm:$0xff]  ;;  %v6517_v53 = vsel %vm2678_vm1, %v6453_v18, %v10262_v58  ;;  %v17371_v45 = vld [vmem:[#allocation40_spill] sm:$0xff]  ;;  %v10759_v58 = vld [vmem:[%s16996_s0 + $0x68] sm:$0xff] }
 0x4d1   :  { %v15007_v26 = vpop.permute.xlu2 %10350  ;;  %v3574_v3 = vpop.f32.mrf.mxu1  ;;  %v7273_v59 = vadd.f32 %v17371_v45, %v14873_v12  ;;  %v6392_v31 = vsel %vm2743_vm2, %v6328_v9, %v10293_v30  ;;  %v7749_v47 = vrot.slane %v7443_v7, 4  ;;  %v10278_v54 = vunpack.i.h.bf16 %v14889_v5 }
 0x4d2   :  { %v4006_v22 = vmax.f32 %v3942_v25, 0.0  ;;  %v7282_v35 = vadd.f32 %v17370_v24, %v7073_v60  ;;  %v3575_v8 = vadd.f32 %v3574_v3, %v17372_v32  ;;  %v10287_v12 = vunpack.i.l.bf16 %v14986_v41  ;;  %v17374_v25 = vld [vmem:[#allocation85_spill] sm:$0xff]  ;;  %v4153_v24 = vld [vmem:[#allocation2 + $0x1c8] sm:$0xff] }
 0x4d3   :  { %v6581_v60 = vsel %vm2743_vm2, %v6517_v53, %v10267_v49  ;;  %v15033_v5 = vpack.i.bf16 %v4678_v2, %v14967_v13  ;;  %v10263_v3 = vunpack.i.h.bf16 %v14928_v28  ;;  %v10760_v13 = vld [vmem:[%s16996_s0 + $0x50] sm:$0xff]  ;;  %v15052_v28 = vld [vmem:[%s16999_s3] ss:$0 sm:$0xff]  ;;  %v6265_v45 = vsel %vm291_vm0, %v4153_v24, %v10282_v4 }
 0x4d4   :  { %4106 = vst.msk [vmem:[#allocation2 + $0x2a9] sm:$0xff] %vm291_vm0, %v4006_v22  ;;  %v7447_v14 = vadd.f32 %v10759_v58, %v7282_v35  ;;  %6922 = vmatmul.f32.gmra.mxu3 %v6392_v31  ;;  %v3784_v30 = vadd.f32 %v17374_v25, %v3575_v8  ;;  %8780 = vmatmul.msk.f32.gmra.mxu0 %vm291_vm0, %v4678_v2  ;;  %v10268_v35 = vunpack.i.h.bf16 %v14688_v52  ;;  %v15067_v31 = vpop.permute.xlu1 %10315  ;;  %v4406_v58 = vld [vmem:[#allocation2 + $0x189] sm:$0xff]  ;;  %v10283_v4 = vunpack.i.h.bf16 %v14814_v37 }
 0x4d5   :  { %v15047_v49 = vadd.f32 %v10760_v13, %v7273_v59  ;;  %v17375_v59 = vld [vmem:[#allocation9_spill] sm:$0xff]  ;;  %v6329_v25 = vsel %vm2678_vm1, %v6265_v45, %v10287_v12 }
 0x4d6   :  { %v7747_v9 = vrot.slane %v7447_v14, 4  ;;  %v15037_v18 = vsel %vm7499_vm3, %v7447_v14, %v7749_v47  ;;  %7122 = vmatmul.f32.gmra.mxu2 %v6581_v60  ;;  %v3875_v2 = vmul.f32 %v15052_v28, %v3784_v30  ;;  %v7276_v32 = vadd.f32 %v17375_v59, %v14911_v46  ;;  %v15079_v46 = vld [vmem:[%s17000_s4] ss:$0 sm:$0xff]  ;;  %v10763_v12 = vld [vmem:[%s16996_s0 + $0x58] sm:$0xff] }
 0x4d7   :  { %v15041_v22 = vpop.f32.mrf.mxu3  ;;  %10530 = vrot.lane.b32.xlu2 %v14974_v36, %s10845_s1  ;;  %10515 = vrot.lane.b32.xlu0 %v15033_v5, %s10844_s16  ;;  %v7075_v52 = vpop.f32.mrf.mxu2  ;;  %v6454_v30 = vsel %vm291_vm0, %v4406_v58, %v10278_v54  ;;  %v7537_v13 = vrot.slane %v15047_v49, 4  ;;  %v15094_v54 = vperm.slane %v14804_v48, %v15026_v38  ;;  %v10288_v48 = vunpack.i.h.bf16 %v14986_v41 }
 0x4d8   :  { %v15059_v53 = vpop.permute.xlu0 %10310  ;;  %v15065_v8 = vsel %vm7499_vm3, %v7747_v9, %v7443_v7  ;;  %10520 = vrot.lane.b32.xlu1 %v15039_v27, %s10845_s1  ;;  %v7076_v36 = vadd.f32 %v7075_v52, %v14897_v23  ;;  %v3943_v7 = vadd.f32 %v15079_v46, %v3875_v2  ;;  %v17376_v23 = vld [vmem:[#allocation18_spill] sm:$0xff]  ;;  %v6518_v37 = vsel %vm2678_vm1, %v6454_v30, %v10263_v3  ;;  %v10764_v3 = vld [vmem:[%s16996_s0 + $0x70] sm:$0xff] }
 0x4d9   :  { %v15072_v29 = vpop.permute.xlu2 %10360  ;;  %v10312_v47 = vunpack.i.l.bf16 %v15059_v53  ;;  %v3577_v14 = vpop.f32.mrf.mxu1  ;;  %v10297_v52 = vunpack.i.l.bf16 %v14943_v19  ;;  %v4235_v2 = vld [vmem:[#allocation2 + $0x2a1] sm:$0xff]  ;;  %v15099_v45 = vadd.f32 %v10763_v12, %v7276_v32  ;;  %v6582_v32 = vsel %vm2743_vm2, %v6518_v37, %v10268_v35 }
 0x4da   :  { %v7285_v60 = vadd.f32 %v17376_v23, %v7076_v36  ;;  %v3578_v9 = vadd.f32 %v3577_v14, %v17377_v63  ;;  %v4007_v59 = vmax.f32 %v3943_v7, 0.0  ;;  %v4154_v14 = vld [vmem:[#allocation2 + $0x1d0] sm:$0xff]  ;;  %v15114_v23 = vpop.f32.mrf.mxu0 }
 0x4db   :  { %v6393_v24 = vsel %vm2743_vm2, %v6329_v25, %v10312_v47  ;;  %v15090_v44 = vld [vmem:[#allocation2 + $0x2a2] sm:$0xff]  ;;  %v10317_v25 = vunpack.i.l.bf16 %v15067_v31  ;;  %v6266_v30 = vsel %vm291_vm0, %v4154_v14, %v10283_v4  ;;  %17379 = vst [vmem:[#allocation28_spill] sm:$0xff] %v15114_v23  ;;  %v10313_v4 = vunpack.i.h.bf16 %v15059_v53 }
 0x4dc   :  { %v4236_v50 = vld [vmem:[#allocation2 + $0x2a9] sm:$0xff]  ;;  %v7448_v36 = vadd.f32 %v10764_v3, %v7285_v60  ;;  %v17378_v47 = vld [vmem:[#allocation86_spill] sm:$0xff]  ;;  %6925 = vmatmul.f32.gmra.mxu3 %v6393_v24  ;;  %4107 = vst.msk [vmem:[#allocation2 + $0x2b9] sm:$0xff] %vm291_vm0, %v4007_v59  ;;  %8781 = vmatmul.msk.f32.gmra.mxu0 %vm291_vm0, %v15090_v44  ;;  %v6330_v14 = vsel %vm2678_vm1, %v6266_v30, %v10288_v48  ;;  %v10302_v48 = vunpack.i.l.bf16 %v14995_v34 }
 0x4dd   :  { %v3787_v58 = vadd.f32 %v17378_v47, %v3578_v9  ;;  %v15105_v7 = vpack.i.bf16 %v4236_v50, %v4235_v2  ;;  %v7530_v50 = vperm.slane %v15001_v42, %v14673_v16  ;;  %v4407_v24 = vld [vmem:[#allocation2 + $0x1c9] sm:$0xff]  ;;  %v7761_v2 = vrot.slane %v15099_v45, 4 }
 0x4de   :  { %v7535_v60 = vrot.slane %v7448_v36, 4  ;;  %v7538_v63 = vsel %vm7499_vm3, %v7448_v36, %v7537_v13  ;;  %7125 = vmatmul.f32.gmra.mxu2 %v6582_v32  ;;  %v6455_v13 = vsel %vm291_vm0, %v4407_v24, %v10297_v52  ;;  %v10322_v47 = vunpack.i.l.bf16 %v14953_v39  ;;  %v4680_v32 = vld [vmem:[#allocation2 + $0x2aa] sm:$0xff] }
 0x4df   :  { %v3876_v41 = vmul.f32 %v15052_v28, %v3787_v58  ;;  %v15120_v9 = vpop.f32.mrf.mxu3  ;;  %v15124_v35 = vperm.slane %v7538_v63, %v14673_v16  ;;  %10540 = vrot.lane.b32.xlu2 %v15105_v7, %s10843_s24  ;;  %10535 = vrot.lane.b32.xlu0 %v15033_v5, %s10843_s24  ;;  %v7078_v42 = vpop.f32.mrf.mxu2  ;;  %v7573_v24 = vrot.slane %v7530_v50, 4  ;;  %v17381_v59 = vld [vmem:[#allocation56_spill] sm:$0xff] }
 0x4e0   :  { %v15131_v37 = vpop.permute.xlu0 %10325  ;;  %v7536_v12 = vsel %vm7499_vm3, %v7535_v60, %v15047_v49  ;;  %10525 = vrot.lane.b32.xlu1 %v15039_v27, %s10844_s16  ;;  %v7079_v53 = vadd.f32 %v7078_v42, %v14939_v51  ;;  %v6519_v49 = vsel %vm2678_vm1, %v6455_v13, %v10317_v25  ;;  %v15151_v60 = vperm.slane %v14984_v40, %v14673_v16  ;;  %v17380_v51 = vld [vmem:[#allocation49_spill] sm:$0xff]  ;;  %v4361_v13 = vld [vmem:[#allocation2 + $0x2a0] sm:$0xff] }
 0x4e1   :  { %v3944_v3 = vadd.f32 %v15079_v46, %v3876_v41  ;;  %v15141_v36 = vpop.permute.xlu2 %10370  ;;  %v15143_v5 = vpop.permute.xlu1 %10330  ;;  %v7542_v52 = vperm.slane %v7536_v12, %v14673_v16  ;;  %v4362_v41 = vld [vmem:[#allocation2 + $0x2a8] sm:$0xff]  ;;  %v7583_v42 = vrot.slane %v15124_v35, 4  ;;  %v6394_v12 = vsel %vm2743_vm2, %v6330_v14, %v10313_v4  ;;  %v10765_v40 = vld [vmem:[%s16996_s0 + $0x78] sm:$0xff] }
 0x4e2   :  { %v3580_v58 = vpop.f32.mrf.mxu1  ;;  %v7288_v63 = vadd.f32 %v17380_v51, %v7079_v53  ;;  %v6583_v30 = vsel %vm2743_vm2, %v6519_v49, %v10322_v47  ;;  %v17382_v53 = vld [vmem:[#allocation12_spill] sm:$0xff]  ;;  %v15166_v4 = vpack.i.bf16 %v4362_v41, %v4361_v13 }
 0x4e3   :  { %v4008_v27 = vmax.f32 %v3944_v3, 0.0  ;;  %v3581_v23 = vadd.f32 %v3580_v58, %v17381_v59  ;;  %v7571_v33 = vrot.slane %v7542_v52, 4  ;;  %v10564_v3 = vpack.i.bf16 %v4680_v32, %v15090_v44 }
 0x4e4   :  { %v7449_v25 = vadd.f32 %v10765_v40, %v7288_v63  ;;  %6928 = vmatmul.f32.gmra.mxu3 %v6394_v12  ;;  %8782 = vmatmul.msk.f32.gmra.mxu0 %vm291_vm0, %v4680_v32  ;;  %v7574_v14 = vsel %vm7499_vm3, %v7542_v52, %v7573_v24  ;;  %v4408_v24 = vld [vmem:[#allocation2 + $0x1d1] sm:$0xff]  ;;  %v15196_v12 = vperm.slane %v14859_v55, %v15026_v38 }
 0x4e5   :  { %4108 = vst.msk [vmem:[#allocation2 + $0x2c1] sm:$0xff] %vm291_vm0, %v4008_v27  ;;  %v3790_v59 = vadd.f32 %v17382_v53, %v3581_v23  ;;  %v15169_v58 = vsel %vm7499_vm3, %v7571_v33, %v7530_v50  ;;  %v10318_v27 = vunpack.i.h.bf16 %v15067_v31  ;;  %v4155_v33 = vld [vmem:[#allocation2 + $0x1e0] sm:$0xff]  ;;  %v7601_v50 = vrot.slane %v15094_v54, 4  ;;  %v4156_v53 = vld [vmem:[#allocation2 + $0x1e8] sm:$0xff] }
 0x4e6   :  { %17383 = vst [vmem:[#allocation42_spill] sm:$0xff] %v15169_v58  ;;  %v7759_v51 = vrot.slane %v7449_v25, 4  ;;  %v7762_v63 = vsel %vm7499_vm3, %v7449_v25, %v7761_v2  ;;  %7128 = vmatmul.f32.gmra.mxu2 %v6583_v30  ;;  %v15185_v31 = vsel %vm7499_vm3, %v7583_v42, %v15151_v60  ;;  %v10303_v2 = vunpack.i.h.bf16 %v14995_v34 }
 0x4e7   :  { %v15174_v47 = vpop.f32.mrf.mxu3  ;;  %v3877_v44 = vmul.f32 %v15052_v28, %v3790_v59  ;;  %10550 = vrot.lane.b32.xlu2 %v15166_v4, %s10845_s1  ;;  %10565 = vrot.lane.b32.xlu0 %v10564_v3, %s10843_s24  ;;  %17384 = vst [vmem:[#allocation11_spill] sm:$0xff] %v15185_v31  ;;  %v6267_v41 = vsel %vm291_vm0, %v4155_v33, %v10302_v48  ;;  %v10307_v42 = vunpack.i.l.bf16 %v14913_v11  ;;  %v17385_v30 = vunpack.i.h.bf16 %v14943_v19  ;;  %v15208_v48 = vpop.f32.mrf.mxu0  ;;  %v17387_v33 = vld [vmem:[#allocation57_spill] sm:$0xff]  ;;  %v17391_v31 = vld [vmem:[#allocation88_spill] sm:$0xff] }
 0x4e8   :  { %v15180_v23 = vpop.permute.xlu0 %10335  ;;  %v7760_v52 = vsel %vm7499_vm3, %v7759_v51, %v15099_v45  ;;  %10545 = vrot.lane.b32.xlu1 %v10564_v3, %s10844_s16  ;;  %v7081_v32 = vpop.f32.mrf.mxu2  ;;  %17386 = vst [vmem:[#allocation65_spill] sm:$0xff] %v15208_v48  ;;  %v7582_v59 = vperm.slane %v7574_v14, %v15026_v38  ;;  %v10323_v51 = vunpack.i.h.bf16 %v14953_v39  ;;  %v7754_v39 = vperm.slane %v15065_v8, %v14673_v16 }
 0x4e9   :  { %v15191_v49 = vpop.permute.xlu2 %10380  ;;  %v3945_v40 = vadd.f32 %v15079_v46, %v3877_v44  ;;  %v15201_v34 = vadd.f32 %v7081_v32, %v14989_v43  ;;  %v15203_v45 = vpop.permute.xlu1 %10340  ;;  %v6456_v13 = vsel %vm291_vm0, %v4408_v24, %v17385_v30  ;;  %v15215_v43 = vperm.slane %v14863_v15, %v15026_v38  ;;  %v4237_v30 = vld [vmem:[#allocation2 + $0x2b9] sm:$0xff] }
 0x4ea   :  { %v3583_v25 = vpop.f32.mrf.mxu1  ;;  %v10342_v3 = vunpack.i.l.bf16 %v15203_v45  ;;  %v6520_v55 = vsel %vm2678_vm1, %v6456_v13, %v10318_v27  ;;  %v6331_v32 = vsel %vm2678_vm1, %v6267_v41, %v10307_v42  ;;  %v15221_v48 = vperm.slane %v7760_v52, %v14673_v16 }
 0x4eb   :  { %v4009_v44 = vmax.f32 %v3945_v40, 0.0  ;;  %v3584_v19 = vadd.f32 %v3583_v25, %v17387_v33  ;;  %v6268_v15 = vsel %vm291_vm0, %v4156_v53, %v10303_v2  ;;  %v17388_v40 = vld [vmem:[#allocation87_spill] sm:$0xff]  ;;  %v6584_v41 = vsel %vm2743_vm2, %v6520_v55, %v10323_v51 }
 0x4ec   :  { %v4681_v24 = vld [vmem:[#allocation2 + $0x2ba] sm:$0xff]  ;;  %v6395_v27 = vsel %vm2743_vm2, %v6331_v32, %v10342_v3  ;;  %v10308_v52 = vunpack.i.h.bf16 %v14913_v11  ;;  %v7585_v42 = vrot.slane %v15151_v60, 4  ;;  %v15239_v8 = vsel %vm7499_vm3, %v7582_v59, %v7601_v50 }
 0x4ed   :  { %v4238_v56 = vld [vmem:[#allocation2 + $0x2c1] sm:$0xff]  ;;  %4109 = vst.msk [vmem:[#allocation2 + $0x2d1] sm:$0xff] %vm291_vm0, %v4009_v44  ;;  %v3793_v25 = vadd.f32 %v17388_v40, %v3584_v19  ;;  %6931 = vmatmul.f32.gmra.mxu3 %v6395_v27  ;;  %8783 = vmatmul.msk.f32.gmra.mxu0 %vm291_vm0, %v4681_v24  ;;  %v10352_v13 = vunpack.i.l.bf16 %v15007_v26  ;;  %v15243_v3 = vperm.slane %v7762_v63, %v14673_v16  ;;  %v7599_v60 = vrot.slane %v7582_v59, 4 }
 0x4ee   :  { %v15224_v14 = vpack.i.bf16 %v4238_v56, %v4237_v30  ;;  %v10327_v56 = vunpack.i.l.bf16 %v15131_v37  ;;  %7131 = vmatmul.f32.gmra.mxu2 %v6584_v41  ;;  %17389 = vst [vmem:[#allocation75_spill] sm:$0xff] %v15239_v8  ;;  %v15254_v50 = vperm.slane %v15037_v18, %v14673_v16  ;;  %v10343_v55 = vunpack.i.h.bf16 %v15203_v45  ;;  %v4409_v45 = vld [vmem:[#allocation2 + $0x1e1] sm:$0xff] }
 0x4ef   :  { %v15236_v2 = vpop.f32.mrf.mxu3  ;;  %v3878_v53 = vmul.f32 %v15052_v28, %v3793_v25  ;;  %10560 = vrot.lane.b32.xlu2 %v15105_v7, %s10845_s1  ;;  %v6332_v7 = vsel %vm2678_vm1, %v6268_v15, %v10308_v52  ;;  %v7795_v44 = vrot.slane %v15221_v48, 4  ;;  %v10328_v33 = vunpack.i.h.bf16 %v15131_v37  ;;  %v17390_v40 = vld [vmem:[#allocation58_spill] sm:$0xff] }
 0x4f0   :  { %10570 = vrot.lane.b32.xlu0 %v15224_v14, %s10843_s24  ;;  %v15250_v11 = vpop.permute.xlu0 %10355  ;;  %10555 = vrot.lane.b32.xlu1 %v15166_v4, %s10844_s16  ;;  %v7084_v63 = vpop.f32.mrf.mxu2  ;;  %v7797_v30 = vrot.slane %v7754_v39, 4  ;;  %v10332_v4 = vunpack.i.l.bf16 %v15143_v5  ;;  %v4682_v41 = vld [vmem:[#allocation2 + $0x2c2] sm:$0xff]  ;;  %v6457_v15 = vsel %vm291_vm0, %v4409_v45, %v10327_v56  ;;  %v7807_v37 = vrot.slane %v15243_v3, 4 }
 0x4f1   :  { %v15259_v51 = vpop.permute.xlu2 %10395  ;;  %v3946_v59 = vadd.f32 %v15079_v46, %v3878_v53  ;;  %v15266_v19 = vadd.f32 %v7084_v63, %v15041_v22  ;;  %v10346_v18 = vpop.permute.xlu1 %10345  ;;  %v4364_v52 = vld [vmem:[#allocation2 + $0x2c0] sm:$0xff]  ;;  %v10337_v53 = vunpack.i.l.bf16 %v15180_v23  ;;  %v15275_v22 = vsel %vm7499_vm3, %v7599_v60, %v15094_v54 }
 0x4f2   :  { %v3586_v32 = vpop.f32.mrf.mxu1  ;;  %v10347_v27 = vunpack.i.l.bf16 %v10346_v18  ;;  %v15277_v63 = vpop.f32.mrf.mxu0  ;;  %v6396_v58 = vsel %vm2743_vm2, %v6332_v7, %v10343_v55  ;;  %v15283_v56 = vsel %vm7499_vm3, %v7795_v44, %v7754_v39  ;;  %v10574_v60 = vpack.i.bf16 %v4682_v41, %v4681_v24  ;;  %v4157_v24 = vld [vmem:[#allocation2 + $0x1f8] sm:$0xff] }
 0x4f3   :  { %v3587_v25 = vadd.f32 %v3586_v32, %v17390_v40  ;;  %v4010_v8 = vmax.f32 %v3946_v59, 0.0  ;;  %v4363_v40 = vld [vmem:[#allocation2 + $0x2b8] sm:$0xff]  ;;  %v10348_v45 = vunpack.i.h.bf16 %v10346_v18  ;;  %v7586_v7 = vsel %vm7499_vm3, %v15124_v35, %v7585_v42  ;;  %v4410_v18 = vld [vmem:[#allocation2 + $0x1e9] sm:$0xff] }
 0x4f4   :  { %v6521_v32 = vsel %vm2678_vm1, %v6457_v15, %v10347_v27  ;;  %v10579_v59 = vpack.i.bf16 %v4364_v52, %v4363_v40  ;;  %v7798_v39 = vsel %vm7499_vm3, %v15221_v48, %v7797_v30  ;;  %v6269_v44 = vsel %vm291_vm0, %v4157_v24, %v10332_v4 }
 0x4f5   :  { %v3796_v1 = vadd.f32 %v17391_v31, %v3587_v25  ;;  %4110 = vst.msk [vmem:[#allocation2 + $0x2d9] sm:$0xff] %vm291_vm0, %v4010_v8  ;;  %6934 = vmatmul.f32.gmra.mxu3 %v6396_v58  ;;  %8784 = vmatmul.msk.f32.gmra.mxu0 %vm291_vm0, %v4682_v41  ;;  %v6585_v54 = vsel %vm2743_vm2, %v6521_v32, %v10352_v13  ;;  %v7825_v27 = vrot.slane %v15215_v43, 4  ;;  %v10372_v4 = vunpack.i.l.bf16 %v15141_v36 }
 0x4f6   :  { %7134 = vmatmul.f32.gmra.mxu2 %v6585_v54  ;;  %v7594_v8 = vperm.slane %v7586_v7, %v15026_v38  ;;  %v15303_v13 = vsel %vm7499_vm3, %v7807_v37, %v15254_v50  ;;  %v7806_v30 = vperm.slane %v7798_v39, %v15026_v38  ;;  %v6333_v52 = vsel %vm2678_vm1, %v6269_v44, %v10337_v53  ;;  %v17393_v54 = vld [vmem:[#allocation59_spill] sm:$0xff]  ;;  %v4239_v44 = vld [vmem:[#allocation2 + $0x2d1] sm:$0xff] }
 0x4f7   :  { %v3879_v31 = vmul.f32 %v15052_v28, %v3796_v1  ;;  %v15289_v55 = vpop.f32.mrf.mxu3  ;;  %10575 = vrot.lane.b32.xlu2 %v10574_v60, %s10844_s16  ;;  %v7609_v1 = vrot.slane %v15196_v12, 4  ;;  %17392 = vst [vmem:[#allocation24_spill] sm:$0xff] %v15303_v13  ;;  %v6458_v37 = vsel %vm291_vm0, %v4410_v18, %v10328_v33  ;;  %v10353_v7 = vunpack.i.h.bf16 %v15007_v26  ;;  %v17394_v33 = vld [vmem:[#allocation89_spill] sm:$0xff] }
 0x4f8   :  { %10580 = vrot.lane.b32.xlu0 %v10579_v59, %s10845_s1  ;;  %v15297_v58 = vpop.permute.xlu0 %10385  ;;  %10585 = vrot.lane.b32.xlu1 %v10579_v59, %s10844_s16  ;;  %v7087_v48 = vpop.f32.mrf.mxu2  ;;  %v7607_v39 = vrot.slane %v7594_v8, 4  ;;  %v10333_v24 = vunpack.i.h.bf16 %v15143_v5  ;;  %v15332_v18 = vsel %vm7499_vm3, %v7806_v30, %v7825_v27 }
 0x4f9   :  { %v3947_v35 = vadd.f32 %v15079_v46, %v3879_v31  ;;  %v15307_v42 = vpop.permute.xlu2 %10410  ;;  %v15313_v25 = vadd.f32 %v7087_v48, %v15120_v9  ;;  %v15315_v41 = vpop.permute.xlu1 %10365  ;;  %v15320_v32 = vsel %vm7499_vm3, %v7594_v8, %v7609_v1  ;;  %v6522_v31 = vsel %vm2678_vm1, %v6458_v37, %v10348_v45  ;;  %17395 = vst [vmem:[#allocation52_spill] sm:$0xff] %v15332_v18 }
 0x4fa   :  { %v3589_v15 = vpop.f32.mrf.mxu1  ;;  %v7809_v9 = vrot.slane %v15254_v50, 4  ;;  %v6397_v1 = vsel %vm2743_vm2, %v6333_v52, %v10372_v4  ;;  %v10338_v45 = vunpack.i.h.bf16 %v15180_v23  ;;  %v6586_v26 = vsel %vm2743_vm2, %v6522_v31, %v10353_v7  ;;  %v15337_v8 = vpop.f32.mrf.mxu0 }
 0x4fb   :  { %v4011_v40 = vmax.f32 %v3947_v35, 0.0  ;;  %v3590_v59 = vadd.f32 %v3589_v15, %v17393_v54  ;;  %v7823_v50 = vrot.slane %v7806_v30, 4  ;;  %v15344_v27 = vsel %vm7499_vm3, %v7607_v39, %v15196_v12  ;;  %v4158_v30 = vld [vmem:[#allocation2 + $0x200] sm:$0xff] }
 0x4fc   :  { %v4683_v48 = vld [vmem:[#allocation2 + $0x2d2] sm:$0xff]  ;;  %v7794_v23 = vperm.slane %v14935_v20, %v15026_v38  ;;  %v7810_v4 = vsel %vm7499_vm3, %v15243_v3, %v7809_v9  ;;  %v10373_v9 = vunpack.i.h.bf16 %v15141_v36 }
 0x4fd   :  { %4111 = vst.msk [vmem:[#allocation2 + $0x2e9] sm:$0xff] %vm291_vm0, %v4011_v40  ;;  %v3799_v53 = vadd.f32 %v17394_v33, %v3590_v59  ;;  %v4240_v35 = vld [vmem:[#allocation2 + $0x2d9] sm:$0xff]  ;;  %6937 = vmatmul.f32.gmra.mxu3 %v6397_v1  ;;  %8785 = vmatmul.msk.f32.gmra.mxu0 %vm291_vm0, %v4683_v48  ;;  %v15353_v37 = vsel %vm7499_vm3, %v7823_v50, %v15215_v43  ;;  %v10357_v40 = vunpack.i.l.bf16 %v15250_v11  ;;  %v17397_v1 = vld [vmem:[#allocation60_spill] sm:$0xff] }
 0x4fe   :  { %v10599_v5 = vpack.i.bf16 %v4240_v35, %v4239_v44  ;;  %7137 = vmatmul.f32.gmra.mxu2 %v6586_v26  ;;  %17396 = vst [vmem:[#allocation19_spill] sm:$0xff] %v15353_v37  ;;  %v7833_v33 = vrot.slane %v7794_v23, 4  ;;  %v4684_v35 = vld [vmem:[#allocation2 + $0x2da] sm:$0xff] }
 0x4ff   :  { %v3880_v15 = vmul.f32 %v15052_v28, %v3799_v53  ;;  %v15340_v52 = vpop.f32.mrf.mxu3  ;;  %10590 = vrot.lane.b32.xlu2 %v15224_v14, %s10845_s1  ;;  %v6270_v14 = vsel %vm291_vm0, %v4158_v30, %v10333_v24  ;;  %v4411_v24 = vld [vmem:[#allocation2 + $0x1f9] sm:$0xff]  ;;  %v10362_v30 = vunpack.i.l.bf16 %v15072_v29 }
 0x500   :  { %10595 = vrot.lane.b32.xlu0 %v10574_v60, %s10843_s24  ;;  %10600 = vrot.lane.b32.xlu1 %v10599_v5, %s10843_s24  ;;  %v7090_v20 = vpop.f32.mrf.mxu2  ;;  %v7818_v60 = vperm.slane %v7810_v4, %v15026_v38  ;;  %v6334_v3 = vsel %vm2678_vm1, %v6270_v14, %v10338_v45  ;;  %v4366_v26 = vld [vmem:[#allocation2 + $0x2d8] sm:$0xff]  ;;  %v6459_v45 = vsel %vm291_vm0, %v4411_v24, %v10357_v40  ;;  %v17399_v4 = vld [vmem:[#allocation7_spill] sm:$0xff] }
 0x501   :  { %v3948_v12 = vadd.f32 %v15079_v46, %v3880_v15  ;;  %v15360_v54 = vpop.permute.xlu2 %10440  ;;  %v15365_v59 = vadd.f32 %v7090_v20, %v15174_v47  ;;  %v15367_v43 = vpop.permute.xlu0 %10390  ;;  %v10382_v47 = vunpack.i.l.bf16 %v15191_v49  ;;  %v6398_v15 = vsel %vm2743_vm2, %v6334_v3, %v10373_v9  ;;  %v17400_v20 = vld [vmem:[#allocation69_spill] sm:$0xff] }
 0x502   :  { %v10376_v31 = vpop.permute.xlu1 %10375  ;;  %v3592_v39 = vpop.f32.mrf.mxu1  ;;  %v7831_v50 = vrot.slane %v7818_v60, 4  ;;  %v15377_v36 = vsel %vm7499_vm3, %v7818_v60, %v7833_v33  ;;  %v10358_v3 = vunpack.i.h.bf16 %v15250_v11  ;;  %v10604_v9 = vpack.i.bf16 %v4684_v35, %v4683_v48  ;;  %v10766_v48 = vld [vmem:[%s16996_s0 + $0x80] sm:$0xff] }
 0x503   :  { %v4012_v7 = vmax.f32 %v3948_v12, 0.0  ;;  %v10377_v53 = vunpack.i.l.bf16 %v10376_v31  ;;  %v3593_v44 = vadd.f32 %v3592_v39, %v17397_v1  ;;  %17398 = vst [vmem:[#allocation17_spill] sm:$0xff] %v15377_v36  ;;  %v7291_v12 = vadd.f32 %v17399_v4, %v15201_v34  ;;  %v17402_v36 = vld [vmem:[#allocation61_spill] sm:$0xff] }
 0x504   :  { %v10367_v1 = vunpack.i.l.bf16 %v15315_v41  ;;  %v10378_v24 = vunpack.i.h.bf16 %v10376_v31 }
 0x505   :  { %4112 = vst.msk [vmem:[#allocation2 + $0x2f1] sm:$0xff] %vm291_vm0, %v4012_v7  ;;  %v3802_v14 = vadd.f32 %v17400_v20, %v3593_v44  ;;  %6940 = vmatmul.f32.gmra.mxu3 %v6398_v15  ;;  %8786 = vmatmul.msk.f32.gmra.mxu0 %vm291_vm0, %v4684_v35  ;;  %v6523_v39 = vsel %vm2678_vm1, %v6459_v45, %v10377_v53  ;;  %v4365_v7 = vld [vmem:[#allocation2 + $0x2d0] sm:$0xff]  ;;  %v15395_v53 = vpop.f32.mrf.mxu0 }
 0x506   :  { %v6587_v40 = vsel %vm2743_vm2, %v6523_v39, %v10382_v47  ;;  %v10609_v60 = vpack.i.bf16 %v4366_v26, %v4365_v7  ;;  %v15393_v44 = vsel %vm7499_vm3, %v7831_v50, %v7794_v23  ;;  %v7450_v31 = vadd.f32 %v10766_v48, %v7291_v12  ;;  %v4159_v50 = vld [vmem:[#allocation2 + $0x210] sm:$0xff]  ;;  %v4412_v47 = vld [vmem:[#allocation2 + $0x201] sm:$0xff] }
 0x507   :  { %v15387_v33 = vpop.f32.mrf.mxu3  ;;  %v3881_v34 = vmul.f32 %v15052_v28, %v3802_v14  ;;  %7140 = vmatmul.f32.gmra.mxu2 %v6587_v40  ;;  %10620 = vrot.lane.b32.xlu2 %v10599_v5, %s10845_s1  ;;  %17401 = vst [vmem:[#allocation25_spill] sm:$0xff] %v15393_v44  ;;  %v6271_v20 = vsel %vm291_vm0, %v4159_v50, %v10362_v30  ;;  %v10383_v48 = vunpack.i.h.bf16 %v15191_v49  ;;  %v10363_v49 = vunpack.i.h.bf16 %v15072_v29 }
 0x508   :  { %10605 = vrot.lane.b32.xlu0 %v10604_v9, %s10844_s16  ;;  %10610 = vrot.lane.b32.xlu1 %v10609_v60, %s10845_s1  ;;  %v7093_v11 = vpop.f32.mrf.mxu2  ;;  %v6460_v14 = vsel %vm291_vm0, %v4412_v47, %v10358_v3  ;;  %v7613_v3 = vrot.slane %v7450_v31, 4 }
 0x509   :  { %v3949_v35 = vadd.f32 %v15079_v46, %v3881_v34  ;;  %v7094_v26 = vadd.f32 %v7093_v11, %v15236_v2  ;;  %v15404_v5 = vpop.permute.xlu2 %10450  ;;  %v15406_v23 = vpop.permute.xlu0 %10400  ;;  %v6335_v2 = vsel %vm2678_vm1, %v6271_v20, %v10367_v1  ;;  %v6524_v40 = vsel %vm2678_vm1, %v6460_v14, %v10378_v24  ;;  %v4241_v34 = vld [vmem:[#allocation2 + $0x2e9] sm:$0xff]  ;;  %v10767_v1 = vld [vmem:[%s16996_s0 + $0xa0] sm:$0xff] }
 0x50a   :  { %v10402_v15 = vunpack.i.l.bf16 %v15406_v23  ;;  %v15409_v45 = vpop.permute.xlu1 %10405  ;;  %v3595_v4 = vpop.f32.mrf.mxu1  ;;  %v6588_v47 = vsel %vm2743_vm2, %v6524_v40, %v10383_v48  ;;  %v10403_v29 = vunpack.i.h.bf16 %v15406_v23  ;;  %v10768_v14 = vld [vmem:[%s16996_s0 + $0x88] sm:$0xff] }
 0x50b   :  { %v4013_v12 = vmax.f32 %v3949_v35, 0.0  ;;  %v7303_v39 = vadd.f32 %v14596_v61, %v7094_v26  ;;  %v3596_v44 = vadd.f32 %v3595_v4, %v17402_v36  ;;  %v17403_v35 = vld [vmem:[#allocation10_spill] sm:$0xff]  ;;  %v10387_v36 = vunpack.i.l.bf16 %v15297_v58 }
 0x50c   :  { %v15415_v7 = vld [vmem:[#allocation2 + $0x2ea] sm:$0xff]  ;;  %v6399_v13 = vsel %vm2743_vm2, %v6335_v2, %v10402_v15  ;;  %v7294_v61 = vadd.f32 %v17403_v35, %v15266_v19  ;;  %v17404_v26 = vld [vmem:[#allocation90_spill] sm:$0xff]  ;;  %v10368_v19 = vunpack.i.h.bf16 %v15315_v41  ;;  %v10407_v20 = vunpack.i.l.bf16 %v15409_v45 }
 0x50d   :  { %v4242_v11 = vld [vmem:[#allocation2 + $0x2f1] sm:$0xff]  ;;  %4113 = vst.msk [vmem:[#allocation2 + $0x301] sm:$0xff] %vm291_vm0, %v4013_v12  ;;  %v7454_v24 = vadd.f32 %v10767_v1, %v7303_v39  ;;  %6943 = vmatmul.f32.gmra.mxu3 %v6399_v13  ;;  %8787 = vmatmul.msk.f32.gmra.mxu0 %vm291_vm0, %v15415_v7  ;;  %v3805_v50 = vadd.f32 %v17404_v26, %v3596_v44  ;;  %v15467_v26 = vpop.f32.mrf.mxu0 }
 0x50e   :  { %v15421_v30 = vpack.i.bf16 %v4242_v11, %v4241_v34  ;;  %v7451_v12 = vadd.f32 %v10768_v14, %v7294_v61  ;;  %v4160_v34 = vld [vmem:[#allocation2 + $0x218] sm:$0xff]  ;;  %v4368_v61 = vld [vmem:[#allocation2 + $0x2f0] sm:$0xff] }
 0x50f   :  { %v7611_v15 = vrot.slane %v7454_v24, 4  ;;  %v15437_v4 = vsel %vm7499_vm3, %v7454_v24, %v7613_v3  ;;  %7143 = vmatmul.f32.gmra.mxu2 %v6588_v47  ;;  %v15442_v13 = vpop.f32.mrf.mxu3  ;;  %v3882_v44 = vmul.f32 %v15052_v28, %v3805_v50  ;;  %v4413_v11 = vld [vmem:[#allocation2 + $0x211] sm:$0xff]  ;;  %v6272_v3 = vsel %vm291_vm0, %v4160_v34, %v10363_v49 }
 0x510   :  { %10630 = vrot.lane.b32.xlu2 %v15421_v30, %s10843_s24  ;;  %10625 = vrot.lane.b32.xlu0 %v10604_v9, %s10843_s24  ;;  %v7096_v41 = vpop.f32.mrf.mxu2  ;;  %v6461_v35 = vsel %vm291_vm0, %v4413_v11, %v10387_v36  ;;  %v4686_v1 = vld [vmem:[#allocation2 + $0x2f2] sm:$0xff]  ;;  %v7297_v50 = vadd.f32 %v14462_v21, %v15313_v25  ;;  %v10412_v47 = vunpack.i.l.bf16 %v15307_v42  ;;  %v7837_v36 = vrot.slane %v7451_v12, 4 }
 0x511   :  { %10615 = vrot.lane.b32.xlu1 %v10609_v60, %s10844_s16  ;;  %v15452_v39 = vsel %vm7499_vm3, %v7611_v15, %v7450_v31  ;;  %v7097_v2 = vadd.f32 %v7096_v41, %v15289_v55  ;;  %v15455_v40 = vpop.permute.xlu2 %10460  ;;  %v15457_v23 = vpop.permute.xlu0 %10415  ;;  %v3950_v9 = vadd.f32 %v15079_v46, %v3882_v44  ;;  %v6336_v55 = vsel %vm2678_vm1, %v6272_v3, %v10368_v19  ;;  %v4367_v44 = vld [vmem:[#allocation2 + $0x2e8] sm:$0xff]  ;;  %v17405_v41 = vld [vmem:[#allocation62_spill] sm:$0xff] }
 0x512   :  { %v15460_v60 = vpop.permute.xlu1 %10420  ;;  %v3598_v48 = vpop.f32.mrf.mxu1  ;;  %v6525_v24 = vsel %vm2678_vm1, %v6461_v35, %v10407_v20  ;;  %v6400_v49 = vsel %vm2743_vm2, %v6336_v55, %v10403_v29  ;;  %v15478_v20 = vpack.i.bf16 %v4368_v61, %v4367_v44  ;;  %v10388_v21 = vunpack.i.h.bf16 %v15297_v58  ;;  %v10770_v35 = vld [vmem:[%s16996_s0 + $0x90] sm:$0xff] }
 0x513   :  { %v7306_v31 = vadd.f32 %v14696_v6, %v7097_v2  ;;  %v4014_v15 = vmax.f32 %v3950_v9, 0.0  ;;  %v10769_v6 = vld [vmem:[%s16996_s0 + $0xa8] sm:$0xff]  ;;  %v3599_v14 = vadd.f32 %v3598_v48, %v17405_v41  ;;  %v10392_v25 = vunpack.i.l.bf16 %v15367_v43 }
 0x514   :  { %v6589_v29 = vsel %vm2743_vm2, %v6525_v24, %v10412_v47  ;;  %v10654_v2 = vpack.i.bf16 %v4686_v1, %v15415_v7  ;;  %v10408_v34 = vunpack.i.h.bf16 %v15409_v45  ;;  %v17406_v48 = vld [vmem:[#allocation91_spill] sm:$0xff]  ;;  %v15497_v61 = vadd.f32 %v10770_v35, %v7297_v50  ;;  %v4414_v47 = vld [vmem:[#allocation2 + $0x219] sm:$0xff] }
 0x515   :  { %v7455_v19 = vadd.f32 %v10769_v6, %v7306_v31  ;;  %6946 = vmatmul.f32.gmra.mxu3 %v6400_v49  ;;  %8788 = vmatmul.msk.f32.gmra.mxu0 %vm291_vm0, %v4686_v1  ;;  %4114 = vst.msk [vmem:[#allocation2 + $0x309] sm:$0xff] %vm291_vm0, %v4014_v15  ;;  %v3808_v3 = vadd.f32 %v17406_v48, %v3599_v14  ;;  %v4161_v24 = vld [vmem:[#allocation2 + $0x228] sm:$0xff] }
 0x516   :  { %v7300_v45 = vadd.f32 %v14525_v17, %v15365_v59  ;;  %v6273_v44 = vsel %vm291_vm0, %v4161_v24, %v10392_v25  ;;  %v6462_v17 = vsel %vm291_vm0, %v4414_v47, %v10388_v21  ;;  %v10397_v59 = vunpack.i.l.bf16 %v15259_v51  ;;  %v10771_v21 = vld [vmem:[%s16996_s0 + $0x98] sm:$0xff]  ;;  %v4162_v47 = vld [vmem:[#allocation2 + $0x230] sm:$0xff] }
 0x517   :  { %v7835_v11 = vrot.slane %v7455_v19, 4  ;;  %v15487_v9 = vsel %vm7499_vm3, %v7455_v19, %v7837_v36  ;;  %7146 = vmatmul.f32.gmra.mxu2 %v6589_v29  ;;  %v15492_v58 = vpop.f32.mrf.mxu3  ;;  %v3883_v31 = vmul.f32 %v15052_v28, %v3808_v3  ;;  %v6526_v19 = vsel %vm2678_vm1, %v6462_v17, %v10408_v34  ;;  %v4243_v3 = vld [vmem:[#allocation2 + $0x301] sm:$0xff] }
 0x518   :  { %10640 = vrot.lane.b32.xlu2 %v15478_v20, %s10845_s1  ;;  %10655 = vrot.lane.b32.xlu0 %v10654_v2, %s10843_s24  ;;  %v7625_v41 = vrot.slane %v15497_v61, 4  ;;  %v15527_v25 = vadd.f32 %v10771_v21, %v7300_v45  ;;  %v6337_v48 = vsel %vm2678_vm1, %v6273_v44, %v10397_v59  ;;  %v17409_v44 = vld [vmem:[#allocation44_spill] sm:$0xff] }
 0x519   :  { %10635 = vrot.lane.b32.xlu1 %v10654_v2, %s10844_s16  ;;  %v15504_v7 = vsel %vm7499_vm3, %v7835_v11, %v7451_v12  ;;  %v7099_v55 = vpop.f32.mrf.mxu2  ;;  %v15507_v1 = vpop.permute.xlu2 %10470  ;;  %v10393_v12 = vunpack.i.h.bf16 %v15367_v43  ;;  %v3951_v36 = vadd.f32 %v15079_v46, %v3883_v31  ;;  %v17407_v2 = vld [vmem:[#allocation63_spill] sm:$0xff] }
 0x51a   :  { %v7100_v50 = vadd.f32 %v7099_v55, %v15340_v52  ;;  %v15510_v15 = vpop.permute.xlu0 %10425  ;;  %v15512_v49 = vpop.permute.xlu1 %10430  ;;  %v10413_v52 = vunpack.i.h.bf16 %v15307_v42 }
 0x51b   :  { %v3601_v6 = vpop.f32.mrf.mxu1  ;;  %v10432_v29 = vunpack.i.l.bf16 %v15512_v49  ;;  %v4015_v43 = vmax.f32 %v3951_v36, 0.0  ;;  %v15531_v31 = vpop.f32.mrf.mxu0  ;;  %v6274_v36 = vsel %vm291_vm0, %v4162_v47, %v10393_v12 }
 0x51c   :  { %v7309_v14 = vadd.f32 %v14772_v0, %v7100_v50  ;;  %v3602_v11 = vadd.f32 %v3601_v6, %v17407_v2  ;;  %v4687_v34 = vld [vmem:[#allocation2 + $0x302] sm:$0xff]  ;;  %17408 = vst [vmem:[#allocation66_spill] sm:$0xff] %v15531_v31  ;;  %v10772_v0 = vld [vmem:[%s16996_s0 + $0xb0] sm:$0xff]  ;;  %v6590_v45 = vsel %vm2743_vm2, %v6526_v19, %v10413_v52  ;;  %v15545_v50 = vperm.slane %v15437_v4, %v14673_v16 }
 0x51d   :  { %v4244_v35 = vld [vmem:[#allocation2 + $0x309] sm:$0xff]  ;;  %v6401_v55 = vsel %vm2743_vm2, %v6337_v48, %v10432_v29  ;;  %8789 = vmatmul.msk.f32.gmra.mxu0 %vm291_vm0, %v4687_v34  ;;  %4115 = vst.msk [vmem:[#allocation2 + $0x319] sm:$0xff] %vm291_vm0, %v4015_v43  ;;  %v10398_v6 = vunpack.i.h.bf16 %v15259_v51  ;;  %v10417_v19 = vunpack.i.l.bf16 %v15457_v23  ;;  %v10433_v52 = vunpack.i.h.bf16 %v15512_v49 }
 0x51e   :  { %v15536_v42 = vadd.f32 %v10772_v0, %v7309_v14  ;;  %v15541_v24 = vpack.i.bf16 %v4244_v35, %v4243_v3  ;;  %v3811_v17 = vadd.f32 %v17409_v44, %v3602_v11  ;;  %6949 = vmatmul.f32.gmra.mxu3 %v6401_v55  ;;  %v7849_v29 = vrot.slane %v15527_v25, 4  ;;  %v4415_v0 = vld [vmem:[#allocation2 + $0x229] sm:$0xff] }
 0x51f   :  { %7149 = vmatmul.f32.gmra.mxu2 %v6590_v45  ;;  %v15549_v59 = vpop.f32.mrf.mxu3  ;;  %v6338_v49 = vsel %vm2678_vm1, %v6274_v36, %v10398_v6  ;;  %v7673_v11 = vrot.slane %v15545_v50, 4  ;;  %v10422_v48 = vunpack.i.l.bf16 %v15460_v60  ;;  %v15578_v55 = vld [vmem:[#allocation2 + $0x308] sm:$0xff]  ;;  %v6463_v44 = vsel %vm291_vm0, %v4415_v0, %v10417_v19  ;;  %v17410_v36 = vld [vmem:[#allocation50_spill] sm:$0xff] }
 0x520   :  { %10650 = vrot.lane.b32.xlu2 %v15421_v30, %s10845_s1  ;;  %10660 = vrot.lane.b32.xlu0 %v15541_v24, %s10843_s24  ;;  %v7626_v4 = vsel %vm7499_vm3, %v15536_v42, %v7625_v41  ;;  %v3884_v14 = vmul.f32 %v15052_v28, %v3811_v17  ;;  %v10442_v30 = vunpack.i.l.bf16 %v15360_v54  ;;  %v4688_v41 = vld [vmem:[#allocation2 + $0x30a] sm:$0xff]  ;;  %v6402_v6 = vsel %vm2743_vm2, %v6338_v49, %v10433_v52 }
 0x521   :  { %10645 = vrot.lane.b32.xlu1 %v15478_v20, %s10844_s16  ;;  %v7102_v12 = vpop.f32.mrf.mxu2  ;;  %v15564_v51 = vpop.permute.xlu2 %10485  ;;  %v10418_v20 = vunpack.i.h.bf16 %v15457_v23  ;;  %v7623_v31 = vrot.slane %v15536_v42, 4  ;;  %v10427_v52 = vunpack.i.l.bf16 %v15510_v15 }
 0x522   :  { %v7103_v21 = vadd.f32 %v7102_v12, %v15387_v33  ;;  %v15569_v43 = vpop.permute.xlu0 %10445  ;;  %v15571_v2 = vpop.permute.xlu1 %10435  ;;  %v3952_v3 = vadd.f32 %v15079_v46, %v3884_v14  ;;  %v15581_v33 = vperm.slane %v7626_v4, %v14673_v16  ;;  %v15588_v12 = vpack.i.bf16 %v4688_v41, %v4687_v34  ;;  %v4369_v14 = vld [vmem:[#allocation2 + $0x300] sm:$0xff]  ;;  %v10773_v4 = vld [vmem:[%s16996_s0 + $0xb8] sm:$0xff] }
 0x523   :  { %v3604_v35 = vpop.f32.mrf.mxu1  ;;  %v10437_v47 = vunpack.i.l.bf16 %v15571_v2  ;;  %v17411_v34 = vld [vmem:[#allocation34_spill] sm:$0xff] }
 0x524   :  { %v7312_v45 = vadd.f32 %v14847_v57, %v7103_v21  ;;  %v4016_v17 = vmax.f32 %v3952_v3, 0.0  ;;  %v3605_v23 = vadd.f32 %v3604_v35, %v17410_v36  ;;  %v15596_v19 = vld [vmem:[#allocation2 + $0x319] sm:$0xff]  ;;  %v10669_v21 = vpack.i.bf16 %v15578_v55, %v4369_v14 }
 0x525   :  { %8790 = vmatmul.msk.f32.gmra.mxu0 %vm291_vm0, %v4688_v41  ;;  %v6527_v57 = vsel %vm2678_vm1, %v6463_v44, %v10437_v47  ;;  %v10684_v3 = vpack.i.bf16 %v15596_v19, %v4369_v14  ;;  %v15606_v41 = vpop.f32.mrf.mxu0  ;;  %v10438_v47 = vunpack.i.h.bf16 %v15571_v2  ;;  %v15616_v44 = vsel %vm7499_vm3, %v15581_v33, %v7673_v11  ;;  %v4163_v2 = vld [vmem:[#allocation2 + $0x240] sm:$0xff]  ;;  %v4416_v14 = vld [vmem:[#allocation2 + $0x231] sm:$0xff] }
 0x526   :  { %v7457_v18 = vadd.f32 %v10773_v4, %v7312_v45  ;;  %4116 = vst.msk [vmem:[#allocation2 + $0x321] sm:$0xff] %vm291_vm0, %v4016_v17  ;;  %v3814_v49 = vadd.f32 %v17411_v34, %v3605_v23  ;;  %6952 = vmatmul.f32.gmra.mxu3 %v6402_v6  ;;  %v6591_v42 = vsel %vm2743_vm2, %v6527_v57, %v10442_v30  ;;  %v10423_v36 = vunpack.i.h.bf16 %v15460_v60 }
 0x527   :  { %v15604_v35 = vpop.f32.mrf.mxu3  ;;  %17412 = vst [vmem:[#allocation73_spill] sm:$0xff] %v15606_v41  ;;  %7152 = vmatmul.f32.gmra.mxu2 %v6591_v42  ;;  %v15620_v30 = vperm.slane %v15452_v39, %v14673_v16  ;;  %v7624_v11 = vsel %vm7499_vm3, %v7623_v31, %v15497_v61  ;;  %v6275_v6 = vsel %vm291_vm0, %v4163_v2, %v10422_v48  ;;  %v10462_v34 = vunpack.i.l.bf16 %v15455_v40 }
 0x528   :  { %v7847_v0 = vrot.slane %v7457_v18, 4  ;;  %v15609_v45 = vsel %vm7499_vm3, %v7457_v18, %v7849_v29  ;;  %10665 = vrot.lane.b32.xlu2 %v15588_v12, %s10844_s16  ;;  %v3885_v17 = vmul.f32 %v15052_v28, %v3814_v49  ;;  %10685 = vrot.lane.b32.xlu0 %v10684_v3, %s10845_s1  ;;  %v6464_v60 = vsel %vm291_vm0, %v4416_v14, %v10418_v20 }
 0x529   :  { %10670 = vrot.lane.b32.xlu1 %v10669_v21, %s10844_s16  ;;  %v15625_v18 = vpop.f32.mrf.mxu2  ;;  %v15627_v29 = vpop.permute.xlu2 %10500  ;;  %v6339_v21 = vsel %vm2678_vm1, %v6275_v6, %v10427_v52  ;;  %v7671_v61 = vrot.slane %v15581_v33, 4  ;;  %v6528_v31 = vsel %vm2678_vm1, %v6464_v60, %v10438_v47  ;;  %v10443_v49 = vunpack.i.h.bf16 %v15360_v54  ;;  %v10774_v60 = vld [vmem:[%s16999_s3] ss:$0 sm:$0xff] }
 0x52a   :  { %v7848_v39 = vsel %vm7499_vm3, %v7847_v0, %v15527_v25  ;;  %v15634_v23 = vpop.permute.xlu0 %10475  ;;  %v15636_v28 = vpop.permute.xlu1 %10455  ;;  %v3953_v4 = vadd.f32 %v15079_v46, %v3885_v17  ;;  %v10428_v25 = vunpack.i.h.bf16 %v15510_v15  ;;  %v15648_v48 = vperm.slane %v7624_v11, %v14673_v16  ;;  %v17413_v46 = vld [vmem:[#allocation64_spill] sm:$0xff]  ;;  %v4164_v0 = vld [vmem:[#allocation2 + $0x248] sm:$0xff]  ;;  %v17414_v15 = vld [vmem:[#allocation30_spill] sm:$0xff] }
 0x52b   :  { %v3607_v57 = vpop.f32.mrf.mxu1  ;;  %v7661_v52 = vrot.slane %v15620_v30, 4  ;;  %v6403_v20 = vsel %vm2743_vm2, %v6339_v21, %v10462_v34  ;;  %v6276_v33 = vsel %vm291_vm0, %v4164_v0, %v10423_v36  ;;  %v6592_v54 = vsel %vm2743_vm2, %v6528_v31, %v10443_v49 }
 0x52c   :  { %v4017_v42 = vmax.f32 %v3953_v4, 0.0  ;;  %v3608_v3 = vadd.f32 %v3607_v57, %v17413_v46  ;;  %v7842_v14 = vperm.slane %v15504_v7, %v14673_v16  ;;  %v6340_v36 = vsel %vm2678_vm1, %v6276_v33, %v10428_v25 }
 0x52d   :  { %v4689_v17 = vld [vmem:[#allocation2 + $0x31a] sm:$0xff]  ;;  %v4310_v2 = vld [vmem:[#allocation2 + $0x322] sm:$0xff]  ;;  %v15669_v4 = vsel %vm7499_vm3, %v7671_v61, %v15545_v50  ;;  %v7854_v57 = vperm.slane %v7848_v39, %v14673_v16  ;;  %v10447_v21 = vunpack.i.l.bf16 %v15569_v43  ;;  %v15686_v50 = vsel %vm7499_vm3, %v15648_v48, %v7661_v52  ;;  %v15691_v31 = vpop.f32.mrf.mxu0 }
 0x52e   :  { %4117 = vst.msk [vmem:[#allocation2 + $0x331] sm:$0xff] %vm291_vm0, %v4017_v42  ;;  %v3817_v47 = vadd.f32 %v17414_v15, %v3608_v3  ;;  %6955 = vmatmul.f32.gmra.mxu3 %v6403_v20  ;;  %8791 = vmatmul.msk.f32.gmra.mxu0 %vm291_vm0, %v4689_v17  ;;  %v15658_v11 = vpack.i.bf16 %v4310_v2, %v4689_v17  ;;  %v10463_v39 = vunpack.i.h.bf16 %v15455_v40  ;;  %v10472_v49 = vunpack.i.l.bf16 %v15507_v1  ;;  %v15697_v46 = vld [vmem:[#allocation2 + $0x320] sm:$0xff] }
 0x52f   :  { %v15660_v6 = vpop.f32.mrf.mxu3  ;;  %7155 = vmatmul.f32.gmra.mxu2 %v6592_v54  ;;  %17415 = vst [vmem:[#allocation32_spill] sm:$0xff] %v15691_v31  ;;  %v4626_v3 = vld [vmem:[#allocation2 + $0x321] sm:$0xff]  ;;  %v7885_v0 = vrot.slane %v7842_v14, 4  ;;  %v7659_v52 = vrot.slane %v15648_v48, 4  ;;  %v7883_v33 = vrot.slane %v7854_v57, 4  ;;  %v10448_v15 = vunpack.i.h.bf16 %v15569_v43 }
 0x530   :  { %10675 = vrot.lane.b32.xlu2 %v15541_v24, %s10845_s1  ;;  %v3886_v34 = vmul.f32 %v10774_v60, %v3817_v47  ;;  %10695 = vrot.lane.b32.xlu0 %v15658_v11, %s10844_s16  ;;  %v6404_v40 = vsel %vm2743_vm2, %v6340_v36, %v10463_v39  ;;  %v4417_v17 = vld [vmem:[#allocation2 + $0x241] sm:$0xff]  ;;  %v4561_v60 = vld [vmem:[#allocation2 + $0x318] sm:$0xff]  ;;  %v10704_v48 = vpack.i.bf16 %v4626_v3, %v15578_v55  ;;  %v10452_v41 = vunpack.i.l.bf16 %v15404_v5 }
 0x531   :  { %10680 = vrot.lane.b32.xlu1 %v15588_v12, %s10843_s24  ;;  %v15680_v7 = vpop.f32.mrf.mxu2  ;;  %v15682_v24 = vpop.permute.xlu2 %10530  ;;  %v10775_v12 = vld [vmem:[%s17000_s4] ss:$0 sm:$0xff]  ;;  %v6465_v54 = vsel %vm291_vm0, %v4417_v17, %v10447_v21  ;;  %v10699_v31 = vpack.i.bf16 %v15697_v46, %v4561_v60  ;;  %v10689_v21 = vpack.i.bf16 %v4626_v3, %v15596_v19  ;;  %v15719_v55 = vsel %vm7499_vm3, %v7659_v52, %v15620_v30 }
 0x532   :  { %v15689_v61 = vpop.permute.xlu0 %10480  ;;  %v10466_v25 = vpop.permute.xlu1 %10465  ;;  %v3954_v42 = vadd.f32 %v10775_v12, %v3886_v34  ;;  %v7858_v34 = vperm.slane %v15609_v45, %v14673_v16  ;;  %v10457_v45 = vunpack.i.l.bf16 %v15636_v28 }
 0x533   :  { %v10467_v20 = vunpack.i.l.bf16 %v10466_v25  ;;  %v10468_v36 = vunpack.i.h.bf16 %v10466_v25  ;;  %v15722_v25 = vsel %vm7499_vm3, %v7854_v57, %v7885_v0  ;;  %v4165_v57 = vld [vmem:[#allocation2 + $0x258] sm:$0xff] }
 0x534   :  { %v4018_v47 = vmax.f32 %v3954_v42, 0.0  ;;  %v4418_v42 = vld [vmem:[#allocation2 + $0x249] sm:$0xff]  ;;  %v7895_v52 = vrot.slane %v7858_v34, 4 }
 0x535   :  { %v6529_v12 = vsel %vm2678_vm1, %v6465_v54, %v10467_v20  ;;  %v6466_v0 = vsel %vm291_vm0, %v4418_v42, %v10448_v15  ;;  %v6277_v20 = vsel %vm291_vm0, %v4165_v57, %v10452_v41  ;;  %v4627_v17 = vld [vmem:[#allocation2 + $0x331] sm:$0xff]  ;;  %v10477_v41 = vunpack.i.l.bf16 %v15634_v23 }
 0x536   :  { %4118 = vst.msk [vmem:[#allocation2 + $0x339] sm:$0xff] %vm291_vm0, %v4018_v47  ;;  %6958 = vmatmul.f32.gmra.mxu3 %v6404_v40  ;;  %8792 = vmatmul.msk.f32.gmra.mxu0 %vm291_vm0, %v4310_v2  ;;  %v6593_v43 = vsel %vm2743_vm2, %v6529_v12, %v10472_v49  ;;  %v7846_v2 = vperm.slane %v15487_v9, %v14673_v16  ;;  %v10473_v47 = vunpack.i.h.bf16 %v15507_v1  ;;  %v15742_v12 = vpop.f32.mrf.mxu0  ;;  %v4563_v15 = vld [vmem:[#allocation2 + $0x330] sm:$0xff] }
 0x537   :  { %v15713_v39 = vpop.f32.mrf.mxu3  ;;  %7158 = vmatmul.f32.gmra.mxu2 %v6593_v43  ;;  %v6530_v40 = vsel %vm2678_vm1, %v6466_v0, %v10468_v36  ;;  %v6341_v54 = vsel %vm2678_vm1, %v6277_v20, %v10457_v45  ;;  %17416 = vst [vmem:[#allocation26_spill] sm:$0xff] %v15742_v12  ;;  %v10714_v42 = vpack.i.bf16 %v4627_v17, %v4561_v60  ;;  %v10453_v0 = vunpack.i.h.bf16 %v15404_v5  ;;  %v4166_v17 = vld [vmem:[#allocation2 + $0x260] sm:$0xff] }
 0x538   :  { %10700 = vrot.lane.b32.xlu2 %v10699_v31, %s10844_s16  ;;  %10705 = vrot.lane.b32.xlu0 %v10704_v48, %s10845_s1  ;;  %v15733_v31 = vsel %vm7499_vm3, %v7883_v33, %v7842_v14  ;;  %v7897_v14 = vrot.slane %v7846_v2, 4  ;;  %v6594_v43 = vsel %vm2743_vm2, %v6530_v40, %v10473_v47  ;;  %v15757_v57 = vsel %vm7499_vm3, %v7895_v52, %v7846_v2  ;;  %v4419_v40 = vld [vmem:[#allocation2 + $0x259] sm:$0xff] }
 0x539   :  { %10690 = vrot.lane.b32.xlu1 %v10689_v21, %s10843_s24  ;;  %v15728_v19 = vpop.f32.mrf.mxu2  ;;  %v15730_v49 = vpop.permute.xlu2 %10540  ;;  %v10458_v60 = vunpack.i.h.bf16 %v15636_v28  ;;  %v6467_v47 = vsel %vm291_vm0, %v4419_v40, %v10477_v41  ;;  %v6278_v28 = vsel %vm291_vm0, %v4166_v17, %v10453_v0  ;;  %v10478_v41 = vunpack.i.h.bf16 %v15634_v23 }
 0x53a   :  { %v10491_v30 = vpop.permute.xlu0 %10490  ;;  %v15735_v3 = vpop.permute.xlu1 %10495  ;;  %v15754_v45 = vsel %vm7499_vm3, %v7858_v34, %v7897_v14 }
 0x53b   :  { %v10492_v9 = vunpack.i.l.bf16 %v10491_v30  ;;  %v10493_v2 = vunpack.i.h.bf16 %v10491_v30  ;;  %v6342_v30 = vsel %vm2678_vm1, %v6278_v28, %v10458_v60  ;;  %v10498_v17 = vunpack.i.h.bf16 %v15735_v3  ;;  %v4167_v60 = vld [vmem:[#allocation2 + $0x270] sm:$0xff]  ;;  %v4420_v28 = vld [vmem:[#allocation2 + $0x261] sm:$0xff] }
 0x53d   :  { %v6405_v33 = vsel %vm2743_vm2, %v6341_v54, %v10492_v9  ;;  %v4691_v48 = vld [vmem:[#allocation2 + $0x332] sm:$0xff]  ;;  %v10497_v9 = vunpack.i.l.bf16 %v15735_v3  ;;  %v7106_v3 = vadd.f32 %v15625_v18, %v15442_v13  ;;  %v15813_v13 = vperm.slane %v14842_v10, %v15026_v38 }
 0x53e   :  { %v15746_v21 = vld [vmem:[#allocation2 + $0x338] sm:$0xff]  ;;  %6961 = vmatmul.f32.gmra.mxu3 %v6405_v33  ;;  %8793 = vmatmul.msk.f32.gmra.mxu0 %vm291_vm0, %v4691_v48  ;;  %v10502_v33 = vunpack.i.l.bf16 %v15627_v29  ;;  %v15781_v37 = vpop.f32.mrf.mxu0  ;;  %v10483_v18 = vunpack.i.h.bf16 %v15689_v61 }
 0x53f   :  { %v10719_v1 = vpack.i.bf16 %v15746_v21, %v4563_v15  ;;  %v15751_v36 = vpop.f32.mrf.mxu3  ;;  %7161 = vmatmul.f32.gmra.mxu2 %v6594_v43  ;;  %v6531_v54 = vsel %vm2678_vm1, %v6467_v47, %v10497_v9  ;;  %v4628_v14 = vld [vmem:[#allocation2 + $0x339] sm:$0xff]  ;;  %v10482_v43 = vunpack.i.l.bf16 %v15689_v61  ;;  %v10487_v47 = vunpack.i.l.bf16 %v15564_v51  ;;  %17418 = vst [vmem:[#allocation27_spill] sm:$0xff] %v15813_v13 }
 0x540   :  { %10710 = vrot.lane.b32.xlu2 %v15658_v11, %s10843_s24  ;;  %v4629_v11 = vld [vmem:[#allocation2 + $0x349] sm:$0xff]  ;;  %v6595_v0 = vsel %vm2743_vm2, %v6531_v54, %v10502_v33  ;;  %v10724_v9 = vpack.i.bf16 %v4628_v14, %v15697_v46  ;;  %v6468_v54 = vsel %vm291_vm0, %v4420_v28, %v10478_v41  ;;  %v17423_v10 = vld [vmem:[#allocation65_spill] sm:$0xff] }
 0x541   :  { %10720 = vrot.lane.b32.xlu0 %v10719_v1, %s10844_s16  ;;  %10715 = vrot.lane.b32.xlu1 %v10714_v42, %s10845_s1  ;;  %v15766_v20 = vpop.f32.mrf.mxu2  ;;  %v15768_v34 = vpop.permute.xlu2 %10550  ;;  %v6406_v42 = vsel %vm2743_vm2, %v6342_v30, %v10493_v2  ;;  %v4692_v1 = vld [vmem:[#allocation2 + $0x33a] sm:$0xff]  ;;  %v10729_v12 = vpack.i.bf16 %v4629_v11, %v4563_v15  ;;  %v6279_v2 = vsel %vm291_vm0, %v4167_v60, %v10482_v43  ;;  %v10503_v30 = vunpack.i.h.bf16 %v15627_v29  ;;  %v4565_v41 = vld [vmem:[#allocation2 + $0x348] sm:$0xff] }
 0x542   :  { %v15770_v52 = vpop.permute.xlu0 %10505  ;;  %v15772_v5 = vpop.permute.xlu1 %10510  ;;  %v6343_v14 = vsel %vm2678_vm1, %v6279_v2, %v10487_v47  ;;  %v6532_v33 = vsel %vm2678_vm1, %v6468_v54, %v10498_v17  ;;  %v15807_v43 = vperm.slane %v14740_v62, %v15026_v38  ;;  %v17421_v29 = vld [vmem:[#allocation11_spill] sm:$0xff]  ;;  %v7109_v47 = vadd.f32 %v15680_v7, %v15492_v58  ;;  %v4168_v54 = vld [vmem:[#allocation2 + $0x278] sm:$0xff] }
 0x543   :  { %v6596_v62 = vsel %vm2743_vm2, %v6532_v33, %v10503_v30  ;;  %v10507_v28 = vunpack.i.l.bf16 %v15770_v52  ;;  %v7112_v58 = vadd.f32 %v15728_v19, %v15549_v59  ;;  %v6280_v30 = vsel %vm291_vm0, %v4168_v54, %v10483_v18  ;;  %v10777_v18 = vld [vmem:[%s16996_s0 + $0xe0] sm:$0xff] }
 0x544   :  { %17417 = vst [vmem:[#allocation35_spill] sm:$0xff] %v15807_v43  ;;  %v7597_v61 = vrot.slane %v15807_v43, 4  ;;  %v15865_v19 = vperm.slane %v15283_v56, %v15026_v38  ;;  %v7115_v56 = vadd.f32 %v15766_v20, %v15604_v35  ;;  %v10508_v43 = vunpack.i.h.bf16 %v15770_v52  ;;  %v10778_v52 = vld [vmem:[%s16996_s0 + $0xc8] sm:$0xff] }
 0x546   :  { %6964 = vmatmul.f32.gmra.mxu3 %v6406_v42  ;;  %8794 = vmatmul.msk.f32.gmra.mxu0 %vm291_vm0, %v4692_v1 }
 0x547   :  { %v15787_v40 = vpop.f32.mrf.mxu3  ;;  %7164 = vmatmul.f32.gmra.mxu2 %v6595_v0 }
 0x548   :  { %10730 = vrot.lane.b32.xlu2 %v10729_v12, %s10845_s1 }
 0x549   :  { %5651 = vrot.lane.b32.xlu0 %v4691_v48, %s10843_s24  ;;  %10725 = vrot.lane.b32.xlu1 %v10724_v9, %s10845_s1  ;;  %v15793_v23 = vpop.permute.xlu2 %10560  ;;  %v7117_v15 = vpop.f32.mrf.mxu2  ;;  %v17420_v9 = vld [vmem:[#allocation72_spill] sm:$0xff] }
 0x54a   :  { %v15797_v46 = vpop.permute.xlu0 %10515  ;;  %v10521_v11 = vpop.permute.xlu1 %10520  ;;  %v7118_v48 = vadd.f32 %v7117_v15, %v15660_v6  ;;  %v17419_v6 = vld [vmem:[#allocation42_spill] sm:$0xff]  ;;  %v7315_v17 = vadd.f32 %v17420_v9, %v7106_v3  ;;  %v15826_v15 = vperm.slane %v17421_v29, %v15026_v38  ;;  %v4421_v29 = vld [vmem:[#allocation2 + $0x271] sm:$0xff] }
 0x54b   :  { %v10522_v12 = vunpack.i.l.bf16 %v10521_v11  ;;  %v15818_v0 = vperm.slane %v17419_v6, %v15026_v38  ;;  %v10523_v7 = vunpack.i.h.bf16 %v10521_v11  ;;  %v10776_v6 = vld [vmem:[%s16996_s0 + $0xc0] sm:$0xff]  ;;  %v10532_v11 = vunpack.i.l.bf16 %v15682_v24 }
 0x54c   :  { %17422 = vst [vmem:[#allocation36_spill] sm:$0xff] %v15826_v15  ;;  %v7327_v2 = vadd.f32 %v17423_v10, %v7118_v48  ;;  %v7605_v48 = vrot.slane %v15813_v13, 4  ;;  %v7458_v9 = vadd.f32 %v10776_v6, %v7315_v17  ;;  %v15874_v17 = vperm.slane %v15669_v4, %v15026_v38  ;;  %v17425_v10 = vld [vmem:[#allocation15_spill] sm:$0xff]  ;;  %v4566_v4 = vld [vmem:[#allocation2 + $0x350] sm:$0xff] }
 0x54d   :  { %v6407_v42 = vsel %vm2743_vm2, %v6343_v14, %v10522_v12  ;;  %v17426_v6 = vld [vmem:[#allocation51_spill] sm:$0xff] }
 0x54e   :  { %6967 = vmatmul.f32.gmra.mxu3 %v6407_v42  ;;  %v7598_v42 = vsel %vm7499_vm3, %v15818_v0, %v7597_v61  ;;  %v15861_v59 = vsel %vm7499_vm3, %v15826_v15, %v7605_v48  ;;  %v7318_v61 = vadd.f32 %v17425_v10, %v7109_v47  ;;  %v6469_v48 = vsel %vm291_vm0, %v4421_v29, %v10507_v28  ;;  %v4169_v29 = vld [vmem:[#allocation2 + $0x288] sm:$0xff] }
 0x54f   :  { %v15822_v60 = vpop.f32.mrf.mxu3  ;;  %7167 = vmatmul.f32.gmra.mxu2 %v6596_v62  ;;  %v7321_v13 = vadd.f32 %v17426_v6, %v7112_v58  ;;  %v10517_v47 = vunpack.i.l.bf16 %v15797_v46  ;;  %v15892_v28 = vperm.slane %v15616_v44, %v15026_v38  ;;  %v7637_v58 = vrot.slane %v7458_v9, 4 }
 0x550   :  { %5397 = vrot.lane.b32.xlu2 %v15746_v21, %s10845_s1  ;;  %v17424_v21 = vld [vmem:[#allocation53_spill] sm:$0xff]  ;;  %v15910_v10 = vperm.slane %v15686_v50, %v15026_v38 }
 0x551   :  { %5653 = vrot.lane.b32.xlu0 %v4692_v1, %s10843_s24  ;;  %5907 = vrot.lane.b32.xlu1 %v4565_v41, %s10844_s16  ;;  %v15837_v3 = vpop.permute.xlu2 %10575  ;;  %v15839_v12 = vpop.f32.mrf.mxu2  ;;  %v15844_v14 = vperm.slane %v17424_v21, %v15026_v38  ;;  %v10488_v41 = vunpack.i.h.bf16 %v15564_v51  ;;  %v7462_v51 = vadd.f32 %v10777_v18, %v7327_v2  ;;  %v4630_v21 = vld [vmem:[#allocation2 + $0x351] sm:$0xff]  ;;  %v10512_v2 = vunpack.i.l.bf16 %v15772_v5 }
 0x552   :  { %v15848_v33 = vpop.permute.xlu0 %10535  ;;  %v15850_v1 = vpop.permute.xlu1 %10525 }
 0x553   :  { %v10527_v62 = vunpack.i.l.bf16 %v15850_v1  ;;  %v6344_v54 = vsel %vm2678_vm1, %v6280_v30, %v10488_v41  ;;  %v10533_v30 = vunpack.i.h.bf16 %v15682_v24  ;;  %v10528_v41 = vunpack.i.h.bf16 %v15850_v1 }
 0x554   :  { %v6408_v18 = vsel %vm2743_vm2, %v6344_v54, %v10523_v7  ;;  %v7635_v7 = vrot.slane %v7462_v51, 4  ;;  %v6281_v6 = vsel %vm291_vm0, %v4169_v29, %v10512_v2  ;;  %v7638_v50 = vsel %vm7499_vm3, %v7462_v51, %v7637_v58 }
 0x555   :  { %v6533_v15 = vsel %vm2678_vm1, %v6469_v48, %v10527_v62  ;;  %v7121_v51 = vadd.f32 %v15839_v12, %v15713_v39  ;;  %v10537_v29 = vunpack.i.l.bf16 %v15848_v33 }
 0x556   :  { %6970 = vmatmul.f32.gmra.mxu3 %v6408_v18  ;;  %v6597_v35 = vsel %vm2743_vm2, %v6533_v15, %v10532_v11  ;;  %v15900_v15 = vadd.f32 %v10778_v52, %v7318_v61  ;;  %v17427_v11 = vld [vmem:[#allocation28_spill] sm:$0xff]  ;;  %v4422_v18 = vld [vmem:[#allocation2 + $0x279] sm:$0xff] }
 0x557   :  { %v15888_v20 = vpop.f32.mrf.mxu3  ;;  %7170 = vmatmul.f32.gmra.mxu2 %v6597_v35  ;;  %v7324_v62 = vadd.f32 %v17427_v11, %v7115_v56  ;;  %v10779_v61 = vld [vmem:[%s16996_s0 + $0xd0] sm:$0xff]  ;;  %v10552_v56 = vunpack.i.l.bf16 %v15768_v34  ;;  %v6345_v35 = vsel %vm2678_vm1, %v6281_v6, %v10517_v47  ;;  %v6470_v52 = vsel %vm291_vm0, %v4422_v18, %v10508_v43 }
 0x558   :  { %6165 = vrot.lane.b32.xlu2 %v4630_v21, %s10845_s1  ;;  %v7460_v54 = vadd.f32 %v10779_v61, %v7321_v13  ;;  %v10518_v13 = vunpack.i.h.bf16 %v15797_v46  ;;  %v7636_v11 = vsel %vm7499_vm3, %v7635_v7, %v7458_v9  ;;  %v6534_v1 = vsel %vm2678_vm1, %v6470_v52, %v10528_v41  ;;  %v4170_v7 = vld [vmem:[#allocation2 + $0x290] sm:$0xff] }
 0x559   :  { %8399 = vrot.lane.b32.xlu0 %v7598_v42, %s10843_s24  ;;  %5909 = vrot.lane.b32.xlu1 %v4566_v4, %s10844_s16  ;;  %v15905_v44 = vpop.permute.xlu2 %10590  ;;  %v7123_v24 = vpop.f32.mrf.mxu2  ;;  %v10513_v4 = vunpack.i.h.bf16 %v15772_v5  ;;  %v10780_v5 = vld [vmem:[%s16996_s0 + $0xd8] sm:$0xff]  ;;  %v7713_v43 = vrot.slane %v15910_v10, 4  ;;  %v7646_v9 = vperm.slane %v7638_v50, %v14673_v16  ;;  %v6409_v58 = vsel %vm2743_vm2, %v6345_v35, %v10552_v56  ;;  %v17428_v56 = vld [vmem:[#allocation75_spill] sm:$0xff] }
 0x55a   :  { %v15916_v42 = vpop.permute.xlu0 %10565  ;;  %v15918_v48 = vpop.permute.xlu1 %10545  ;;  %v7124_v21 = vadd.f32 %v7123_v24, %v15751_v36  ;;  %v7861_v36 = vrot.slane %v15900_v15, 4  ;;  %v15934_v2 = vadd.f32 %v10780_v5, %v7324_v62  ;;  %v7649_v46 = vrot.slane %v7460_v54, 4 }
 0x55b   :  { %v10542_v41 = vunpack.i.l.bf16 %v15730_v49  ;;  %v15946_v62 = vperm.slane %v7636_v11, %v14673_v16  ;;  %v6598_v39 = vsel %vm2743_vm2, %v6534_v1, %v10533_v30  ;;  %v6282_v24 = vsel %vm291_vm0, %v4170_v7, %v10513_v4 }
 0x55c   :  { %v7333_v61 = vadd.f32 %v15337_v8, %v7124_v21  ;;  %v10781_v8 = vld [vmem:[%s16996_s0 + $0xf0] sm:$0xff]  ;;  %v6346_v18 = vsel %vm2678_vm1, %v6282_v24, %v10518_v13  ;;  %v7873_v50 = vrot.slane %v15934_v2, 4  ;;  %v10553_v35 = vunpack.i.h.bf16 %v15768_v34 }
 0x55d   :  { %v7330_v30 = vadd.f32 %v15277_v63, %v7121_v51  ;;  %v10562_v11 = vunpack.i.l.bf16 %v15793_v23  ;;  %v7697_v13 = vrot.slane %v7646_v9, 4 }
 0x55e   :  { %v7464_v47 = vadd.f32 %v10781_v8, %v7333_v61  ;;  %6973 = vmatmul.f32.gmra.mxu3 %v6409_v58  ;;  %v4423_v8 = vld [vmem:[#allocation2 + $0x289] sm:$0xff] }
 0x55f   :  { %v15949_v12 = vpop.f32.mrf.mxu3  ;;  %7173 = vmatmul.f32.gmra.mxu2 %v6598_v39  ;;  %v6471_v7 = vsel %vm291_vm0, %v4423_v8, %v10537_v29  ;;  %v10782_v39 = vld [vmem:[%s16996_s0 + $0xe8] sm:$0xff]  ;;  %v17429_v8 = vrot.slane %v15874_v17, 4 }
 0x560   :  { %v7647_v21 = vrot.slane %v7464_v47, 4  ;;  %v7650_v6 = vsel %vm7499_vm3, %v7464_v47, %v7649_v46  ;;  %8431 = vrot.lane.b32.xlu2 %v17428_v56, %s10845_s1 }
 0x561   :  { %v7658_v1 = vperm.slane %v7650_v6, %v14673_v16  ;;  %8447 = vrot.lane.b32.xlu0 %v15861_v59, %s10843_s24  ;;  %8415 = vrot.lane.b32.xlu1 %v15275_v22, %s10844_s16  ;;  %v15965_v4 = vpop.permute.xlu2 %10620  ;;  %v7126_v52 = vpop.f32.mrf.mxu2  ;;  %v6410_v59 = vsel %vm2743_vm2, %v6346_v18, %v10553_v35  ;;  %v7685_v22 = vrot.slane %v15946_v62, 4 }
 0x562   :  { %v7648_v61 = vsel %vm7499_vm3, %v7647_v21, %v7460_v54  ;;  %v15969_v5 = vpop.permute.xlu0 %10570  ;;  %v10556_v34 = vpop.permute.xlu1 %10555  ;;  %v7127_v63 = vadd.f32 %v7126_v52, %v15787_v40  ;;  %v7463_v40 = vadd.f32 %v10782_v39, %v7330_v30  ;;  %v10538_v30 = vunpack.i.h.bf16 %v15848_v33 }
 0x563   :  { %v7654_v51 = vperm.slane %v7648_v61, %v14673_v16  ;;  %v7695_v46 = vrot.slane %v7658_v1, 4  ;;  %v10557_v47 = vunpack.i.l.bf16 %v10556_v34  ;;  %v7698_v54 = vsel %vm7499_vm3, %v7658_v1, %v7697_v13  ;;  %v16002_v61 = vpop.f32.mrf.mxu0 }
 0x564   :  { %v7336_v58 = vadd.f32 %v15395_v53, %v7127_v63  ;;  %v15982_v24 = vperm.slane %v7698_v54, %v15026_v38  ;;  %v10783_v53 = vld [vmem:[%s16996_s0 + $0xf8] sm:$0xff]  ;;  %v10547_v1 = vunpack.i.l.bf16 %v15918_v48  ;;  %v10558_v63 = vunpack.i.h.bf16 %v10556_v34 }
 0x565   :  { %v7696_v21 = vsel %vm7499_vm3, %v7695_v46, %v7646_v9  ;;  %v7686_v6 = vsel %vm7499_vm3, %v7654_v51, %v7685_v22  ;;  %v6535_v29 = vsel %vm2678_vm1, %v6471_v7, %v10557_v47  ;;  %v4171_v7 = vld [vmem:[#allocation2 + $0x2a0] sm:$0xff]  ;;  %v7683_v54 = vrot.slane %v7654_v51, 4 }
 0x566   :  { %v7465_v56 = vadd.f32 %v10783_v53, %v7336_v58  ;;  %v15991_v18 = vperm.slane %v7696_v21, %v15026_v38  ;;  %v15994_v35 = vperm.slane %v7686_v6, %v15026_v38  ;;  %6976 = vmatmul.f32.gmra.mxu3 %v6410_v59  ;;  %v6599_v9 = vsel %vm2743_vm2, %v6535_v29, %v10562_v11  ;;  %v4424_v6 = vld [vmem:[#allocation2 + $0x291] sm:$0xff] }
 0x567   :  { %v15999_v52 = vpop.f32.mrf.mxu3  ;;  %v7719_v13 = vrot.slane %v15982_v24, 4  ;;  %7176 = vmatmul.f32.gmra.mxu2 %v6599_v9  ;;  %v7859_v11 = vrot.slane %v7463_v40, 4  ;;  %v7862_v59 = vsel %vm7499_vm3, %v7463_v40, %v7861_v36  ;;  %v6283_v40 = vsel %vm291_vm0, %v4171_v7, %v10542_v41 }
 0x568   :  { %v7871_v46 = vrot.slane %v7465_v56, 4  ;;  %v7718_v22 = vsel %vm7499_vm3, %v15991_v18, %v17429_v8  ;;  %v7714_v33 = vsel %vm7499_vm3, %v15994_v35, %v7713_v43  ;;  %v16036_v51 = vperm.slane %v15719_v55, %v15026_v38 }
 0x569   :  { %v7129_v34 = vpop.f32.mrf.mxu2  ;;  %v7720_v58 = vsel %vm7499_vm3, %v7719_v13, %v15892_v28  ;;  %8449 = vrot.lane.b32.xlu1 %v7718_v22, %s10843_s24  ;;  %8433 = vrot.lane.b32.xlu0 %v7714_v33, %s10845_s1  ;;  %v7874_v53 = vsel %vm7499_vm3, %v7465_v56, %v7873_v50  ;;  %v6472_v9 = vsel %vm291_vm0, %v4424_v6, %v10538_v30  ;;  %v10563_v13 = vunpack.i.h.bf16 %v15793_v23 }
 0x56a   :  { %v16015_v47 = vpop.permute.xlu2 %10630  ;;  %v7872_v43 = vsel %vm7499_vm3, %v7871_v46, %v15934_v2  ;;  %v16023_v39 = vpop.permute.xlu0 %10580  ;;  %v16028_v36 = vadd.f32 %v7129_v34, %v15822_v60  ;;  %8465 = vrot.lane.b32.xlu2 %v7720_v58, %s10844_s16  ;;  %v7870_v46 = vperm.slane %v7862_v59, %v14673_v16  ;;  %v6347_v41 = vsel %vm2678_vm1, %v6283_v40, %v10547_v1 }
 0x56b   :  { %v16025_v21 = vpop.permute.xlu1 %10585  ;;  %v7878_v29 = vperm.slane %v7872_v43, %v14673_v16  ;;  %v10582_v60 = vunpack.i.l.bf16 %v16023_v39  ;;  %v6536_v8 = vsel %vm2678_vm1, %v6472_v9, %v10558_v63  ;;  %v7860_v55 = vsel %vm7499_vm3, %v7859_v11, %v15900_v15  ;;  %v4425_v9 = vld [vmem:[#allocation2 + $0x2a1] sm:$0xff] }
 0x56c   :  { %v7711_v50 = vrot.slane %v15994_v35, 4  ;;  %v7684_v56 = vsel %vm7499_vm3, %v7683_v54, %v15946_v62  ;;  %v7882_v30 = vperm.slane %v7874_v53, %v14673_v16  ;;  %v7721_v23 = vrot.slane %v15892_v28, 4 }
 0x56d   :  { %v6411_v2 = vsel %vm2743_vm2, %v6347_v41, %v10582_v60  ;;  %v16057_v22 = vperm.slane %v7684_v56, %v15026_v38  ;;  %v7709_v1 = vrot.slane %v16036_v51, 4  ;;  %v10543_v63 = vunpack.i.h.bf16 %v15730_v49  ;;  %v4172_v41 = vld [vmem:[#allocation2 + $0x2a8] sm:$0xff] }
 0x56e   :  { %v10567_v15 = vunpack.i.l.bf16 %v15916_v42  ;;  %6979 = vmatmul.f32.gmra.mxu3 %v6411_v2  ;;  %v6600_v33 = vsel %vm2743_vm2, %v6536_v8, %v10563_v13  ;;  %v7907_v35 = vrot.slane %v7878_v29, 4  ;;  %v7866_v11 = vperm.slane %v7860_v55, %v14673_v16 }
 0x56f   :  { %v10587_v62 = vunpack.i.l.bf16 %v16025_v21  ;;  %7179 = vmatmul.f32.gmra.mxu2 %v6600_v33  ;;  %v7722_v28 = vsel %vm7499_vm3, %v15982_v24, %v7721_v23  ;;  %v7710_v34 = vsel %vm7499_vm3, %v16057_v22, %v7709_v1  ;;  %v7921_v49 = vrot.slane %v7870_v46, 4 }
 0x570   :  { %v16065_v59 = vpop.f32.mrf.mxu3  ;;  %v10548_v58 = vunpack.i.h.bf16 %v15918_v48  ;;  %v7712_v43 = vsel %vm7499_vm3, %v7711_v50, %v15910_v10  ;;  %v7821_v40 = vrot.slane %v15844_v14, 4  ;;  %v7919_v6 = vrot.slane %v7882_v30, 4  ;;  %v16089_v10 = vpop.f32.mrf.mxu0 }
 0x571   :  { %v7132_v54 = vpop.f32.mrf.mxu2  ;;  %8481 = vrot.lane.b32.xlu0 %v7722_v28, %s10845_s1  ;;  %8401 = vrot.lane.b32.xlu1 %v7710_v34, %s10843_s24  ;;  %v10583_v24 = vunpack.i.h.bf16 %v16023_v39  ;;  %v7908_v13 = vsel %vm7499_vm3, %v7907_v35, %v7866_v11  ;;  %v6473_v8 = vsel %vm291_vm0, %v4425_v9, %v10567_v15  ;;  %v7922_v55 = vsel %vm7499_vm3, %v7882_v30, %v7921_v49  ;;  %v4426_v9 = vld [vmem:[#allocation2 + $0x2a9] sm:$0xff] }
 0x572   :  { %v16072_v7 = vpop.permute.xlu2 %10640  ;;  %v16080_v53 = vpop.permute.xlu0 %10595  ;;  %v16085_v48 = vadd.f32 %v7132_v54, %v15888_v20  ;;  %8417 = vrot.lane.b32.xlu2 %v7712_v43, %s10844_s16  ;;  %v7822_v39 = vsel %vm7499_vm3, %v15865_v19, %v7821_v40  ;;  %v6284_v2 = vsel %vm291_vm0, %v4172_v41, %v10543_v63  ;;  %v6537_v20 = vsel %vm2678_vm1, %v6473_v8, %v10587_v62 }
 0x573   :  { %v16082_v60 = vpop.permute.xlu1 %10600  ;;  %v7909_v50 = vrot.slane %v7866_v11, 4  ;;  %v16099_v56 = vperm.slane %v15754_v45, %v15026_v38  ;;  %v10592_v23 = vunpack.i.l.bf16 %v15905_v44  ;;  %v10572_v1 = vunpack.i.l.bf16 %v15969_v5 }
 0x574   :  { %v6348_v15 = vsel %vm2678_vm1, %v6284_v2, %v10548_v58  ;;  %v7914_v33 = vperm.slane %v7908_v13, %v15026_v38  ;;  %v16108_v63 = vperm.slane %v7922_v55, %v15026_v38  ;;  %v7920_v11 = vsel %vm7499_vm3, %v7919_v6, %v7870_v46 }
 0x575   :  { %v6412_v35 = vsel %vm2743_vm2, %v6348_v15, %v10583_v24  ;;  %v7910_v30 = vsel %vm7499_vm3, %v7878_v29, %v7909_v50  ;;  %v10568_v45 = vunpack.i.h.bf16 %v15916_v42  ;;  %v6601_v62 = vsel %vm2743_vm2, %v6537_v20, %v10592_v23 }
 0x576   :  { %6982 = vmatmul.f32.gmra.mxu3 %v6412_v35  ;;  %v7894_v28 = vperm.slane %v15722_v25, %v15026_v38  ;;  %v16116_v34 = vperm.slane %v7920_v11, %v15026_v38  ;;  %v10588_v49 = vunpack.i.h.bf16 %v16025_v21  ;;  %v7890_v58 = vperm.slane %v15733_v31, %v15026_v38  ;;  %v4173_v25 = vld [vmem:[#allocation2 + $0x2b8] sm:$0xff] }
 0x577   :  { %7182 = vmatmul.f32.gmra.mxu2 %v6601_v62  ;;  %v7707_v46 = vrot.slane %v16057_v22, 4  ;;  %v7945_v42 = vrot.slane %v16099_v56, 4  ;;  %v7918_v43 = vperm.slane %v7910_v30, %v15026_v38  ;;  %v16131_v21 = vperm.slane %v15757_v57, %v15026_v38 }
 0x578   :  { %v16119_v29 = vpop.f32.mrf.mxu3  ;;  %v7939_v40 = vrot.slane %v16116_v34, 4  ;;  %v7931_v31 = vrot.slane %v7914_v33, 4  ;;  %v10577_v41 = vunpack.i.l.bf16 %v15837_v3  ;;  %v16159_v2 = vpop.f32.mrf.mxu0  ;;  %v7937_v35 = vrot.slane %v7894_v28, 4 }
 0x579   :  { %v7135_v54 = vpop.f32.mrf.mxu2  ;;  %8495 = vrot.lane.b32.xlu0 %v7822_v39, %s10843_s24  ;;  %8463 = vrot.lane.b32.xlu1 %v15344_v27, %s10844_s16  ;;  %v6285_v27 = vsel %vm291_vm0, %v4173_v25, %v10572_v1  ;;  %v16146_v57 = vsel %vm7499_vm3, %v7707_v46, %v16036_v51  ;;  %v16150_v13 = vsel %vm7499_vm3, %v16108_v63, %v7945_v42  ;;  %v10593_v51 = vunpack.i.h.bf16 %v15905_v44 }
 0x57a   :  { %v16134_v6 = vpop.permute.xlu2 %10650  ;;  %v16136_v22 = vpop.permute.xlu0 %10605  ;;  %v16139_v24 = vadd.f32 %v7135_v54, %v15949_v12  ;;  %8479 = vrot.lane.b32.xlu2 %v15320_v32, %s10845_s1  ;;  %17430 = vst [vmem:[#allocation45_spill] sm:$0xff] %v16150_v13  ;;  %v6474_v12 = vsel %vm291_vm0, %v4426_v9, %v10568_v45  ;;  %v16157_v32 = vsel %vm7499_vm3, %v7939_v40, %v16131_v21  ;;  %v7935_v50 = vrot.slane %v7918_v43, 4 }
 0x57b   :  { %v10611_v8 = vpop.permute.xlu1 %10610  ;;  %v6538_v55 = vsel %vm2678_vm1, %v6474_v12, %v10588_v49  ;;  %v6349_v20 = vsel %vm2678_vm1, %v6285_v27, %v10577_v41  ;;  %v16164_v23 = vsel %vm7499_vm3, %v7931_v31, %v7890_v58  ;;  %v10573_v1 = vunpack.i.h.bf16 %v15969_v5 }
 0x57c   :  { %v10612_v39 = vunpack.i.l.bf16 %v10611_v8  ;;  %v7933_v30 = vrot.slane %v7890_v58, 4  ;;  %v6602_v11 = vsel %vm2743_vm2, %v6538_v55, %v10593_v51  ;;  %v7938_v44 = vsel %vm7499_vm3, %v7918_v43, %v7937_v35  ;;  %v4174_v58 = vld [vmem:[#allocation2 + $0x2c0] sm:$0xff] }
 0x57d   :  { %v10597_v49 = vunpack.i.l.bf16 %v16080_v53  ;;  %v7936_v5 = vsel %vm7499_vm3, %v7935_v50, %v7894_v28  ;;  %v10613_v42 = vunpack.i.h.bf16 %v10611_v8  ;;  %v10578_v43 = vunpack.i.h.bf16 %v15837_v3  ;;  %v4427_v28 = vld [vmem:[#allocation2 + $0x2b9] sm:$0xff] }
 0x57e   :  { %v6413_v15 = vsel %vm2743_vm2, %v6349_v20, %v10612_v39  ;;  %v7934_v62 = vsel %vm7499_vm3, %v7914_v33, %v7933_v30  ;;  %v6286_v33 = vsel %vm291_vm0, %v4174_v58, %v10573_v1  ;;  %v7943_v9 = vrot.slane %v16108_v63, 4  ;;  %v17431_v30 = vld [vmem:[#allocation19_spill] sm:$0xff] }
 0x57f   :  { %6985 = vmatmul.f32.gmra.mxu3 %v6413_v15  ;;  %7185 = vmatmul.f32.gmra.mxu2 %v6602_v11  ;;  %v10622_v41 = vunpack.i.l.bf16 %v15965_v4  ;;  %v6350_v8 = vsel %vm2678_vm1, %v6286_v33, %v10578_v43  ;;  %v6475_v12 = vsel %vm291_vm0, %v4427_v28, %v10597_v49  ;;  %v10598_v3 = vunpack.i.h.bf16 %v16080_v53  ;;  %v4175_v53 = vld [vmem:[#allocation2 + $0x2d0] sm:$0xff] }
 0x580   :  { %v16169_v45 = vpop.f32.mrf.mxu3  ;;  %v6414_v39 = vsel %vm2743_vm2, %v6350_v8, %v10613_v42  ;;  %v16194_v51 = vpop.f32.mrf.mxu0  ;;  %v10607_v20 = vunpack.i.l.bf16 %v16136_v22  ;;  %v7339_v50 = vadd.f32 %v15467_v26, %v16028_v36  ;;  %v7944_v35 = vsel %vm7499_vm3, %v7943_v9, %v16099_v56  ;;  %v4428_v36 = vld [vmem:[#allocation2 + $0x2c1] sm:$0xff]  ;;  %v17433_v49 = vld [vmem:[#allocation20_spill] sm:$0xff] }
 0x581   :  { %v7138_v46 = vpop.f32.mrf.mxu2  ;;  %8529 = vrot.lane.b32.xlu0 %v7938_v44, %s10845_s1  ;;  %8497 = vrot.lane.b32.xlu1 %v7934_v62, %s10843_s24  ;;  %v17432_v62 = vld [vmem:[#allocation52_spill] sm:$0xff]  ;;  %v6476_v42 = vsel %vm291_vm0, %v4428_v36, %v10598_v3  ;;  %v10642_v28 = vunpack.i.l.bf16 %v16072_v7  ;;  %v10623_v8 = vunpack.i.h.bf16 %v15965_v4  ;;  %v10785_v4 = vld [vmem:[%s16996_s0 + $0x120] sm:$0xff] }
 0x582   :  { %v16177_v54 = vpop.permute.xlu2 %10665  ;;  %v16179_v25 = vpop.permute.xlu0 %10625  ;;  %v16182_v40 = vadd.f32 %v7138_v46, %v15999_v52  ;;  %8513 = vrot.lane.b32.xlu2 %v7936_v5, %s10844_s16  ;;  %v10602_v52 = vunpack.i.l.bf16 %v16082_v60  ;;  %v16217_v46 = vperm.slane %v17433_v49, %v15026_v38  ;;  %v17435_v33 = vld [vmem:[#allocation24_spill] sm:$0xff] }
 0x583   :  { %v10616_v31 = vpop.permute.xlu1 %10615  ;;  %v16225_v43 = vperm.slane %v17435_v33, %v15026_v38 }
 0x584   :  { %v10617_v27 = vunpack.i.l.bf16 %v10616_v31  ;;  %v10618_v1 = vunpack.i.h.bf16 %v10616_v31  ;;  %v6287_v26 = vsel %vm291_vm0, %v4175_v53, %v10602_v52  ;;  %17434 = vst [vmem:[#allocation31_spill] sm:$0xff] %v16217_v46  ;;  %v10784_v31 = vld [vmem:[%s16996_s0 + $0x100] sm:$0xff]  ;;  %v7829_v3 = vrot.slane %v16217_v46, 4  ;;  %v4693_v46 = vld [vmem:[#allocation2 + $0x34a] sm:$0xff] }
 0x585   :  { %v6351_v58 = vsel %vm2678_vm1, %v6287_v26, %v10607_v20  ;;  %17436 = vst [vmem:[#allocation67_spill] sm:$0xff] %v16225_v43  ;;  %v17437_v52 = vld [vmem:[#allocation26_spill] sm:$0xff]  ;;  %v10608_v20 = vunpack.i.h.bf16 %v16136_v22  ;;  %v4176_v26 = vld [vmem:[#allocation2 + $0x2d8] sm:$0xff]  ;;  %8795 = vmatmul.msk.f32.gmra.mxu0 %vm291_vm0, %v4693_v46 }
 0x586   :  { %v6539_v55 = vsel %vm2678_vm1, %v6475_v12, %v10617_v27  ;;  %v7466_v27 = vadd.f32 %v10784_v31, %v7339_v50  ;;  %v10603_v12 = vunpack.i.h.bf16 %v16082_v60  ;;  %v7941_v50 = vrot.slane %v16131_v21, 4  ;;  %v17438_v22 = vld [vmem:[#allocation66_spill] sm:$0xff] }
 0x587   :  { %6988 = vmatmul.f32.gmra.mxu3 %v6414_v39  ;;  %v6603_v63 = vsel %vm2743_vm2, %v6539_v55, %v10622_v41  ;;  %v6540_v41 = vsel %vm2678_vm1, %v6476_v42, %v10618_v1  ;;  %v6415_v55 = vsel %vm2743_vm2, %v6351_v58, %v10642_v28  ;;  %v7342_v53 = vadd.f32 %v17438_v22, %v16085_v48 }
 0x588   :  { %7188 = vmatmul.f32.gmra.mxu2 %v6603_v63  ;;  %v16201_v15 = vpop.f32.mrf.mxu3  ;;  %v6604_v63 = vsel %vm2743_vm2, %v6540_v41, %v10623_v8  ;;  %v7942_v21 = vsel %vm7499_vm3, %v16116_v34, %v7941_v50  ;;  %v6288_v42 = vsel %vm291_vm0, %v4176_v26, %v10603_v12  ;;  %v10643_v34 = vunpack.i.h.bf16 %v16072_v7  ;;  %v4429_v41 = vld [vmem:[#allocation2 + $0x2d1] sm:$0xff]  ;;  %v10786_v8 = vld [vmem:[%s16996_s0 + $0x108] sm:$0xff] }
 0x589   :  { %8561 = vrot.lane.b32.xlu0 %v7944_v35, %s10844_s16  ;;  %8511 = vrot.lane.b32.xlu1 %v17431_v30, %s10844_s16  ;;  %v7830_v35 = vsel %vm7499_vm3, %v16225_v43, %v7829_v3  ;;  %v16248_v30 = vpop.f32.mrf.mxu0  ;;  %v6352_v31 = vsel %vm2678_vm1, %v6288_v42, %v10608_v20  ;;  %v10628_v7 = vunpack.i.h.bf16 %v16179_v25  ;;  %v10632_v50 = vunpack.i.l.bf16 %v16015_v47 }
 0x58a   :  { %v16208_v11 = vpop.permute.xlu2 %10675  ;;  %v16210_v44 = vpop.permute.xlu0 %10655  ;;  %8527 = vrot.lane.b32.xlu2 %v17432_v62, %s10845_s1  ;;  %v10627_v62 = vunpack.i.l.bf16 %v16179_v25  ;;  %v6416_v3 = vsel %vm2743_vm2, %v6352_v31, %v10643_v34  ;;  %v10787_v25 = vld [vmem:[%s16996_s0 + $0x128] sm:$0xff]  ;;  %v10653_v31 = vunpack.i.h.bf16 %v16134_v6 }
 0x58b   :  { %v16219_v56 = vpop.permute.xlu1 %10635  ;;  %v7141_v5 = vpop.f32.mrf.mxu2 }
 0x58c   :  { %v7142_v9 = vadd.f32 %v7141_v5, %v16065_v59  ;;  %v7949_v59 = vrot.slane %v7466_v27, 4  ;;  %v6477_v12 = vsel %vm291_vm0, %v4429_v41, %v10627_v62  ;;  %v10637_v22 = vunpack.i.l.bf16 %v16219_v56  ;;  %v17440_v62 = vld [vmem:[#allocation25_spill] sm:$0xff] }
 0x58e   :  { %v7351_v39 = vadd.f32 %v17437_v52, %v7142_v9  ;;  %v7467_v52 = vadd.f32 %v10786_v8, %v7342_v53 }
 0x58f   :  { %6991 = vmatmul.f32.gmra.mxu3 %v6415_v55 }
 0x590   :  { %v7470_v1 = vadd.f32 %v10785_v4, %v7351_v39  ;;  %7191 = vmatmul.f32.gmra.mxu2 %v6604_v63  ;;  %v16244_v60 = vpop.f32.mrf.mxu3  ;;  %v10652_v39 = vunpack.i.l.bf16 %v16134_v6 }
 0x591   :  { %8543 = vrot.lane.b32.xlu1 %v7830_v35, %s10843_s24 }
 0x592   :  { %v7947_v36 = vrot.slane %v7470_v1, 4  ;;  %v7950_v49 = vsel %vm7499_vm3, %v7470_v1, %v7949_v59  ;;  %v16257_v5 = vpop.permute.xlu2 %10700  ;;  %v16259_v58 = vpop.permute.xlu0 %10660  ;;  %8545 = vrot.lane.b32.xlu2 %v7942_v21, %s10843_s24  ;;  %v17439_v1 = vld [vmem:[#allocation73_spill] sm:$0xff] }
 0x593   :  { %v10646_v48 = vpop.permute.xlu1 %10645  ;;  %v7144_v33 = vpop.f32.mrf.mxu2  ;;  %v7345_v35 = vadd.f32 %v17439_v1, %v16139_v24  ;;  %v4430_v21 = vld [vmem:[#allocation2 + $0x2d9] sm:$0xff]  ;;  %v17441_v1 = vld [vmem:[#allocation32_spill] sm:$0xff] }
 0x594   :  { %v7948_v28 = vsel %vm7499_vm3, %v7947_v36, %v7466_v27  ;;  %v10647_v9 = vunpack.i.l.bf16 %v10646_v48  ;;  %v7145_v55 = vadd.f32 %v7144_v33, %v16119_v29  ;;  %v10648_v59 = vunpack.i.h.bf16 %v10646_v48  ;;  %v4177_v48 = vld [vmem:[#allocation2 + $0x2e8] sm:$0xff] }
 0x595   :  { %v8173_v29 = vrot.slane %v7467_v52, 4  ;;  %v6478_v33 = vsel %vm291_vm0, %v4430_v21, %v10628_v7  ;;  %v6289_v41 = vsel %vm291_vm0, %v4177_v48, %v10632_v50 }
 0x596   :  { %v6541_v20 = vsel %vm2678_vm1, %v6477_v12, %v10647_v9  ;;  %v7354_v27 = vadd.f32 %v15781_v37, %v7145_v55  ;;  %v6542_v8 = vsel %vm2678_vm1, %v6478_v33, %v10648_v59  ;;  %v10788_v55 = vld [vmem:[%s16996_s0 + $0x110] sm:$0xff]  ;;  %v6353_v6 = vsel %vm2678_vm1, %v6289_v41, %v10637_v22 }
 0x597   :  { %6994 = vmatmul.f32.gmra.mxu3 %v6416_v3  ;;  %v6605_v63 = vsel %vm2743_vm2, %v6541_v20, %v10652_v39  ;;  %v16302_v39 = vpop.f32.mrf.mxu0  ;;  %v7468_v12 = vadd.f32 %v10788_v55, %v7345_v35  ;;  %v6606_v50 = vsel %vm2743_vm2, %v6542_v8, %v10653_v31  ;;  %v7958_v59 = vperm.slane %v7950_v49, %v14673_v16  ;;  %v10789_v35 = vld [vmem:[%s16996_s0 + $0x130] sm:$0xff]  ;;  %v17442_v49 = vld [vmem:[#allocation17_spill] sm:$0xff] }
 0x598   :  { %7194 = vmatmul.f32.gmra.mxu2 %v6605_v63  ;;  %v16278_v4 = vpop.f32.mrf.mxu3  ;;  %v7471_v37 = vadd.f32 %v10787_v25, %v7354_v27  ;;  %v10657_v27 = vunpack.i.l.bf16 %v16210_v44  ;;  %v7954_v25 = vperm.slane %v7948_v28, %v14673_v16  ;;  %v10633_v31 = vunpack.i.h.bf16 %v16015_v47  ;;  %v10790_v8 = vld [vmem:[%s16996_s0 + $0x118] sm:$0xff] }
 0x599   :  { %v8009_v28 = vrot.slane %v7958_v59, 4 }
 0x59a   :  { %v16286_v53 = vpop.permute.xlu2 %10710  ;;  %8559 = vrot.lane.b32.xlu2 %v17440_v62, %s10844_s16  ;;  %v8171_v26 = vrot.slane %v7471_v37, 4  ;;  %v16291_v36 = vsel %vm7499_vm3, %v7471_v37, %v8173_v29  ;;  %v16293_v42 = vpop.permute.xlu0 %10685  ;;  %v4431_v62 = vld [vmem:[#allocation2 + $0x2e9] sm:$0xff] }
 0x59b   :  { %v16295_v24 = vpop.permute.xlu1 %10670  ;;  %v10687_v34 = vunpack.i.l.bf16 %v16293_v42  ;;  %v7147_v9 = vpop.f32.mrf.mxu2  ;;  %v6479_v33 = vsel %vm291_vm0, %v4431_v62, %v10657_v27  ;;  %v7997_v27 = vrot.slane %v7954_v25, 4  ;;  %v10638_v62 = vunpack.i.h.bf16 %v16219_v56 }
 0x59c   :  { %v16308_v3 = vsel %vm7499_vm3, %v8171_v26, %v7467_v52  ;;  %v7148_v20 = vadd.f32 %v7147_v9, %v16169_v45  ;;  %v10672_v29 = vunpack.i.l.bf16 %v16295_v24  ;;  %v7961_v52 = vrot.slane %v7468_v12, 4 }
 0x59d   :  { %v6417_v7 = vsel %vm2743_vm2, %v6353_v6, %v10687_v34  ;;  %v7348_v45 = vadd.f32 %v17441_v1, %v16182_v40  ;;  %v10678_v56 = vunpack.i.h.bf16 %v16208_v11 }
 0x59e   :  { %v7357_v63 = vadd.f32 %v16002_v61, %v7148_v20  ;;  %v6543_v41 = vsel %vm2678_vm1, %v6479_v33, %v10672_v29  ;;  %v10677_v20 = vunpack.i.l.bf16 %v16208_v11  ;;  %v10658_v29 = vunpack.i.h.bf16 %v16210_v44  ;;  %v10791_v44 = vld [vmem:[%s16996_s0 + $0x138] sm:$0xff] }
 0x59f   :  { %6997 = vmatmul.f32.gmra.mxu3 %v6417_v7  ;;  %v7469_v55 = vadd.f32 %v10790_v8, %v7348_v45 }
 0x5a0   :  { %7197 = vmatmul.f32.gmra.mxu2 %v6606_v50  ;;  %v7472_v22 = vadd.f32 %v10789_v35, %v7357_v63  ;;  %v6607_v45 = vsel %vm2743_vm2, %v6543_v41, %v10677_v20  ;;  %v10673_v35 = vunpack.i.h.bf16 %v16295_v24  ;;  %v8182_v24 = vperm.slane %v16291_v36, %v14673_v16 }
 0x5a1   :  { %v16324_v61 = vpop.f32.mrf.mxu3 }
 0x5a2   :  { %v16326_v37 = vpop.permute.xlu2 %10730  ;;  %8575 = vrot.lane.b32.xlu2 %v17442_v49, %s10845_s1  ;;  %v7959_v21 = vrot.slane %v7472_v22, 4  ;;  %v7962_v26 = vsel %vm7499_vm3, %v7472_v22, %v7961_v52  ;;  %v16331_v48 = vpop.permute.xlu0 %10695  ;;  %v8185_v49 = vrot.slane %v7469_v55, 4 }
 0x5a3   :  { %v16333_v40 = vpop.permute.xlu1 %10680  ;;  %v7970_v34 = vperm.slane %v7962_v26, %v14673_v16  ;;  %v7150_v9 = vpop.f32.mrf.mxu2 }
 0x5a4   :  { %v7960_v6 = vsel %vm7499_vm3, %v7959_v21, %v7468_v12  ;;  %v7151_v7 = vadd.f32 %v7150_v9, %v16201_v15  ;;  %v16349_v52 = vpop.f32.mrf.mxu0  ;;  %v4178_v21 = vld [vmem:[#allocation2 + $0x2f0] sm:$0xff] }
 0x5a5   :  { %v7966_v47 = vperm.slane %v7960_v6, %v14673_v16  ;;  %v8007_v63 = vrot.slane %v7970_v34, 4  ;;  %v16347_v50 = vsel %vm7499_vm3, %v7970_v34, %v8009_v28  ;;  %v4432_v28 = vld [vmem:[#allocation2 + $0x2f1] sm:$0xff]  ;;  %v8178_v6 = vperm.slane %v16308_v3, %v14673_v16 }
 0x5a6   :  { %v7360_v1 = vadd.f32 %v16089_v10, %v7151_v7  ;;  %v6480_v36 = vsel %vm291_vm0, %v4432_v28, %v10658_v29  ;;  %v8233_v29 = vrot.slane %v8182_v24, 4 }
 0x5a7   :  { %v7995_v12 = vrot.slane %v7966_v47, 4  ;;  %v16356_v15 = vsel %vm7499_vm3, %v8007_v63, %v7958_v59  ;;  %v16359_v22 = vsel %vm7499_vm3, %v7966_v47, %v7997_v27  ;;  %v6290_v59 = vsel %vm291_vm0, %v4178_v21, %v10633_v31 }
 0x5a8   :  { %7200 = vmatmul.f32.gmra.mxu2 %v6607_v45  ;;  %v7473_v10 = vadd.f32 %v10791_v44, %v7360_v1  ;;  %v6544_v11 = vsel %vm2678_vm1, %v6480_v36, %v10673_v35  ;;  %v10662_v27 = vunpack.i.l.bf16 %v16259_v58  ;;  %v10682_v47 = vunpack.i.l.bf16 %v16333_v40  ;;  %v4433_v35 = vld [vmem:[#allocation2 + $0x301] sm:$0xff] }
 0x5a9   :  { %v16367_v26 = vpop.f32.mrf.mxu3  ;;  %v16373_v34 = vsel %vm7499_vm3, %v7995_v12, %v7954_v25  ;;  %v6354_v1 = vsel %vm2678_vm1, %v6290_v59, %v10638_v62  ;;  %v8221_v44 = vrot.slane %v8178_v6, 4  ;;  %v4179_v62 = vld [vmem:[#allocation2 + $0x300] sm:$0xff] }
 0x5aa   :  { %v16369_v33 = vpop.permute.xlu2 %5397  ;;  %v8183_v9 = vrot.slane %v7473_v10, 4  ;;  %v8186_v41 = vsel %vm7499_vm3, %v7473_v10, %v8185_v49  ;;  %v16377_v8 = vpop.permute.xlu0 %10705  ;;  %v6608_v49 = vsel %vm2743_vm2, %v6544_v11, %v10678_v56  ;;  %v6481_v59 = vsel %vm291_vm0, %v4433_v35, %v10682_v47 }
 0x5ab   :  { %v16379_v20 = vpop.permute.xlu1 %10690  ;;  %v8194_v31 = vperm.slane %v8186_v41, %v14673_v16  ;;  %v10707_v7 = vunpack.i.l.bf16 %v16377_v8  ;;  %v16386_v25 = vpop.f32.mrf.mxu2  ;;  %v6291_v56 = vsel %vm291_vm0, %v4179_v62, %v10662_v27  ;;  %v10667_v11 = vunpack.i.l.bf16 %v16177_v54 }
 0x5ac   :  { %v8184_v63 = vsel %vm7499_vm3, %v8183_v9, %v7469_v55  ;;  %v16399_v28 = vpop.f32.mrf.mxu0  ;;  %v10702_v55 = vunpack.i.l.bf16 %v16257_v5  ;;  %v10688_v27 = vunpack.i.h.bf16 %v16293_v42  ;;  %v10668_v42 = vunpack.i.h.bf16 %v16177_v54 }
 0x5ad   :  { %v8190_v45 = vperm.slane %v8184_v63, %v14673_v16  ;;  %v8231_v3 = vrot.slane %v8194_v31, 4  ;;  %v6418_v12 = vsel %vm2743_vm2, %v6354_v1, %v10707_v7  ;;  %v16397_v21 = vsel %vm7499_vm3, %v8194_v31, %v8233_v29 }
 0x5ae   :  { %7000 = vmatmul.f32.gmra.mxu3 %v6418_v12  ;;  %v6545_v12 = vsel %vm2678_vm1, %v6481_v59, %v10702_v55  ;;  %v4434_v55 = vld [vmem:[#allocation2 + $0x309] sm:$0xff]  ;;  %v10708_v62 = vunpack.i.h.bf16 %v16377_v8 }
 0x5af   :  { %v8219_v10 = vrot.slane %v8190_v45, 4  ;;  %v16409_v36 = vsel %vm7499_vm3, %v8231_v3, %v8182_v24  ;;  %v16415_v31 = vsel %vm7499_vm3, %v8190_v45, %v8221_v44  ;;  %v6355_v24 = vsel %vm2678_vm1, %v6291_v56, %v10667_v11  ;;  %v4180_v44 = vld [vmem:[#allocation2 + $0x308] sm:$0xff] }
 0x5b0   :  { %7203 = vmatmul.f32.gmra.mxu2 %v6608_v49  ;;  %v10683_v45 = vunpack.i.h.bf16 %v16333_v40  ;;  %v6609_v49 = vsel %vm2743_vm2, %v6545_v12, %v10688_v27  ;;  %v10703_v11 = vunpack.i.h.bf16 %v16257_v5 }
 0x5b1   :  { %v16403_v9 = vpop.f32.mrf.mxu3  ;;  %v16412_v7 = vsel %vm7499_vm3, %v8219_v10, %v8178_v6  ;;  %v10663_v6 = vunpack.i.h.bf16 %v16259_v58 }
 0x5b2   :  { %v16405_v41 = vpop.permute.xlu2 %6165  ;;  %v6482_v56 = vsel %vm291_vm0, %v4434_v55, %v10683_v45  ;;  %v10697_v55 = vunpack.i.l.bf16 %v16331_v48 }
 0x5b3   :  { %v16418_v63 = vpop.permute.xlu0 %10720  ;;  %v10716_v47 = vpop.permute.xlu1 %10715  ;;  %v6292_v35 = vsel %vm291_vm0, %v4180_v44, %v10663_v6  ;;  %v6546_v6 = vsel %vm2678_vm1, %v6482_v56, %v10703_v11 }
 0x5b4   :  { %v10717_v1 = vunpack.i.l.bf16 %v10716_v47  ;;  %v16420_v29 = vpop.f32.mrf.mxu2  ;;  %v16437_v40 = vpop.f32.mrf.mxu0  ;;  %v6356_v54 = vsel %vm2678_vm1, %v6292_v35, %v10668_v42  ;;  %v6610_v45 = vsel %vm2743_vm2, %v6546_v6, %v10708_v62  ;;  %v10722_v5 = vunpack.i.l.bf16 %v16418_v63  ;;  %v4435_v35 = vld [vmem:[#allocation2 + $0x319] sm:$0xff] }
 0x5b5   :  { %v10718_v42 = vunpack.i.h.bf16 %v10716_v47  ;;  %v10732_v62 = vunpack.i.l.bf16 %v16326_v37 }
 0x5b6   :  { %v6419_v3 = vsel %vm2743_vm2, %v6355_v24, %v10717_v1  ;;  %v10692_v1 = vunpack.i.l.bf16 %v16379_v20 }
 0x5b7   :  { %7003 = vmatmul.f32.gmra.mxu3 %v6419_v3  ;;  %v10712_v3 = vunpack.i.l.bf16 %v16286_v53 }
 0x5b8   :  { %7206 = vmatmul.f32.gmra.mxu2 %v6609_v49  ;;  %v4181_v49 = vld [vmem:[#allocation2 + $0x318] sm:$0xff] }
 0x5b9   :  { %v16429_v10 = vpop.f32.mrf.mxu3  ;;  %v6293_v44 = vsel %vm291_vm0, %v4181_v49, %v10692_v1 }
 0x5ba   :  { %v16443_v24 = vpop.permute.xlu2 %8431  ;;  %v6357_v11 = vsel %vm2678_vm1, %v6293_v44, %v10697_v55  ;;  %v4182_v55 = vld [vmem:[#allocation2 + $0x320] sm:$0xff] }
 0x5bb   :  { %v16434_v59 = vpop.permute.xlu0 %5651  ;;  %v10726_v58 = vpop.permute.xlu1 %10725  ;;  %v6421_v47 = vsel %vm2743_vm2, %v6357_v11, %v10732_v62 }
 0x5bc   :  { %v10727_v12 = vunpack.i.l.bf16 %v10726_v58  ;;  %v16441_v27 = vpop.f32.mrf.mxu2  ;;  %v16466_v49 = vpop.f32.mrf.mxu0  ;;  %v10728_v43 = vunpack.i.h.bf16 %v10726_v58 }
 0x5be   :  { %v6420_v8 = vsel %vm2743_vm2, %v6356_v54, %v10727_v12  ;;  %v6483_v54 = vsel %vm291_vm0, %v4435_v35, %v10712_v3  ;;  %v10713_v3 = vunpack.i.h.bf16 %v16286_v53  ;;  %v10723_v35 = vunpack.i.h.bf16 %v16418_v63 }
 0x5bf   :  { %7006 = vmatmul.f32.gmra.mxu3 %v6420_v8  ;;  %v10693_v8 = vunpack.i.h.bf16 %v16379_v20  ;;  %v6547_v1 = vsel %vm2678_vm1, %v6483_v54, %v10722_v5  ;;  %v10698_v5 = vunpack.i.h.bf16 %v16331_v48  ;;  %v7154_v53 = vadd.f32 %v16386_v25, %v16244_v60 }
 0x5c0   :  { %7209 = vmatmul.f32.gmra.mxu2 %v6610_v45  ;;  %v6611_v44 = vsel %vm2743_vm2, %v6547_v1, %v10718_v42  ;;  %v4436_v1 = vld [vmem:[#allocation2 + $0x321] sm:$0xff]  ;;  %v7595_v48 = vrot.slane %v15818_v0, 4 }
 0x5c1   :  { %v16453_v13 = vpop.f32.mrf.mxu3  ;;  %v6294_v20 = vsel %vm291_vm0, %v4182_v55, %v10693_v8  ;;  %v6484_v8 = vsel %vm291_vm0, %v4436_v1, %v10713_v3  ;;  %v7363_v3 = vadd.f32 %v16159_v2, %v7154_v53  ;;  %v4694_v2 = vld [vmem:[#allocation2 + $0x352] sm:$0xff] }
 0x5c2   :  { %v6548_v58 = vsel %vm2678_vm1, %v6484_v8, %v10723_v35  ;;  %v7160_v8 = vadd.f32 %v16441_v27, %v16324_v61 }
 0x5c3   :  { %v16455_v12 = vpop.permute.xlu0 %5653  ;;  %v5908_v56 = vpop.permute.xlu1 %5907  ;;  %v6612_v55 = vsel %vm2743_vm2, %v6548_v58, %v10728_v43 }
 0x5c4   :  { %v16461_v6 = vpop.f32.mrf.mxu2  ;;  %v16464_v45 = vpop.permute.xlu2 %8465  ;;  %v7369_v27 = vadd.f32 %v16248_v30, %v7160_v8  ;;  %v7715_v30 = vrot.slane %v15991_v18, 4 }
 0x5c7   :  { %7009 = vmatmul.f32.gmra.mxu3 %v6421_v47  ;;  %v6358_v47 = vsel %vm2678_vm1, %v6294_v20, %v10698_v5  ;;  %v16489_v20 = vpop.f32.mrf.mxu0  ;;  %v4437_v5 = vld [vmem:[#allocation2 + $0x331] sm:$0xff] }
 0x5c8   :  { %7212 = vmatmul.f32.gmra.mxu2 %v6611_v44  ;;  %v6422_v63 = vsel %vm2743_vm2, %v6358_v47, %v16369_v33  ;;  %v6485_v33 = vsel %vm291_vm0, %v4437_v5, %v16434_v59  ;;  %v10792_v59 = vld [vmem:[%s16996_s0 + $0x160] sm:$0xff] }
 0x5c9   :  { %v16475_v54 = vpop.f32.mrf.mxu3  ;;  %v6549_v47 = vsel %vm2678_vm1, %v6485_v33, %v5908_v56  ;;  %v10793_v56 = vld [vmem:[%s16996_s0 + $0x140] sm:$0xff] }
 0x5cb   :  { %v8400_v11 = vpop.permute.xlu0 %8399  ;;  %v5910_v62 = vpop.permute.xlu1 %5909 }
 0x5cc   :  { %v7165_v42 = vpop.f32.mrf.mxu2  ;;  %v16479_v44 = vpop.permute.xlu2 %8417 }
 0x5cd   :  { %v7166_v46 = vadd.f32 %v7165_v42, %v16403_v9  ;;  %v17443_v42 = vld [vmem:[#allocation35_spill] sm:$0xff] }
 0x5ce   :  { %v7596_v60 = vsel %vm7499_vm3, %v7595_v48, %v17443_v42 }
 0x5cf   :  { %7012 = vmatmul.f32.gmra.mxu3 %v6422_v63  ;;  %v7375_v9 = vadd.f32 %v16349_v52, %v7166_v46  ;;  %v8587_v25 = vsel %vm291_vm0, %v7596_v60, %v8400_v11  ;;  %v10733_v46 = vunpack.i.h.bf16 %v16326_v37  ;;  %v7474_v63 = vadd.f32 %v10793_v56, %v7363_v3  ;;  %v4438_v3 = vld [vmem:[#allocation2 + $0x339] sm:$0xff] }
 0x5d0   :  { %7215 = vmatmul.f32.gmra.mxu2 %v6612_v55  ;;  %v7157_v37 = vadd.f32 %v16420_v29, %v16278_v4  ;;  %v16523_v55 = vpop.f32.mrf.mxu0  ;;  %v7163_v4 = vadd.f32 %v16461_v6, %v16367_v26  ;;  %v6486_v42 = vsel %vm291_vm0, %v4438_v3, %v16455_v12  ;;  %v10794_v26 = vld [vmem:[%s16996_s0 + $0x150] sm:$0xff]  ;;  %v16587_v3 = vperm.slane %v16359_v22, %v15026_v38 }
 0x5d1   :  { %v16495_v0 = vpop.f32.mrf.mxu3  ;;  %v7478_v53 = vadd.f32 %v10792_v59, %v7375_v9  ;;  %v6613_v61 = vsel %vm2743_vm2, %v6549_v47, %v10733_v46  ;;  %v7973_v9 = vrot.slane %v7474_v63, 4  ;;  %v7476_v12 = vadd.f32 %v10794_v26, %v7369_v27 }
 0x5d2   :  { %v7366_v5 = vadd.f32 %v16194_v51, %v7157_v37 }
 0x5d3   :  { %v16500_v35 = vpop.permute.xlu0 %8447  ;;  %v8416_v43 = vpop.permute.xlu1 %8415  ;;  %v7971_v58 = vrot.slane %v7478_v53, 4 }
 0x5d4   :  { %v8591_v52 = vsel %vm2678_vm1, %v8587_v25, %v8416_v43  ;;  %v7168_v1 = vpop.f32.mrf.mxu2  ;;  %v16512_v48 = vpop.permute.xlu2 %8479  ;;  %v7974_v25 = vsel %vm7499_vm3, %v7478_v53, %v7973_v9  ;;  %v17444_v43 = vld [vmem:[#allocation36_spill] sm:$0xff]  ;;  %v7716_v53 = vsel %vm7499_vm3, %v7715_v30, %v15874_v17 }
 0x5d5   :  { %v8595_v11 = vsel %vm2743_vm2, %v8591_v52, %v16443_v24  ;;  %v7169_v24 = vadd.f32 %v7168_v1, %v16429_v10  ;;  %v6550_v10 = vsel %vm2678_vm1, %v6486_v42, %v5910_v62  ;;  %v7603_v47 = vrot.slane %v17444_v43, 4  ;;  %v10797_v17 = vld [vmem:[%s16996_s0 + $0x170] sm:$0xff] }
 0x5d6   :  { %8635 = vst [vmem:[#allocation3] sm:$0xff] %v8595_v11  ;;  %v16538_v52 = vperm.slane %v16347_v50, %v15026_v38  ;;  %v7972_v6 = vsel %vm7499_vm3, %v7971_v58, %v7474_v63  ;;  %v7372_v50 = vadd.f32 %v16302_v39, %v7163_v4  ;;  %v7982_v8 = vperm.slane %v7974_v25, %v14673_v16  ;;  %v17445_v11 = vld [vmem:[#allocation27_spill] sm:$0xff]  ;;  %v10798_v58 = vld [vmem:[%s16996_s0 + $0x158] sm:$0xff] }
 0x5d7   :  { %8796 = vmatmul.msk.f32.vlgmr.msra.gmra.mxu3 %vm291_vm0, %v4694_v2  ;;  %v7378_v18 = vadd.f32 %v16399_v28, %v7169_v24  ;;  %v10795_v2 = vld [vmem:[%s16996_s0 + $0x148] sm:$0xff]  ;;  %v16561_v28 = vperm.slane %v7972_v6, %v14673_v16  ;;  %v7604_v56 = vsel %vm7499_vm3, %v7603_v47, %v17445_v11  ;;  %v7985_v39 = vrot.slane %v7476_v12, 4 }
 0x5d8   :  { %7218 = vmatmul.f32.gmra.mxu2 %v6613_v61  ;;  %v16551_v46 = vadd.f32 %v10795_v2, %v7366_v5  ;;  %v8057_v61 = vrot.slane %v16538_v52, 4  ;;  %v7477_v24 = vadd.f32 %v10798_v58, %v7372_v50  ;;  %v16583_v5 = vperm.slane %v16356_v15, %v15026_v38  ;;  %v16597_v26 = vpop.f32.mrf.mxu0 }
 0x5d9   :  { %v16528_v29 = vpop.f32.mrf.mxu3  ;;  %v8033_v4 = vrot.slane %v7982_v8, 4  ;;  %v8021_v22 = vrot.slane %v16561_v28, 4  ;;  %v8599_v58 = vsel %vm291_vm0, %v7604_v56, %v16500_v35 }
 0x5da   :  { %v8197_v27 = vrot.slane %v16551_v46, 4 }
 0x5db   :  { %v8450_v60 = vpop.permute.xlu1 %8449  ;;  %v8434_v33 = vpop.permute.xlu0 %8433 }
 0x5dc   :  { %v7171_v51 = vpop.f32.mrf.mxu2  ;;  %v16546_v1 = vpop.permute.xlu2 %8513  ;;  %v8600_v63 = vsel %vm291_vm0, %v7716_v53, %v8450_v60 }
 0x5dd   :  { %v7172_v62 = vadd.f32 %v7171_v51, %v16453_v13  ;;  %v6614_v13 = vsel %vm2743_vm2, %v6550_v10, %v16405_v41  ;;  %v8604_v30 = vsel %vm2678_vm1, %v8600_v63, %v16464_v45 }
 0x5df   :  { %v7381_v59 = vadd.f32 %v16437_v40, %v7172_v62  ;;  %v10796_v40 = vld [vmem:[%s16996_s0 + $0x168] sm:$0xff] }
 0x5e0   :  { %7221 = vmatmul.f32.gmra.mxu2 %v6614_v13  ;;  %v16569_v37 = vadd.f32 %v10796_v40, %v7378_v18  ;;  %v8209_v13 = vrot.slane %v7477_v24, 4 }
 0x5e1   :  { %v7480_v41 = vadd.f32 %v10797_v17, %v7381_v59  ;;  %v16579_v9 = vpop.f32.mrf.mxu3 }
 0x5e2   :  { %v8198_v6 = vsel %vm7499_vm3, %v16569_v37, %v8197_v27 }
 0x5e3   :  { %v7983_v42 = vrot.slane %v7480_v41, 4  ;;  %v7986_v60 = vsel %vm7499_vm3, %v7480_v41, %v7985_v39  ;;  %v8482_v10 = vpop.permute.xlu0 %8481  ;;  %v8402_v25 = vpop.permute.xlu1 %8401  ;;  %v8206_v63 = vperm.slane %v8198_v6, %v14673_v16 }
 0x5e4   :  { %v7994_v43 = vperm.slane %v7986_v60, %v14673_v16  ;;  %v7174_v47 = vpop.f32.mrf.mxu2  ;;  %v8608_v51 = vsel %vm2743_vm2, %v8604_v30, %v8482_v10  ;;  %v8588_v15 = vsel %vm291_vm0, %v16146_v57, %v8402_v25  ;;  %v16605_v2 = vpop.permute.xlu2 %8527  ;;  %v16632_v60 = vperm.slane %v16373_v34, %v15026_v38 }
 0x5e5   :  { %v7984_v18 = vsel %vm7499_vm3, %v7983_v42, %v7476_v12  ;;  %v7175_v45 = vadd.f32 %v7174_v47, %v16475_v54  ;;  %8640 = vst [vmem:[#allocation3 + $0x28] sm:$0xff] %v8608_v51  ;;  %v8592_v62 = vsel %vm2678_vm1, %v8588_v15, %v16479_v44  ;;  %v8053_v54 = vrot.slane %v16583_v5, 4 }
 0x5e6   :  { %v7990_v50 = vperm.slane %v7984_v18, %v14673_v16  ;;  %v8031_v57 = vrot.slane %v7994_v43, 4  ;;  %v8596_v59 = vsel %vm2743_vm2, %v8592_v62, %v8434_v33  ;;  %v8034_v53 = vsel %vm7499_vm3, %v7994_v43, %v8033_v4  ;;  %v10799_v33 = vld [vmem:[%s16996_s0 + $0x178] sm:$0xff] }
 0x5e7   :  { %v7384_v11 = vadd.f32 %v16466_v49, %v7175_v45  ;;  %8639 = vst [vmem:[#allocation3 + $0x20] sm:$0xff] %v8596_v59  ;;  %v8042_v12 = vperm.slane %v8034_v53, %v15026_v38  ;;  %v8195_v4 = vrot.slane %v16569_v37, 4  ;;  %v8257_v51 = vrot.slane %v8206_v63, 4 }
 0x5e8   :  { %v8032_v44 = vsel %vm7499_vm3, %v8031_v57, %v7982_v8  ;;  %v8022_v39 = vsel %vm7499_vm3, %v7990_v50, %v8021_v22  ;;  %v8019_v40 = vrot.slane %v7990_v50, 4  ;;  %v8049_v62 = vrot.slane %v16587_v3, 4 }
 0x5e9   :  { %v7481_v17 = vadd.f32 %v10799_v33, %v7384_v11  ;;  %v8058_v41 = vsel %vm7499_vm3, %v8042_v12, %v8057_v61  ;;  %v8055_v49 = vrot.slane %v8042_v12, 4  ;;  %v16621_v27 = vperm.slane %v8032_v44, %v15026_v38  ;;  %v16627_v8 = vpop.f32.mrf.mxu3 }
 0x5ea   :  { %8483 = vrot.lane.b32.xlu1 %v8058_v41, %s10845_s1  ;;  %v8030_v42 = vperm.slane %v8022_v39, %v15026_v38  ;;  %v8020_v47 = vsel %vm7499_vm3, %v8019_v40, %v16561_v28  ;;  %v16657_v28 = vpop.f32.mrf.mxu0  ;;  %v8242_v59 = vperm.slane %v16397_v21, %v15026_v38  ;;  %v16680_v39 = vperm.slane %v16409_v36, %v15026_v38 }
 0x5eb   :  { %v8207_v61 = vrot.slane %v7481_v17, 4  ;;  %v8210_v30 = vsel %vm7499_vm3, %v7481_v17, %v8209_v13  ;;  %v8056_v10 = vsel %vm7499_vm3, %v8055_v49, %v16538_v52  ;;  %v8054_v35 = vsel %vm7499_vm3, %v16621_v27, %v8053_v54  ;;  %v8496_v56 = vpop.permute.xlu0 %8495  ;;  %v8464_v37 = vpop.permute.xlu1 %8463 }
 0x5ec   :  { %v8218_v25 = vperm.slane %v8210_v30, %v14673_v16  ;;  %v7177_v43 = vpop.f32.mrf.mxu2  ;;  %8467 = vrot.lane.b32.xlu0 %v8056_v10, %s10844_s16  ;;  %8451 = vrot.lane.b32.xlu2 %v8054_v35, %s10843_s24  ;;  %v8603_v34 = vsel %vm2678_vm1, %v8599_v58, %v8464_v37  ;;  %v8546_v6 = vpop.permute.xlu2 %8545  ;;  %v16662_v50 = vperm.slane %v8020_v47, %v15026_v38  ;;  %v8045_v13 = vrot.slane %v16632_v60, 4 }
 0x5ed   :  { %v8208_v52 = vsel %vm7499_vm3, %v8207_v61, %v7477_v24  ;;  %v16647_v15 = vadd.f32 %v7177_v43, %v16495_v0  ;;  %v8607_v22 = vsel %vm2743_vm2, %v8603_v34, %v16512_v48  ;;  %v16654_v45 = vsel %vm291_vm0, %v16157_v32, %v8546_v6 }
 0x5ee   :  { %v8214_v18 = vperm.slane %v8208_v52, %v14673_v16  ;;  %8636 = vst [vmem:[#allocation3 + $0x8] sm:$0xff] %v8607_v22  ;;  %v8196_v24 = vsel %vm7499_vm3, %v8195_v4, %v16551_v46  ;;  %v8047_v0 = vrot.slane %v8030_v42, 4  ;;  %v8258_v48 = vsel %vm7499_vm3, %v8218_v25, %v8257_v51 }
 0x5ef   :  { %v8255_v57 = vrot.slane %v8218_v25, 4  ;;  %v8050_v32 = vsel %vm7499_vm3, %v8030_v42, %v8049_v62  ;;  %v8266_v11 = vperm.slane %v8258_v48, %v15026_v38  ;;  %v8202_v12 = vperm.slane %v8196_v24, %v14673_v16  ;;  %v17446_v48 = vld [vmem:[#allocation67_spill] sm:$0xff] }
 0x5f0   :  { %v8243_v53 = vrot.slane %v8214_v18, 4  ;;  %v8048_v54 = vsel %vm7499_vm3, %v8047_v0, %v16587_v3  ;;  %v8046_v44 = vsel %vm7499_vm3, %v16662_v50, %v8045_v13  ;;  %v8281_v41 = vrot.slane %v8242_v59, 4  ;;  %v17447_v13 = vld [vmem:[#allocation31_spill] sm:$0xff] }
 0x5f1   :  { %v16672_v46 = vpop.f32.mrf.mxu3  ;;  %v8256_v17 = vsel %vm7499_vm3, %v8255_v57, %v8206_v63  ;;  %v8279_v4 = vrot.slane %v8266_v11, 4  ;;  %v16693_v42 = vperm.slane %v16412_v7, %v15026_v38  ;;  %v7819_v61 = vrot.slane %v15865_v19, 4 }
 0x5f2   :  { %8435 = vrot.lane.b32.xlu1 %v8050_v32, %s10845_s1  ;;  %v8244_v3 = vsel %vm7499_vm3, %v8243_v53, %v8202_v12  ;;  %v16698_v63 = vsel %vm7499_vm3, %v8266_v11, %v8281_v41  ;;  %v16701_v30 = vperm.slane %v8256_v17, %v15026_v38  ;;  %v8277_v7 = vrot.slane %v16680_v39, 4 }
 0x5f3   :  { %v8498_v21 = vpop.permute.xlu1 %8497  ;;  %v8530_v58 = vpop.permute.xlu0 %8529  ;;  %v8280_v10 = vsel %vm7499_vm3, %v8279_v4, %v8242_v59  ;;  %v8269_v35 = vrot.slane %v16693_v42, 4  ;;  %v7820_v19 = vsel %vm7499_vm3, %v7819_v61, %v15844_v14  ;;  %v8245_v25 = vrot.slane %v8202_v12, 4 }
 0x5f4   :  { %v7180_v40 = vpop.f32.mrf.mxu2  ;;  %8419 = vrot.lane.b32.xlu0 %v8048_v54, %s10844_s16  ;;  %8403 = vrot.lane.b32.xlu2 %v8046_v44, %s10843_s24  ;;  %v8612_v33 = vsel %vm291_vm0, %v16164_v23, %v8498_v21  ;;  %v8611_v43 = vsel %vm291_vm0, %v7820_v19, %v8496_v56  ;;  %v8560_v34 = vpop.permute.xlu2 %8559  ;;  %v8278_v47 = vsel %vm7499_vm3, %v16701_v30, %v8277_v7  ;;  %v7827_v57 = vrot.slane %v17446_v48, 4 }
 0x5f5   :  { %v7181_v49 = vadd.f32 %v7180_v40, %v16528_v29  ;;  %v8616_v36 = vsel %vm2678_vm1, %v8612_v33, %v16546_v1  ;;  %v16704_v29 = vperm.slane %v8244_v3, %v15026_v38  ;;  %v7398_v1 = vpop.f32.mrf.mxu0  ;;  %v8246_v6 = vsel %vm7499_vm3, %v8214_v18, %v8245_v25  ;;  %v10802_v25 = vld [vmem:[%s16996_s0 + $0x188] sm:$0xff] }
 0x5f6   :  { %v8620_v23 = vsel %vm2743_vm2, %v8616_v36, %v8530_v58  ;;  %v8230_v24 = vperm.slane %v16415_v31, %v15026_v38  ;;  %v8254_v0 = vperm.slane %v8246_v6, %v15026_v38  ;;  %v7828_v18 = vsel %vm7499_vm3, %v7827_v57, %v17447_v13  ;;  %v10800_v58 = vld [vmem:[%s16996_s0 + $0x180] sm:$0xff] }
 0x5f7   :  { %8641 = vst [vmem:[#allocation3 + $0x30] sm:$0xff] %v8620_v23  ;;  %v8270_v51 = vsel %vm7499_vm3, %v16704_v29, %v8269_v35  ;;  %v7387_v33 = vadd.f32 %v16489_v20, %v16647_v15  ;;  %v10801_v20 = vld [vmem:[%s16996_s0 + $0x1a0] sm:$0xff] }
 0x5f8   :  { %v8273_v59 = vrot.slane %v8230_v24, 4  ;;  %v8271_v40 = vrot.slane %v8254_v0, 4 }
 0x5f9   :  { %v6983_v37 = vpop.f32.mrf.mxu3 }
 0x5fa   :  { %8563 = vrot.lane.b32.xlu1 %v8280_v10, %s10844_s16  ;;  %v8274_v32 = vsel %vm7499_vm3, %v8254_v0, %v8273_v59  ;;  %v8272_v17 = vsel %vm7499_vm3, %v8271_v40, %v8230_v24  ;;  %v7390_v10 = vadd.f32 %v16523_v55, %v7181_v49 }
 0x5fb   :  { %v8512_v52 = vpop.permute.xlu1 %8511 }
 0x5fc   :  { %v7183_v22 = vpop.f32.mrf.mxu2  ;;  %8547 = vrot.lane.b32.xlu0 %v8278_v47, %s10843_s24  ;;  %8499 = vrot.lane.b32.xlu2 %v8270_v51, %s10843_s24  ;;  %v8615_v14 = vsel %vm2678_vm1, %v8611_v43, %v8512_v52  ;;  %v8576_v31 = vpop.permute.xlu2 %8575  ;;  %v7483_v43 = vadd.f32 %v10802_v25, %v7390_v10  ;;  %v10803_v52 = vld [vmem:[%s16996_s0 + $0x1a8] sm:$0xff] }
 0x5fd   :  { %v7184_v62 = vadd.f32 %v7183_v22, %v16579_v9  ;;  %v8619_v56 = vsel %vm2743_vm2, %v8615_v14, %v16605_v2  ;;  %v7401_v53 = vpop.f32.mrf.mxu0 }
 0x5fe   :  { %8637 = vst [vmem:[#allocation3 + $0x10] sm:$0xff] %v8619_v56  ;;  %v8285_v49 = vrot.slane %v7483_v43, 4 }
 0x5ff   :  { %v7393_v51 = vadd.f32 %v16597_v26, %v7184_v62 }
 0x602   :  { %v6986_v9 = vpop.f32.mrf.mxu3 }
 0x603   :  { %v8544_v11 = vpop.permute.xlu1 %8543 }
 0x604   :  { %v7186_v12 = vpop.f32.mrf.mxu2  ;;  %8531 = vrot.lane.b32.xlu0 %v8274_v32, %s10845_s1  ;;  %v8623_v2 = vsel %vm291_vm0, %v7828_v18, %v8544_v11  ;;  %v10805_v32 = vld [vmem:[%s16996_s0 + $0x1b0] sm:$0xff] }
 0x605   :  { %v7187_v54 = vadd.f32 %v7186_v12, %v16627_v8  ;;  %v8627_v44 = vsel %vm2678_vm1, %v8623_v2, %v8560_v34  ;;  %v7404_v41 = vpop.f32.mrf.mxu0  ;;  %v7482_v8 = vadd.f32 %v10800_v58, %v7387_v33 }
 0x606   :  { %v8631_v21 = vsel %vm2743_vm2, %v8627_v44, %v8576_v31 }
 0x607   :  { %8638 = vst [vmem:[#allocation3 + $0x18] sm:$0xff] %v8631_v21  ;;  %v8061_v23 = vrot.slane %v7482_v8, 4  ;;  %v10806_v21 = vld [vmem:[%s16996_s0 + $0x198] sm:$0xff] }
 0x60a   :  { %v6989_v4 = vpop.f32.mrf.mxu3 }
 0x60c   :  { %v7189_v3 = vpop.f32.mrf.mxu2  ;;  %8515 = vrot.lane.b32.xlu0 %v8272_v17, %s10844_s16 }
 0x60d   :  { %v7190_v36 = vadd.f32 %v7189_v3, %v16672_v46  ;;  %v7407_v34 = vpop.f32.mrf.mxu0 }
 0x60f   :  { %v7399_v61 = vadd.f32 %v7398_v1, %v7190_v36 }
 0x611   :  { %v7486_v15 = vadd.f32 %v10801_v20, %v7399_v61 }
 0x612   :  { %v16753_v55 = vpop.f32.mrf.mxu3 }
 0x613   :  { %v8059_v7 = vrot.slane %v7486_v15, 4  ;;  %v8062_v35 = vsel %vm7499_vm3, %v7486_v15, %v8061_v23 }
 0x614   :  { %v7192_v19 = vpop.f32.mrf.mxu2  ;;  %v8070_v26 = vperm.slane %v8062_v35, %v14673_v16 }
 0x615   :  { %v8060_v46 = vsel %vm7499_vm3, %v8059_v7, %v7482_v8  ;;  %v7193_v1 = vadd.f32 %v7192_v19, %v6983_v37  ;;  %v10804_v37 = vld [vmem:[%s16996_s0 + $0x190] sm:$0xff]  ;;  %v7410_v62 = vpop.f32.mrf.mxu0 }
 0x616   :  { %v7484_v24 = vadd.f32 %v10804_v37, %v7393_v51  ;;  %v8066_v18 = vperm.slane %v8060_v46, %v14673_v16  ;;  %v8121_v31 = vrot.slane %v8070_v26, 4 }
 0x617   :  { %v7402_v47 = vadd.f32 %v7401_v53, %v7193_v1  ;;  %v7396_v53 = vadd.f32 %v16657_v28, %v7187_v54 }
 0x618   :  { %v8073_v59 = vrot.slane %v7484_v24, 4  ;;  %v8109_v33 = vrot.slane %v8066_v18, 4 }
 0x619   :  { %v7487_v22 = vadd.f32 %v10803_v52, %v7402_v47  ;;  %v7485_v28 = vadd.f32 %v10806_v21, %v7396_v53 }
 0x61a   :  { %v6995_v11 = vpop.f32.mrf.mxu3 }
 0x61b   :  { %v8283_v14 = vrot.slane %v7487_v22, 4  ;;  %v8286_v6 = vsel %vm7499_vm3, %v7487_v22, %v8285_v49  ;;  %v8297_v10 = vrot.slane %v7485_v28, 4 }
 0x61c   :  { %v7195_v56 = vpop.f32.mrf.mxu2  ;;  %v8294_v8 = vperm.slane %v8286_v6, %v14673_v16 }
 0x61d   :  { %v8284_v0 = vsel %vm7499_vm3, %v8283_v14, %v7483_v43  ;;  %v7196_v48 = vadd.f32 %v7195_v56, %v6986_v9  ;;  %v7413_v35 = vpop.f32.mrf.mxu0 }
 0x61e   :  { %v8290_v15 = vperm.slane %v8284_v0, %v14673_v16  ;;  %v8345_v43 = vrot.slane %v8294_v8, 4 }
 0x61f   :  { %v7405_v57 = vadd.f32 %v7404_v41, %v7196_v48 }
 0x620   :  { %v8333_v49 = vrot.slane %v8290_v15, 4 }
 0x621   :  { %v7488_v13 = vadd.f32 %v10805_v32, %v7405_v57 }
 0x622   :  { %v6998_v46 = vpop.f32.mrf.mxu3 }
 0x623   :  { %v8071_v12 = vrot.slane %v7488_v13, 4  ;;  %v8074_v2 = vsel %vm7499_vm3, %v7488_v13, %v8073_v59 }
 0x624   :  { %v8082_v9 = vperm.slane %v8074_v2, %v14673_v16  ;;  %v7198_v44 = vpop.f32.mrf.mxu2 }
 0x625   :  { %v8072_v54 = vsel %vm7499_vm3, %v8071_v12, %v7484_v24  ;;  %v7199_v40 = vadd.f32 %v7198_v44, %v6989_v4  ;;  %v10807_v4 = vld [vmem:[%s16996_s0 + $0x1b8] sm:$0xff]  ;;  %v7416_v48 = vpop.f32.mrf.mxu0 }
 0x626   :  { %v8078_v17 = vperm.slane %v8072_v54, %v14673_v16  ;;  %v8119_v3 = vrot.slane %v8082_v9, 4  ;;  %v16778_v41 = vsel %vm7499_vm3, %v8082_v9, %v8121_v31 }
 0x627   :  { %v7408_v58 = vadd.f32 %v7407_v34, %v7199_v40  ;;  %v16811_v40 = vpop.permute.xlu0 %8561 }
 0x628   :  { %v8107_v36 = vrot.slane %v8078_v17, 4  ;;  %v16782_v61 = vsel %vm7499_vm3, %v8119_v3, %v8070_v26  ;;  %v16785_v23 = vsel %vm7499_vm3, %v8078_v17, %v8109_v33  ;;  %v10808_v17 = vld [vmem:[%s16996_s0 + $0x1c0] sm:$0xff] }
 0x629   :  { %v7489_v20 = vadd.f32 %v10807_v4, %v7408_v58  ;;  %v10809_v58 = vld [vmem:[%s16996_s0 + $0x1e0] sm:$0xff] }
 0x62a   :  { %v16792_v7 = vsel %vm7499_vm3, %v8107_v36, %v8066_v18  ;;  %v8051_v36 = vrot.slane %v16621_v27, 4 }
 0x62b   :  { %v8295_v19 = vrot.slane %v7489_v20, 4  ;;  %v8298_v25 = vsel %vm7499_vm3, %v7489_v20, %v8297_v10 }
 0x62c   :  { %v8306_v1 = vperm.slane %v8298_v25, %v14673_v16  ;;  %v7201_v34 = vpop.f32.mrf.mxu2  ;;  %v8052_v25 = vsel %vm7499_vm3, %v8051_v36, %v16583_v5 }
 0x62d   :  { %v8296_v47 = vsel %vm7499_vm3, %v8295_v19, %v7485_v28  ;;  %v7419_v59 = vpop.f32.mrf.mxu0  ;;  %v7202_v12 = vadd.f32 %v7201_v34, %v16753_v55  ;;  %v10810_v34 = vld [vmem:[%s16996_s0 + $0x1d0] sm:$0xff] }
 0x62e   :  { %v8302_v51 = vperm.slane %v8296_v47, %v14673_v16  ;;  %v8343_v52 = vrot.slane %v8306_v1, 4  ;;  %v16799_v22 = vsel %vm7499_vm3, %v8306_v1, %v8345_v43 }
 0x62f   :  { %v7411_v44 = vadd.f32 %v7410_v62, %v7202_v12 }
 0x630   :  { %v8331_v14 = vrot.slane %v8302_v51, 4  ;;  %v16802_v6 = vsel %vm7499_vm3, %v8343_v52, %v8294_v8  ;;  %v16805_v56 = vsel %vm7499_vm3, %v8302_v51, %v8333_v49 }
 0x631   :  { %v7001_v24 = vpop.f32.mrf.mxu3  ;;  %v7490_v3 = vadd.f32 %v10808_v17, %v7411_v44 }
 0x632   :  { %v16808_v37 = vsel %vm7499_vm3, %v8331_v14, %v8290_v15 }
 0x633   :  { %v8085_v15 = vrot.slane %v7490_v3, 4 }
 0x634   :  { %v7204_v0 = vpop.f32.mrf.mxu2 }
 0x635   :  { %v7422_v13 = vpop.f32.mrf.mxu0  ;;  %v7205_v33 = vadd.f32 %v7204_v0, %v6995_v11 }
 0x637   :  { %v7414_v20 = vadd.f32 %v7413_v35, %v7205_v33  ;;  %v10811_v35 = vld [vmem:[%s16996_s0 + $0x1c8] sm:$0xff] }
 0x639   :  { %v16829_v14 = vadd.f32 %v10811_v35, %v7414_v20 }
 0x63a   :  { %v7004_v26 = vpop.f32.mrf.mxu3 }
 0x63b   :  { %v8309_v44 = vrot.slane %v16829_v14, 4 }
 0x63c   :  { %v7207_v57 = vpop.f32.mrf.mxu2 }
 0x63d   :  { %v7425_v9 = vpop.f32.mrf.mxu0  ;;  %v7208_v54 = vadd.f32 %v7207_v57, %v6998_v46 }
 0x63f   :  { %v7417_v10 = vadd.f32 %v7416_v48, %v7208_v54 }
 0x641   :  { %v7492_v47 = vadd.f32 %v10810_v34, %v7417_v10 }
 0x642   :  { %v7007_v32 = vpop.f32.mrf.mxu3 }
 0x643   :  { %v8097_v12 = vrot.slane %v7492_v47, 4 }
 0x644   :  { %v7210_v53 = vpop.f32.mrf.mxu2 }
 0x645   :  { %v7211_v4 = vadd.f32 %v7210_v53, %v7001_v24  ;;  %v7428_v11 = vpop.f32.mrf.mxu0  ;;  %v8043_v24 = vrot.slane %v16662_v50, 4  ;;  %v16846_v50 = vperm.slane %v16782_v61, %v15026_v38 }
 0x646   :  { %v8452_v8 = vpop.permute.xlu2 %8451 }
 0x647   :  { %v7420_v49 = vadd.f32 %v7419_v59, %v7211_v4  ;;  %v8601_v5 = vsel %vm291_vm0, %v8052_v25, %v8452_v8  ;;  %v8130_v59 = vperm.slane %v16778_v41, %v15026_v38  ;;  %v8044_v61 = vsel %vm7499_vm3, %v8043_v24, %v16632_v60 }
 0x649   :  { %v8169_v17 = vrot.slane %v8130_v59, 4 }
 0x64a   :  { %v7010_v31 = vpop.f32.mrf.mxu3 }
 0x64c   :  { %v7213_v18 = vpop.f32.mrf.mxu2 }
 0x64d   :  { %v7214_v2 = vadd.f32 %v7213_v18, %v7004_v26 }
 0x64f   :  { %v7423_v21 = vadd.f32 %v7422_v13, %v7214_v2  ;;  %v10813_v2 = vld [vmem:[%s16996_s0 + $0x1d8] sm:$0xff] }
 0x650   :  { %v7493_v41 = vadd.f32 %v10813_v2, %v7420_v49 }
 0x651   :  { %v7494_v55 = vadd.f32 %v10809_v58, %v7423_v21 }
 0x652   :  { %v7013_v43 = vpop.f32.mrf.mxu3  ;;  %v8321_v10 = vrot.slane %v7493_v41, 4 }
 0x653   :  { %v8083_v19 = vrot.slane %v7494_v55, 4  ;;  %v8086_v27 = vsel %vm7499_vm3, %v7494_v55, %v8085_v15 }
 0x654   :  { %v7216_v28 = vpop.f32.mrf.mxu2  ;;  %v8094_v53 = vperm.slane %v8086_v27, %v14673_v16 }
 0x655   :  { %v7217_v62 = vadd.f32 %v7216_v28, %v7007_v32  ;;  %v8084_v48 = vsel %vm7499_vm3, %v8083_v19, %v7490_v3  ;;  %v10812_v32 = vld [vmem:[%s16996_s0 + $0x1e8] sm:$0xff]  ;;  %v8404_v28 = vpop.permute.xlu2 %8403 }
 0x656   :  { %v8090_v21 = vperm.slane %v8084_v48, %v14673_v16  ;;  %v8145_v3 = vrot.slane %v8094_v53, 4  ;;  %v8589_v4 = vsel %vm291_vm0, %v8044_v61, %v8404_v28  ;;  %v16897_v28 = vperm.slane %v16792_v7, %v15026_v38 }
 0x657   :  { %v7426_v46 = vadd.f32 %v7425_v9, %v7217_v62  ;;  %v8165_v62 = vrot.slane %v16846_v50, 4 }
 0x659   :  { %v16841_v13 = vadd.f32 %v10812_v32, %v7426_v46  ;;  %v8133_v46 = vrot.slane %v8090_v21, 4  ;;  %v8118_v32 = vperm.slane %v16785_v23, %v15026_v38 }
 0x65a   :  { %v7431_v36 = vpop.f32.mrf.mxu3 }
 0x65b   :  { %v8310_v58 = vsel %vm7499_vm3, %v16841_v13, %v8309_v44 }
 0x65c   :  { %v7219_v1 = vpop.f32.mrf.mxu2  ;;  %v8484_v52 = vpop.permute.xlu1 %8483 }
 0x65d   :  { %v7220_v51 = vadd.f32 %v7219_v1, %v7010_v31  ;;  %v10814_v31 = vld [vmem:[%s16996_s0 + $0x1f0] sm:$0xff]  ;;  %v8318_v1 = vperm.slane %v8310_v58, %v14673_v16 }
 0x65e   :  { %v8468_v0 = vpop.permute.xlu0 %8467 }
 0x65f   :  { %v7429_v57 = vadd.f32 %v7428_v11, %v7220_v51  ;;  %v8605_v26 = vsel %vm2678_vm1, %v8601_v5, %v8468_v0  ;;  %v10815_v5 = vld [vmem:[%s16996_s0 + $0x1f8] sm:$0xff] }
 0x660   :  { %v8609_v18 = vsel %vm2743_vm2, %v8605_v26, %v8484_v52  ;;  %v8307_v26 = vrot.slane %v16841_v13, 4  ;;  %v8369_v13 = vrot.slane %v8318_v1, 4 }
 0x661   :  { %v7496_v9 = vadd.f32 %v10814_v31, %v7429_v57  ;;  %8644 = vst [vmem:[#allocation3 + $0x48] sm:$0xff] %v8609_v18 }
 0x663   :  { %v8095_v54 = vrot.slane %v7496_v9, 4  ;;  %v8098_v33 = vsel %vm7499_vm3, %v7496_v9, %v8097_v12 }
 0x664   :  { %v8106_v55 = vperm.slane %v8098_v33, %v14673_v16  ;;  %v7222_v8 = vpop.f32.mrf.mxu2  ;;  %v8436_v34 = vpop.permute.xlu1 %8435 }
 0x665   :  { %v8096_v20 = vsel %vm7499_vm3, %v8095_v54, %v7492_v47  ;;  %v7223_v60 = vadd.f32 %v7222_v8, %v7013_v43  ;;  %v8157_v8 = vrot.slane %v16897_v28, 4 }
 0x666   :  { %v8102_v15 = vperm.slane %v8096_v20, %v14673_v16  ;;  %v8143_v19 = vrot.slane %v8106_v55, 4  ;;  %v8420_v11 = vpop.permute.xlu0 %8419  ;;  %v8146_v25 = vsel %vm7499_vm3, %v8106_v55, %v8145_v3 }
 0x667   :  { %v8593_v49 = vsel %vm2678_vm1, %v8589_v4, %v8420_v11  ;;  %v7432_v27 = vadd.f32 %v7431_v36, %v7223_v60  ;;  %v8154_v51 = vperm.slane %v8146_v25, %v15026_v38  ;;  %v8354_v11 = vperm.slane %v16799_v22, %v15026_v38 }
 0x668   :  { %v8131_v52 = vrot.slane %v8102_v15, 4  ;;  %v8597_v35 = vsel %vm2743_vm2, %v8593_v49, %v8436_v34  ;;  %v8144_v43 = vsel %vm7499_vm3, %v8143_v19, %v8094_v53  ;;  %v8134_v47 = vsel %vm7499_vm3, %v8102_v15, %v8133_v46 }
 0x669   :  { %8643 = vst [vmem:[#allocation3 + $0x40] sm:$0xff] %v8597_v35  ;;  %v7497_v24 = vadd.f32 %v10815_v5, %v7432_v27  ;;  %v8170_v0 = vsel %vm7499_vm3, %v8154_v51, %v8169_v17  ;;  %v8167_v48 = vrot.slane %v8154_v51, 4  ;;  %v16878_v57 = vperm.slane %v8144_v43, %v15026_v38  ;;  %v8500_v27 = vpop.permute.xlu2 %8499 }
 0x66a   :  { %8485 = vrot.lane.b32.xlu2 %v8170_v0, %s10845_s1  ;;  %v8275_v53 = vrot.slane %v16701_v30, 4  ;;  %v8142_v18 = vperm.slane %v8134_v47, %v15026_v38  ;;  %v8132_v30 = vsel %vm7499_vm3, %v8131_v52, %v8090_v21  ;;  %v8161_v17 = vrot.slane %v8118_v32, 4 }
 0x66b   :  { %v8319_v12 = vrot.slane %v7497_v24, 4  ;;  %v8322_v2 = vsel %vm7499_vm3, %v7497_v24, %v8321_v10  ;;  %v8168_v31 = vsel %vm7499_vm3, %v8167_v48, %v8130_v59  ;;  %v8166_v9 = vsel %vm7499_vm3, %v16878_v57, %v8165_v62 }
 0x66c   :  { %v8330_v44 = vperm.slane %v8322_v2, %v14673_v16  ;;  %8469 = vrot.lane.b32.xlu1 %v8168_v31, %s10844_s16  ;;  %8453 = vrot.lane.b32.xlu0 %v8166_v9, %s10843_s24  ;;  %v8308_v59 = vsel %vm7499_vm3, %v8307_v26, %v16829_v14  ;;  %v8276_v33 = vsel %vm7499_vm3, %v8275_v53, %v16680_v39  ;;  %v8159_v21 = vrot.slane %v8142_v18, 4 }
 0x66d   :  { %v8320_v23 = vsel %vm7499_vm3, %v8319_v12, %v7493_v41  ;;  %v16908_v41 = vperm.slane %v8132_v30, %v15026_v38  ;;  %v8162_v14 = vsel %vm7499_vm3, %v8142_v18, %v8161_v17  ;;  %v8314_v39 = vperm.slane %v8308_v59, %v14673_v16  ;;  %v8564_v12 = vpop.permute.xlu1 %8563 }
 0x66e   :  { %v8326_v61 = vperm.slane %v8320_v23, %v14673_v16  ;;  %v8548_v54 = vpop.permute.xlu0 %8547  ;;  %v8370_v7 = vsel %vm7499_vm3, %v8330_v44, %v8369_v13  ;;  %v8367_v55 = vrot.slane %v8330_v44, 4  ;;  %v8160_v62 = vsel %vm7499_vm3, %v8159_v21, %v8118_v32 }
 0x66f   :  { %v16905_v3 = vsel %vm291_vm0, %v8276_v33, %v8548_v54  ;;  %v8378_v36 = vperm.slane %v8370_v7, %v15026_v38  ;;  %v8158_v10 = vsel %vm7499_vm3, %v16908_v41, %v8157_v8  ;;  %v8350_v15 = vperm.slane %v16802_v6, %v15026_v38 }
 0x670   :  { %v8355_v58 = vrot.slane %v8326_v61, 4  ;;  %v8368_v4 = vsel %vm7499_vm3, %v8367_v55, %v8318_v1  ;;  %v16927_v16 = vperm.slane %v16808_v37, %v15026_v38  ;;  %v8267_v1 = vrot.slane %v16704_v29, 4 }
 0x671   :  { %v8391_v60 = vrot.slane %v8378_v36, 4  ;;  %v8374_v25 = vperm.slane %v8368_v4, %v15026_v38  ;;  %v8389_v49 = vrot.slane %v8350_v15, 4  ;;  %v8357_v37 = vrot.slane %v8314_v39, 4 }
 0x672   :  { %8437 = vrot.lane.b32.xlu2 %v8162_v14, %s10845_s1  ;;  %v8356_v20 = vsel %vm7499_vm3, %v8355_v58, %v8314_v39  ;;  %v8381_v6 = vrot.slane %v16927_v16, 4  ;;  %v8268_v52 = vsel %vm7499_vm3, %v8267_v1, %v16693_v42  ;;  %v8342_v35 = vperm.slane %v16805_v56, %v15026_v38  ;;  %v17448_v56 = vld [vmem:[#allocation45_spill] sm:$0xff] }
 0x673   :  { %v16933_v46 = vperm.slane %v8356_v20, %v15026_v38  ;;  %v8392_v34 = vsel %vm7499_vm3, %v8391_v60, %v8354_v11  ;;  %v8390_v51 = vsel %vm7499_vm3, %v8374_v25, %v8389_v49  ;;  %v8358_v29 = vsel %vm7499_vm3, %v8326_v61, %v8357_v37 }
 0x674   :  { %8421 = vrot.lane.b32.xlu1 %v8160_v62, %s10844_s16  ;;  %8405 = vrot.lane.b32.xlu0 %v8158_v10, %s10843_s24  ;;  %v8613_v43 = vsel %vm291_vm0, %v8268_v52, %v8500_v27  ;;  %v8393_v24 = vrot.slane %v8354_v11, 4  ;;  %v8366_v0 = vperm.slane %v8358_v29, %v15026_v38  ;;  %v8385_v53 = vrot.slane %v8342_v35, 4 }
 0x675   :  { %v8382_v22 = vsel %vm7499_vm3, %v16933_v46, %v8381_v6  ;;  %v8163_v2 = vrot.slane %v16878_v57, 4  ;;  %v8155_v61 = vrot.slane %v16908_v41, 4  ;;  %v8387_v7 = vrot.slane %v8374_v25, 4 }
 0x676   :  { %v8532_v19 = vpop.permute.xlu0 %8531  ;;  %v8394_v26 = vsel %vm7499_vm3, %v8378_v36, %v8393_v24  ;;  %v8386_v42 = vsel %vm7499_vm3, %v8366_v0, %v8385_v53  ;;  %v8383_v32 = vrot.slane %v8366_v0, 4  ;;  %v8379_v20 = vrot.slane %v16933_v46, 4 }
 0x677   :  { %v8164_v30 = vsel %vm7499_vm3, %v8163_v2, %v16846_v50  ;;  %v8156_v57 = vsel %vm7499_vm3, %v8155_v61, %v16897_v28  ;;  %v8388_v55 = vsel %vm7499_vm3, %v8387_v7, %v8350_v15  ;;  %v8628_v28 = vsel %vm2678_vm1, %v16654_v45, %v16811_v40 }
 0x678   :  { %v8384_v18 = vsel %vm7499_vm3, %v8383_v32, %v8342_v35  ;;  %v8380_v60 = vsel %vm7499_vm3, %v8379_v20, %v16927_v16  ;;  %v8629_v45 = vsel %vm2678_vm1, %v16905_v3, %v8564_v12 }
 0x67a   :  { %8565 = vrot.lane.b32.xlu2 %v8392_v34, %s10844_s16 }
 0x67c   :  { %8549 = vrot.lane.b32.xlu1 %v8390_v51, %s10843_s24  ;;  %8501 = vrot.lane.b32.xlu0 %v8382_v22, %s10843_s24 }
 0x67e   :  { %v8516_v47 = vpop.permute.xlu0 %8515 }
 0x67f   :  { %v8617_v5 = vsel %vm2678_vm1, %v8613_v43, %v8516_v47 }
 0x680   :  { %v8621_v48 = vsel %vm2743_vm2, %v8617_v5, %v8532_v19 }
 0x681   :  { %8645 = vst [vmem:[#allocation3 + $0x50] sm:$0xff] %v8621_v48 }
 0x682   :  { %8581 = vrot.lane.b32.xlu2 %v8394_v26, %s10845_s1 }
 0x684   :  { %8533 = vrot.lane.b32.xlu1 %v8386_v42, %s10845_s1  ;;  %8577 = vrot.lane.b32.xlu0 %v17448_v56, %s10845_s1 }
 0x68c   :  { %8517 = vrot.lane.b32.xlu1 %v8384_v18, %s10844_s16 }
 0x694   :  { %8579 = vrot.lane.b32.xlu1 %v16698_v63, %s10845_s1  ;;  %s8657_s1 = sshll.u32 %s17003_s7, 4  ;;  %s8658_s1 = int_to_ptr.hbm [resolvable:$true] %s8657_s1 }
 0x6c4   :  { %v8486_v38 = vpop.permute.xlu2 %8485 }
 0x6cc   :  { %v8438_v31 = vpop.permute.xlu2 %8437 }
 0x6d4   :  { %v8566_v63 = vpop.permute.xlu2 %8565 }
 0x6dc   :  { %v8582_v8 = vpop.permute.xlu2 %8581 }
 0x6de   :  { %v8470_v9 = vpop.permute.xlu1 %8469  ;;  %v8454_v44 = vpop.permute.xlu0 %8453 }
 0x6df   :  { %v8602_v13 = vsel %vm291_vm0, %v8164_v30, %v8454_v44 }
 0x6e0   :  { %v8606_v23 = vsel %vm2678_vm1, %v8602_v13, %v8470_v9 }
 0x6e1   :  { %v8610_v59 = vsel %vm2743_vm2, %v8606_v23, %v8486_v38 }
 0x6e2   :  { %8648 = vst [vmem:[#allocation3 + $0x68] sm:$0xff] %v8610_v59 }
 0x6e6   :  { %v8422_v54 = vpop.permute.xlu1 %8421  ;;  %v8406_v33 = vpop.permute.xlu0 %8405 }
 0x6e7   :  { %v8590_v17 = vsel %vm291_vm0, %v8156_v57, %v8406_v33 }
 0x6e8   :  { %v8594_v21 = vsel %vm2678_vm1, %v8590_v17, %v8422_v54 }
 0x6e9   :  { %v8598_v50 = vsel %vm2743_vm2, %v8594_v21, %v8438_v31 }
 0x6ea   :  { %8647 = vst [vmem:[#allocation3 + $0x60] sm:$0xff] %v8598_v50 }
 0x6ee   :  { %v8550_v58 = vpop.permute.xlu1 %8549  ;;  %v8502_v14 = vpop.permute.xlu0 %8501 }
 0x6ef   :  { %v8626_v41 = vsel %vm291_vm0, %v8388_v55, %v8550_v58  ;;  %v8614_v15 = vsel %vm291_vm0, %v8380_v60, %v8502_v14 }
 0x6f0   :  { %v8630_v36 = vsel %vm2678_vm1, %v8626_v41, %v8566_v63 }
 0x6f1   :  { %v8634_v39 = vsel %vm2743_vm2, %v8630_v36, %v8582_v8 }
 0x6f2   :  { %8650 = vst [vmem:[#allocation3 + $0x78] sm:$0xff] %v8634_v39 }
 0x6f6   :  { %v8534_v62 = vpop.permute.xlu1 %8533  ;;  %v8578_v10 = vpop.permute.xlu0 %8577 }
 0x6f7   :  { %v8632_v4 = vsel %vm2743_vm2, %v8628_v28, %v8578_v10 }
 0x6f8   :  { %8642 = vst [vmem:[#allocation3 + $0x38] sm:$0xff] %v8632_v4 }
 0x6fe   :  { %v8518_v19 = vpop.permute.xlu1 %8517 }
 0x6ff   :  { %v8618_v11 = vsel %vm2678_vm1, %v8614_v15, %v8518_v19 }
 0x700   :  { %v8622_v25 = vsel %vm2743_vm2, %v8618_v11, %v8534_v62 }
 0x701   :  { %8649 = vst [vmem:[#allocation3 + $0x70] sm:$0xff] %v8622_v25 }
 0x706   :  { %v8580_v40 = vpop.permute.xlu1 %8579 }
 0x707   :  { %v8633_v16 = vsel %vm2743_vm2, %v8629_v45, %v8580_v40 }
 0x708   :  { %8646 = vst [vmem:[#allocation3 + $0x58] sm:$0xff] %v8633_v16 }
 0x709   :  { %8663 = dma.vmem_to_hbm [thread:$0]  %s8656_s20, 2048, %s8658_s1, [#allocation4], %s10849_s21, %s10849_s21, %s10843_s24  }
 0x70a   :  { %10840 = dma.done.wait [#allocation4], 2048  }
 0x70b   :  { %10841 = vsyncadd [#allocation4], 4294965248 }
 0x70c   :  { %8668 = vsyncpa [#allocation4], 1 }

</bundles_post_ra>
